<compile_context>
chip_gen: v6e
topology: v6e:2x2x1
jax: 0.10.0
libtpu: 0.0.40
codegen_flags: <defaults>
</compile_context>

<pallas_src>
import functools
import math

import numpy as np

import jax
import jax.numpy as jnp
from jax.experimental import pallas as pl
from jax.experimental.pallas import tpu as pltpu

LANES = 128


def _round_up(x, m):
    return (x + m - 1) // m * m


def _gelu(x):
    c = math.sqrt(2.0 / math.pi)
    return 0.5 * x * (1.0 + jnp.tanh(c * (x + 0.044715 * x * x * x)))


# ----------------------------- fused kernel ---------------------------------


def _fused_critic_kernel(*refs, meta):
    """Whole ParameterCritic forward for ONE batch element (grid step)."""
    blocks = meta["blocks"]
    nb = len(blocks)
    n_extra = meta["n_extra_dense"]

    it = iter(refs)
    x_ref = next(it)
    blk_refs = []
    for k in range(nb):
        w = next(it)
        b = next(it)
        sel = next(it) if k < nb - 1 else None
        blk_refs.append((w, b, sel))
    wd1_ref = next(it)
    bd1_ref = next(it)
    extra_refs = [(next(it), next(it)) for _ in range(n_extra)]
    wout_ref = next(it)
    bout_ref = next(it)
    o_ref = next(it)
    conv_scr = next(it)
    pad_scr = next(it)

    src = x_ref                      # flattened zero-padded input of the current block
    h = None                         # (1, 128) dense-head activation
    for k, blk in enumerate(blocks):
        S, NQ, L = blk["S"], blk["NQ"], blk["L"]
        w_ref, b_ref, sel_ref = blk_refs[k]

        # --- 3x3 conv (stride 1, pad 1): 9 accumulated MXU matmuls, value accumulation.
        # Row q = h*S + w of `conv`; the two pad columns produce junk rows that are
        # never selected downstream.
        conv = None
        for t in range(9):
            dy, dx = divmod(t, 3)
            lhs = src[pl.ds(dy * S + dx, NQ), :]
            d = jnp.dot(lhs, w_ref[t], preferred_element_type=jnp.float32)
            conv = d if conv is None else conv + d
        conv_scr[pl.ds(0, NQ), :] = conv
        bias = b_ref[...]

        if sel_ref is not None:
            # 2x2 max-pool (column-pair then row-pair max via shifted windows),
            # bias + GELU, then one constant 0/1 selection matmul that subsamples the
            # pooled pixels and scatters them (zero borders included) straight into the
            # next block's flattened padded input.
            pool = jnp.maximum(
                jnp.maximum(conv_scr[pl.ds(0, L), :], conv_scr[pl.ds(1, L), :]),
                jnp.maximum(conv_scr[pl.ds(S, L), :], conv_scr[pl.ds(S + 1, L), :]))
            act = _gelu(pool + bias).astype(jnp.bfloat16)
            nxt = jnp.dot(sel_ref[...], act, preferred_element_type=jnp.float32)
            pad_scr[pl.ds(0, blk["p_next"]), :] = nxt.astype(pad_scr.dtype)
            src = pad_scr
        else:
            # Last block: pool + bias + GELU only at the final pixels; the NCHW
            # (c, h, w) flatten is folded into the packed first dense weight wd1[p].
            for p, q in enumerate(blk["pix"]):
                r = jnp.maximum(
                    jnp.maximum(conv_scr[pl.ds(q, 1), :],
                                conv_scr[pl.ds(q + 1, 1), :]),
                    jnp.maximum(conv_scr[pl.ds(q + S, 1), :],
                                conv_scr[pl.ds(q + S + 1, 1), :]))
                a = _gelu(r + bias).astype(jnp.bfloat16)
                d = jnp.dot(a, wd1_ref[p], preferred_element_type=jnp.float32)
                h = d if h is None else h + d
            h = _gelu(h + bd1_ref[...]).astype(jnp.bfloat16)

    # Remaining hidden dense layers + output layer (all lane-padded to 128).
    for (w_ref, b_ref) in extra_refs:
        z = jnp.dot(h, w_ref[...], preferred_element_type=jnp.float32) + b_ref[...]
        h = _gelu(z).astype(jnp.bfloat16)
    y = jnp.dot(h, wout_ref[...], preferred_element_type=jnp.float32) + bout_ref[...]
    if not meta["wasserstein"]:
        y = jax.nn.sigmoid(y)
    o_ref[...] = y.astype(o_ref.dtype)


# ----------------------------- parameter packing -----------------------------


def prepare_critic_params(conv_params, dense_params, out_params, *,
                          input_hw, in_channels=2, wasserstein=False):
    """Host-side (one-time) packing of weights / biases / selection matrices."""
    H, W = input_hw
    nb = len(conv_params)
    assert nb >= 1 and len(dense_params) >= 1
    arrays = []
    blocks = []
    nq_max, p_max = 0, 0

    Hk, Wk = H, W
    c_last, p_last = None, None
    for k, (w, b) in enumerate(conv_params):
        assert Hk % 2 == 0 and Wk % 2 == 0, "2x2 max-pool requires even spatial dims"
        kh, kw, cin_real, cout = w.shape
        assert (kh, kw) == (3, 3) and cout <= LANES
        kdim = in_channels if k == 0 else LANES
        assert cin_real <= kdim

        wk = np.zeros((9, kdim, LANES), np.float32)
        wk[:, :cin_real, :cout] = np.asarray(w, np.float32).reshape(9, cin_real, cout)
        bk = np.zeros((1, LANES), np.float32)
        bk[0, :cout] = np.asarray(b, np.float32)
        arrays += [jnp.asarray(wk, jnp.bfloat16), jnp.asarray(bk, jnp.float32)]

        S = Wk + 2
        NQ = Hk * S - 2                    # conv rows needed (incl. junk pad columns)
        L = NQ - S - 1                     # rows covered by the pooled windows
        Ho, Wo = Hk // 2, Wk // 2
        blk = dict(S=S, NQ=NQ, L=L, kdim=kdim)
        nq_max = max(nq_max, NQ)

        if k < nb - 1:
            Sn = Wo + 2
            Pn = (Ho + 2) * Sn
            sel = np.zeros((Pn, L), np.float32)
            for i in range(1, Ho + 1):
                for j in range(1, Wo + 1):
                    sel[i * Sn + j, 2 * (i - 1) * S + 2 * (j - 1)] = 1.0
            arrays.append(jnp.asarray(sel, jnp.bfloat16))
            blk["p_next"] = Pn
            p_max = max(p_max, Pn)
        else:
            blk["pix"] = tuple(2 * ho * S + 2 * wo
                               for ho in range((Hk // 2)) for wo in range(Wo))
            c_last, p_last = cout, Ho * Wo
        blocks.append(blk)
        Hk, Wk = Ho, Wo

    # Dense head: first layer packed per final pixel (folds the NCHW flatten).
    w1, b1 = dense_params[0]
    F, n1 = w1.shape
    assert F == c_last * p_last and n1 <= LANES
    w1np = np.asarray(w1, np.float32)
    wd1 = np.zeros((p_last, LANES, LANES), np.float32)
    for p in range(p_last):
        for c in range(c_last):
            wd1[p, c, :n1] = w1np[c * p_last + p, :]
    bd1 = np.zeros((1, LANES), np.float32)
    bd1[0, :n1] = np.asarray(b1, np.float32)
    arrays += [jnp.asarray(wd1, jnp.bfloat16), jnp.asarray(bd1, jnp.float32)]

    n_in = n1
    for (w, b) in list(dense_params[1:]) + [out_params]:
        ni, no = w.shape
        assert ni == n_in and ni <= LANES and no <= LANES
        wp = np.zeros((LANES, LANES), np.float32)
        wp[:ni, :no] = np.asarray(w, np.float32)
        bp = np.zeros((1, LANES), np.float32)
        bp[0, :no] = np.asarray(b, np.float32)
        arrays += [jnp.asarray(wp, jnp.bfloat16), jnp.asarray(bp, jnp.float32)]
        n_in = no

    meta = dict(H=H, W=W, Cin=in_channels, blocks=blocks,
                n_extra_dense=len(dense_params) - 1, p_last=p_last,
                nq_max=nq_max, p_max=p_max, wasserstein=wasserstein)
    return tuple(arrays), meta


# ----------------------------- forward ---------------------------------------


def parameter_critic_forward(x_nchw, arrays, *, meta):
    """Forward pass of ParameterCritic. Input is NCHW like PyTorch; returns (B, 1)."""
    B = x_nchw.shape[0]
    H, W, Cin = meta["H"], meta["W"], meta["Cin"]
    NP1 = (H + 2) * (W + 2)

    # Only wrapper glue: NCHW -> NHWC, zero-pad, flatten rows, cast to bf16.
    xh = jnp.transpose(x_nchw, (0, 2, 3, 1)).astype(jnp.bfloat16)
    xp = jnp.pad(xh, ((0, 0), (1, 1), (1, 1), (0, 0)))
    xflat = xp.reshape(B, NP1, Cin)

    in_specs = [pl.BlockSpec((None, NP1, Cin), lambda b: (b, 0, 0))]
    for a in arrays:
        nd = a.ndim
        in_specs.append(pl.BlockSpec(a.shape, lambda b, _nd=nd: (0,) * _nd))

    nq_rows = _round_up(meta["nq_max"], 8)
    pad_rows = _round_up(max(meta["p_max"], 8), 8)

    # Advisory cost estimate.
    flops = trans = 0
    for blk in meta["blocks"]:
        flops += 18 * blk["NQ"] * blk["kdim"] * LANES
        trans += blk["L"] * LANES
        if "p_next" in blk:
            flops += 2 * blk["p_next"] * blk["L"] * LANES
    flops += 2 * (meta["p_last"] + meta["n_extra_dense"] + 1) * LANES * LANES
    flops *= B
    trans = (trans + 8 * LANES) * B
    nbytes = int(xflat.size) * 2 + B * LANES * 4 \
        + B * sum(int(a.size) * a.dtype.itemsize for a in arrays)

    kernel = functools.partial(_fused_critic_kernel, meta=meta)
    out = pl.pallas_call(
        kernel,
        out_shape=jax.ShapeDtypeStruct((B, 1, LANES), jnp.float32),
        grid=(B,),
        in_specs=in_specs,
        out_specs=pl.BlockSpec((None, 1, LANES), lambda b: (b, 0, 0)),
        scratch_shapes=[pltpu.VMEM((nq_rows, LANES), jnp.float32),
                        pltpu.VMEM((pad_rows, LANES), jnp.bfloat16)],
        compiler_params=pltpu.CompilerParams(
            dimension_semantics=("parallel",),
            vmem_limit_bytes=32 * 1024 * 1024),
        cost_estimate=pl.CostEstimate(flops=int(flops), transcendentals=int(trans),
                                      bytes_accessed=int(nbytes)),
    )(xflat, *arrays)
    return out[:, 0, :1]


# ----------------------------- init / reference ------------------------------


def init_parameter_critic(key, num_channels, num_dense_neurons):
    conv_params = []
    in_ch = 2  # first_layer_channels
    for out_ch in num_channels:
        key, k1, k2 = jax.random.split(key, 3)
        fan_in = 9 * in_ch
        w = jax.random.normal(k1, (3, 3, in_ch, out_ch), jnp.float32) / math.sqrt(fan_in)
        b = 0.01 * jax.random.normal(k2, (out_ch,), jnp.float32)
        conv_params.append((w, b))
        in_ch = out_ch

    dense_params = []
    in_f = 4 * num_channels[-1]
    for n in num_dense_neurons:
        key, k1, k2 = jax.random.split(key, 3)
        w = jax.random.normal(k1, (in_f, n), jnp.float32) / math.sqrt(in_f)
        b = 0.01 * jax.random.normal(k2, (n,), jnp.float32)
        dense_params.append((w, b))
        in_f = n

    key, k1, k2 = jax.random.split(key, 3)
    w_out = jax.random.normal(k1, (in_f, 1), jnp.float32) / math.sqrt(in_f)
    b_out = 0.01 * jax.random.normal(k2, (1,), jnp.float32)
    return conv_params, dense_params, (w_out, b_out)


def _reference_forward(x_nchw, conv_params, dense_params, out_params, wasserstein):
    x = jnp.transpose(x_nchw, (0, 2, 3, 1))
    for (w, b) in conv_params:
        y = jax.lax.conv_general_dilated(
            x, w, window_strides=(1, 1), padding=((1, 1), (1, 1)),
            dimension_numbers=("NHWC", "HWIO", "NHWC"),
            precision=jax.lax.Precision.HIGHEST) + b
        y = jax.lax.reduce_window(y, -jnp.inf, jax.lax.max,
                                  (1, 2, 2, 1), (1, 2, 2, 1), "VALID")
        x = _gelu(y)
    B = x.shape[0]
    x = jnp.transpose(x, (0, 3, 1, 2)).reshape(B, -1)   # NCHW flatten order
    for (w, b) in dense_params:
        x = _gelu(x @ w + b)
    y = x @ out_params[0] + out_params[1]
    return y if wasserstein else jax.nn.sigmoid(y)


# ----------------------------- main -------------------------------------------

if __name__ == "__main__":
    key = jax.random.PRNGKey(0)
    num_channels = [4, 8, 16]        # 3 downsample blocks: 16 -> 8 -> 4 -> 2 spatial
    num_dense_neurons = [32, 16]
    B, H, W = 2, 16, 16

    key, kx = jax.random.split(key)
    x = jax.random.normal(kx, (B, 2, H, W), jnp.float32)  # NCHW, 2 input channels

    conv_p, dense_p, out_p = init_parameter_critic(key, num_channels, num_dense_neurons)
    arrays, meta = prepare_critic_params(conv_p, dense_p, out_p,
                                         input_hw=(H, W), in_channels=2,
                                         wasserstein=False)

    fwd = jax.jit(functools.partial(parameter_critic_forward, meta=meta))
    y = jax.block_until_ready(fwd(x, arrays))

    y_ref = _reference_forward(x, conv_p, dense_p, out_p, wasserstein=False)
    err = float(jnp.max(jnp.abs(y - y_ref)))

    assert y.shape == (B, 1)
    assert bool(jnp.all(jnp.isfinite(y)))
    assert bool(jnp.all((y >= 0.0) & (y <= 1.0)))          # sigmoid output
    assert err < 6e-2, f"mismatch vs reference: {err}"     # bf16 operands vs f32 reference
    print("KERNEL_OK")
</pallas_src>

<mosaic_0001>
module attributes {stable_mosaic.version = 11 : i64} {
  func.func @_fused_critic_kernel(%arg0: i32, %arg1: memref<1x324x2xbf16, #tpu.memory_space<vmem>>, %arg2: memref<9x2x128xbf16, #tpu.memory_space<vmem>>, %arg3: memref<1x128xf32, #tpu.memory_space<vmem>>, %arg4: memref<100x267xbf16, #tpu.memory_space<vmem>>, %arg5: memref<9x128x128xbf16, #tpu.memory_space<vmem>>, %arg6: memref<1x128xf32, #tpu.memory_space<vmem>>, %arg7: memref<36x67xbf16, #tpu.memory_space<vmem>>, %arg8: memref<9x128x128xbf16, #tpu.memory_space<vmem>>, %arg9: memref<1x128xf32, #tpu.memory_space<vmem>>, %arg10: memref<4x128x128xbf16, #tpu.memory_space<vmem>>, %arg11: memref<1x128xf32, #tpu.memory_space<vmem>>, %arg12: memref<128x128xbf16, #tpu.memory_space<vmem>>, %arg13: memref<1x128xf32, #tpu.memory_space<vmem>>, %arg14: memref<128x128xbf16, #tpu.memory_space<vmem>>, %arg15: memref<1x128xf32, #tpu.memory_space<vmem>>, %arg16: memref<1x1x128xf32, #tpu.memory_space<vmem>>, %arg17: memref<288x128xf32, #tpu.memory_space<vmem>>, %arg18: memref<104x128xbf16, #tpu.memory_space<vmem>>) attributes {dimension_semantics = [#tpu.dimension_semantics<parallel>], iteration_bounds = array<i64: 2>, scalar_prefetch = 0 : i64, scratch_operands = 2 : i64, tpu.core_type = #tpu.core_type<tc>, window_params = [{transform_indices = @transform_0, window_bounds = array<i64: 1, 324, 2>}, {pipeline_mode = #tpu.pipeline_mode<synchronous>, transform_indices = @transform_1, window_bounds = array<i64: 9, 2, 128>}, {pipeline_mode = #tpu.pipeline_mode<synchronous>, transform_indices = @transform_2, window_bounds = array<i64: 1, 128>}, {pipeline_mode = #tpu.pipeline_mode<synchronous>, transform_indices = @transform_3, window_bounds = array<i64: 100, 267>}, {pipeline_mode = #tpu.pipeline_mode<synchronous>, transform_indices = @transform_4, window_bounds = array<i64: 9, 128, 128>}, {pipeline_mode = #tpu.pipeline_mode<synchronous>, transform_indices = @transform_5, window_bounds = array<i64: 1, 128>}, {pipeline_mode = #tpu.pipeline_mode<synchronous>, transform_indices = @transform_6, window_bounds = array<i64: 36, 67>}, {pipeline_mode = #tpu.pipeline_mode<synchronous>, transform_indices = @transform_7, window_bounds = array<i64: 9, 128, 128>}, {pipeline_mode = #tpu.pipeline_mode<synchronous>, transform_indices = @transform_8, window_bounds = array<i64: 1, 128>}, {pipeline_mode = #tpu.pipeline_mode<synchronous>, transform_indices = @transform_9, window_bounds = array<i64: 4, 128, 128>}, {pipeline_mode = #tpu.pipeline_mode<synchronous>, transform_indices = @transform_10, window_bounds = array<i64: 1, 128>}, {pipeline_mode = #tpu.pipeline_mode<synchronous>, transform_indices = @transform_11, window_bounds = array<i64: 128, 128>}, {pipeline_mode = #tpu.pipeline_mode<synchronous>, transform_indices = @transform_12, window_bounds = array<i64: 1, 128>}, {pipeline_mode = #tpu.pipeline_mode<synchronous>, transform_indices = @transform_13, window_bounds = array<i64: 128, 128>}, {pipeline_mode = #tpu.pipeline_mode<synchronous>, transform_indices = @transform_14, window_bounds = array<i64: 1, 128>}, {transform_indices = @transform_15, window_bounds = array<i64: 1, 1, 128>}]} {
    %c0 = arith.constant 0 : index
    %c0_0 = arith.constant 0 : index
    %c0_1 = arith.constant 0 : index
    %0 = vector.load %arg1[%c0, %c0_0, %c0_1] : memref<1x324x2xbf16, #tpu.memory_space<vmem>>, vector<1x286x2xbf16>
    %1 = vector.shape_cast %0 : vector<1x286x2xbf16> to vector<286x2xbf16>
    %c0_2 = arith.constant 0 : index
    %c0_3 = arith.constant 0 : index
    %c0_4 = arith.constant 0 : index
    %2 = vector.load %arg2[%c0_2, %c0_3, %c0_4] : memref<9x2x128xbf16, #tpu.memory_space<vmem>>, vector<1x2x128xbf16>
    %3 = vector.shape_cast %2 : vector<1x2x128xbf16> to vector<2x128xbf16>
    %cst = arith.constant dense<0.000000e+00> : vector<286x128xf32>
    %4 = tpu.matmul %1, %3, %cst {dimension_numbers = #tpu.dot_dimension_numbers<[1], [0], [0], [1], [0, 0, 1, 1], [], []>} : vector<286x2xbf16>, vector<2x128xbf16>, vector<286x128xf32> -> vector<286x128xf32>
    %c0_5 = arith.constant 0 : index
    %c1 = arith.constant 1 : index
    %c0_6 = arith.constant 0 : index
    %5 = vector.load %arg1[%c0_5, %c1, %c0_6] : memref<1x324x2xbf16, #tpu.memory_space<vmem>>, vector<1x286x2xbf16>
    %6 = vector.shape_cast %5 : vector<1x286x2xbf16> to vector<286x2xbf16>
    %c1_7 = arith.constant 1 : index
    %c0_8 = arith.constant 0 : index
    %c0_9 = arith.constant 0 : index
    %7 = vector.load %arg2[%c1_7, %c0_8, %c0_9] : memref<9x2x128xbf16, #tpu.memory_space<vmem>>, vector<1x2x128xbf16>
    %8 = vector.shape_cast %7 : vector<1x2x128xbf16> to vector<2x128xbf16>
    %cst_10 = arith.constant dense<0.000000e+00> : vector<286x128xf32>
    %9 = tpu.matmul %6, %8, %cst_10 {dimension_numbers = #tpu.dot_dimension_numbers<[1], [0], [0], [1], [0, 0, 1, 1], [], []>} : vector<286x2xbf16>, vector<2x128xbf16>, vector<286x128xf32> -> vector<286x128xf32>
    %10 = arith.addf %4, %9 : vector<286x128xf32>
    %c0_11 = arith.constant 0 : index
    %c2 = arith.constant 2 : index
    %c0_12 = arith.constant 0 : index
    %11 = vector.load %arg1[%c0_11, %c2, %c0_12] : memref<1x324x2xbf16, #tpu.memory_space<vmem>>, vector<1x286x2xbf16>
    %12 = vector.shape_cast %11 : vector<1x286x2xbf16> to vector<286x2xbf16>
    %c2_13 = arith.constant 2 : index
    %c0_14 = arith.constant 0 : index
    %c0_15 = arith.constant 0 : index
    %13 = vector.load %arg2[%c2_13, %c0_14, %c0_15] : memref<9x2x128xbf16, #tpu.memory_space<vmem>>, vector<1x2x128xbf16>
    %14 = vector.shape_cast %13 : vector<1x2x128xbf16> to vector<2x128xbf16>
    %cst_16 = arith.constant dense<0.000000e+00> : vector<286x128xf32>
    %15 = tpu.matmul %12, %14, %cst_16 {dimension_numbers = #tpu.dot_dimension_numbers<[1], [0], [0], [1], [0, 0, 1, 1], [], []>} : vector<286x2xbf16>, vector<2x128xbf16>, vector<286x128xf32> -> vector<286x128xf32>
    %16 = arith.addf %10, %15 : vector<286x128xf32>
    %c0_17 = arith.constant 0 : index
    %c18 = arith.constant 18 : index
    %c0_18 = arith.constant 0 : index
    %17 = vector.load %arg1[%c0_17, %c18, %c0_18] : memref<1x324x2xbf16, #tpu.memory_space<vmem>>, vector<1x286x2xbf16>
    %18 = vector.shape_cast %17 : vector<1x286x2xbf16> to vector<286x2xbf16>
    %c3 = arith.constant 3 : index
    %c0_19 = arith.constant 0 : index
    %c0_20 = arith.constant 0 : index
    %19 = vector.load %arg2[%c3, %c0_19, %c0_20] : memref<9x2x128xbf16, #tpu.memory_space<vmem>>, vector<1x2x128xbf16>
    %20 = vector.shape_cast %19 : vector<1x2x128xbf16> to vector<2x128xbf16>
    %cst_21 = arith.constant dense<0.000000e+00> : vector<286x128xf32>
    %21 = tpu.matmul %18, %20, %cst_21 {dimension_numbers = #tpu.dot_dimension_numbers<[1], [0], [0], [1], [0, 0, 1, 1], [], []>} : vector<286x2xbf16>, vector<2x128xbf16>, vector<286x128xf32> -> vector<286x128xf32>
    %22 = arith.addf %16, %21 : vector<286x128xf32>
    %c0_22 = arith.constant 0 : index
    %c19 = arith.constant 19 : index
    %c0_23 = arith.constant 0 : index
    %23 = vector.load %arg1[%c0_22, %c19, %c0_23] : memref<1x324x2xbf16, #tpu.memory_space<vmem>>, vector<1x286x2xbf16>
    %24 = vector.shape_cast %23 : vector<1x286x2xbf16> to vector<286x2xbf16>
    %c4 = arith.constant 4 : index
    %c0_24 = arith.constant 0 : index
    %c0_25 = arith.constant 0 : index
    %25 = vector.load %arg2[%c4, %c0_24, %c0_25] : memref<9x2x128xbf16, #tpu.memory_space<vmem>>, vector<1x2x128xbf16>
    %26 = vector.shape_cast %25 : vector<1x2x128xbf16> to vector<2x128xbf16>
    %cst_26 = arith.constant dense<0.000000e+00> : vector<286x128xf32>
    %27 = tpu.matmul %24, %26, %cst_26 {dimension_numbers = #tpu.dot_dimension_numbers<[1], [0], [0], [1], [0, 0, 1, 1], [], []>} : vector<286x2xbf16>, vector<2x128xbf16>, vector<286x128xf32> -> vector<286x128xf32>
    %28 = arith.addf %22, %27 : vector<286x128xf32>
    %c0_27 = arith.constant 0 : index
    %c20 = arith.constant 20 : index
    %c0_28 = arith.constant 0 : index
    %29 = vector.load %arg1[%c0_27, %c20, %c0_28] : memref<1x324x2xbf16, #tpu.memory_space<vmem>>, vector<1x286x2xbf16>
    %30 = vector.shape_cast %29 : vector<1x286x2xbf16> to vector<286x2xbf16>
    %c5 = arith.constant 5 : index
    %c0_29 = arith.constant 0 : index
    %c0_30 = arith.constant 0 : index
    %31 = vector.load %arg2[%c5, %c0_29, %c0_30] : memref<9x2x128xbf16, #tpu.memory_space<vmem>>, vector<1x2x128xbf16>
    %32 = vector.shape_cast %31 : vector<1x2x128xbf16> to vector<2x128xbf16>
    %cst_31 = arith.constant dense<0.000000e+00> : vector<286x128xf32>
    %33 = tpu.matmul %30, %32, %cst_31 {dimension_numbers = #tpu.dot_dimension_numbers<[1], [0], [0], [1], [0, 0, 1, 1], [], []>} : vector<286x2xbf16>, vector<2x128xbf16>, vector<286x128xf32> -> vector<286x128xf32>
    %34 = arith.addf %28, %33 : vector<286x128xf32>
    %c0_32 = arith.constant 0 : index
    %c36 = arith.constant 36 : index
    %c0_33 = arith.constant 0 : index
    %35 = vector.load %arg1[%c0_32, %c36, %c0_33] : memref<1x324x2xbf16, #tpu.memory_space<vmem>>, vector<1x286x2xbf16>
    %36 = vector.shape_cast %35 : vector<1x286x2xbf16> to vector<286x2xbf16>
    %c6 = arith.constant 6 : index
    %c0_34 = arith.constant 0 : index
    %c0_35 = arith.constant 0 : index
    %37 = vector.load %arg2[%c6, %c0_34, %c0_35] : memref<9x2x128xbf16, #tpu.memory_space<vmem>>, vector<1x2x128xbf16>
    %38 = vector.shape_cast %37 : vector<1x2x128xbf16> to vector<2x128xbf16>
    %cst_36 = arith.constant dense<0.000000e+00> : vector<286x128xf32>
    %39 = tpu.matmul %36, %38, %cst_36 {dimension_numbers = #tpu.dot_dimension_numbers<[1], [0], [0], [1], [0, 0, 1, 1], [], []>} : vector<286x2xbf16>, vector<2x128xbf16>, vector<286x128xf32> -> vector<286x128xf32>
    %40 = arith.addf %34, %39 : vector<286x128xf32>
    %c0_37 = arith.constant 0 : index
    %c37 = arith.constant 37 : index
    %c0_38 = arith.constant 0 : index
    %41 = vector.load %arg1[%c0_37, %c37, %c0_38] : memref<1x324x2xbf16, #tpu.memory_space<vmem>>, vector<1x286x2xbf16>
    %42 = vector.shape_cast %41 : vector<1x286x2xbf16> to vector<286x2xbf16>
    %c7 = arith.constant 7 : index
    %c0_39 = arith.constant 0 : index
    %c0_40 = arith.constant 0 : index
    %43 = vector.load %arg2[%c7, %c0_39, %c0_40] : memref<9x2x128xbf16, #tpu.memory_space<vmem>>, vector<1x2x128xbf16>
    %44 = vector.shape_cast %43 : vector<1x2x128xbf16> to vector<2x128xbf16>
    %cst_41 = arith.constant dense<0.000000e+00> : vector<286x128xf32>
    %45 = tpu.matmul %42, %44, %cst_41 {dimension_numbers = #tpu.dot_dimension_numbers<[1], [0], [0], [1], [0, 0, 1, 1], [], []>} : vector<286x2xbf16>, vector<2x128xbf16>, vector<286x128xf32> -> vector<286x128xf32>
    %46 = arith.addf %40, %45 : vector<286x128xf32>
    %c0_42 = arith.constant 0 : index
    %c38 = arith.constant 38 : index
    %c0_43 = arith.constant 0 : index
    %47 = vector.load %arg1[%c0_42, %c38, %c0_43] : memref<1x324x2xbf16, #tpu.memory_space<vmem>>, vector<1x286x2xbf16>
    %48 = vector.shape_cast %47 : vector<1x286x2xbf16> to vector<286x2xbf16>
    %c8 = arith.constant 8 : index
    %c0_44 = arith.constant 0 : index
    %c0_45 = arith.constant 0 : index
    %49 = vector.load %arg2[%c8, %c0_44, %c0_45] : memref<9x2x128xbf16, #tpu.memory_space<vmem>>, vector<1x2x128xbf16>
    %50 = vector.shape_cast %49 : vector<1x2x128xbf16> to vector<2x128xbf16>
    %cst_46 = arith.constant dense<0.000000e+00> : vector<286x128xf32>
    %51 = tpu.matmul %48, %50, %cst_46 {dimension_numbers = #tpu.dot_dimension_numbers<[1], [0], [0], [1], [0, 0, 1, 1], [], []>} : vector<286x2xbf16>, vector<2x128xbf16>, vector<286x128xf32> -> vector<286x128xf32>
    %52 = arith.addf %46, %51 : vector<286x128xf32>
    %c0_47 = arith.constant 0 : index
    %c0_48 = arith.constant 0 : index
    %53 = vector.load %arg17[%c0_47, %c0_48] : memref<288x128xf32, #tpu.memory_space<vmem>>, vector<286x128xf32>
    tpu.vector_store %arg17[%c0_47, %c0_48], %52 {strides = array<i32>} : memref<288x128xf32, #tpu.memory_space<vmem>>, vector<286x128xf32>,
    %c0_49 = arith.constant 0 : index
    %c0_50 = arith.constant 0 : index
    %54 = vector.load %arg3[%c0_49, %c0_50] : memref<1x128xf32, #tpu.memory_space<vmem>>, vector<1x128xf32>
    %c0_51 = arith.constant 0 : index
    %c0_52 = arith.constant 0 : index
    %55 = vector.load %arg17[%c0_51, %c0_52] : memref<288x128xf32, #tpu.memory_space<vmem>>, vector<267x128xf32>
    %c1_53 = arith.constant 1 : index
    %c0_54 = arith.constant 0 : index
    %56 = vector.load %arg17[%c1_53, %c0_54] : memref<288x128xf32, #tpu.memory_space<vmem>>, vector<267x128xf32>
    %57 = arith.maximumf %55, %56 : vector<267x128xf32>
    %c18_55 = arith.constant 18 : index
    %c0_56 = arith.constant 0 : index
    %58 = vector.load %arg17[%c18_55, %c0_56] : memref<288x128xf32, #tpu.memory_space<vmem>>, vector<267x128xf32>
    %c19_57 = arith.constant 19 : index
    %c0_58 = arith.constant 0 : index
    %59 = vector.load %arg17[%c19_57, %c0_58] : memref<288x128xf32, #tpu.memory_space<vmem>>, vector<267x128xf32>
    %60 = arith.maximumf %58, %59 : vector<267x128xf32>
    %61 = arith.maximumf %57, %60 : vector<267x128xf32>
    %62 = vector.broadcast %54 : vector<1x128xf32> to vector<267x128xf32>
    %63 = arith.addf %61, %62 : vector<267x128xf32>
    %cst_59 = arith.constant 5.000000e-01 : f32
    %64 = vector.broadcast %cst_59 : f32 to vector<267x128xf32>
    %65 = arith.mulf %64, %63 : vector<267x128xf32>
    %cst_60 = arith.constant 4.471500e-02 : f32
    %66 = vector.broadcast %cst_60 : f32 to vector<267x128xf32>
    %67 = arith.mulf %66, %63 : vector<267x128xf32>
    %68 = arith.mulf %67, %63 : vector<267x128xf32>
    %69 = arith.mulf %68, %63 : vector<267x128xf32>
    %70 = arith.addf %63, %69 : vector<267x128xf32>
    %cst_61 = arith.constant 0.797884583 : f32
    %71 = vector.broadcast %cst_61 : f32 to vector<267x128xf32>
    %72 = arith.mulf %71, %70 : vector<267x128xf32>
    %73 = math.tanh %72 : vector<267x128xf32>
    %cst_62 = arith.constant 1.000000e+00 : f32
    %74 = vector.broadcast %cst_62 : f32 to vector<267x128xf32>
    %75 = arith.addf %74, %73 : vector<267x128xf32>
    %76 = arith.mulf %65, %75 : vector<267x128xf32>
    %77 = arith.truncf %76 : vector<267x128xf32> to vector<267x128xbf16>
    %c0_63 = arith.constant 0 : index
    %c0_64 = arith.constant 0 : index
    %78 = vector.load %arg4[%c0_63, %c0_64] : memref<100x267xbf16, #tpu.memory_space<vmem>>, vector<100x267xbf16>
    %cst_65 = arith.constant dense<0.000000e+00> : vector<100x128xf32>
    %79 = tpu.matmul %78, %77, %cst_65 {dimension_numbers = #tpu.dot_dimension_numbers<[1], [0], [0], [1], [0, 0, 1, 1], [], []>} : vector<100x267xbf16>, vector<267x128xbf16>, vector<100x128xf32> -> vector<100x128xf32>
    %80 = arith.truncf %79 : vector<100x128xf32> to vector<100x128xbf16>
    %c0_66 = arith.constant 0 : index
    %c0_67 = arith.constant 0 : index
    %81 = vector.load %arg18[%c0_66, %c0_67] : memref<104x128xbf16, #tpu.memory_space<vmem>>, vector<100x128xbf16>
    tpu.vector_store %arg18[%c0_66, %c0_67], %80 {strides = array<i32>} : memref<104x128xbf16, #tpu.memory_space<vmem>>, vector<100x128xbf16>,
    %c0_68 = arith.constant 0 : index
    %c0_69 = arith.constant 0 : index
    %82 = vector.load %arg18[%c0_68, %c0_69] : memref<104x128xbf16, #tpu.memory_space<vmem>>, vector<78x128xbf16>
    %c0_70 = arith.constant 0 : index
    %c0_71 = arith.constant 0 : index
    %c0_72 = arith.constant 0 : index
    %83 = vector.load %arg5[%c0_70, %c0_71, %c0_72] : memref<9x128x128xbf16, #tpu.memory_space<vmem>>, vector<1x128x128xbf16>
    %84 = vector.shape_cast %83 : vector<1x128x128xbf16> to vector<128x128xbf16>
    %cst_73 = arith.constant dense<0.000000e+00> : vector<78x128xf32>
    %85 = tpu.matmul %82, %84, %cst_73 {dimension_numbers = #tpu.dot_dimension_numbers<[1], [0], [0], [1], [0, 0, 1, 1], [], []>} : vector<78x128xbf16>, vector<128x128xbf16>, vector<78x128xf32> -> vector<78x128xf32>
    %c1_74 = arith.constant 1 : index
    %c0_75 = arith.constant 0 : index
    %86 = vector.load %arg18[%c1_74, %c0_75] : memref<104x128xbf16, #tpu.memory_space<vmem>>, vector<78x128xbf16>
    %c1_76 = arith.constant 1 : index
    %c0_77 = arith.constant 0 : index
    %c0_78 = arith.constant 0 : index
    %87 = vector.load %arg5[%c1_76, %c0_77, %c0_78] : memref<9x128x128xbf16, #tpu.memory_space<vmem>>, vector<1x128x128xbf16>
    %88 = vector.shape_cast %87 : vector<1x128x128xbf16> to vector<128x128xbf16>
    %cst_79 = arith.constant dense<0.000000e+00> : vector<78x128xf32>
    %89 = tpu.matmul %86, %88, %cst_79 {dimension_numbers = #tpu.dot_dimension_numbers<[1], [0], [0], [1], [0, 0, 1, 1], [], []>} : vector<78x128xbf16>, vector<128x128xbf16>, vector<78x128xf32> -> vector<78x128xf32>
    %90 = arith.addf %85, %89 : vector<78x128xf32>
    %c2_80 = arith.constant 2 : index
    %c0_81 = arith.constant 0 : index
    %91 = vector.load %arg18[%c2_80, %c0_81] : memref<104x128xbf16, #tpu.memory_space<vmem>>, vector<78x128xbf16>
    %c2_82 = arith.constant 2 : index
    %c0_83 = arith.constant 0 : index
    %c0_84 = arith.constant 0 : index
    %92 = vector.load %arg5[%c2_82, %c0_83, %c0_84] : memref<9x128x128xbf16, #tpu.memory_space<vmem>>, vector<1x128x128xbf16>
    %93 = vector.shape_cast %92 : vector<1x128x128xbf16> to vector<128x128xbf16>
    %cst_85 = arith.constant dense<0.000000e+00> : vector<78x128xf32>
    %94 = tpu.matmul %91, %93, %cst_85 {dimension_numbers = #tpu.dot_dimension_numbers<[1], [0], [0], [1], [0, 0, 1, 1], [], []>} : vector<78x128xbf16>, vector<128x128xbf16>, vector<78x128xf32> -> vector<78x128xf32>
    %95 = arith.addf %90, %94 : vector<78x128xf32>
    %c10 = arith.constant 10 : index
    %c0_86 = arith.constant 0 : index
    %96 = vector.load %arg18[%c10, %c0_86] : memref<104x128xbf16, #tpu.memory_space<vmem>>, vector<78x128xbf16>
    %c3_87 = arith.constant 3 : index
    %c0_88 = arith.constant 0 : index
    %c0_89 = arith.constant 0 : index
    %97 = vector.load %arg5[%c3_87, %c0_88, %c0_89] : memref<9x128x128xbf16, #tpu.memory_space<vmem>>, vector<1x128x128xbf16>
    %98 = vector.shape_cast %97 : vector<1x128x128xbf16> to vector<128x128xbf16>
    %cst_90 = arith.constant dense<0.000000e+00> : vector<78x128xf32>
    %99 = tpu.matmul %96, %98, %cst_90 {dimension_numbers = #tpu.dot_dimension_numbers<[1], [0], [0], [1], [0, 0, 1, 1], [], []>} : vector<78x128xbf16>, vector<128x128xbf16>, vector<78x128xf32> -> vector<78x128xf32>
    %100 = arith.addf %95, %99 : vector<78x128xf32>
    %c11 = arith.constant 11 : index
    %c0_91 = arith.constant 0 : index
    %101 = vector.load %arg18[%c11, %c0_91] : memref<104x128xbf16, #tpu.memory_space<vmem>>, vector<78x128xbf16>
    %c4_92 = arith.constant 4 : index
    %c0_93 = arith.constant 0 : index
    %c0_94 = arith.constant 0 : index
    %102 = vector.load %arg5[%c4_92, %c0_93, %c0_94] : memref<9x128x128xbf16, #tpu.memory_space<vmem>>, vector<1x128x128xbf16>
    %103 = vector.shape_cast %102 : vector<1x128x128xbf16> to vector<128x128xbf16>
    %cst_95 = arith.constant dense<0.000000e+00> : vector<78x128xf32>
    %104 = tpu.matmul %101, %103, %cst_95 {dimension_numbers = #tpu.dot_dimension_numbers<[1], [0], [0], [1], [0, 0, 1, 1], [], []>} : vector<78x128xbf16>, vector<128x128xbf16>, vector<78x128xf32> -> vector<78x128xf32>
    %105 = arith.addf %100, %104 : vector<78x128xf32>
    %c12 = arith.constant 12 : index
    %c0_96 = arith.constant 0 : index
    %106 = vector.load %arg18[%c12, %c0_96] : memref<104x128xbf16, #tpu.memory_space<vmem>>, vector<78x128xbf16>
    %c5_97 = arith.constant 5 : index
    %c0_98 = arith.constant 0 : index
    %c0_99 = arith.constant 0 : index
    %107 = vector.load %arg5[%c5_97, %c0_98, %c0_99] : memref<9x128x128xbf16, #tpu.memory_space<vmem>>, vector<1x128x128xbf16>
    %108 = vector.shape_cast %107 : vector<1x128x128xbf16> to vector<128x128xbf16>
    %cst_100 = arith.constant dense<0.000000e+00> : vector<78x128xf32>
    %109 = tpu.matmul %106, %108, %cst_100 {dimension_numbers = #tpu.dot_dimension_numbers<[1], [0], [0], [1], [0, 0, 1, 1], [], []>} : vector<78x128xbf16>, vector<128x128xbf16>, vector<78x128xf32> -> vector<78x128xf32>
    %110 = arith.addf %105, %109 : vector<78x128xf32>
    %c20_101 = arith.constant 20 : index
    %c0_102 = arith.constant 0 : index
    %111 = vector.load %arg18[%c20_101, %c0_102] : memref<104x128xbf16, #tpu.memory_space<vmem>>, vector<78x128xbf16>
    %c6_103 = arith.constant 6 : index
    %c0_104 = arith.constant 0 : index
    %c0_105 = arith.constant 0 : index
    %112 = vector.load %arg5[%c6_103, %c0_104, %c0_105] : memref<9x128x128xbf16, #tpu.memory_space<vmem>>, vector<1x128x128xbf16>
    %113 = vector.shape_cast %112 : vector<1x128x128xbf16> to vector<128x128xbf16>
    %cst_106 = arith.constant dense<0.000000e+00> : vector<78x128xf32>
    %114 = tpu.matmul %111, %113, %cst_106 {dimension_numbers = #tpu.dot_dimension_numbers<[1], [0], [0], [1], [0, 0, 1, 1], [], []>} : vector<78x128xbf16>, vector<128x128xbf16>, vector<78x128xf32> -> vector<78x128xf32>
    %115 = arith.addf %110, %114 : vector<78x128xf32>
    %c21 = arith.constant 21 : index
    %c0_107 = arith.constant 0 : index
    %116 = vector.load %arg18[%c21, %c0_107] : memref<104x128xbf16, #tpu.memory_space<vmem>>, vector<78x128xbf16>
    %c7_108 = arith.constant 7 : index
    %c0_109 = arith.constant 0 : index
    %c0_110 = arith.constant 0 : index
    %117 = vector.load %arg5[%c7_108, %c0_109, %c0_110] : memref<9x128x128xbf16, #tpu.memory_space<vmem>>, vector<1x128x128xbf16>
    %118 = vector.shape_cast %117 : vector<1x128x128xbf16> to vector<128x128xbf16>
    %cst_111 = arith.constant dense<0.000000e+00> : vector<78x128xf32>
    %119 = tpu.matmul %116, %118, %cst_111 {dimension_numbers = #tpu.dot_dimension_numbers<[1], [0], [0], [1], [0, 0, 1, 1], [], []>} : vector<78x128xbf16>, vector<128x128xbf16>, vector<78x128xf32> -> vector<78x128xf32>
    %120 = arith.addf %115, %119 : vector<78x128xf32>
    %c22 = arith.constant 22 : index
    %c0_112 = arith.constant 0 : index
    %121 = vector.load %arg18[%c22, %c0_112] : memref<104x128xbf16, #tpu.memory_space<vmem>>, vector<78x128xbf16>
    %c8_113 = arith.constant 8 : index
    %c0_114 = arith.constant 0 : index
    %c0_115 = arith.constant 0 : index
    %122 = vector.load %arg5[%c8_113, %c0_114, %c0_115] : memref<9x128x128xbf16, #tpu.memory_space<vmem>>, vector<1x128x128xbf16>
    %123 = vector.shape_cast %122 : vector<1x128x128xbf16> to vector<128x128xbf16>
    %cst_116 = arith.constant dense<0.000000e+00> : vector<78x128xf32>
    %124 = tpu.matmul %121, %123, %cst_116 {dimension_numbers = #tpu.dot_dimension_numbers<[1], [0], [0], [1], [0, 0, 1, 1], [], []>} : vector<78x128xbf16>, vector<128x128xbf16>, vector<78x128xf32> -> vector<78x128xf32>
    %125 = arith.addf %120, %124 : vector<78x128xf32>
    %c0_117 = arith.constant 0 : index
    %c0_118 = arith.constant 0 : index
    %126 = vector.load %arg17[%c0_117, %c0_118] : memref<288x128xf32, #tpu.memory_space<vmem>>, vector<78x128xf32>
    tpu.vector_store %arg17[%c0_117, %c0_118], %125 {strides = array<i32>} : memref<288x128xf32, #tpu.memory_space<vmem>>, vector<78x128xf32>,
    %c0_119 = arith.constant 0 : index
    %c0_120 = arith.constant 0 : index
    %127 = vector.load %arg6[%c0_119, %c0_120] : memref<1x128xf32, #tpu.memory_space<vmem>>, vector<1x128xf32>
    %c0_121 = arith.constant 0 : index
    %c0_122 = arith.constant 0 : index
    %128 = vector.load %arg17[%c0_121, %c0_122] : memref<288x128xf32, #tpu.memory_space<vmem>>, vector<67x128xf32>
    %c1_123 = arith.constant 1 : index
    %c0_124 = arith.constant 0 : index
    %129 = vector.load %arg17[%c1_123, %c0_124] : memref<288x128xf32, #tpu.memory_space<vmem>>, vector<67x128xf32>
    %130 = arith.maximumf %128, %129 : vector<67x128xf32>
    %c10_125 = arith.constant 10 : index
    %c0_126 = arith.constant 0 : index
    %131 = vector.load %arg17[%c10_125, %c0_126] : memref<288x128xf32, #tpu.memory_space<vmem>>, vector<67x128xf32>
    %c11_127 = arith.constant 11 : index
    %c0_128 = arith.constant 0 : index
    %132 = vector.load %arg17[%c11_127, %c0_128] : memref<288x128xf32, #tpu.memory_space<vmem>>, vector<67x128xf32>
    %133 = arith.maximumf %131, %132 : vector<67x128xf32>
    %134 = arith.maximumf %130, %133 : vector<67x128xf32>
    %135 = vector.broadcast %127 : vector<1x128xf32> to vector<67x128xf32>
    %136 = arith.addf %134, %135 : vector<67x128xf32>
    %cst_129 = arith.constant 5.000000e-01 : f32
    %137 = vector.broadcast %cst_129 : f32 to vector<67x128xf32>
    %138 = arith.mulf %137, %136 : vector<67x128xf32>
    %cst_130 = arith.constant 4.471500e-02 : f32
    %139 = vector.broadcast %cst_130 : f32 to vector<67x128xf32>
    %140 = arith.mulf %139, %136 : vector<67x128xf32>
    %141 = arith.mulf %140, %136 : vector<67x128xf32>
    %142 = arith.mulf %141, %136 : vector<67x128xf32>
    %143 = arith.addf %136, %142 : vector<67x128xf32>
    %cst_131 = arith.constant 0.797884583 : f32
    %144 = vector.broadcast %cst_131 : f32 to vector<67x128xf32>
    %145 = arith.mulf %144, %143 : vector<67x128xf32>
    %146 = math.tanh %145 : vector<67x128xf32>
    %cst_132 = arith.constant 1.000000e+00 : f32
    %147 = vector.broadcast %cst_132 : f32 to vector<67x128xf32>
    %148 = arith.addf %147, %146 : vector<67x128xf32>
    %149 = arith.mulf %138, %148 : vector<67x128xf32>
    %150 = arith.truncf %149 : vector<67x128xf32> to vector<67x128xbf16>
    %c0_133 = arith.constant 0 : index
    %c0_134 = arith.constant 0 : index
    %151 = vector.load %arg7[%c0_133, %c0_134] : memref<36x67xbf16, #tpu.memory_space<vmem>>, vector<36x67xbf16>
    %cst_135 = arith.constant dense<0.000000e+00> : vector<36x128xf32>
    %152 = tpu.matmul %151, %150, %cst_135 {dimension_numbers = #tpu.dot_dimension_numbers<[1], [0], [0], [1], [0, 0, 1, 1], [], []>} : vector<36x67xbf16>, vector<67x128xbf16>, vector<36x128xf32> -> vector<36x128xf32>
    %153 = arith.truncf %152 : vector<36x128xf32> to vector<36x128xbf16>
    %c0_136 = arith.constant 0 : index
    %c0_137 = arith.constant 0 : index
    %154 = vector.load %arg18[%c0_136, %c0_137] : memref<104x128xbf16, #tpu.memory_space<vmem>>, vector<36x128xbf16>
    tpu.vector_store %arg18[%c0_136, %c0_137], %153 {strides = array<i32>} : memref<104x128xbf16, #tpu.memory_space<vmem>>, vector<36x128xbf16>,
    %c0_138 = arith.constant 0 : index
    %c0_139 = arith.constant 0 : index
    %155 = vector.load %arg18[%c0_138, %c0_139] : memref<104x128xbf16, #tpu.memory_space<vmem>>, vector<22x128xbf16>
    %c0_140 = arith.constant 0 : index
    %c0_141 = arith.constant 0 : index
    %c0_142 = arith.constant 0 : index
    %156 = vector.load %arg8[%c0_140, %c0_141, %c0_142] : memref<9x128x128xbf16, #tpu.memory_space<vmem>>, vector<1x128x128xbf16>
    %157 = vector.shape_cast %156 : vector<1x128x128xbf16> to vector<128x128xbf16>
    %cst_143 = arith.constant dense<0.000000e+00> : vector<22x128xf32>
    %158 = tpu.matmul %155, %157, %cst_143 {dimension_numbers = #tpu.dot_dimension_numbers<[1], [0], [0], [1], [0, 0, 1, 1], [], []>} : vector<22x128xbf16>, vector<128x128xbf16>, vector<22x128xf32> -> vector<22x128xf32>
    %c1_144 = arith.constant 1 : index
    %c0_145 = arith.constant 0 : index
    %159 = vector.load %arg18[%c1_144, %c0_145] : memref<104x128xbf16, #tpu.memory_space<vmem>>, vector<22x128xbf16>
    %c1_146 = arith.constant 1 : index
    %c0_147 = arith.constant 0 : index
    %c0_148 = arith.constant 0 : index
    %160 = vector.load %arg8[%c1_146, %c0_147, %c0_148] : memref<9x128x128xbf16, #tpu.memory_space<vmem>>, vector<1x128x128xbf16>
    %161 = vector.shape_cast %160 : vector<1x128x128xbf16> to vector<128x128xbf16>
    %cst_149 = arith.constant dense<0.000000e+00> : vector<22x128xf32>
    %162 = tpu.matmul %159, %161, %cst_149 {dimension_numbers = #tpu.dot_dimension_numbers<[1], [0], [0], [1], [0, 0, 1, 1], [], []>} : vector<22x128xbf16>, vector<128x128xbf16>, vector<22x128xf32> -> vector<22x128xf32>
    %163 = arith.addf %158, %162 : vector<22x128xf32>
    %c2_150 = arith.constant 2 : index
    %c0_151 = arith.constant 0 : index
    %164 = vector.load %arg18[%c2_150, %c0_151] : memref<104x128xbf16, #tpu.memory_space<vmem>>, vector<22x128xbf16>
    %c2_152 = arith.constant 2 : index
    %c0_153 = arith.constant 0 : index
    %c0_154 = arith.constant 0 : index
    %165 = vector.load %arg8[%c2_152, %c0_153, %c0_154] : memref<9x128x128xbf16, #tpu.memory_space<vmem>>, vector<1x128x128xbf16>
    %166 = vector.shape_cast %165 : vector<1x128x128xbf16> to vector<128x128xbf16>
    %cst_155 = arith.constant dense<0.000000e+00> : vector<22x128xf32>
    %167 = tpu.matmul %164, %166, %cst_155 {dimension_numbers = #tpu.dot_dimension_numbers<[1], [0], [0], [1], [0, 0, 1, 1], [], []>} : vector<22x128xbf16>, vector<128x128xbf16>, vector<22x128xf32> -> vector<22x128xf32>
    %168 = arith.addf %163, %167 : vector<22x128xf32>
    %c6_156 = arith.constant 6 : index
    %c0_157 = arith.constant 0 : index
    %169 = vector.load %arg18[%c6_156, %c0_157] : memref<104x128xbf16, #tpu.memory_space<vmem>>, vector<22x128xbf16>
    %c3_158 = arith.constant 3 : index
    %c0_159 = arith.constant 0 : index
    %c0_160 = arith.constant 0 : index
    %170 = vector.load %arg8[%c3_158, %c0_159, %c0_160] : memref<9x128x128xbf16, #tpu.memory_space<vmem>>, vector<1x128x128xbf16>
    %171 = vector.shape_cast %170 : vector<1x128x128xbf16> to vector<128x128xbf16>
    %cst_161 = arith.constant dense<0.000000e+00> : vector<22x128xf32>
    %172 = tpu.matmul %169, %171, %cst_161 {dimension_numbers = #tpu.dot_dimension_numbers<[1], [0], [0], [1], [0, 0, 1, 1], [], []>} : vector<22x128xbf16>, vector<128x128xbf16>, vector<22x128xf32> -> vector<22x128xf32>
    %173 = arith.addf %168, %172 : vector<22x128xf32>
    %c7_162 = arith.constant 7 : index
    %c0_163 = arith.constant 0 : index
    %174 = vector.load %arg18[%c7_162, %c0_163] : memref<104x128xbf16, #tpu.memory_space<vmem>>, vector<22x128xbf16>
    %c4_164 = arith.constant 4 : index
    %c0_165 = arith.constant 0 : index
    %c0_166 = arith.constant 0 : index
    %175 = vector.load %arg8[%c4_164, %c0_165, %c0_166] : memref<9x128x128xbf16, #tpu.memory_space<vmem>>, vector<1x128x128xbf16>
    %176 = vector.shape_cast %175 : vector<1x128x128xbf16> to vector<128x128xbf16>
    %cst_167 = arith.constant dense<0.000000e+00> : vector<22x128xf32>
    %177 = tpu.matmul %174, %176, %cst_167 {dimension_numbers = #tpu.dot_dimension_numbers<[1], [0], [0], [1], [0, 0, 1, 1], [], []>} : vector<22x128xbf16>, vector<128x128xbf16>, vector<22x128xf32> -> vector<22x128xf32>
    %178 = arith.addf %173, %177 : vector<22x128xf32>
    %c8_168 = arith.constant 8 : index
    %c0_169 = arith.constant 0 : index
    %179 = vector.load %arg18[%c8_168, %c0_169] : memref<104x128xbf16, #tpu.memory_space<vmem>>, vector<22x128xbf16>
    %c5_170 = arith.constant 5 : index
    %c0_171 = arith.constant 0 : index
    %c0_172 = arith.constant 0 : index
    %180 = vector.load %arg8[%c5_170, %c0_171, %c0_172] : memref<9x128x128xbf16, #tpu.memory_space<vmem>>, vector<1x128x128xbf16>
    %181 = vector.shape_cast %180 : vector<1x128x128xbf16> to vector<128x128xbf16>
    %cst_173 = arith.constant dense<0.000000e+00> : vector<22x128xf32>
    %182 = tpu.matmul %179, %181, %cst_173 {dimension_numbers = #tpu.dot_dimension_numbers<[1], [0], [0], [1], [0, 0, 1, 1], [], []>} : vector<22x128xbf16>, vector<128x128xbf16>, vector<22x128xf32> -> vector<22x128xf32>
    %183 = arith.addf %178, %182 : vector<22x128xf32>
    %c12_174 = arith.constant 12 : index
    %c0_175 = arith.constant 0 : index
    %184 = vector.load %arg18[%c12_174, %c0_175] : memref<104x128xbf16, #tpu.memory_space<vmem>>, vector<22x128xbf16>
    %c6_176 = arith.constant 6 : index
    %c0_177 = arith.constant 0 : index
    %c0_178 = arith.constant 0 : index
    %185 = vector.load %arg8[%c6_176, %c0_177, %c0_178] : memref<9x128x128xbf16, #tpu.memory_space<vmem>>, vector<1x128x128xbf16>
    %186 = vector.shape_cast %185 : vector<1x128x128xbf16> to vector<128x128xbf16>
    %cst_179 = arith.constant dense<0.000000e+00> : vector<22x128xf32>
    %187 = tpu.matmul %184, %186, %cst_179 {dimension_numbers = #tpu.dot_dimension_numbers<[1], [0], [0], [1], [0, 0, 1, 1], [], []>} : vector<22x128xbf16>, vector<128x128xbf16>, vector<22x128xf32> -> vector<22x128xf32>
    %188 = arith.addf %183, %187 : vector<22x128xf32>
    %c13 = arith.constant 13 : index
    %c0_180 = arith.constant 0 : index
    %189 = vector.load %arg18[%c13, %c0_180] : memref<104x128xbf16, #tpu.memory_space<vmem>>, vector<22x128xbf16>
    %c7_181 = arith.constant 7 : index
    %c0_182 = arith.constant 0 : index
    %c0_183 = arith.constant 0 : index
    %190 = vector.load %arg8[%c7_181, %c0_182, %c0_183] : memref<9x128x128xbf16, #tpu.memory_space<vmem>>, vector<1x128x128xbf16>
    %191 = vector.shape_cast %190 : vector<1x128x128xbf16> to vector<128x128xbf16>
    %cst_184 = arith.constant dense<0.000000e+00> : vector<22x128xf32>
    %192 = tpu.matmul %189, %191, %cst_184 {dimension_numbers = #tpu.dot_dimension_numbers<[1], [0], [0], [1], [0, 0, 1, 1], [], []>} : vector<22x128xbf16>, vector<128x128xbf16>, vector<22x128xf32> -> vector<22x128xf32>
    %193 = arith.addf %188, %192 : vector<22x128xf32>
    %c14 = arith.constant 14 : index
    %c0_185 = arith.constant 0 : index
    %194 = vector.load %arg18[%c14, %c0_185] : memref<104x128xbf16, #tpu.memory_space<vmem>>, vector<22x128xbf16>
    %c8_186 = arith.constant 8 : index
    %c0_187 = arith.constant 0 : index
    %c0_188 = arith.constant 0 : index
    %195 = vector.load %arg8[%c8_186, %c0_187, %c0_188] : memref<9x128x128xbf16, #tpu.memory_space<vmem>>, vector<1x128x128xbf16>
    %196 = vector.shape_cast %195 : vector<1x128x128xbf16> to vector<128x128xbf16>
    %cst_189 = arith.constant dense<0.000000e+00> : vector<22x128xf32>
    %197 = tpu.matmul %194, %196, %cst_189 {dimension_numbers = #tpu.dot_dimension_numbers<[1], [0], [0], [1], [0, 0, 1, 1], [], []>} : vector<22x128xbf16>, vector<128x128xbf16>, vector<22x128xf32> -> vector<22x128xf32>
    %198 = arith.addf %193, %197 : vector<22x128xf32>
    %c0_190 = arith.constant 0 : index
    %c0_191 = arith.constant 0 : index
    %199 = vector.load %arg17[%c0_190, %c0_191] : memref<288x128xf32, #tpu.memory_space<vmem>>, vector<22x128xf32>
    tpu.vector_store %arg17[%c0_190, %c0_191], %198 {strides = array<i32>} : memref<288x128xf32, #tpu.memory_space<vmem>>, vector<22x128xf32>,
    %c0_192 = arith.constant 0 : index
    %c0_193 = arith.constant 0 : index
    %200 = vector.load %arg9[%c0_192, %c0_193] : memref<1x128xf32, #tpu.memory_space<vmem>>, vector<1x128xf32>
    %c0_194 = arith.constant 0 : index
    %c0_195 = arith.constant 0 : index
    %201 = vector.load %arg17[%c0_194, %c0_195] : memref<288x128xf32, #tpu.memory_space<vmem>>, vector<1x128xf32>
    %c1_196 = arith.constant 1 : index
    %c0_197 = arith.constant 0 : index
    %202 = vector.load %arg17[%c1_196, %c0_197] : memref<288x128xf32, #tpu.memory_space<vmem>>, vector<1x128xf32>
    %203 = arith.maximumf %201, %202 : vector<1x128xf32>
    %c6_198 = arith.constant 6 : index
    %c0_199 = arith.constant 0 : index
    %204 = vector.load %arg17[%c6_198, %c0_199] : memref<288x128xf32, #tpu.memory_space<vmem>>, vector<1x128xf32>
    %c7_200 = arith.constant 7 : index
    %c0_201 = arith.constant 0 : index
    %205 = vector.load %arg17[%c7_200, %c0_201] : memref<288x128xf32, #tpu.memory_space<vmem>>, vector<1x128xf32>
    %206 = arith.maximumf %204, %205 : vector<1x128xf32>
    %207 = arith.maximumf %203, %206 : vector<1x128xf32>
    %208 = arith.addf %207, %200 : vector<1x128xf32>
    %cst_202 = arith.constant 5.000000e-01 : f32
    %209 = vector.broadcast %cst_202 : f32 to vector<1x128xf32>
    %210 = arith.mulf %209, %208 : vector<1x128xf32>
    %cst_203 = arith.constant 4.471500e-02 : f32
    %211 = vector.broadcast %cst_203 : f32 to vector<1x128xf32>
    %212 = arith.mulf %211, %208 : vector<1x128xf32>
    %213 = arith.mulf %212, %208 : vector<1x128xf32>
    %214 = arith.mulf %213, %208 : vector<1x128xf32>
    %215 = arith.addf %208, %214 : vector<1x128xf32>
    %cst_204 = arith.constant 0.797884583 : f32
    %216 = vector.broadcast %cst_204 : f32 to vector<1x128xf32>
    %217 = arith.mulf %216, %215 : vector<1x128xf32>
    %218 = math.tanh %217 : vector<1x128xf32>
    %cst_205 = arith.constant 1.000000e+00 : f32
    %219 = vector.broadcast %cst_205 : f32 to vector<1x128xf32>
    %220 = arith.addf %219, %218 : vector<1x128xf32>
    %221 = arith.mulf %210, %220 : vector<1x128xf32>
    %222 = arith.truncf %221 : vector<1x128xf32> to vector<1x128xbf16>
    %c0_206 = arith.constant 0 : index
    %c0_207 = arith.constant 0 : index
    %c0_208 = arith.constant 0 : index
    %223 = vector.load %arg10[%c0_206, %c0_207, %c0_208] : memref<4x128x128xbf16, #tpu.memory_space<vmem>>, vector<1x128x128xbf16>
    %224 = vector.shape_cast %223 : vector<1x128x128xbf16> to vector<128x128xbf16>
    %cst_209 = arith.constant dense<0.000000e+00> : vector<1x128xf32>
    %225 = tpu.matmul %222, %224, %cst_209 {dimension_numbers = #tpu.dot_dimension_numbers<[1], [0], [0], [1], [0, 0, 1, 1], [], []>} : vector<1x128xbf16>, vector<128x128xbf16>, vector<1x128xf32> -> vector<1x128xf32>
    %c2_210 = arith.constant 2 : index
    %c0_211 = arith.constant 0 : index
    %226 = vector.load %arg17[%c2_210, %c0_211] : memref<288x128xf32, #tpu.memory_space<vmem>>, vector<1x128xf32>
    %c3_212 = arith.constant 3 : index
    %c0_213 = arith.constant 0 : index
    %227 = vector.load %arg17[%c3_212, %c0_213] : memref<288x128xf32, #tpu.memory_space<vmem>>, vector<1x128xf32>
    %228 = arith.maximumf %226, %227 : vector<1x128xf32>
    %c8_214 = arith.constant 8 : index
    %c0_215 = arith.constant 0 : index
    %229 = vector.load %arg17[%c8_214, %c0_215] : memref<288x128xf32, #tpu.memory_space<vmem>>, vector<1x128xf32>
    %c9 = arith.constant 9 : index
    %c0_216 = arith.constant 0 : index
    %230 = vector.load %arg17[%c9, %c0_216] : memref<288x128xf32, #tpu.memory_space<vmem>>, vector<1x128xf32>
    %231 = arith.maximumf %229, %230 : vector<1x128xf32>
    %232 = arith.maximumf %228, %231 : vector<1x128xf32>
    %233 = arith.addf %232, %200 : vector<1x128xf32>
    %cst_217 = arith.constant 5.000000e-01 : f32
    %234 = vector.broadcast %cst_217 : f32 to vector<1x128xf32>
    %235 = arith.mulf %234, %233 : vector<1x128xf32>
    %cst_218 = arith.constant 4.471500e-02 : f32
    %236 = vector.broadcast %cst_218 : f32 to vector<1x128xf32>
    %237 = arith.mulf %236, %233 : vector<1x128xf32>
    %238 = arith.mulf %237, %233 : vector<1x128xf32>
    %239 = arith.mulf %238, %233 : vector<1x128xf32>
    %240 = arith.addf %233, %239 : vector<1x128xf32>
    %cst_219 = arith.constant 0.797884583 : f32
    %241 = vector.broadcast %cst_219 : f32 to vector<1x128xf32>
    %242 = arith.mulf %241, %240 : vector<1x128xf32>
    %243 = math.tanh %242 : vector<1x128xf32>
    %cst_220 = arith.constant 1.000000e+00 : f32
    %244 = vector.broadcast %cst_220 : f32 to vector<1x128xf32>
    %245 = arith.addf %244, %243 : vector<1x128xf32>
    %246 = arith.mulf %235, %245 : vector<1x128xf32>
    %247 = arith.truncf %246 : vector<1x128xf32> to vector<1x128xbf16>
    %c1_221 = arith.constant 1 : index
    %c0_222 = arith.constant 0 : index
    %c0_223 = arith.constant 0 : index
    %248 = vector.load %arg10[%c1_221, %c0_222, %c0_223] : memref<4x128x128xbf16, #tpu.memory_space<vmem>>, vector<1x128x128xbf16>
    %249 = vector.shape_cast %248 : vector<1x128x128xbf16> to vector<128x128xbf16>
    %cst_224 = arith.constant dense<0.000000e+00> : vector<1x128xf32>
    %250 = tpu.matmul %247, %249, %cst_224 {dimension_numbers = #tpu.dot_dimension_numbers<[1], [0], [0], [1], [0, 0, 1, 1], [], []>} : vector<1x128xbf16>, vector<128x128xbf16>, vector<1x128xf32> -> vector<1x128xf32>
    %251 = arith.addf %225, %250 : vector<1x128xf32>
    %c12_225 = arith.constant 12 : index
    %c0_226 = arith.constant 0 : index
    %252 = vector.load %arg17[%c12_225, %c0_226] : memref<288x128xf32, #tpu.memory_space<vmem>>, vector<1x128xf32>
    %c13_227 = arith.constant 13 : index
    %c0_228 = arith.constant 0 : index
    %253 = vector.load %arg17[%c13_227, %c0_228] : memref<288x128xf32, #tpu.memory_space<vmem>>, vector<1x128xf32>
    %254 = arith.maximumf %252, %253 : vector<1x128xf32>
    %c18_229 = arith.constant 18 : index
    %c0_230 = arith.constant 0 : index
    %255 = vector.load %arg17[%c18_229, %c0_230] : memref<288x128xf32, #tpu.memory_space<vmem>>, vector<1x128xf32>
    %c19_231 = arith.constant 19 : index
    %c0_232 = arith.constant 0 : index
    %256 = vector.load %arg17[%c19_231, %c0_232] : memref<288x128xf32, #tpu.memory_space<vmem>>, vector<1x128xf32>
    %257 = arith.maximumf %255, %256 : vector<1x128xf32>
    %258 = arith.maximumf %254, %257 : vector<1x128xf32>
    %259 = arith.addf %258, %200 : vector<1x128xf32>
    %cst_233 = arith.constant 5.000000e-01 : f32
    %260 = vector.broadcast %cst_233 : f32 to vector<1x128xf32>
    %261 = arith.mulf %260, %259 : vector<1x128xf32>
    %cst_234 = arith.constant 4.471500e-02 : f32
    %262 = vector.broadcast %cst_234 : f32 to vector<1x128xf32>
    %263 = arith.mulf %262, %259 : vector<1x128xf32>
    %264 = arith.mulf %263, %259 : vector<1x128xf32>
    %265 = arith.mulf %264, %259 : vector<1x128xf32>
    %266 = arith.addf %259, %265 : vector<1x128xf32>
    %cst_235 = arith.constant 0.797884583 : f32
    %267 = vector.broadcast %cst_235 : f32 to vector<1x128xf32>
    %268 = arith.mulf %267, %266 : vector<1x128xf32>
    %269 = math.tanh %268 : vector<1x128xf32>
    %cst_236 = arith.constant 1.000000e+00 : f32
    %270 = vector.broadcast %cst_236 : f32 to vector<1x128xf32>
    %271 = arith.addf %270, %269 : vector<1x128xf32>
    %272 = arith.mulf %261, %271 : vector<1x128xf32>
    %273 = arith.truncf %272 : vector<1x128xf32> to vector<1x128xbf16>
    %c2_237 = arith.constant 2 : index
    %c0_238 = arith.constant 0 : index
    %c0_239 = arith.constant 0 : index
    %274 = vector.load %arg10[%c2_237, %c0_238, %c0_239] : memref<4x128x128xbf16, #tpu.memory_space<vmem>>, vector<1x128x128xbf16>
    %275 = vector.shape_cast %274 : vector<1x128x128xbf16> to vector<128x128xbf16>
    %cst_240 = arith.constant dense<0.000000e+00> : vector<1x128xf32>
    %276 = tpu.matmul %273, %275, %cst_240 {dimension_numbers = #tpu.dot_dimension_numbers<[1], [0], [0], [1], [0, 0, 1, 1], [], []>} : vector<1x128xbf16>, vector<128x128xbf16>, vector<1x128xf32> -> vector<1x128xf32>
    %277 = arith.addf %251, %276 : vector<1x128xf32>
    %c14_241 = arith.constant 14 : index
    %c0_242 = arith.constant 0 : index
    %278 = vector.load %arg17[%c14_241, %c0_242] : memref<288x128xf32, #tpu.memory_space<vmem>>, vector<1x128xf32>
    %c15 = arith.constant 15 : index
    %c0_243 = arith.constant 0 : index
    %279 = vector.load %arg17[%c15, %c0_243] : memref<288x128xf32, #tpu.memory_space<vmem>>, vector<1x128xf32>
    %280 = arith.maximumf %278, %279 : vector<1x128xf32>
    %c20_244 = arith.constant 20 : index
    %c0_245 = arith.constant 0 : index
    %281 = vector.load %arg17[%c20_244, %c0_245] : memref<288x128xf32, #tpu.memory_space<vmem>>, vector<1x128xf32>
    %c21_246 = arith.constant 21 : index
    %c0_247 = arith.constant 0 : index
    %282 = vector.load %arg17[%c21_246, %c0_247] : memref<288x128xf32, #tpu.memory_space<vmem>>, vector<1x128xf32>
    %283 = arith.maximumf %281, %282 : vector<1x128xf32>
    %284 = arith.maximumf %280, %283 : vector<1x128xf32>
    %285 = arith.addf %284, %200 : vector<1x128xf32>
    %cst_248 = arith.constant 5.000000e-01 : f32
    %286 = vector.broadcast %cst_248 : f32 to vector<1x128xf32>
    %287 = arith.mulf %286, %285 : vector<1x128xf32>
    %cst_249 = arith.constant 4.471500e-02 : f32
    %288 = vector.broadcast %cst_249 : f32 to vector<1x128xf32>
    %289 = arith.mulf %288, %285 : vector<1x128xf32>
    %290 = arith.mulf %289, %285 : vector<1x128xf32>
    %291 = arith.mulf %290, %285 : vector<1x128xf32>
    %292 = arith.addf %285, %291 : vector<1x128xf32>
    %cst_250 = arith.constant 0.797884583 : f32
    %293 = vector.broadcast %cst_250 : f32 to vector<1x128xf32>
    %294 = arith.mulf %293, %292 : vector<1x128xf32>
    %295 = math.tanh %294 : vector<1x128xf32>
    %cst_251 = arith.constant 1.000000e+00 : f32
    %296 = vector.broadcast %cst_251 : f32 to vector<1x128xf32>
    %297 = arith.addf %296, %295 : vector<1x128xf32>
    %298 = arith.mulf %287, %297 : vector<1x128xf32>
    %299 = arith.truncf %298 : vector<1x128xf32> to vector<1x128xbf16>
    %c3_252 = arith.constant 3 : index
    %c0_253 = arith.constant 0 : index
    %c0_254 = arith.constant 0 : index
    %300 = vector.load %arg10[%c3_252, %c0_253, %c0_254] : memref<4x128x128xbf16, #tpu.memory_space<vmem>>, vector<1x128x128xbf16>
    %301 = vector.shape_cast %300 : vector<1x128x128xbf16> to vector<128x128xbf16>
    %cst_255 = arith.constant dense<0.000000e+00> : vector<1x128xf32>
    %302 = tpu.matmul %299, %301, %cst_255 {dimension_numbers = #tpu.dot_dimension_numbers<[1], [0], [0], [1], [0, 0, 1, 1], [], []>} : vector<1x128xbf16>, vector<128x128xbf16>, vector<1x128xf32> -> vector<1x128xf32>
    %303 = arith.addf %277, %302 : vector<1x128xf32>
    %c0_256 = arith.constant 0 : index
    %c0_257 = arith.constant 0 : index
    %304 = vector.load %arg11[%c0_256, %c0_257] : memref<1x128xf32, #tpu.memory_space<vmem>>, vector<1x128xf32>
    %305 = arith.addf %303, %304 : vector<1x128xf32>
    %cst_258 = arith.constant 5.000000e-01 : f32
    %306 = vector.broadcast %cst_258 : f32 to vector<1x128xf32>
    %307 = arith.mulf %306, %305 : vector<1x128xf32>
    %cst_259 = arith.constant 4.471500e-02 : f32
    %308 = vector.broadcast %cst_259 : f32 to vector<1x128xf32>
    %309 = arith.mulf %308, %305 : vector<1x128xf32>
    %310 = arith.mulf %309, %305 : vector<1x128xf32>
    %311 = arith.mulf %310, %305 : vector<1x128xf32>
    %312 = arith.addf %305, %311 : vector<1x128xf32>
    %cst_260 = arith.constant 0.797884583 : f32
    %313 = vector.broadcast %cst_260 : f32 to vector<1x128xf32>
    %314 = arith.mulf %313, %312 : vector<1x128xf32>
    %315 = math.tanh %314 : vector<1x128xf32>
    %cst_261 = arith.constant 1.000000e+00 : f32
    %316 = vector.broadcast %cst_261 : f32 to vector<1x128xf32>
    %317 = arith.addf %316, %315 : vector<1x128xf32>
    %318 = arith.mulf %307, %317 : vector<1x128xf32>
    %319 = arith.truncf %318 : vector<1x128xf32> to vector<1x128xbf16>
    %c0_262 = arith.constant 0 : index
    %c0_263 = arith.constant 0 : index
    %320 = vector.load %arg12[%c0_262, %c0_263] : memref<128x128xbf16, #tpu.memory_space<vmem>>, vector<128x128xbf16>
    %cst_264 = arith.constant dense<0.000000e+00> : vector<1x128xf32>
    %321 = tpu.matmul %319, %320, %cst_264 {dimension_numbers = #tpu.dot_dimension_numbers<[1], [0], [0], [1], [0, 0, 1, 1], [], []>} : vector<1x128xbf16>, vector<128x128xbf16>, vector<1x128xf32> -> vector<1x128xf32>
    %c0_265 = arith.constant 0 : index
    %c0_266 = arith.constant 0 : index
    %322 = vector.load %arg13[%c0_265, %c0_266] : memref<1x128xf32, #tpu.memory_space<vmem>>, vector<1x128xf32>
    %323 = arith.addf %321, %322 : vector<1x128xf32>
    %cst_267 = arith.constant 5.000000e-01 : f32
    %324 = vector.broadcast %cst_267 : f32 to vector<1x128xf32>
    %325 = arith.mulf %324, %323 : vector<1x128xf32>
    %cst_268 = arith.constant 4.471500e-02 : f32
    %326 = vector.broadcast %cst_268 : f32 to vector<1x128xf32>
    %327 = arith.mulf %326, %323 : vector<1x128xf32>
    %328 = arith.mulf %327, %323 : vector<1x128xf32>
    %329 = arith.mulf %328, %323 : vector<1x128xf32>
    %330 = arith.addf %323, %329 : vector<1x128xf32>
    %cst_269 = arith.constant 0.797884583 : f32
    %331 = vector.broadcast %cst_269 : f32 to vector<1x128xf32>
    %332 = arith.mulf %331, %330 : vector<1x128xf32>
    %333 = math.tanh %332 : vector<1x128xf32>
    %cst_270 = arith.constant 1.000000e+00 : f32
    %334 = vector.broadcast %cst_270 : f32 to vector<1x128xf32>
    %335 = arith.addf %334, %333 : vector<1x128xf32>
    %336 = arith.mulf %325, %335 : vector<1x128xf32>
    %337 = arith.truncf %336 : vector<1x128xf32> to vector<1x128xbf16>
    %c0_271 = arith.constant 0 : index
    %c0_272 = arith.constant 0 : index
    %338 = vector.load %arg14[%c0_271, %c0_272] : memref<128x128xbf16, #tpu.memory_space<vmem>>, vector<128x128xbf16>
    %cst_273 = arith.constant dense<0.000000e+00> : vector<1x128xf32>
    %339 = tpu.matmul %337, %338, %cst_273 {dimension_numbers = #tpu.dot_dimension_numbers<[1], [0], [0], [1], [0, 0, 1, 1], [], []>} : vector<1x128xbf16>, vector<128x128xbf16>, vector<1x128xf32> -> vector<1x128xf32>
    %c0_274 = arith.constant 0 : index
    %c0_275 = arith.constant 0 : index
    %340 = vector.load %arg15[%c0_274, %c0_275] : memref<1x128xf32, #tpu.memory_space<vmem>>, vector<1x128xf32>
    %341 = arith.addf %339, %340 : vector<1x128xf32>
    %342 = arith.negf %341 : vector<1x128xf32>
    %343 = math.exp %342 : vector<1x128xf32>
    %cst_276 = arith.constant 1.000000e+00 : f32
    %344 = vector.broadcast %cst_276 : f32 to vector<1x128xf32>
    %345 = arith.addf %344, %343 : vector<1x128xf32>
    %346 = arith.divf %344, %345 : vector<1x128xf32>
    %c0_277 = arith.constant 0 : index
    %c0_278 = arith.constant 0 : index
    %c0_279 = arith.constant 0 : index
    %347 = vector.load %arg16[%c0_277, %c0_278, %c0_279] : memref<1x1x128xf32, #tpu.memory_space<vmem>>, vector<1x1x128xf32>
    %348 = vector.shape_cast %347 : vector<1x1x128xf32> to vector<1x128xf32>
    %349 = vector.shape_cast %346 : vector<1x128xf32> to vector<1x1x128xf32>
    tpu.vector_store %arg16[%c0_277, %c0_278, %c0_279], %349 {strides = array<i32>} : memref<1x1x128xf32, #tpu.memory_space<vmem>>, vector<1x1x128xf32>,
    return
  }
  func.func @transform_0(%arg0: i32) -> (i32, i32, i32) {
    %c0_i32 = arith.constant 0 : i32
    %c0_i32_0 = arith.constant 0 : i32
    %c0_i32_1 = arith.constant 0 : i32
    return %arg0, %c0_i32, %c0_i32_0 : i32, i32, i32
  }
  func.func @transform_1(%arg0: i32) -> (i32, i32, i32) {
    %c0_i32 = arith.constant 0 : i32
    %c0_i32_0 = arith.constant 0 : i32
    %c0_i32_1 = arith.constant 0 : i32
    %c0_i32_2 = arith.constant 0 : i32
    return %c0_i32, %c0_i32_0, %c0_i32_1 : i32, i32, i32
  }
  func.func @transform_2(%arg0: i32) -> (i32, i32) {
    %c0_i32 = arith.constant 0 : i32
    %c0_i32_0 = arith.constant 0 : i32
    %c0_i32_1 = arith.constant 0 : i32
    return %c0_i32, %c0_i32_0 : i32, i32
  }
  func.func @transform_3(%arg0: i32) -> (i32, i32) {
    %c0_i32 = arith.constant 0 : i32
    %c0_i32_0 = arith.constant 0 : i32
    %c0_i32_1 = arith.constant 0 : i32
    return %c0_i32, %c0_i32_0 : i32, i32
  }
  func.func @transform_4(%arg0: i32) -> (i32, i32, i32) {
    %c0_i32 = arith.constant 0 : i32
    %c0_i32_0 = arith.constant 0 : i32
    %c0_i32_1 = arith.constant 0 : i32
    %c0_i32_2 = arith.constant 0 : i32
    return %c0_i32, %c0_i32_0, %c0_i32_1 : i32, i32, i32
  }
  func.func @transform_5(%arg0: i32) -> (i32, i32) {
    %c0_i32 = arith.constant 0 : i32
    %c0_i32_0 = arith.constant 0 : i32
    %c0_i32_1 = arith.constant 0 : i32
    return %c0_i32, %c0_i32_0 : i32, i32
  }
  func.func @transform_6(%arg0: i32) -> (i32, i32) {
    %c0_i32 = arith.constant 0 : i32
    %c0_i32_0 = arith.constant 0 : i32
    %c0_i32_1 = arith.constant 0 : i32
    return %c0_i32, %c0_i32_0 : i32, i32
  }
  func.func @transform_7(%arg0: i32) -> (i32, i32, i32) {
    %c0_i32 = arith.constant 0 : i32
    %c0_i32_0 = arith.constant 0 : i32
    %c0_i32_1 = arith.constant 0 : i32
    %c0_i32_2 = arith.constant 0 : i32
    return %c0_i32, %c0_i32_0, %c0_i32_1 : i32, i32, i32
  }
  func.func @transform_8(%arg0: i32) -> (i32, i32) {
    %c0_i32 = arith.constant 0 : i32
    %c0_i32_0 = arith.constant 0 : i32
    %c0_i32_1 = arith.constant 0 : i32
    return %c0_i32, %c0_i32_0 : i32, i32
  }
  func.func @transform_9(%arg0: i32) -> (i32, i32, i32) {
    %c0_i32 = arith.constant 0 : i32
    %c0_i32_0 = arith.constant 0 : i32
    %c0_i32_1 = arith.constant 0 : i32
    %c0_i32_2 = arith.constant 0 : i32
    return %c0_i32, %c0_i32_0, %c0_i32_1 : i32, i32, i32
  }
  func.func @transform_10(%arg0: i32) -> (i32, i32) {
    %c0_i32 = arith.constant 0 : i32
    %c0_i32_0 = arith.constant 0 : i32
    %c0_i32_1 = arith.constant 0 : i32
    return %c0_i32, %c0_i32_0 : i32, i32
  }
  func.func @transform_11(%arg0: i32) -> (i32, i32) {
    %c0_i32 = arith.constant 0 : i32
    %c0_i32_0 = arith.constant 0 : i32
    %c0_i32_1 = arith.constant 0 : i32
    return %c0_i32, %c0_i32_0 : i32, i32
  }
  func.func @transform_12(%arg0: i32) -> (i32, i32) {
    %c0_i32 = arith.constant 0 : i32
    %c0_i32_0 = arith.constant 0 : i32
    %c0_i32_1 = arith.constant 0 : i32
    return %c0_i32, %c0_i32_0 : i32, i32
  }
  func.func @transform_13(%arg0: i32) -> (i32, i32) {
    %c0_i32 = arith.constant 0 : i32
    %c0_i32_0 = arith.constant 0 : i32
    %c0_i32_1 = arith.constant 0 : i32
    return %c0_i32, %c0_i32_0 : i32, i32
  }
  func.func @transform_14(%arg0: i32) -> (i32, i32) {
    %c0_i32 = arith.constant 0 : i32
    %c0_i32_0 = arith.constant 0 : i32
    %c0_i32_1 = arith.constant 0 : i32
    return %c0_i32, %c0_i32_0 : i32, i32
  }
  func.func @transform_15(%arg0: i32) -> (i32, i32, i32) {
    %c0_i32 = arith.constant 0 : i32
    %c0_i32_0 = arith.constant 0 : i32
    %c0_i32_1 = arith.constant 0 : i32
    return %arg0, %c0_i32, %c0_i32_0 : i32, i32, i32
  }
}

</mosaic_0001>

<bundles_post_ra>
// kernel: parameter_critic_forward.1
= control target key start
LH: loop header
LB: loop body
LE: loop exit
PB: predicated region body
PF: predicated region fallthrough
CT: control target
= control target key end

     0   :  { %20 = vsyncpa [#allocation5], 0  ;;  %s15673_s0 = inlined_call_operand.vmem [shape: bf16[2,324,2], index: 0, kind: input, shape index: {}]   ;;  %s15674_s1 = inlined_call_operand.vmem [shape: bf16[9,2,128], index: 1, kind: input, shape index: {}]   ;;  %s15675_s2 = inlined_call_operand.vmem [shape: f32[1,128], index: 2, kind: input, shape index: {}]   ;;  %s15676_s3 = inlined_call_operand.vmem [shape: bf16[100,267], index: 3, kind: input, shape index: {}]   ;;  %s15677_s4 = inlined_call_operand.vmem [shape: bf16[9,128,128], index: 4, kind: input, shape index: {}]   ;;  %s15678_s5 = inlined_call_operand.vmem [shape: f32[1,128], index: 5, kind: input, shape index: {}]   ;;  %s15679_s6 = inlined_call_operand.vmem [shape: bf16[36,67], index: 6, kind: input, shape index: {}]   ;;  %s15680_s7 = inlined_call_operand.hbm [shape: bf16[9,128,128], index: 7, kind: input, shape index: {}]   ;;  %s15681_s8 = inlined_call_operand.vmem [shape: f32[1,128], index: 8, kind: input, shape index: {}]   ;;  %s15682_s9 = inlined_call_operand.vmem [shape: bf16[4,128,128], index: 9, kind: input, shape index: {}]   ;;  %s15683_s10 = inlined_call_operand.vmem [shape: f32[1,128], index: 10, kind: input, shape index: {}]   ;;  %s15684_s11 = inlined_call_operand.hbm [shape: bf16[128,128], index: 11, kind: input, shape index: {}]   ;;  %s15685_s12 = inlined_call_operand.vmem [shape: f32[1,128], index: 12, kind: input, shape index: {}]   ;;  %s15686_s13 = inlined_call_operand.hbm [shape: bf16[128,128], index: 13, kind: input, shape index: {}]   ;;  %s15687_s14 = inlined_call_operand.vmem [shape: f32[1,128], index: 14, kind: input, shape index: {}]   ;;  %s15688_s15 = inlined_call_operand.vmem [shape: f32[2,1,128], index: 15, kind: output, shape index: {}]  }
   0x1   :  { %21 = vsyncpa [#allocation7], 0  ;;  %s12137_s18 = smov 0  }
   0x2 LB: > { %s12143_s19 = sadd.s32 4294967295, %s12047_s18   ;;  %p9130_p0 = scmp.ge.s32.totalorder %s12047_s18, 1  ;;  %s12047_s18 = sphi %s12137_s18, %s27_s18  }
   0x3   : > { %p378_p1 = scmp.lt.s32.totalorder %s12047_s18, 3  ;;  %p11474_p2 = scmp.eq.s32.totalorder %s12143_s19, 0 }
   0x4   : > { %s12049_s21 = smov [#allocation6]   ;;  %s12050_s23 = smov [#allocation4]  }
   0x5   : > { %p12148_p3 = pnand %p9130_p0, %p378_p1  ;;  %s430_s22 = sshll.u32 %s12049_s21, 4  ;;  %s431_s22 = int_to_ptr.vmem [resolvable:$true] %s430_s22 }
   0x6   : > { %s408_s24 = sshll.u32 %s12050_s23, 4  ;;  %s12051_s26 = smov [#allocation8]   ;;  %s409_s24 = int_to_ptr.vmem [resolvable:$true] %s408_s24 }
   0x7   : > { %p11464_p4 = pneg %p12148_p3  ;;  %s446_s27 = sshll.u32 %s12051_s26, 4  ;;  %s12160_s27 = int_to_ptr.vmem [resolvable:$true] %s446_s27 }
   0x8   : > { %s11966_s28 = scalar_lea.vmem %s431_s22, 1024  ;;  %p11974_p10 = scmp.lt.s32.totalorder %s431_s22, %s431_s22 }
   0x9   : > { %p12156_p5 = pnand %p11474_p2, %p11464_p4  ;;  %p11967_p7 = scmp.ne.s32.totalorder %s431_s22, %s11966_s28 }
   0xa   : > { %p11975_p11 = scmp.lt.s32.totalorder %s11966_s28, %s11966_s28 }
   0xb   : > { %p11957_p6 = pneg %p12156_p5 }
   0xc   : > { %p11976_p12 = por %p11975_p11, %p11974_p10 }
   0xd   : > { %p11969_p8 = pnand %p11967_p7, %p11957_p6 }
   0xf   : > { %p11970_p9 = pneg %p11969_p8 }
  0x11   : > { %p11977_p13 = pnand %p11976_p12, %p11970_p9 }
  0x13   : > { %11980 = shalt.err (!%p11977_p13)
}
  0x14   : > { %s12052_s29 = smov 64   ;;  %s12053_s30 = smov 4  }
  0x15   : > { %11470 = dma.hbm_to_vmem [thread:$0]  (!%p12156_p5), %s15684_s11, 1024, %s431_s22, [#allocation7], %s12052_s29, %s12052_s29, %s12053_s30  }
  0x16   : > { %s11992_s21 = scalar_lea.vmem %s409_s24, 9216  ;;  %p12000_p7 = scmp.lt.s32.totalorder %s409_s24, %s409_s24 }
  0x17   : > { %p11993_p0 = scmp.ne.s32.totalorder %s409_s24, %s11992_s21  ;;  %p12001_p8 = scmp.lt.s32.totalorder %s11992_s21, %s11992_s21 }
  0x19   : > { %p11995_p1 = pnand %p11993_p0, %p11957_p6  ;;  %p12002_p10 = por %p12001_p8, %p12000_p7 }
  0x1b   : > { %p11996_p4 = pneg %p11995_p1 }
  0x1d   : > { %p12003_p9 = pnand %p12002_p10, %p11996_p4 }
  0x1f   : > { %12006 = shalt.err (!%p12003_p9)
}
  0x20   : > { %11467 = dma.hbm_to_vmem [thread:$0]  (!%p12156_p5), %s15680_s7, 9216, %s409_s24, [#allocation5], %s12052_s29, %s12052_s29, %s12053_s30  }
  0x21   : > { %s12018_s22 = scalar_lea.vmem %s12160_s27, 1024  ;;  %p12026_p0 = scmp.lt.s32.totalorder %s12160_s27, %s12160_s27 }
  0x22   : > { %p12019_p11 = scmp.ne.s32.totalorder %s12160_s27, %s12018_s22  ;;  %p12027_p1 = scmp.lt.s32.totalorder %s12018_s22, %s12018_s22 }
  0x24   : > { %p12021_p12 = pnand %p12019_p11, %p11957_p6  ;;  %p12028_p4 = por %p12027_p1, %p12026_p0 }
  0x26   : > { %p12022_p13 = pneg %p12021_p12 }
  0x28   : > { %p12029_p7 = pnand %p12028_p4, %p12022_p13 }
  0x2a   : > { %12032 = shalt.err (!%p12029_p7)
}
  0x2b   : > { %11473 = dma.hbm_to_vmem [thread:$0]  (!%p12156_p5), %s15686_s13, 1024, %s12160_s27, [#allocation7], %s12052_s29, %s12052_s29, %s12053_s30  }
  0x2c   : > { %473 = sbr.rel (%p12148_p3) target bundleno = 2761 (0xac9), region = 80 }
  0x31   : > { %12038 = dma.done.wait (%p11474_p2), [#allocation5], 9216  }
  0x32   : > { %12040 = vsyncadd (%p11474_p2), [#allocation5], 4294958080 }
  0x33   : > { %12042 = dma.done.wait (%p11474_p2), [#allocation7], 2048  }
  0x34   : > { %12044 = vsyncadd (%p11474_p2), [#allocation7], 4294965248  ;;  %p527_p6 = scmp.lt.s32.totalorder %s12143_s19, 1  ;;  %vm865_vm0 = vcmask 1040384   ;;  %vm810_vm1 = vcmask 15360   ;;  %vm1272_vm3 = vcmask 1046528  }
  0x35   : > { %v9140_v0 = vld [vmem:[%s15674_s1 + $0x1] sm:$0x1]  ;;  %v572_v1 = vld [vmem:[%s15674_s1] sm:$0x1]  ;;  %vm666_vm2 = vsmask.f32 7424 }
  0x36   : > { %s15926_s19 = smov (!%p527_p6, %s12143_s19), 1  ;;  %11442 = vmatprep.subr.msk.bf16.mxu0 %vm865_vm0, %v9140_v0  ;;  %11443 = vmatprep.subr.msk.bf16.mxu1 %vm865_vm0, %v572_v1  ;;  %v867_v3 = vsel %vm865_vm0, %v9140_v0, 0  ;;  %v1087_v4 = vsel %vm865_vm0, %v572_v1, 0  ;;  %v9196_v42 = vld [vmem:[%s15674_s1 + $0x2] sm:$0x1]  ;;  %vm2586_vm4 = vcmask 1045504  }
  0x37   : > { %s11451_s20 = smul.u32 164, %s15926_s19  ;;  %10425 = vmatpush3.bf16.msra.mxu0 %v867_v3  ;;  %10463 = vmatpush3.bf16.msra.mxu1 %v1087_v4  ;;  %v1363_v46 = vsel %vm865_vm0, %v9196_v42, 0  ;;  %v9216_v56 = vld [vmem:[%s15674_s1 + $0x3] sm:$0x1]  ;;  %vm2143_vm5 = vsmask.f32 6400  ;;  %s534_s21 = scalar_lea.vmem %s15688_s15, %s15926_s19 }
  0x38   : > { %11444 = vmatprep.subr.msk.bf16.mxu0 %vm865_vm0, %v9196_v42  ;;  %11445 = vmatprep.subr.msk.bf16.mxu1 %vm865_vm0, %v9216_v56  ;;  %v1796_v1 = vsel %vm865_vm0, %v9216_v56, 0  ;;  %vm3339_vm6 = vsmask.f32 5376  ;;  %vm3786_vm7 = vcmask 1044480   ;;  %vm12055_vm8 = vmmov 0  }
  0x39   : > { %s12211_s27 = scalar_lea.vmem %s15673_s0, %s11451_s20  ;;  %vm4858_vm9 = vcmask 89088   ;;  %vm7048_vm10 = vcmask 1041408   ;;  %vm7038_vm11 = vcmask 547840   ;;  %vm7676_vm12 = vsmask.f32 4352 }
  0x3a   : > { %v536_v2 = vld [vmem:[%s12211_s27] sm:$0xf]  ;;  %v12225_v5 = vld [vmem:[%s12211_s27 + $0x4] sm:$0xf]  ;;  %v12229_v7 = vld [vmem:[%s12211_s27 + $0x8] sm:$0xff]  }
  0x3b   : > { %v9141_v6 = vcombine.low %v536_v2, %v12225_v5  ;;  %v12232_v8 = vld [vmem:[%s12211_s27 + $0x10] sm:$0xff]   ;;  %v675_v11 = vshll.u32 %v12229_v7, 16  ;;  %v679_v12 = vshrl.u32 %v12229_v7, 16  ;;  %v12241_v14 = vld [vmem:[%s12211_s27 + $0x18] sm:$0xff]   ;;  %v12245_v16 = vld [vmem:[%s12211_s27 + $0x20] sm:$0xff]   ;;  %v1274_v0 = vrot.slane %v12229_v7, 1 }
  0x3c   : > { %v683_v13 = vshll.u32 %v12232_v8, 16  ;;  %v687_v15 = vshrl.u32 %v12232_v8, 16  ;;  %v691_v20 = vshll.u32 %v12241_v14, 16  ;;  %v699_v23 = vshll.u32 %v12245_v16, 16  ;;  %v12252_v24 = vld [vmem:[%s12211_s27 + $0x28] sm:$0xff]   ;;  %v12263_v34 = vld [vmem:[%s12211_s27 + $0x30] sm:$0xff]  }
  0x3d   : > { %v668_v9 = vshrl.u32 %v9141_v6, 16  ;;  %v670_v10 = vshll.u32 %v9141_v6, 16  ;;  %10464 = vmatprep.mubr.msk.bf16.mxu1 %vm810_vm1, %v9141_v6  ;;  %v677_v18 = vrot.slane %v675_v11, 1  ;;  %v695_v27 = vshrl.u32 %v12241_v14, 16  ;;  %v12271_v38 = vld [vmem:[%s12211_s27 + $0x38] sm:$0xff]   ;;  %v12286_v48 = vld [vmem:[%s12211_s27 + $0x40] sm:$0xff]  }
  0x3e   : > { %10465 = vmatmul.mubr.msk.bf16.vlgmr.msra.gmra.mxu1 %vm810_vm1, %v12229_v7  ;;  %v685_v19 = vrot.slane %v683_v13, 1  ;;  %v693_v26 = vrot.slane %v691_v20, 1  ;;  %v703_v30 = vshrl.u32 %v12245_v16, 16  ;;  %v707_v31 = vshll.u32 %v12252_v24, 16  ;;  %v12294_v52 = vld [vmem:[%s12211_s27 + $0x48] sm:$0xff]   ;;  %v12310_v63 = vld [vmem:[%s12211_s27 + $0x50] sm:$0xff]  }
  0x3f   : > { %v672_v17 = vrot.slane %v670_v10, 1  ;;  %10468 = vmatprep.mubr.msk.bf16.mxu1 %vm810_vm1, %v12232_v8  ;;  %v681_v22 = vor.u32 %v679_v12, %v677_v18  ;;  %v701_v33 = vrot.slane %v699_v23, 1  ;;  %v715_v39 = vshll.u32 %v12263_v34, 16  ;;  %v1266_v57 = vld [vmem:[%s12211_s27] sm:$0xe]  ;;  %10539 = vmatpush3.bf16.msra.mxu1 %v1796_v1 }
  0x40   : > { %v689_v25 = vor.u32 %v687_v15, %v685_v19  ;;  %v697_v35 = vor.u32 %v695_v27, %v693_v26  ;;  %v709_v37 = vrot.slane %v707_v31, 1  ;;  %v711_v41 = vshrl.u32 %v12252_v24, 16  ;;  %v12374_v42 = vld [vmem:[%s12211_s27 + $0x88] sm:$0xf] }
  0x41   : > { %v673_v21 = vor.u32 %v672_v17, %v668_v9  ;;  %v686_v29 = vsel %vm666_vm2, %v681_v22, %v685_v19  ;;  %v705_v36 = vor.u32 %v703_v30, %v701_v33  ;;  %v719_v44 = vshrl.u32 %v12263_v34, 16  ;;  %v11507_v9 = vld [vmem:[%s12211_s27 + $0x58] sm:$0xff]   ;;  %v11508_v22 = vld [vmem:[%s12211_s27 + $0x60] sm:$0xff]  }
  0x42   : > { %v694_v32 = vsel %vm666_vm2, %v689_v25, %v693_v26  ;;  %v702_v40 = vsel %vm666_vm2, %v697_v35, %v701_v33  ;;  %v723_v45 = vshll.u32 %v12271_v38, 16  ;;  %v717_v47 = vrot.slane %v715_v39, 1  ;;  %v11510_v39 = vld [vmem:[%s12211_s27 + $0x70] sm:$0xff]  }
  0x43   : > { %v678_v28 = vsel %vm666_vm2, %v673_v21, %v677_v18  ;;  %v710_v43 = vsel %vm666_vm2, %v705_v36, %v709_v37  ;;  %v713_v49 = vor.u32 %v711_v41, %v709_v37  ;;  %v731_v53 = vshll.u32 %v12286_v48, 16 }
  0x44   : > { %10426 = vmatprep.mubr.msk.bf16.mxu0 %vm810_vm1, %v678_v28  ;;  %v721_v50 = vor.u32 %v719_v44, %v717_v47  ;;  %v725_v51 = vrot.slane %v723_v45, 1  ;;  %v727_v55 = vshrl.u32 %v12271_v38, 16  ;;  %v735_v59 = vshrl.u32 %v12286_v48, 16  ;;  %v12379_v45 = vld [vmem:[%s15674_s1 + $0x4] sm:$0x1] }
  0x45   : > { %10427 = vmatmul.mubr.msk.bf16.vlgmr.msra.gmra.mxu0 %vm810_vm1, %v686_v29  ;;  %v718_v54 = vsel %vm666_vm2, %v713_v49, %v717_v47  ;;  %v739_v60 = vshll.u32 %v12294_v52, 16  ;;  %v9197_v61 = vcombine.low %v1266_v57, %v12225_v5  ;;  %v733_v62 = vrot.slane %v731_v53, 1  ;;  %v11511_v47 = vld [vmem:[%s12211_s27 + $0x78] sm:$0xff]  }
  0x46   : > { %10430 = vmatprep.mubr.msk.bf16.mxu0 %vm810_vm1, %v694_v32  ;;  %10469 = vmatmul.mubr.msk.bf16.gmra.mxu1 %vm810_vm1, %v12241_v14  ;;  %v726_v58 = vsel %vm666_vm2, %v721_v50, %v725_v51  ;;  %v729_v2 = vor.u32 %v727_v55, %v725_v51  ;;  %v1276_v4 = vrot.slane %v12232_v8, 1  ;;  %v1278_v7 = vrot.slane %v12241_v14, 1  ;;  %v11512_v51 = vld [vmem:[%s12211_s27 + $0x80] sm:$0xff]  }
  0x47   : > { %10472 = vmatprep.mubr.msk.bf16.mxu1 %vm810_vm1, %v12245_v16  ;;  %10501 = vmatpush3.bf16.msra.mxu0 %v1363_v46  ;;  %v1273_v3 = vrot.slane %v9197_v61, 1  ;;  %v737_v5 = vor.u32 %v735_v59, %v733_v62  ;;  %v741_v6 = vrot.slane %v739_v60, 1  ;;  %v1280_v10 = vrot.slane %v12245_v16, 1 }
  0x48   : > { %v12327_v12 = vsel %vm1272_vm3, %v1274_v0, %v1276_v4  ;;  %v747_v8 = vshll.u32 %v12310_v63, 16  ;;  %v12331_v13 = vsel %vm1272_vm3, %v1276_v4, %v1278_v7  ;;  %v734_v17 = vsel %vm666_vm2, %v729_v2, %v733_v62  ;;  %11446 = vmatprep.subr.msk.bf16.mxu0 %vm865_vm0, %v12379_v45 }
  0x49   : > { %v12324_v11 = vsel %vm1272_vm3, %v1273_v3, %v1274_v0  ;;  %v12334_v15 = vsel %vm1272_vm3, %v1278_v7, %v1280_v10  ;;  %v743_v14 = vshrl.u32 %v12294_v52, 16  ;;  %v1282_v16 = vrot.slane %v12252_v24, 1 }
  0x4a   : > { %v1284_v18 = vrot.slane %v12263_v34, 1  ;;  %v742_v19 = vsel %vm666_vm2, %v737_v5, %v741_v6  ;;  %v751_v20 = vshrl.u32 %v12310_v63, 16  ;;  %v755_v21 = vshll.u32 %v11507_v9, 16  ;;  %v9291_v5 = vld [vmem:[%s15674_s1 + $0x5] sm:$0x1] }
  0x4b   : > { %v12344_v23 = vsel %vm1272_vm3, %v1280_v10, %v1282_v16  ;;  %v749_v26 = vrot.slane %v747_v8, 1  ;;  %v1288_v27 = vrot.slane %v12286_v48, 1  ;;  %v745_v28 = vor.u32 %v743_v14, %v741_v6  ;;  %11447 = vmatprep.subr.msk.bf16.mxu1 %vm865_vm0, %v9291_v5 }
  0x4c   : > { %v12347_v25 = vsel %vm1272_vm3, %v1282_v16, %v1284_v18  ;;  %v759_v29 = vshrl.u32 %v11507_v9, 16  ;;  %v1290_v30 = vrot.slane %v12294_v52, 1  ;;  %v1292_v31 = vrot.slane %v12310_v63, 1 }
  0x4d   : > { %10431 = vmatmul.mubr.msk.bf16.gmra.mxu0 %vm810_vm1, %v702_v40  ;;  %v753_v32 = vor.u32 %v751_v20, %v749_v26  ;;  %v757_v33 = vrot.slane %v755_v21, 1  ;;  %v763_v37 = vshll.u32 %v11508_v22, 16  ;;  %v1296_v44 = vrot.slane %v11508_v22, 1 }
  0x4e   : > { %10434 = vmatprep.mubr.msk.bf16.mxu0 %vm810_vm1, %v710_v43  ;;  %10473 = vmatmul.mubr.msk.bf16.gmra.mxu1 %vm810_vm1, %v12252_v24  ;;  %v1286_v24 = vrot.slane %v12271_v38, 1  ;;  %v12368_v40 = vsel %vm1272_vm3, %v1288_v27, %v1290_v30  ;;  %v12371_v41 = vsel %vm1272_vm3, %v1290_v30, %v1292_v31  ;;  %v1294_v43 = vrot.slane %v11507_v9, 1 }
  0x4f   : > { %10476 = vmatprep.mubr.msk.bf16.mxu1 %vm810_vm1, %v12263_v34  ;;  %v11509_v34 = vld [vmem:[%s12211_s27 + $0x68] sm:$0xff]   ;;  %v750_v46 = vsel %vm666_vm2, %v745_v28, %v749_v26  ;;  %v758_v49 = vsel %vm666_vm2, %v753_v32, %v757_v33  ;;  %v1300_v55 = vrot.slane %v11510_v39, 1  ;;  %v761_v56 = vor.u32 %v759_v29, %v757_v33  ;;  %v11517_v29 = vld [vmem:[%s12211_s27 + $0x10] sm:$0xff]  }
  0x50   : > { %v12361_v35 = vsel %vm1272_vm3, %v1284_v18, %v1286_v24  ;;  %v12364_v36 = vsel %vm1272_vm3, %v1286_v24, %v1288_v27  ;;  %v771_v50 = vshll.u32 %v11509_v34, 16  ;;  %v12392_v53 = vsel %vm1272_vm3, %v1294_v43, %v1296_v44  ;;  %v11516_v28 = vld [vmem:[%s12211_s27 + $0x8] sm:$0xfe]  }
  0x51   : > { %v765_v57 = vrot.slane %v763_v37, 1  ;;  %v1302_v61 = vrot.slane %v11511_v47, 1  ;;  %v1304_v62 = vrot.slane %v11512_v51, 1  ;;  %v779_v4 = vshll.u32 %v11510_v39, 16  ;;  %v571_v32 = vld [vmem:[%s12211_s27 + $0x8c] sm:$0x7] }
  0x52   : > { %v773_v0 = vrot.slane %v771_v50, 1  ;;  %v783_v8 = vshrl.u32 %v11510_v39, 16  ;;  %v795_v20 = vshll.u32 %v11512_v51, 16  ;;  %v799_v24 = vshrl.u32 %v11512_v51, 16 }
  0x53   : > { %v12408_v1 = vsel %vm1272_vm3, %v1300_v55, %v1302_v61  ;;  %v12411_v2 = vsel %vm1272_vm3, %v1302_v61, %v1304_v62  ;;  %v766_v6 = vsel %vm666_vm2, %v761_v56, %v765_v57  ;;  %v781_v14 = vrot.slane %v779_v4, 1  ;;  %v11522_v56 = vld [vmem:[%s12211_s27 + $0x38] sm:$0xff]   ;;  %v12455_v61 = vld [vmem:[%s12211_s27 + $0x40] sm:$0xff]  }
  0x54   : > { %v797_v30 = vrot.slane %v795_v20, 1  ;;  %v1706_v37 = vrot.slane %v11516_v28, 1  ;;  %v2679_v4 = vsel %vm865_vm0, %v9291_v5, 0  ;;  %v1717_v5 = vrot.slane %v11522_v56, 1  ;;  %v12487_v20 = vld [vmem:[%s12211_s27 + $0x78] sm:$0xff]  }
  0x55   : > { %10435 = vmatmul.mubr.msk.bf16.gmra.mxu0 %vm810_vm1, %v718_v54  ;;  %v1298_v54 = vrot.slane %v11509_v34, 1  ;;  %v785_v18 = vor.u32 %v783_v8, %v781_v14  ;;  %v12473_v8 = vld [vmem:[%s12211_s27 + $0x60] sm:$0xff]  }
  0x56   : > { %10438 = vmatprep.mubr.msk.bf16.mxu0 %vm810_vm1, %v726_v58  ;;  %10477 = vmatmul.mubr.msk.bf16.gmra.mxu1 %vm810_vm1, %v12271_v38  ;;  %v767_v38 = vshrl.u32 %v11508_v22, 16  ;;  %v801_v33 = vor.u32 %v799_v24, %v797_v30  ;;  %v1727_v24 = vrot.slane %v12473_v8, 1 }
  0x57   : > { %10480 = vmatprep.mubr.msk.bf16.mxu1 %vm810_vm1, %v12286_v48  ;;  %v573_v48 = vld [vmem:[%s12211_s27 + $0x8c] sm:$0xf]  ;;  %v12401_v59 = vsel %vm1272_vm3, %v1296_v44, %v1298_v54  ;;  %v12404_v60 = vsel %vm1272_vm3, %v1298_v54, %v1300_v55  ;;  %v11521_v55 = vld [vmem:[%s12211_s27 + $0x30] sm:$0xff]  }
  0x58   : > { %v12396_v58 = vcombine.low %v12374_v42, %v573_v48  ;;  %v11519_v48 = vld [vmem:[%s12211_s27 + $0x20] sm:$0xff]  }
  0x59   : > { %v1711_v50 = vrot.slane %v11519_v48, 1 }
  0x5a   : > { %v15689_v3 = vrot.slane %v12396_v58, 1  ;;  %v803_v27 = vshll.u32 %v12396_v58, 16 }
  0x5c   : > { %v12421_v7 = vsel %vm1272_vm3, %v1304_v62, %v15689_v3  ;;  %v12623_v3 = vld [vmem:[%s12211_s27 + $0x50] sm:$0xff]  }
  0x5d   : > { %10439 = vmatmul.mubr.msk.bf16.gmra.mxu0 %vm810_vm1, %v734_v17  ;;  %v787_v17 = vshll.u32 %v11511_v47, 16 }
  0x5e   : > { %10442 = vmatprep.mubr.msk.bf16.mxu0 %vm810_vm1, %v742_v19  ;;  %10481 = vmatmul.mubr.msk.bf16.gmra.mxu1 %vm810_vm1, %v12294_v52  ;;  %v12389_v52 = vsel %vm1272_vm3, %v1292_v31, %v1294_v43  ;;  %v9177_v43 = vcombine.low %v12374_v42, %v571_v32  ;;  %v12508_v32 = vld [vmem:[%s15674_s1 + $0x6] sm:$0x1] }
  0x5f   : > { %10484 = vmatprep.mubr.msk.bf16.mxu1 %vm810_vm1, %v12310_v63  ;;  %v769_v63 = vor.u32 %v767_v38, %v765_v57  ;;  %v789_v19 = vrot.slane %v787_v17, 1  ;;  %v1707_v38 = vrot.slane %v11517_v29, 1  ;;  %v12477_v17 = vld [vmem:[%s12211_s27 + $0x68] sm:$0xff]   ;;  %v2365_v29 = vsel %vm865_vm0, %v12379_v45, 0 }
  0x61   : > { %v774_v10 = vsel %vm666_vm2, %v769_v63, %v773_v0  ;;  %v790_v26 = vsel %vm666_vm2, %v785_v18, %v789_v19  ;;  %v12459_v63 = vld [vmem:[%s12211_s27 + $0x48] sm:$0xff]   ;;  %v12482_v18 = vld [vmem:[%s12211_s27 + $0x70] sm:$0xff]  }
  0x62   : > { %v15690_v45 = vrot.slane %v12482_v18, 1 }
  0x65   : > { %10443 = vmatmul.mubr.msk.bf16.gmra.mxu0 %vm810_vm1, %v750_v46  ;;  %v11518_v46 = vld [vmem:[%s12211_s27 + $0x18] sm:$0xff]  }
  0x66   : > { %10446 = vmatprep.mubr.msk.bf16.mxu0 %vm810_vm1, %v758_v49  ;;  %10485 = vmatmul.mubr.msk.bf16.gmra.mxu1 %vm810_vm1, %v11507_v9  ;;  %v775_v9 = vshrl.u32 %v11509_v34, 16  ;;  %v807_v49 = vshrl.u32 %v12396_v58, 16  ;;  %v1709_v42 = vrot.slane %v11518_v46, 1 }
  0x67   : > { %10488 = vmatprep.mubr.msk.bf16.mxu1 %vm810_vm1, %v11508_v22  ;;  %v791_v22 = vshrl.u32 %v11511_v47, 16 }
  0x68   : > { %v777_v16 = vor.u32 %v775_v9, %v773_v0  ;;  %v1710_v57 = vsel %vm1272_vm3, %v1707_v38, %v1709_v42  ;;  %v1712_v62 = vsel %vm1272_vm3, %v1709_v42, %v1711_v50  ;;  %v12462_v0 = vld [vmem:[%s12211_s27 + $0x50] sm:$0xff]   ;;  %v12467_v9 = vld [vmem:[%s12211_s27 + $0x58] sm:$0xff]  }
  0x69   : > { %v793_v31 = vor.u32 %v791_v22, %v789_v19  ;;  %v1725_v19 = vrot.slane %v12467_v9, 1  ;;  %v2011_v22 = vld [vmem:[%s12211_s27 + $0x8] sm:$0xe] }
  0x6a   : > { %v782_v21 = vsel %vm666_vm2, %v777_v16, %v781_v14  ;;  %v1719_v14 = vrot.slane %v12455_v61, 1  ;;  %v1721_v16 = vrot.slane %v12459_v63, 1 }
  0x6c   : > { %v1720_v48 = vsel %vm1272_vm3, %v1717_v5, %v1719_v14 }
  0x6d   : > { %10447 = vmatmul.mubr.msk.bf16.gmra.mxu0 %vm810_vm1, %v766_v6 }
  0x6e   : > { %10450 = vmatprep.mubr.msk.bf16.mxu0 %vm810_vm1, %v774_v10  ;;  %10489 = vmatmul.mubr.msk.bf16.gmra.mxu1 %vm810_vm1, %v11509_v34  ;;  %v805_v34 = vrot.slane %v803_v27, 1  ;;  %v1715_v10 = vrot.slane %v11521_v55, 1  ;;  %v2012_v27 = vld [vmem:[%s12211_s27 + $0xc] sm:$0xf] }
  0x6f   : > { %10492 = vmatprep.mubr.msk.bf16.mxu1 %vm810_vm1, %v11510_v39  ;;  %v798_v39 = vsel %vm666_vm2, %v793_v31, %v797_v30  ;;  %v1729_v30 = vrot.slane %v12477_v17, 1  ;;  %v12501_v31 = vld [vmem:[%s12211_s27 + $0x10] sm:$0xff]   ;;  %v12544_v55 = vld [vmem:[%s12211_s27 + $0x28] sm:$0xff]   ;;  %v12703_v17 = vld [vmem:[%s12211_s27 + $0x78] sm:$0xff]  }
  0x70   : > { %v806_v44 = vsel %vm666_vm2, %v801_v33, %v805_v34  ;;  %v809_v54 = vor.u32 %v807_v49, %v805_v34  ;;  %v12516_v34 = vld [vmem:[%s12211_s27 + $0x88] sm:$0xff]   ;;  %v1718_v46 = vsel %vm1272_vm3, %v1715_v10, %v1717_v5  ;;  %v12560_v5 = vld [vmem:[%s12211_s27 + $0x30] sm:$0xff]  }
  0x71   : > { %v2189_v61 = vshrl.u32 %v12560_v5, 16  ;;  %v1732_v42 = vsel %vm1272_vm3, %v1729_v30, %v15690_v45  ;;  %v15712_v45 = vrot.slane %v12487_v20, 1 }
  0x75   : > { %10451 = vmatmul.mubr.msk.bf16.gmra.mxu0 %vm810_vm1, %v782_v21  ;;  %v12490_v21 = vld [vmem:[%s12211_s27 + $0x80] sm:$0xff]  }
  0x76   : > { %10454 = vmatprep.mubr.msk.bf16.mxu0 %vm810_vm1, %v790_v26  ;;  %10493 = vmatmul.mubr.msk.bf16.gmra.mxu1 %vm810_vm1, %v11511_v47  ;;  %v1708_v47 = vsel %vm1272_vm3, %v1706_v37, %v1707_v38  ;;  %v12519_v37 = vld [vmem:[%s12211_s27 + $0x90] sm:$0xff]   ;;  %v9254_v38 = vcombine.low %v2011_v22, %v2012_v27 }
  0x77   : > { %10496 = vmatprep.mubr.msk.bf16.mxu1 %vm810_vm1, %v11512_v51  ;;  %v11520_v51 = vld [vmem:[%s12211_s27 + $0x28] sm:$0xff]  }
  0x78   : > { %v1713_v6 = vrot.slane %v11520_v51, 1  ;;  %v2580_v51 = vld [vmem:[%s12211_s27 + $0x8] sm:$0xc] }
  0x7a   : > { %v1714_v26 = vsel %vm1272_vm3, %v1711_v50, %v1713_v6  ;;  %v1716_v28 = vsel %vm1272_vm3, %v1713_v6, %v1715_v10  ;;  %v2148_v50 = vshll.u32 %v9254_v38, 16 }
  0x7d   : > { %10455 = vmatmul.mubr.msk.bf16.gmra.mxu0 %vm810_vm1, %v798_v39  ;;  %v12525_v39 = vld [vmem:[%s12211_s27 + $0x18] sm:$0xff]  }
  0x7e   : > { %10458 = vmatprep.mubr.msk.bf16.mxu0 %vm810_vm1, %v806_v44  ;;  %10497 = vmatmul.mubr.msk.bf16.gmra.mxu1 %vm810_vm1, %v9177_v43  ;;  %v12530_v43 = vld [vmem:[%s12211_s27 + $0x20] sm:$0xff]   ;;  %v2156_v44 = vshll.u32 %v12501_v31, 16 }
  0x7f   : > { %10540 = vmatprep.mubr.msk.bf16.mxu1 %vm810_vm1, %v1708_v47  ;;  %v2145_v47 = vshrl.u32 %v9254_v38, 16  ;;  %v2171_v6 = vshrl.u32 %v12530_v43, 16  ;;  %v2174_v10 = vshll.u32 %v12530_v43, 16 }
  0x85   : > { %10459 = vmatmul.mubr.msk.bf16.gmra.mxu0 %vm810_vm1, %v809_v54  ;;  %v2162_v54 = vshrl.u32 %v12525_v39, 16 }
  0x86   : > { %10502 = vmatprep.mubr.msk.bf16.mxu0 %vm810_vm1, %v12324_v11  ;;  %10541 = vmatmul.mubr.msk.bf16.vlgmr.msra.gmra.mxu1 %vm810_vm1, %v1710_v57  ;;  %v1723_v11 = vrot.slane %v12462_v0, 1  ;;  %v2165_v57 = vshll.u32 %v12525_v39, 16 }
  0x87   : > { %10544 = vmatprep.mubr.msk.bf16.mxu1 %vm810_vm1, %v1712_v62  ;;  %10615 = vmatpush3.bf16.msra.mxu1 %v2679_v4  ;;  %v12553_v62 = vrot.slane %v2145_v47, 1  ;;  %v12555_v4 = vrot.slane %v2156_v44, 2  ;;  %v12564_v22 = vrot.slane %v2162_v54, 1  ;;  %v12578_v44 = vld [vmem:[%s15674_s1 + $0x7] sm:$0x1] }
  0x88   : > { %11449 = vmatprep.subr.msk.bf16.mxu1 %vm865_vm0, %v12578_v44 }
  0x8d   : > { %10503 = vmatmul.mubr.msk.bf16.vlgmr.msra.gmra.mxu0 %vm810_vm1, %v12327_v12 }
  0x8e   : > { %10506 = vmatprep.mubr.msk.bf16.mxu0 %vm810_vm1, %v12331_v13  ;;  %10545 = vmatmul.mubr.msk.bf16.gmra.mxu1 %vm810_vm1, %v1714_v26  ;;  %v2153_v13 = vshrl.u32 %v12501_v31, 16  ;;  %v2180_v26 = vshrl.u32 %v12544_v55, 16 }
  0x8f   : > { %10548 = vmatprep.mubr.msk.bf16.mxu1 %vm810_vm1, %v1716_v28  ;;  %10577 = vmatpush3.bf16.msra.mxu0 %v2365_v29  ;;  %v12568_v28 = vld [vmem:[%s12211_s27 + $0x38] sm:$0xff]   ;;  %v12570_v29 = vrot.slane %v2165_v57, 2  ;;  %v2192_v57 = vshll.u32 %v12560_v5, 16 }
  0x90   : > { %11448 = vmatprep.subr.msk.bf16.mxu0 %vm865_vm0, %v12508_v32  ;;  %v12549_v56 = vrot.slane %v2153_v13, 1  ;;  %v2183_v13 = vshll.u32 %v12544_v55, 16  ;;  %v12604_v54 = vrot.slane %v2180_v26, 1  ;;  %v2201_v63 = vshll.u32 %v12568_v28, 16 }
  0x91   : > { %v12620_v26 = vrot.slane %v2189_v61, 1  ;;  %v1726_v61 = vsel %vm1272_vm3, %v1723_v11, %v1725_v19 }
  0x95   : > { %10507 = vmatmul.mubr.msk.bf16.gmra.mxu0 %vm810_vm1, %v12334_v15  ;;  %v9292_v15 = vcombine.low %v2580_v51, %v2012_v27  ;;  %v12596_v51 = vrot.slane %v2174_v10, 2  ;;  %v12625_v27 = vrot.slane %v2192_v57, 2  ;;  %v12642_v57 = vld [vmem:[%s12211_s27 + $0x58] sm:$0xff]  }
  0x96   : > { %10510 = vmatprep.mubr.msk.bf16.mxu0 %vm810_vm1, %v12344_v23  ;;  %10549 = vmatmul.mubr.msk.bf16.gmra.mxu1 %vm810_vm1, %v1718_v46  ;;  %v12562_v23 = vrot.slane %v2148_v50, 2  ;;  %v1722_v46 = vsel %vm1272_vm3, %v1719_v14, %v1721_v16  ;;  %v1724_v50 = vsel %vm1272_vm3, %v1721_v16, %v1723_v11  ;;  %v12600_v14 = vld [vmem:[%s12211_s27 + $0x40] sm:$0xff]   ;;  %v12612_v16 = vrot.slane %v2183_v13, 2 }
  0x97   : > { %10552 = vmatprep.mubr.msk.bf16.mxu1 %vm810_vm1, %v1720_v48  ;;  %v12585_v47 = vrot.slane %v9292_v15, 2  ;;  %v12587_v48 = vrot.slane %v2171_v6, 1  ;;  %v2198_v15 = vshrl.u32 %v12568_v28, 16  ;;  %v12615_v6 = vld [vmem:[%s12211_s27 + $0x48] sm:$0xff]   ;;  %v12629_v13 = vrot.slane %v2201_v63, 2 }
  0x98   : > { %v2207_v38 = vshrl.u32 %v12600_v14, 16  ;;  %v2219_v10 = vshll.u32 %v12615_v6, 16  ;;  %v2225_v11 = vshrl.u32 %v12623_v3, 16 }
  0x9a   : > { %v12658_v0 = vrot.slane %v2207_v38, 1  ;;  %v2234_v38 = vshrl.u32 %v12642_v57, 16  ;;  %v12675_v49 = vrot.slane %v2225_v11, 1  ;;  %v12691_v11 = vld [vmem:[%s12211_s27 + $0x70] sm:$0xff]  }
  0x9b   : > { %15707 = vst [vmem:[#allocation12_spill] sm:$0xff] %v12691_v11 }
  0x9d   : > { %10511 = vmatmul.mubr.msk.bf16.gmra.mxu0 %vm810_vm1, %v12347_v25  ;;  %v2216_v25 = vshrl.u32 %v12615_v6, 16 }
  0x9e   : > { %10514 = vmatprep.mubr.msk.bf16.mxu0 %vm810_vm1, %v12361_v35  ;;  %10553 = vmatmul.mubr.msk.bf16.gmra.mxu1 %vm810_vm1, %v1722_v46  ;;  %v12627_v35 = vrot.slane %v2198_v15, 1  ;;  %v1728_v15 = vsel %vm1272_vm3, %v1725_v19, %v1727_v24  ;;  %v12653_v46 = vld [vmem:[%s12211_s27 + $0x60] sm:$0xff]  }
  0x9f   : > { %10556 = vmatprep.mubr.msk.bf16.mxu1 %vm810_vm1, %v1724_v50  ;;  %v2210_v50 = vshll.u32 %v12600_v14, 16  ;;  %v12664_v19 = vrot.slane %v2216_v25, 1  ;;  %v2243_v25 = vshrl.u32 %v12653_v46, 16 }
  0xa1   : > { %v12662_v9 = vrot.slane %v2210_v50, 2  ;;  %v2237_v50 = vshll.u32 %v12642_v57, 16  ;;  %v12712_v33 = vrot.slane %v2243_v25, 1  ;;  %v15713_v25 = vrot.slane %v12482_v18, 1  ;;  %v2894_v18 = vld [vmem:[%s12211_s27 + $0x10] sm:$0xc] }
  0xa5   : > { %10515 = vmatmul.mubr.msk.bf16.gmra.mxu0 %vm810_vm1, %v12364_v36  ;;  %v12666_v36 = vrot.slane %v2219_v10, 2  ;;  %v2246_v10 = vshll.u32 %v12653_v46, 16 }
  0xa6   : > { %10518 = vmatprep.mubr.msk.bf16.mxu0 %vm810_vm1, %v12368_v40  ;;  %10557 = vmatmul.mubr.msk.bf16.gmra.mxu1 %vm810_vm1, %v1726_v61  ;;  %v2228_v40 = vshll.u32 %v12623_v3, 16  ;;  %v12673_v61 = vld [vmem:[%s12211_s27 + $0x68] sm:$0xff]  }
  0xa7   : > { %10560 = vmatprep.mubr.msk.bf16.mxu1 %vm810_vm1, %v1728_v15  ;;  %15706 = vst [vmem:[#allocation11_spill] sm:$0xff] %v12673_v61  ;;  %v1730_v15 = vsel %vm1272_vm3, %v1727_v24, %v1729_v30  ;;  %v2252_v63 = vshrl.u32 %v12673_v61, 16  ;;  %v2255_v12 = vshll.u32 %v12673_v61, 16  ;;  %v12706_v24 = vrot.slane %v2234_v38, 1 }
  0xa8   : > { %v12700_v8 = vrot.slane %v2228_v40, 2  ;;  %v2264_v38 = vshll.u32 %v12691_v11, 16 }
  0xa9   : > { %v12718_v40 = vrot.slane %v2255_v12, 2  ;;  %v15714_v12 = vrot.slane %v12490_v21, 1 }
  0xaa   : > { %15708 = vst [vmem:[#allocation13_spill] sm:$0xff] %v12700_v8  ;;  %v15715_v8 = vmov %v15712_v45 }
  0xab   : > { %15711 = vst [vmem:[#allocation16_spill] sm:$0xff] %v12718_v40  ;;  %v1736_v30 = vsel %vm1272_vm3, %v15715_v8, %v15714_v12  ;;  %v12744_v40 = vsel %vm865_vm0, %v12508_v32, 0  ;;  %v12764_v12 = vld [vmem:[%s12211_s27 + $0x90] sm:$0xff]   ;;  %v15721_v8 = vrot.slane %v12519_v37, 1 }
  0xac   : > { %v2297_v61 = vshrl.u32 %v12764_v12, 16 }
  0xad   : > { %10519 = vmatmul.mubr.msk.bf16.gmra.mxu0 %vm810_vm1, %v12371_v41  ;;  %v12708_v41 = vrot.slane %v2237_v50, 2  ;;  %v2270_v50 = vshrl.u32 %v12703_v17, 16 }
  0xae   : > { %10522 = vmatprep.mubr.msk.bf16.mxu0 %vm810_vm1, %v12389_v52  ;;  %10561 = vmatmul.mubr.msk.bf16.gmra.mxu1 %vm810_vm1, %v1730_v15  ;;  %v12714_v52 = vrot.slane %v2246_v10, 2  ;;  %v12716_v15 = vrot.slane %v2252_v63, 1  ;;  %v1734_v10 = vsel %vm1272_vm3, %v15713_v25, %v15712_v45  ;;  %v12733_v63 = vld [vmem:[%s12211_s27 + $0x88] sm:$0xff]   ;;  %v2273_v45 = vshll.u32 %v12703_v17, 16 }
  0xaf   : > { %10564 = vmatprep.mubr.msk.bf16.mxu1 %vm810_vm1, %v1732_v42  ;;  %15709 = vst [vmem:[#allocation14_spill] sm:$0xff] %v12708_v41  ;;  %v2261_v42 = vshrl.u32 %v12691_v11, 16  ;;  %v12725_v41 = vld [vmem:[%s12211_s27 + $0x80] sm:$0xff]   ;;  %v12756_v32 = vrot.slane %v2270_v50, 1 }
  0xb0   : > { %15710 = vst [vmem:[#allocation15_spill] sm:$0xff] %v12716_v15  ;;  %v2279_v25 = vshrl.u32 %v12725_v41, 16  ;;  %v12779_v15 = vld [vmem:[%s12211_s27 + $0x98] ss:$0 sps:$4 sm:$0x11]   ;;  %v12783_v11 = vrot.slane %v2273_v45, 2 }
  0xb1   : > { %v12750_v20 = vrot.slane %v2261_v42, 1  ;;  %15718 = vst [vmem:[#allocation19_spill] sm:$0xff] %v12756_v32  ;;  %v2291_v42 = vshll.u32 %v12733_v63, 16 }
  0xb3   : > { %15716 = vst [vmem:[#allocation17_spill] sm:$0xff] %v12750_v20  ;;  %v2895_v20 = vld [vmem:[%s12211_s27 + $0x14] sm:$0xf] }
  0xb5   : > { %10523 = vmatmul.mubr.msk.bf16.gmra.mxu0 %vm810_vm1, %v12392_v53  ;;  %v12754_v53 = vrot.slane %v2264_v38, 2  ;;  %v15720_v38 = vrot.slane %v12490_v21, 1  ;;  %v15727_v21 = vrot.slane %v12519_v37, 1  ;;  %v3565_v37 = vsel %vm865_vm0, %v12578_v44, 0 }
  0xb6   : > { %10526 = vmatprep.mubr.msk.bf16.mxu0 %vm810_vm1, %v12401_v59  ;;  %10565 = vmatmul.mubr.msk.bf16.gmra.mxu1 %vm810_vm1, %v1734_v10  ;;  %v2282_v59 = vshll.u32 %v12725_v41, 16  ;;  %v2288_v10 = vshrl.u32 %v12733_v63, 16 }
  0xb7   : > { %10568 = vmatprep.mubr.msk.bf16.mxu1 %vm810_vm1, %v1736_v30  ;;  %15717 = vst [vmem:[#allocation18_spill] sm:$0xff] %v12754_v53  ;;  %v15719_v30 = vrot.slane %v12516_v34, 1  ;;  %v12790_v34 = vrot.slane %v2279_v25, 1  ;;  %v2300_v25 = vshll.u32 %v12764_v12, 16 }
  0xb8   : > { %v12797_v45 = vrot.slane %v2288_v10, 1  ;;  %v15726_v10 = vrot.slane %v12501_v31, 2 }
  0xb9   : > { %v1738_v50 = vsel %vm1272_vm3, %v15720_v38, %v15719_v30  ;;  %v15722_v32 = vmov %v15719_v30  ;;  %v12803_v38 = vrot.slane %v2297_v61, 1  ;;  %v2159_v61 = vor.u32 %v12555_v4, %v12549_v56  ;;  %v12838_v4 = vld [vmem:[%s12211_s27 + $0x28] sm:$0xff]  }
  0xba   : > { %v1740_v53 = vsel %vm1272_vm3, %v15722_v32, %v15721_v8  ;;  %v12792_v32 = vcombine.low %v2894_v18, %v2895_v20  ;;  %v12799_v8 = vrot.slane %v2291_v42, 2  ;;  %v2306_v18 = vshll.u32 %v12779_v15, 16  ;;  %v12811_v20 = vld [vmem:[%s12211_s27 + $0x20] sm:$0xff]   ;;  %15730 = vst [vmem:[#allocation25_spill] sm:$0xff] %v12838_v4 }
  0xbb   : > { %15725 = vst [vmem:[#allocation22_spill] sm:$0xff] %v12811_v20  ;;  %v2589_v42 = vsel %vm2586_vm4, %v12585_v47, %v15726_v10  ;;  %v2151_v47 = vor.u32 %v12562_v23, %v12553_v62  ;;  %v12832_v10 = vrot.slane %v2300_v25, 2  ;;  %v3358_v56 = vshrl.u32 %v12811_v20, 16 }
  0xbc   : > { %15723 = vst [vmem:[#allocation20_spill] sm:$0xff] %v12792_v32  ;;  %v3361_v62 = vshll.u32 %v12811_v20, 16  ;;  %v3367_v23 = vshrl.u32 %v12838_v4, 16  ;;  %v15733_v20 = vrot.slane %v12530_v43, 2 }
  0xbd   : > { %10527 = vmatmul.mubr.msk.bf16.gmra.mxu0 %vm810_vm1, %v12404_v60  ;;  %v12795_v60 = vrot.slane %v2282_v59, 2  ;;  %v3344_v59 = vshll.u32 %v12792_v32, 16  ;;  %15728 = vst [vmem:[#allocation23_spill] sm:$0xff] %v12832_v10 }
  0xbe   : > { %10530 = vmatprep.mubr.msk.bf16.mxu0 %vm810_vm1, %v12408_v1  ;;  %10569 = vmatmul.mubr.msk.bf16.gmra.mxu1 %vm810_vm1, %v1738_v50  ;;  %v12807_v50 = vld [vmem:[%s12211_s27 + $0x18] sm:$0xff]  }
  0xbf   : > { %10572 = vmatprep.mubr.msk.bf16.mxu1 %vm810_vm1, %v1740_v53  ;;  %15724 = vst [vmem:[#allocation21_spill] sm:$0xff] %v12807_v50  ;;  %v3341_v53 = vshrl.u32 %v12792_v32, 16  ;;  %v3349_v30 = vshrl.u32 %v12807_v50, 16  ;;  %v3352_v1 = vshll.u32 %v12807_v50, 16  ;;  %v15735_v32 = vrot.slane %v12396_v58, 1  ;;  %v12882_v50 = vld [vmem:[%s12211_s27 + $0x40] sm:$0xff]  }
  0xc0   : > { %v2177_v58 = vor.u32 %v12596_v51, %v12587_v48  ;;  %v3397_v51 = vshll.u32 %v12882_v50, 16 }
  0xc1   : > { %v12846_v25 = vrot.slane %v3341_v53, 2  ;;  %v12851_v10 = vrot.slane %v3349_v30, 2  ;;  %v2160_v53 = vsel %vm2143_vm5, %v2151_v47, %v2159_v61  ;;  %v3370_v47 = vshll.u32 %v12838_v4, 16 }
  0xc5   : > { %10531 = vmatmul.mubr.msk.bf16.gmra.mxu0 %vm810_vm1, %v12411_v2  ;;  %v12834_v2 = vrot.slane %v2306_v18, 2  ;;  %v15731_v18 = vrot.slane %v12525_v39, 2  ;;  %v12891_v39 = vld [vmem:[%s12211_s27 + $0x48] sm:$0xff]  }
  0xc6   : > { %10534 = vmatprep.mubr.msk.bf16.mxu0 %vm810_vm1, %v12421_v7  ;;  %10573 = vmatmul.mubr.msk.bf16.gmra.mxu1 %vm810_vm1, %v15727_v21  ;;  %v12857_v21 = vrot.slane %v3358_v56, 2  ;;  %v12860_v7 = vld [vmem:[%s12211_s27 + $0x30] sm:$0xff]  }
  0xc7   : > { %15729 = vst [vmem:[#allocation24_spill] sm:$0xff] %v12834_v2  ;;  %10616 = vmatprep.mubr.msk.bf16.mxu1 %vm810_vm1, %v2589_v42  ;;  %v12849_v2 = vrot.slane %v3344_v59, 3  ;;  %v12853_v42 = vrot.slane %v3352_v1, 3  ;;  %v15732_v59 = vrot.slane %v12501_v31, 2  ;;  %v12870_v1 = vld [vmem:[%s12211_s27 + $0x38] sm:$0xff]   ;;  %v15734_v44 = vmov %v15731_v18 }
  0xc8   : > { %v2593_v56 = vsel %vm2586_vm4, %v15734_v44, %v15733_v20  ;;  %v2168_v31 = vor.u32 %v12570_v29, %v12564_v22  ;;  %v3379_v20 = vshll.u32 %v12860_v7, 16  ;;  %v12899_v22 = vrot.slane %v3367_v23, 2 }
  0xc9   : > { %v2591_v30 = vsel %vm2586_vm4, %v15732_v59, %v15731_v18  ;;  %v12888_v18 = vrot.slane %v3361_v62, 3  ;;  %v12901_v29 = vrot.slane %v3370_v47, 3  ;;  %v3385_v62 = vshrl.u32 %v12870_v1, 16 }
  0xca   : > { %15737 = vst [vmem:[#allocation27_spill] sm:$0xff] %v12899_v22  ;;  %v3388_v59 = vshll.u32 %v12870_v1, 16  ;;  %v2169_v48 = vsel %vm2143_vm5, %v2159_v61, %v2168_v31  ;;  %v3403_v44 = vshrl.u32 %v12891_v39, 16  ;;  %v2178_v23 = vsel %vm2143_vm5, %v2168_v31, %v2177_v58  ;;  %v12930_v31 = vld [vmem:[%s15674_s1 + $0x8] sm:$0x1] }
  0xcb   : > { %15736 = vst [vmem:[#allocation26_spill] sm:$0xff] %v12888_v18  ;;  %15738 = vst [vmem:[#allocation28_spill] sm:$0xff] %v12901_v29  ;;  %v15739_v47 = vrot.slane %v12544_v55, 2  ;;  %v15741_v29 = vrot.slane %v12560_v5, 2  ;;  %v2186_v18 = vor.u32 %v12612_v16, %v12604_v54  ;;  %v2195_v54 = vor.u32 %v12625_v27, %v12620_v26 }
  0xcc   : > { %v12943_v16 = vrot.slane %v3379_v20, 3  ;;  %v12955_v27 = vrot.slane %v3397_v51, 3  ;;  %v15743_v51 = vrot.slane %v12568_v28, 2  ;;  %v15744_v26 = vrot.slane %v12560_v5, 2 }
  0xcd   : > { %10535 = vmatmul.mubr.msk.bf16.gmra.mxu0 %vm810_vm1, %v15735_v32  ;;  %v3376_v32 = vshrl.u32 %v12860_v7, 16  ;;  %v15742_v61 = vmov %v15739_v47 }
  0xce   : > { %10578 = vmatprep.mubr.msk.bf16.mxu0 %vm810_vm1, %v2160_v53  ;;  %10617 = vmatmul.mubr.msk.bf16.vlgmr.msra.gmra.mxu1 %vm810_vm1, %v2591_v30  ;;  %v3394_v30 = vshrl.u32 %v12882_v50, 16  ;;  %v15740_v53 = vrot.slane %v12530_v43, 2  ;;  %v2597_v22 = vsel %vm2586_vm4, %v15742_v61, %v15741_v29 }
  0xcf   : > { %10620 = vmatprep.mubr.msk.bf16.mxu1 %vm810_vm1, %v2593_v56  ;;  %10691 = vmatpush3.bf16.msra.mxu1 %v3565_v37  ;;  %v12909_v37 = vld [vmem:[%s12211_s27 + $0x50] sm:$0xff]   ;;  %v3406_v56 = vshll.u32 %v12891_v39, 16 }
  0xd0   : > { %v2595_v4 = vsel %vm2586_vm4, %v15740_v53, %v15739_v47  ;;  %v12935_v53 = vrot.slane %v3376_v32, 2  ;;  %v3412_v55 = vshrl.u32 %v12909_v37, 16  ;;  %v3415_v29 = vshll.u32 %v12909_v37, 16 }
  0xd1   : > { %v12947_v32 = vrot.slane %v3385_v62, 2  ;;  %v12951_v47 = vrot.slane %v3394_v30, 2  ;;  %v12960_v20 = vrot.slane %v3406_v56, 3  ;;  %v12969_v30 = vld [vmem:[%s12211_s27 + $0x58] sm:$0xff]   ;;  %v12978_v56 = vld [vmem:[%s12211_s27 + $0x60] sm:$0xff]   ;;  %v15746_v62 = vmov %v15743_v51 }
  0xd2   : > { %v12964_v61 = vrot.slane %v3412_v55, 2  ;;  %v3421_v5 = vshrl.u32 %v12969_v30, 16  ;;  %v3430_v28 = vshrl.u32 %v12978_v56, 16 }
  0xd5   : > { %10579 = vmatmul.mubr.msk.bf16.vlgmr.msra.gmra.mxu0 %vm810_vm1, %v2169_v48  ;;  %v2196_v48 = vsel %vm2143_vm5, %v2186_v18, %v2195_v54 }
  0xd6   : > { %10582 = vmatprep.mubr.msk.bf16.mxu0 %vm810_vm1, %v2178_v23  ;;  %10621 = vmatmul.mubr.msk.bf16.gmra.mxu1 %vm810_vm1, %v2595_v4  ;;  %v12949_v23 = vrot.slane %v3388_v59, 3  ;;  %v12966_v59 = vrot.slane %v3415_v29, 3  ;;  %v3424_v29 = vshll.u32 %v12969_v30, 16  ;;  %v13193_v4 = vld [vmem:[%s12211_s27 + $0x88] sm:$0xff]  }
  0xd7   : > { %10624 = vmatprep.mubr.msk.bf16.mxu1 %vm810_vm1, %v2597_v22  ;;  %10653 = vmatpush3.bf16.msra.mxu0 %v12744_v40  ;;  %v12958_v40 = vrot.slane %v3403_v44, 2  ;;  %v2187_v22 = vsel %vm2143_vm5, %v2177_v58, %v2186_v18  ;;  %v2599_v44 = vsel %vm2586_vm4, %v15744_v26, %v15743_v51  ;;  %v15745_v58 = vrot.slane %v12600_v14, 2  ;;  %v15751_v14 = vld [vmem:[#allocation13_spill] sm:$0xff] }
  0xd8   : > { %11450 = vmatprep.subr.msk.bf16.mxu0 %vm865_vm0, %v12930_v31  ;;  %v2204_v18 = vor.u32 %v12629_v13, %v12627_v35  ;;  %v2213_v26 = vor.u32 %v12662_v9, %v12658_v0  ;;  %v12999_v35 = vrot.slane %v3421_v5, 2  ;;  %v15747_v51 = vrot.slane %v12615_v6, 2 }
  0xd9   : > { %v2601_v55 = vsel %vm2586_vm4, %v15746_v62, %v15745_v58  ;;  %v15749_v9 = vrot.slane %v12623_v3, 2  ;;  %v13021_v6 = vrot.slane %v3424_v29, 3  ;;  %v2249_v3 = vor.u32 %v12714_v52, %v12712_v33  ;;  %v15760_v52 = vld [vmem:[#allocation12_spill] sm:$0xff] }
  0xda   : > { %v2214_v13 = vsel %vm2143_vm5, %v2204_v18, %v2213_v26 }
  0xdd   : > { %10583 = vmatmul.mubr.msk.bf16.gmra.mxu0 %vm810_vm1, %v2187_v22  ;;  %v3433_v22 = vshll.u32 %v12978_v56, 16 }
  0xde   : > { %10586 = vmatprep.mubr.msk.bf16.mxu0 %vm810_vm1, %v2196_v48  ;;  %10625 = vmatmul.mubr.msk.bf16.gmra.mxu1 %vm810_vm1, %v2599_v44  ;;  %v2205_v48 = vsel %vm2143_vm5, %v2195_v54, %v2204_v18  ;;  %v15748_v44 = vmov %v15745_v58  ;;  %v15750_v58 = vmov %v15747_v51  ;;  %v2222_v54 = vor.u32 %v12666_v36, %v12664_v19 }
  0xdf   : > { %10628 = vmatprep.mubr.msk.bf16.mxu1 %vm810_vm1, %v2601_v55  ;;  %v2603_v0 = vsel %vm2586_vm4, %v15748_v44, %v15747_v51  ;;  %v2605_v55 = vsel %vm2586_vm4, %v15750_v58, %v15749_v9  ;;  %v2231_v18 = vor.u32 %v15751_v14, %v12675_v49  ;;  %v13024_v44 = vrot.slane %v3430_v28, 2  ;;  %v13043_v28 = vld [vmem:[%s12211_s27 + $0x70] sm:$0xff]  }
  0xe0   : > { %v2223_v51 = vsel %vm2143_vm5, %v2213_v26, %v2222_v54  ;;  %v15752_v19 = vrot.slane %v12642_v57, 2  ;;  %v15753_v36 = vmov %v15749_v9  ;;  %v15754_v9 = vrot.slane %v12653_v46, 2  ;;  %v15766_v46 = vld [vmem:[#allocation18_spill] sm:$0xff] }
  0xe1   : > { %v3448_v14 = vshrl.u32 %v13043_v28, 16 }
  0xe2   : > { %v2607_v49 = vsel %vm2586_vm4, %v15753_v36, %v15752_v19  ;;  %v15755_v29 = vmov %v15752_v19  ;;  %v15759_v36 = vmov %v15754_v9 }
  0xe3   : > { %v2609_v26 = vsel %vm2586_vm4, %v15755_v29, %v15754_v9 }
  0xe5   : > { %10587 = vmatmul.mubr.msk.bf16.gmra.mxu0 %vm810_vm1, %v2205_v48  ;;  %v13026_v48 = vrot.slane %v3433_v22, 3  ;;  %v15756_v22 = vld [vmem:[#allocation14_spill] sm:$0xff] }
  0xe6   : > { %10590 = vmatprep.mubr.msk.bf16.mxu0 %vm810_vm1, %v2214_v13  ;;  %10629 = vmatmul.mubr.msk.bf16.gmra.mxu1 %vm810_vm1, %v2603_v0  ;;  %v2232_v13 = vsel %vm2143_vm5, %v2222_v54, %v2231_v18  ;;  %v13035_v0 = vld [vmem:[%s12211_s27 + $0x68] sm:$0xff]   ;;  %v2240_v58 = vor.u32 %v15756_v22, %v12706_v24  ;;  %v15757_v24 = vld [vmem:[#allocation11_spill] sm:$0xff] }
  0xe7   : > { %10632 = vmatprep.mubr.msk.bf16.mxu1 %vm810_vm1, %v2605_v55  ;;  %v3439_v57 = vshrl.u32 %v13035_v0, 16  ;;  %v3442_v55 = vshll.u32 %v13035_v0, 16  ;;  %v15758_v19 = vrot.slane %v15757_v24, 2 }
  0xe8   : > { %v2241_v54 = vsel %vm2143_vm5, %v2231_v18, %v2240_v58  ;;  %v15763_v18 = vld [vmem:[#allocation15_spill] sm:$0xff] }
  0xe9   : > { %v2611_v33 = vsel %vm2586_vm4, %v15759_v36, %v15758_v19  ;;  %v15762_v9 = vmov %v15758_v19  ;;  %v13078_v24 = vrot.slane %v3439_v57, 2 }
  0xed   : > { %10591 = vmatmul.mubr.msk.bf16.gmra.mxu0 %vm810_vm1, %v2223_v51  ;;  %v3451_v51 = vshll.u32 %v13043_v28, 16 }
  0xee   : > { %10594 = vmatprep.mubr.msk.bf16.mxu0 %vm810_vm1, %v2232_v13  ;;  %10633 = vmatmul.mubr.msk.bf16.gmra.mxu1 %vm810_vm1, %v2607_v49  ;;  %v2250_v13 = vsel %vm2143_vm5, %v2240_v58, %v2249_v3  ;;  %v15761_v49 = vrot.slane %v15760_v52, 2  ;;  %v15765_v58 = vld [vmem:[#allocation17_spill] sm:$0xff] }
  0xef   : > { %10636 = vmatprep.mubr.msk.bf16.mxu1 %vm810_vm1, %v2609_v26  ;;  %v15764_v26 = vld [vmem:[#allocation16_spill] sm:$0xff]  ;;  %v2267_v5 = vor.u32 %v15766_v46, %v15765_v58  ;;  %v13106_v46 = vrot.slane %v3448_v14, 2 }
  0xf0   : > { %v2613_v29 = vsel %vm2586_vm4, %v15762_v9, %v15761_v49  ;;  %v2258_v22 = vor.u32 %v15764_v26, %v15763_v18  ;;  %v13082_v49 = vrot.slane %v3442_v55, 3  ;;  %v15767_v9 = vrot.slane %v12703_v17, 2  ;;  %v13096_v58 = vld [vmem:[%s12211_s27 + $0x78] sm:$0xff]  }
  0xf1   : > { %v15771_v55 = vld [vmem:[#allocation19_spill] sm:$0xff] }
  0xf2   : > { %v2259_v36 = vsel %vm2143_vm5, %v2249_v3, %v2258_v22  ;;  %v15770_v26 = vmov %v15767_v9 }
  0xf5   : > { %10595 = vmatmul.mubr.msk.bf16.gmra.mxu0 %vm810_vm1, %v2241_v54 }
  0xf6   : > { %10598 = vmatprep.mubr.msk.bf16.mxu0 %vm810_vm1, %v2250_v13  ;;  %10637 = vmatmul.mubr.msk.bf16.gmra.mxu1 %vm810_vm1, %v2611_v33  ;;  %v2268_v13 = vsel %vm2143_vm5, %v2258_v22, %v2267_v5  ;;  %v15768_v33 = vrot.slane %v15760_v52, 2  ;;  %v2276_v22 = vor.u32 %v12783_v11, %v15771_v55  ;;  %v2285_v52 = vor.u32 %v12795_v60, %v12790_v34 }
  0xf7   : > { %10640 = vmatprep.mubr.msk.bf16.mxu1 %vm810_vm1, %v2613_v29  ;;  %v15769_v29 = vrot.slane %v12725_v41, 2  ;;  %v3457_v11 = vshrl.u32 %v13096_v58, 16  ;;  %v15772_v34 = vrot.slane %v12733_v63, 2  ;;  %v2294_v41 = vor.u32 %v12799_v8, %v12797_v45 }
  0xf8   : > { %v2615_v18 = vsel %vm2586_vm4, %v15768_v33, %v15767_v9  ;;  %v13108_v9 = vrot.slane %v3451_v51, 3  ;;  %v13113_v33 = vsel %vm865_vm0, %v12930_v31, 0  ;;  %v3460_v45 = vshll.u32 %v13096_v58, 16 }
  0xf9   : > { %v2617_v57 = vsel %vm2586_vm4, %v15770_v26, %v15769_v29  ;;  %v15773_v60 = vmov %v15769_v29  ;;  %v13123_v29 = vld [vmem:[%s12211_s27 + $0x80] sm:$0xff]   ;;  %v15775_v26 = vmov %v15772_v34 }
  0xfa   : > { %v2619_v14 = vsel %vm2586_vm4, %v15773_v60, %v15772_v34  ;;  %v15776_v60 = vld [vmem:[#allocation23_spill] sm:$0xff]  ;;  %v3466_v8 = vshrl.u32 %v13123_v29, 16 }
  0xfb   : > { %v2303_v54 = vor.u32 %v15776_v60, %v12803_v38  ;;  %v2295_v38 = vsel %vm2143_vm5, %v2285_v52, %v2294_v41 }
  0xfc   : > { %v13182_v62 = vrot.slane %v3466_v8, 2  ;;  %v13199_v8 = vld [vmem:[%s12211_s27 + $0x90] sm:$0xff]  }
  0xfd   : > { %10599 = vmatmul.mubr.msk.bf16.gmra.mxu0 %vm810_vm1, %v2259_v36  ;;  %v2277_v36 = vsel %vm2143_vm5, %v2267_v5, %v2276_v22  ;;  %v15774_v5 = vrot.slane %v12764_v12, 2 }
  0xfe   : > { %10602 = vmatprep.mubr.msk.bf16.mxu0 %vm810_vm1, %v2268_v13  ;;  %v10466_v3 = vpop.f32.mrf.mxu1  ;;  %10641 = vmatmul.mubr.msk.bf16.gmra.mxu1 %vm810_vm1, %v2615_v18  ;;  %v2286_v18 = vsel %vm2143_vm5, %v2276_v22, %v2285_v52 }
  0xff   : > { %10644 = vmatprep.mubr.msk.bf16.mxu1 %vm810_vm1, %v2617_v57  ;;  %v2621_v31 = vsel %vm2586_vm4, %v15775_v26, %v15774_v5 }
 0x100   : > { %v1123_v17 = vpop.f32.mrf.mxu1 }
 0x102   : > { %v10467_v13 = vpop.f32.mrf.mxu1 }
 0x104   : > { %v1126_v51 = vpop.f32.mrf.mxu1 }
 0x105   : > { %v10428_v57 = vpop.f32.mrf.mxu0  ;;  %10603 = vmatmul.mubr.msk.bf16.gmra.mxu0 %vm810_vm1, %v2277_v36  ;;  %v3355_v36 = vor.u32 %v12853_v42, %v12851_v10  ;;  %v15778_v10 = vrot.slane %v12764_v12, 2  ;;  %v15779_v12 = vld [vmem:[#allocation26_spill] sm:$0xff] }
 0x106   : > { %v13131_v55 = vadd.f32 %v10466_v3, %v10428_v57  ;;  %10606 = vmatprep.mubr.msk.bf16.mxu0 %vm810_vm1, %v2286_v18  ;;  %v10470_v22 = vpop.f32.mrf.mxu1  ;;  %10645 = vmatmul.mubr.msk.bf16.gmra.mxu1 %vm810_vm1, %v2619_v14  ;;  %v3347_v3 = vor.u32 %v12849_v2, %v12846_v25  ;;  %v2304_v2 = vsel %vm2143_vm5, %v2294_v41, %v2303_v54  ;;  %v15777_v25 = vrot.slane %v12779_v15, 2 }
 0x107   : > { %v903_v34 = vpop.f32.mrf.mxu0  ;;  %10648 = vmatprep.mubr.msk.bf16.mxu1 %vm810_vm1, %v2621_v31  ;;  %v3469_v31 = vshll.u32 %v13123_v29, 16 }
 0x108   : > { %v13140_v63 = vadd.f32 %v1123_v17, %v903_v34  ;;  %v1139_v5 = vpop.f32.mrf.mxu1  ;;  %v2623_v42 = vsel %vm2586_vm4, %v15778_v10, %v15777_v25  ;;  %v3356_v60 = vsel %vm3339_vm6, %v3347_v3, %v3355_v36  ;;  %v15781_v25 = vld [vmem:[#allocation28_spill] sm:$0xff]  ;;  %v13174_v10 = vrot.slane %v3457_v11, 2 }
 0x109   : > { %v10429_v18 = vpop.f32.mrf.mxu0 }
 0x10a   : > { %v13148_v14 = vadd.f32 %v10467_v13, %v10429_v18  ;;  %v10471_v26 = vpop.f32.mrf.mxu1 }
 0x10b   : > { %v906_v57 = vpop.f32.mrf.mxu0 }
 0x10c   : > { %v13159_v34 = vadd.f32 %v1126_v51, %v906_v57  ;;  %v1142_v13 = vpop.f32.mrf.mxu1  ;;  %v3364_v51 = vor.u32 %v15779_v12, %v12857_v21  ;;  %v15780_v57 = vld [vmem:[#allocation27_spill] sm:$0xff]  ;;  %v13184_v21 = vrot.slane %v3469_v31, 3 }
 0x10d   : > { %v10432_v52 = vpop.f32.mrf.mxu0  ;;  %10607 = vmatmul.mubr.msk.bf16.gmra.mxu0 %vm810_vm1, %v2295_v38  ;;  %v3373_v38 = vor.u32 %v15781_v25, %v15780_v57  ;;  %v15785_v57 = vld [vmem:[#allocation20_spill] sm:$0xff] }
 0x10e   : > { %v13163_v18 = vadd.f32 %v10470_v22, %v10432_v52  ;;  %10610 = vmatprep.mubr.msk.bf16.mxu0 %vm810_vm1, %v2304_v2  ;;  %v10474_v17 = vpop.f32.mrf.mxu1  ;;  %10649 = vmatmul.mubr.msk.bf16.gmra.mxu1 %vm810_vm1, %v2623_v42  ;;  %v13176_v2 = vrot.slane %v3460_v45, 3  ;;  %v15782_v52 = vld [vmem:[#allocation24_spill] sm:$0xff]  ;;  %v15786_v25 = vrot.slane %v15785_v57, 2  ;;  %v3365_v45 = vsel %vm3339_vm6, %v3355_v36, %v3364_v51 }
 0x10f   : > { %v919_v15 = vpop.f32.mrf.mxu0  ;;  %10692 = vmatprep.mubr.msk.bf16.mxu1 %vm810_vm1, %v3356_v60  ;;  %v2309_v60 = vsel %vm2143_vm5, %v2303_v54, %v15782_v52  ;;  %v3374_v54 = vsel %vm3339_vm6, %v3364_v51, %v3373_v38 }
 0x110   : > { %v13170_v41 = vadd.f32 %v1139_v5, %v919_v15  ;;  %v1155_v3 = vpop.f32.mrf.mxu1  ;;  %v15783_v15 = vld [vmem:[#allocation21_spill] sm:$0xff] }
 0x111   : > { %v10433_v22 = vpop.f32.mrf.mxu0  ;;  %v15784_v12 = vrot.slane %v15783_v15, 2 }
 0x112   : > { %v13178_v42 = vadd.f32 %v10471_v26, %v10433_v22  ;;  %v10475_v19 = vpop.f32.mrf.mxu1 }
 0x113   : > { %v922_v5 = vpop.f32.mrf.mxu0  ;;  %v3028_v11 = vsel %vm2586_vm4, %v15786_v25, %v15784_v12  ;;  %v3475_v12 = vshrl.u32 %v13193_v4, 16  ;;  %v3478_v25 = vshll.u32 %v13193_v4, 16 }
 0x114   : > { %v13195_v26 = vadd.f32 %v1142_v13, %v922_v5  ;;  %v1158_v22 = vpop.f32.mrf.mxu1  ;;  %v3382_v13 = vor.u32 %v12943_v16, %v12935_v53 }
 0x115   : > { %v10436_v31 = vpop.f32.mrf.mxu0  ;;  %10611 = vmatmul.mubr.msk.bf16.gmra.mxu0 %vm810_vm1, %v2309_v60  ;;  %v3391_v60 = vor.u32 %v12949_v23, %v12947_v32  ;;  %v15793_v32 = vld [vmem:[#allocation25_spill] sm:$0xff] }
 0x116   : > { %v13202_v52 = vadd.f32 %v10474_v17, %v10436_v31  ;;  %10654 = vmatprep.mubr.msk.bf16.mxu0 %vm810_vm1, %v3028_v11  ;;  %v10478_v57 = vpop.f32.mrf.mxu1  ;;  %10693 = vmatmul.mubr.msk.bf16.vlgmr.msra.gmra.mxu1 %vm810_vm1, %v3365_v45  ;;  %v15790_v45 = vld [vmem:[#allocation22_spill] sm:$0xff]  ;;  %v15794_v23 = vrot.slane %v15793_v32, 2 }
 0x117   : > { %v935_v36 = vpop.f32.mrf.mxu0  ;;  %10696 = vmatprep.mubr.msk.bf16.mxu1 %vm810_vm1, %v3374_v54  ;;  %v15791_v31 = vrot.slane %v15790_v45, 2  ;;  %v15792_v54 = vrot.slane %v15783_v15, 2  ;;  %v3392_v15 = vsel %vm3339_vm6, %v3382_v13, %v3391_v60  ;;  %v13249_v45 = vrot.slane %v3475_v12, 2 }
 0x118   : > { %15787 = vst [vmem:[#allocation13_spill] sm:$0xff] %v13202_v52  ;;  %v13209_v5 = vadd.f32 %v1155_v3, %v935_v36  ;;  %v1171_v51 = vpop.f32.mrf.mxu1 }
 0x119   : > { %v10437_v17 = vpop.f32.mrf.mxu0  ;;  %v3030_v53 = vsel %vm2586_vm4, %v15792_v54, %v15791_v31 }
 0x11a   : > { %15788 = vst [vmem:[#allocation14_spill] sm:$0xff] %v13209_v5  ;;  %v13215_v11 = vadd.f32 %v10475_v19, %v10437_v17  ;;  %v10479_v16 = vpop.f32.mrf.mxu1  ;;  %v15795_v5 = vmov %v15791_v31  ;;  %v3383_v19 = vsel %vm3339_vm6, %v3373_v38, %v3382_v13  ;;  %v13234_v31 = vld [vmem:[%s12211_s27 + $0x98] sm:$0xff]  }
 0x11b   : > { %v938_v43 = vpop.f32.mrf.mxu0  ;;  %v3032_v52 = vsel %vm2586_vm4, %v15795_v5, %v15794_v23  ;;  %v15796_v23 = vrot.slane %v12860_v7, 2 }
 0x11c   : > { %15789 = vst [vmem:[#allocation11_spill] sm:$0xff] %v13215_v11  ;;  %v13230_v17 = vadd.f32 %v1158_v22, %v938_v43  ;;  %v1174_v11 = vpop.f32.mrf.mxu1  ;;  %v3400_v43 = vor.u32 %v12955_v27, %v12951_v47 }
 0x11d   : > { %v10440_v54 = vpop.f32.mrf.mxu0  ;;  %10655 = vmatmul.mubr.msk.bf16.vlgmr.msra.gmra.mxu0 %vm810_vm1, %v3030_v53 }
 0x11e   : > { %v13237_v36 = vadd.f32 %v10478_v57, %v10440_v54  ;;  %10658 = vmatprep.mubr.msk.bf16.mxu0 %vm810_vm1, %v3032_v52  ;;  %v10482_v3 = vpop.f32.mrf.mxu1  ;;  %10697 = vmatmul.mubr.msk.bf16.gmra.mxu1 %vm810_vm1, %v3383_v19  ;;  %v3409_v57 = vor.u32 %v12960_v20, %v12958_v40  ;;  %v13251_v52 = vrot.slane %v3478_v25, 3  ;;  %v15797_v19 = vrot.slane %v15793_v32, 2 }
 0x11f   : > { %v951_v5 = vpop.f32.mrf.mxu0  ;;  %10700 = vmatprep.mubr.msk.bf16.mxu1 %vm810_vm1, %v3392_v15  ;;  %10729 = vmatpush3.bf16.msra.mxu0 %v13113_v33  ;;  %v3493_v33 = vshrl.u32 %v13234_v31, 16  ;;  %v15798_v40 = vrot.slane %v12870_v1, 2  ;;  %v15799_v20 = vmov %v15796_v23  ;;  %v3401_v25 = vsel %vm3339_vm6, %v3391_v60, %v3400_v43 }
 0x120   : > { %v13245_v38 = vadd.f32 %v1171_v51, %v951_v5  ;;  %v1187_v22 = vpop.f32.mrf.mxu1  ;;  %v3034_v47 = vsel %vm2586_vm4, %v15797_v19, %v15796_v23  ;;  %v3496_v51 = vshll.u32 %v13234_v31, 16  ;;  %v3410_v32 = vsel %vm3339_vm6, %v3400_v43, %v3409_v57 }
 0x121   : > { %v10441_v13 = vpop.f32.mrf.mxu0  ;;  %v3036_v12 = vsel %vm2586_vm4, %v15799_v20, %v15798_v40  ;;  %v3418_v60 = vor.u32 %v12966_v59, %v12964_v61  ;;  %v3427_v43 = vor.u32 %v13021_v6, %v12999_v35 }
 0x122   : > { %v13253_v53 = vadd.f32 %v10479_v16, %v10441_v13  ;;  %v10483_v27 = vpop.f32.mrf.mxu1 }
 0x123   : > { %v954_v15 = vpop.f32.mrf.mxu0 }
 0x124   : > { %v13268_v16 = vadd.f32 %v1174_v11, %v954_v15  ;;  %v1190_v54 = vpop.f32.mrf.mxu1  ;;  %v15800_v15 = vrot.slane %v12882_v50, 2 }
 0x125   : > { %v10444_v5 = vpop.f32.mrf.mxu0  ;;  %10659 = vmatmul.mubr.msk.bf16.gmra.mxu0 %vm810_vm1, %v3034_v47 }
 0x126   : > { %v13272_v13 = vadd.f32 %v10482_v3, %v10444_v5  ;;  %10662 = vmatprep.mubr.msk.bf16.mxu0 %vm810_vm1, %v3036_v12  ;;  %v10486_v23 = vpop.f32.mrf.mxu1  ;;  %10701 = vmatmul.mubr.msk.bf16.gmra.mxu1 %vm810_vm1, %v3401_v25  ;;  %v3038_v20 = vsel %vm2586_vm4, %v15798_v40, %v15800_v15  ;;  %v15802_v61 = vmov %v15800_v15  ;;  %v15803_v40 = vrot.slane %v12909_v37, 2 }
 0x127   : > { %v967_v7 = vpop.f32.mrf.mxu0  ;;  %10704 = vmatprep.mubr.msk.bf16.mxu1 %vm810_vm1, %v3410_v32  ;;  %v15801_v32 = vrot.slane %v12891_v39, 2 }
 0x128   : > { %v13279_v11 = vadd.f32 %v1187_v22, %v967_v7  ;;  %v1203_v19 = vpop.f32.mrf.mxu1  ;;  %v3419_v22 = vsel %vm3339_vm6, %v3409_v57, %v3418_v60  ;;  %v3436_v57 = vor.u32 %v13026_v48, %v13024_v44  ;;  %v15806_v44 = vmov %v15803_v40 }
 0x129   : > { %v10445_v47 = vpop.f32.mrf.mxu0  ;;  %v3040_v59 = vsel %vm2586_vm4, %v15802_v61, %v15801_v32 }
 0x12a   : > { %v13283_v3 = vadd.f32 %v10483_v27, %v10445_v47  ;;  %v10487_v12 = vpop.f32.mrf.mxu1  ;;  %v3428_v27 = vsel %vm3339_vm6, %v3418_v60, %v3427_v43  ;;  %v3445_v60 = vor.u32 %v13082_v49, %v13078_v24 }
 0x12b   : > { %v970_v25 = vpop.f32.mrf.mxu0 }
 0x12c   : > { %v13296_v35 = vadd.f32 %v1190_v54, %v970_v25  ;;  %v1206_v6 = vpop.f32.mrf.mxu1 }
 0x12d   : > { %v10448_v5 = vpop.f32.mrf.mxu0  ;;  %10663 = vmatmul.mubr.msk.bf16.gmra.mxu0 %vm810_vm1, %v3038_v20  ;;  %v15804_v20 = vmov %v15801_v32 }
 0x12e   : > { %v13300_v1 = vadd.f32 %v10486_v23, %v10448_v5  ;;  %10666 = vmatprep.mubr.msk.bf16.mxu0 %vm810_vm1, %v3040_v59  ;;  %v10490_v7 = vpop.f32.mrf.mxu1  ;;  %10705 = vmatmul.mubr.msk.bf16.gmra.mxu1 %vm810_vm1, %v3419_v22  ;;  %v3042_v25 = vsel %vm2586_vm4, %v15804_v20, %v15803_v40  ;;  %v15805_v59 = vrot.slane %v12969_v30, 2 }
 0x12f   : > { %v983_v50 = vpop.f32.mrf.mxu0  ;;  %10708 = vmatprep.mubr.msk.bf16.mxu1 %vm810_vm1, %v3428_v27 }
 0x130   : > { %v13307_v54 = vadd.f32 %v1203_v19, %v983_v50  ;;  %v1219_v47 = vpop.f32.mrf.mxu1  ;;  %v3044_v48 = vsel %vm2586_vm4, %v15806_v44, %v15805_v59  ;;  %v3437_v19 = vsel %vm3339_vm6, %v3427_v43, %v3436_v57  ;;  %v3454_v43 = vor.u32 %v13108_v9, %v13106_v46 }
 0x131   : > { %v10449_v15 = vpop.f32.mrf.mxu0  ;;  %v3463_v50 = vor.u32 %v13176_v2, %v13174_v10  ;;  %v15808_v40 = vmov %v15805_v59  ;;  %v15809_v59 = vrot.slane %v13035_v0, 2 }
 0x132   : > { %v13311_v23 = vadd.f32 %v10487_v12, %v10449_v15  ;;  %v10491_v32 = vpop.f32.mrf.mxu1  ;;  %v3446_v12 = vsel %vm3339_vm6, %v3436_v57, %v3445_v60  ;;  %v15807_v15 = vrot.slane %v12978_v56, 2 }
 0x133   : > { %v986_v61 = vpop.f32.mrf.mxu0 }
 0x134   : > { %v13324_v24 = vadd.f32 %v1206_v6, %v986_v61  ;;  %v1222_v49 = vpop.f32.mrf.mxu1  ;;  %v3046_v20 = vsel %vm2586_vm4, %v15808_v40, %v15807_v15  ;;  %v15810_v46 = vmov %v15807_v15 }
 0x135   : > { %v10452_v22 = vpop.f32.mrf.mxu0  ;;  %10667 = vmatmul.mubr.msk.bf16.gmra.mxu0 %vm810_vm1, %v3042_v25  ;;  %v3048_v9 = vsel %vm2586_vm4, %v15810_v46, %v15809_v59 }
 0x136   : > { %v13328_v39 = vadd.f32 %v10490_v7, %v10452_v22  ;;  %10670 = vmatprep.mubr.msk.bf16.mxu0 %vm810_vm1, %v3044_v48  ;;  %v10494_v27 = vpop.f32.mrf.mxu1  ;;  %10709 = vmatmul.mubr.msk.bf16.gmra.mxu1 %vm810_vm1, %v3437_v19 }
 0x137   : > { %v999_v37 = vpop.f32.mrf.mxu0  ;;  %10712 = vmatprep.mubr.msk.bf16.mxu1 %vm810_vm1, %v3446_v12  ;;  %v3481_v12 = vor.u32 %v13251_v52, %v13249_v45  ;;  %v15815_v45 = vshrl.u32 %v13199_v8, 16 }
 0x138   : > { %v13335_v6 = vadd.f32 %v1219_v47, %v999_v37  ;;  %v1235_v5 = vpop.f32.mrf.mxu1  ;;  %v3455_v47 = vsel %vm3339_vm6, %v3445_v60, %v3454_v43  ;;  %v3472_v60 = vor.u32 %v13184_v21, %v13182_v62  ;;  %v15811_v37 = vrot.slane %v13043_v28, 2 }
 0x139   : > { %v10453_v57 = vpop.f32.mrf.mxu0  ;;  %v3486_v52 = vrot.slane %v15815_v45, 2  ;;  %v3495_v28 = vrot.slane %v3493_v33, 2 }
 0x13a   : > { %v13339_v7 = vadd.f32 %v10491_v32, %v10453_v57  ;;  %v10495_v25 = vpop.f32.mrf.mxu1  ;;  %v3464_v32 = vsel %vm3339_vm6, %v3454_v43, %v3463_v50  ;;  %v15812_v43 = vmov %v15809_v59  ;;  %v15814_v62 = vmov %v15811_v37  ;;  %v13385_v59 = vld [vmem:[%s12211_s27 + $0xa0] ss:$0 sps:$4 sm:$0x33]  }
 0x13b   : > { %v1002_v61 = vpop.f32.mrf.mxu0  ;;  %v3050_v57 = vsel %vm2586_vm4, %v15812_v43, %v15811_v37 }
 0x13c   : > { %v13352_v10 = vadd.f32 %v1222_v49, %v1002_v61  ;;  %v1238_v2 = vpop.f32.mrf.mxu1 }
 0x13d   : > { %v10456_v44 = vpop.f32.mrf.mxu0  ;;  %10671 = vmatmul.mubr.msk.bf16.gmra.mxu0 %vm810_vm1, %v3046_v20  ;;  %v15813_v20 = vrot.slane %v13096_v58, 2 }
 0x13e   : > { %v13356_v30 = vadd.f32 %v10494_v27, %v10456_v44  ;;  %10674 = vmatprep.mubr.msk.bf16.mxu0 %vm810_vm1, %v3048_v9  ;;  %v10498_v48 = vpop.f32.mrf.mxu1  ;;  %10713 = vmatmul.mubr.msk.bf16.gmra.mxu1 %vm810_vm1, %v3455_v47  ;;  %v3482_v9 = vsel %vm3339_vm6, %v3472_v60, %v3481_v12 }
 0x13f   : > { %v1015_v56 = vpop.f32.mrf.mxu0  ;;  %10716 = vmatprep.mubr.msk.bf16.mxu1 %vm810_vm1, %v3464_v32  ;;  %v3052_v21 = vsel %vm2586_vm4, %v15814_v62, %v15813_v20 }
 0x140   : > { %v13363_v19 = vadd.f32 %v1235_v5, %v1015_v56  ;;  %v1251_v49 = vpop.f32.mrf.mxu1  ;;  %v3473_v5 = vsel %vm3339_vm6, %v3463_v50, %v3472_v60  ;;  %v3498_v50 = vrot.slane %v3496_v51, 3  ;;  %v3055_v60 = vrot.slane %v13193_v4, 2 }
 0x141   : > { %v10457_v22 = vpop.f32.mrf.mxu0  ;;  %v3502_v51 = vshrl.u32 %v13385_v59, 16 }
 0x142   : > { %v13367_v27 = vadd.f32 %v10495_v25, %v10457_v22  ;;  %v10499_v15 = vpop.f32.mrf.mxu1  ;;  %v15816_v25 = vshll.u32 %v13199_v8, 16  ;;  %v3505_v22 = vshll.u32 %v13385_v59, 16  ;;  %v3499_v43 = vor.u32 %v3498_v50, %v3495_v28 }
 0x143   : > { %v1018_v40 = vpop.f32.mrf.mxu0  ;;  %v3059_v50 = vrot.slane %v13234_v31, 2 }
 0x144   : > { %v3489_v61 = vrot.slane %v15816_v25, 3  ;;  %v13387_v0 = vadd.f32 %v1238_v2, %v1018_v40  ;;  %v13389_v46 = vpop.f32.mrf.mxu1  ;;  %v3053_v2 = vrot.slane %v13123_v29, 2  ;;  %v15817_v29 = vmov %v15813_v20 }
 0x145   : > { %v10460_v47 = vpop.f32.mrf.mxu0  ;;  %10675 = vmatmul.mubr.msk.bf16.gmra.mxu0 %vm810_vm1, %v3050_v57  ;;  %v3507_v25 = vrot.slane %v3505_v22, 3 }
 0x146   : > { %v13397_v32 = vadd.f32 %v10498_v48, %v10460_v47  ;;  %10678 = vmatprep.mubr.msk.bf16.mxu0 %vm810_vm1, %v3052_v21  ;;  %v10542_v44 = vpop.f32.mrf.mxu1  ;;  %10717 = vmatmul.mubr.msk.bf16.gmra.mxu1 %vm810_vm1, %v3473_v5  ;;  %v3490_v33 = vor.u32 %v3489_v61, %v3486_v52  ;;  %v3054_v20 = vsel %vm2586_vm4, %v15817_v29, %v3053_v2  ;;  %v3504_v52 = vrot.slane %v3502_v51, 2 }
 0x147   : > { %v1031_v56 = vpop.f32.mrf.mxu0  ;;  %10720 = vmatprep.mubr.msk.bf16.mxu1 %vm810_vm1, %v3482_v9  ;;  %v3056_v5 = vsel %vm2586_vm4, %v3053_v2, %v3055_v60  ;;  %v3057_v9 = vrot.slane %v13199_v8, 2 }
 0x148   : > { %v13406_v37 = vadd.f32 %v1251_v49, %v1031_v56  ;;  %v1832_v48 = vpop.f32.mrf.mxu1  ;;  %v3491_v45 = vsel %vm3339_vm6, %v3481_v12, %v3490_v33  ;;  %v3500_v61 = vsel %vm3339_vm6, %v3490_v33, %v3499_v43  ;;  %v3508_v47 = vor.u32 %v3507_v25, %v3504_v52  ;;  %v3780_v33 = vld [vmem:[%s12211_s27 + $0x10] sm:$0x8] }
 0x149   : > { %v10461_v57 = vpop.f32.mrf.mxu0  ;;  %v3058_v29 = vsel %vm2586_vm4, %v3055_v60, %v3057_v9 }
 0x14a   : > { %v13408_v40 = vadd.f32 %v10499_v15, %v10461_v57  ;;  %v10543_v62 = vpop.f32.mrf.mxu1  ;;  %v3509_v52 = vsel %vm3339_vm6, %v3499_v43, %v3508_v47  ;;  %v11940_v47 = vld [vmem:[%s12211_s27 + $0x18] sm:$0xff]  }
 0x14b   : > { %v13413_v21 = vpop.f32.mrf.mxu0 }
 0x14c   : > { %v13417_v49 = vpop.f32.mrf.mxu1 }
 0x14d   : > { %v10504_v15 = vpop.f32.mrf.mxu0  ;;  %10679 = vmatmul.mubr.msk.bf16.gmra.mxu0 %vm810_vm1, %v3054_v20 }
 0x14e   : > { %v1544_v58 = vadd.f32 %v10504_v15, %v13131_v55  ;;  %10682 = vmatprep.mubr.msk.bf16.mxu0 %vm810_vm1, %v3056_v5  ;;  %v10546_v28 = vpop.f32.mrf.mxu1  ;;  %10721 = vmatmul.mubr.msk.bf16.gmra.mxu1 %vm810_vm1, %v3491_v45  ;;  %v11572_v5 = vld [vmem:[%s12211_s27 + $0xa0] ss:$0 sps:$4 sm:$0x11]   ;;  %v3060_v15 = vsel %vm2586_vm4, %v3057_v9, %v3059_v50 }
 0x14f   : > { %v1399_v12 = vpop.f32.mrf.mxu0  ;;  %10724 = vmatprep.mubr.msk.bf16.mxu1 %vm810_vm1, %v3500_v61 }
 0x150   : > { %v1542_v2 = vadd.f32 %v1399_v12, %v13140_v63  ;;  %v13428_v56 = vadd.f32 %v10542_v44, %v1544_v58  ;;  %v1848_v55 = vpop.f32.mrf.mxu1  ;;  %v11939_v63 = vld [vmem:[%s12211_s27 + $0x14] sm:$0xf]  ;;  %v3061_v58 = vrot.slane %v11572_v5, 2 }
 0x151   : > { %v10505_v51 = vpop.f32.mrf.mxu0  ;;  %v9370_v44 = vcombine.low %v3780_v33, %v11939_v63 }
 0x152   : > { %v1545_v22 = vadd.f32 %v10505_v51, %v13148_v14  ;;  %v13432_v57 = vadd.f32 %v1832_v48, %v1542_v2  ;;  %v10547_v20 = vpop.f32.mrf.mxu1 }
 0x153   : > { %v1402_v45 = vpop.f32.mrf.mxu0  ;;  %v3787_v12 = vrot.slane %v9370_v44, 3  ;;  %v11941_v44 = vld [vmem:[%s12211_s27 + $0x20] sm:$0xff]  }
 0x154   : > { %v13440_v25 = vadd.f32 %v1402_v45, %v13159_v34  ;;  %v13442_v61 = vadd.f32 %v10543_v62, %v1545_v22  ;;  %v13444_v14 = vpop.f32.mrf.mxu1  ;;  %v3788_v34 = vrot.slane %v11940_v47, 3 }
 0x155   : > { %v10508_v48 = vpop.f32.mrf.mxu0  ;;  %10683 = vmatmul.mubr.msk.bf16.gmra.mxu0 %vm810_vm1, %v3058_v29  ;;  %v3062_v29 = vsel %vm2586_vm4, %v3059_v50, %v3061_v58  ;;  %v3790_v50 = vrot.slane %v11941_v44, 3  ;;  %v11942_v58 = vld [vmem:[%s12211_s27 + $0x28] sm:$0xff]  }
 0x156   : > { %v1548_v60 = vadd.f32 %v10508_v48, %v13163_v18  ;;  %10686 = vmatprep.mubr.msk.bf16.mxu0 %vm810_vm1, %v3060_v15  ;;  %v10550_v9 = vpop.f32.mrf.mxu1  ;;  %10725 = vmatmul.mubr.msk.bf16.gmra.mxu1 %vm810_vm1, %v3509_v52  ;;  %v3789_v15 = vsel %vm3786_vm7, %v3787_v12, %v3788_v34  ;;  %v15819_v12 = vld [vmem:[#allocation14_spill] sm:$0xff] }
 0x157   : > { %v1415_v43 = vpop.f32.mrf.mxu0 }
 0x158   : > { %v1546_v62 = vadd.f32 %v1415_v43, %v13170_v41  ;;  %v13452_v2 = vadd.f32 %v10546_v28, %v1548_v60  ;;  %v1864_v33 = vpop.f32.mrf.mxu1  ;;  %v3792_v43 = vrot.slane %v11942_v58, 3  ;;  %v11943_v58 = vld [vmem:[%s12211_s27 + $0x30] sm:$0xff]  }
 0x159   : > { %v10509_v51 = vpop.f32.mrf.mxu0 }
 0x15a   : > { %v1549_v18 = vadd.f32 %v10509_v51, %v13178_v42  ;;  %v13455_v22 = vadd.f32 %v1848_v55, %v1546_v62  ;;  %v10551_v5 = vpop.f32.mrf.mxu1  ;;  %v15818_v42 = vld [vmem:[#allocation13_spill] sm:$0xff]  ;;  %v15820_v51 = vld [vmem:[#allocation11_spill] sm:$0xff] }
 0x15b   : > { %v1418_v45 = vpop.f32.mrf.mxu0 }
 0x15c   : > { %v13460_v52 = vadd.f32 %v1418_v45, %v13195_v26  ;;  %v13462_v41 = vadd.f32 %v10547_v20, %v1549_v18  ;;  %v13464_v28 = vpop.f32.mrf.mxu1  ;;  %v3791_v45 = vsel %vm3786_vm7, %v3788_v34, %v3790_v50  ;;  %v3794_v34 = vrot.slane %v11943_v58, 3 }
 0x15d   : > { %v10512_v63 = vpop.f32.mrf.mxu0  ;;  %10687 = vmatmul.mubr.msk.bf16.gmra.mxu0 %vm810_vm1, %v3062_v29 }
 0x15e   : > { %v1552_v55 = vadd.f32 %v10512_v63, %v15818_v42  ;;  %10730 = vmatprep.mubr.msk.bf16.mxu0 %vm810_vm1, %v3789_v15  ;;  %v10554_v48 = vpop.f32.mrf.mxu1  ;;  %v3793_v42 = vsel %vm3786_vm7, %v3790_v50, %v3792_v43 }
 0x15f   : > { %v1431_v60 = vpop.f32.mrf.mxu0 }
 0x160   : > { %v1550_v26 = vadd.f32 %v1431_v60, %v15819_v12  ;;  %v13472_v47 = vadd.f32 %v10550_v9, %v1552_v55  ;;  %v1880_v20 = vpop.f32.mrf.mxu1 }
 0x161   : > { %v10513_v62 = vpop.f32.mrf.mxu0 }
 0x162   : > { %v1553_v18 = vadd.f32 %v10513_v62, %v15820_v51  ;;  %v13475_v29 = vadd.f32 %v1864_v33, %v1550_v26  ;;  %v10555_v15 = vpop.f32.mrf.mxu1  ;;  %v11944_v62 = vld [vmem:[%s12211_s27 + $0x38] sm:$0xff]  }
 0x163   : > { %v1434_v63 = vpop.f32.mrf.mxu0  ;;  %v3796_v50 = vrot.slane %v11944_v62, 3 }
 0x164   : > { %v13480_v44 = vadd.f32 %v1434_v63, %v13230_v17  ;;  %v13482_v60 = vadd.f32 %v10551_v5, %v1553_v18  ;;  %v13484_v9 = vpop.f32.mrf.mxu1 }
 0x165   : > { %v10516_v55 = vpop.f32.mrf.mxu0  ;;  %10731 = vmatmul.mubr.msk.bf16.vlgmr.msra.gmra.mxu0 %vm810_vm1, %v3791_v45  ;;  %v3797_v58 = vsel %vm3786_vm7, %v3794_v34, %v3796_v50 }
 0x166   : > { %v1556_v33 = vadd.f32 %v10516_v55, %v13237_v36  ;;  %10734 = vmatprep.mubr.msk.bf16.mxu0 %vm810_vm1, %v3793_v42  ;;  %v10558_v12 = vpop.f32.mrf.mxu1  ;;  %v3795_v36 = vsel %vm3786_vm7, %v3792_v43, %v3794_v34 }
 0x167   : > { %v1447_v26 = vpop.f32.mrf.mxu0 }
 0x168   : > { %v1554_v17 = vadd.f32 %v1447_v26, %v13245_v38  ;;  %v13492_v51 = vadd.f32 %v10554_v48, %v1556_v33  ;;  %v1896_v5 = vpop.f32.mrf.mxu1 }
 0x169   : > { %v10517_v18 = vpop.f32.mrf.mxu0 }
 0x16a   : > { %v1557_v63 = vadd.f32 %v10517_v18, %v13253_v53  ;;  %v13495_v45 = vadd.f32 %v1880_v20, %v1554_v17  ;;  %v10559_v42 = vpop.f32.mrf.mxu1  ;;  %v11945_v20 = vld [vmem:[%s12211_s27 + $0x40] sm:$0xff]   ;;  %v11946_v18 = vld [vmem:[%s12211_s27 + $0x48] sm:$0xff]  }
 0x16b   : > { %v1450_v55 = vpop.f32.mrf.mxu0  ;;  %v3798_v43 = vrot.slane %v11945_v20, 3  ;;  %v3800_v34 = vrot.slane %v11946_v18, 3 }
 0x16c   : > { %v13500_v62 = vadd.f32 %v1450_v55, %v13268_v16  ;;  %v13502_v38 = vadd.f32 %v10555_v15, %v1557_v63  ;;  %v13504_v48 = vpop.f32.mrf.mxu1 }
 0x16d   : > { %15821 = vst [vmem:[#allocation12_spill] sm:$0xff] %v13504_v48  ;;  %v10520_v33 = vpop.f32.mrf.mxu0  ;;  %10735 = vmatmul.mubr.msk.bf16.gmra.mxu0 %vm810_vm1, %v3795_v36  ;;  %v3801_v20 = vsel %vm3786_vm7, %v3798_v43, %v3800_v34 }
 0x16e   : > { %v1560_v53 = vadd.f32 %v10520_v33, %v13272_v13  ;;  %10738 = vmatprep.mubr.msk.bf16.mxu0 %vm810_vm1, %v3797_v58  ;;  %v10562_v26 = vpop.f32.mrf.mxu1  ;;  %v3799_v13 = vsel %vm3786_vm7, %v3796_v50, %v3798_v43 }
 0x16f   : > { %v1463_v17 = vpop.f32.mrf.mxu0 }
 0x170   : > { %v1558_v16 = vadd.f32 %v1463_v17, %v13279_v11  ;;  %v13512_v55 = vadd.f32 %v10558_v12, %v1560_v53  ;;  %v1912_v15 = vpop.f32.mrf.mxu1 }
 0x171   : > { %v10521_v63 = vpop.f32.mrf.mxu0 }
 0x172   : > { %v1561_v48 = vadd.f32 %v10521_v63, %v13283_v3  ;;  %v13515_v36 = vadd.f32 %v1896_v5, %v1558_v16  ;;  %v10563_v58 = vpop.f32.mrf.mxu1  ;;  %v11947_v5 = vld [vmem:[%s12211_s27 + $0x50] sm:$0xff]   ;;  %v11948_v63 = vld [vmem:[%s12211_s27 + $0x58] sm:$0xff]  }
 0x173   : > { %v1466_v33 = vpop.f32.mrf.mxu0  ;;  %v3802_v50 = vrot.slane %v11947_v5, 3  ;;  %v3804_v43 = vrot.slane %v11948_v63, 3 }
 0x174   : > { %v13520_v18 = vadd.f32 %v1466_v33, %v13296_v35  ;;  %v13522_v11 = vadd.f32 %v10559_v42, %v1561_v48  ;;  %v13524_v12 = vpop.f32.mrf.mxu1 }
 0x175   : > { %15822 = vst [vmem:[#allocation15_spill] sm:$0xff] %v13524_v12  ;;  %v10524_v53 = vpop.f32.mrf.mxu0  ;;  %10739 = vmatmul.mubr.msk.bf16.gmra.mxu0 %vm810_vm1, %v3799_v13  ;;  %v3805_v5 = vsel %vm3786_vm7, %v3802_v50, %v3804_v43 }
 0x176   : > { %v1564_v3 = vadd.f32 %v10524_v53, %v13300_v1  ;;  %10742 = vmatprep.mubr.msk.bf16.mxu0 %vm810_vm1, %v3801_v20  ;;  %v10566_v17 = vpop.f32.mrf.mxu1  ;;  %v3803_v1 = vsel %vm3786_vm7, %v3800_v34, %v3802_v50 }
 0x177   : > { %v1479_v16 = vpop.f32.mrf.mxu0 }
 0x178   : > { %v1562_v35 = vadd.f32 %v1479_v16, %v13307_v54  ;;  %v13532_v33 = vadd.f32 %v10562_v26, %v1564_v3  ;;  %v1928_v42 = vpop.f32.mrf.mxu1 }
 0x179   : > { %v10525_v48 = vpop.f32.mrf.mxu0 }
 0x17a   : > { %v1565_v12 = vadd.f32 %v10525_v48, %v13311_v23  ;;  %v13535_v13 = vadd.f32 %v1912_v15, %v1562_v35  ;;  %v10567_v20 = vpop.f32.mrf.mxu1  ;;  %v11949_v15 = vld [vmem:[%s12211_s27 + $0x60] sm:$0xff]   ;;  %v11950_v48 = vld [vmem:[%s12211_s27 + $0x68] sm:$0xff]  }
 0x17b   : > { %v1482_v53 = vpop.f32.mrf.mxu0  ;;  %v3806_v34 = vrot.slane %v11949_v15, 3  ;;  %v3808_v50 = vrot.slane %v11950_v48, 3 }
 0x17c   : > { %v13540_v63 = vadd.f32 %v1482_v53, %v13324_v24  ;;  %v13542_v54 = vadd.f32 %v10563_v58, %v1565_v12  ;;  %v13544_v26 = vpop.f32.mrf.mxu1 }
 0x17d   : > { %15823 = vst [vmem:[#allocation16_spill] sm:$0xff] %v13544_v26  ;;  %v10528_v3 = vpop.f32.mrf.mxu0  ;;  %10743 = vmatmul.mubr.msk.bf16.gmra.mxu0 %vm810_vm1, %v3803_v1  ;;  %v3809_v15 = vsel %vm3786_vm7, %v3806_v34, %v3808_v50 }
 0x17e   : > { %v1568_v23 = vadd.f32 %v10528_v3, %v13328_v39  ;;  %10746 = vmatprep.mubr.msk.bf16.mxu0 %vm810_vm1, %v3805_v5  ;;  %v10570_v16 = vpop.f32.mrf.mxu1  ;;  %v3807_v39 = vsel %vm3786_vm7, %v3804_v43, %v3806_v34 }
 0x17f   : > { %v1495_v35 = vpop.f32.mrf.mxu0 }
 0x180   : > { %v1566_v24 = vadd.f32 %v1495_v35, %v13335_v6  ;;  %v13552_v53 = vadd.f32 %v10566_v17, %v1568_v23  ;;  %v1944_v58 = vpop.f32.mrf.mxu1 }
 0x181   : > { %v10529_v12 = vpop.f32.mrf.mxu0 }
 0x182   : > { %v1569_v26 = vadd.f32 %v10529_v12, %v13339_v7  ;;  %v13555_v1 = vadd.f32 %v1928_v42, %v1566_v24  ;;  %v10571_v5 = vpop.f32.mrf.mxu1  ;;  %v11951_v42 = vld [vmem:[%s12211_s27 + $0x70] sm:$0xff]   ;;  %v11952_v12 = vld [vmem:[%s12211_s27 + $0x78] sm:$0xff]  }
 0x183   : > { %v1498_v3 = vpop.f32.mrf.mxu0  ;;  %v3810_v43 = vrot.slane %v11951_v42, 3  ;;  %v3812_v34 = vrot.slane %v11952_v12, 3 }
 0x184   : > { %v13560_v48 = vadd.f32 %v1498_v3, %v13352_v10  ;;  %v13562_v6 = vadd.f32 %v10567_v20, %v1569_v26  ;;  %v13564_v17 = vpop.f32.mrf.mxu1 }
 0x185   : > { %15825 = vst [vmem:[#allocation18_spill] sm:$0xff] %v13564_v17  ;;  %v10532_v23 = vpop.f32.mrf.mxu0  ;;  %10747 = vmatmul.mubr.msk.bf16.gmra.mxu0 %vm810_vm1, %v3807_v39  ;;  %v3813_v42 = vsel %vm3786_vm7, %v3810_v43, %v3812_v34 }
 0x186   : > { %15824 = vst [vmem:[#allocation17_spill] sm:$0xff] %v13560_v48  ;;  %v1572_v7 = vadd.f32 %v10532_v23, %v13356_v30  ;;  %10750 = vmatprep.mubr.msk.bf16.mxu0 %vm810_vm1, %v3809_v15  ;;  %v10574_v35 = vpop.f32.mrf.mxu1  ;;  %v3811_v30 = vsel %vm3786_vm7, %v3808_v50, %v3810_v43  ;;  %v3816_v43 = vrot.slane %v13193_v4, 3 }
 0x187   : > { %v1511_v24 = vpop.f32.mrf.mxu0 }
 0x188   : > { %v1570_v10 = vadd.f32 %v1511_v24, %v13363_v19  ;;  %v13572_v3 = vadd.f32 %v10570_v16, %v1572_v7  ;;  %v1960_v20 = vpop.f32.mrf.mxu1 }
 0x189   : > { %v10533_v26 = vpop.f32.mrf.mxu0 }
 0x18a   : > { %v1573_v17 = vadd.f32 %v10533_v26, %v13367_v27  ;;  %v13575_v39 = vadd.f32 %v1944_v58, %v1570_v10  ;;  %v10575_v15 = vpop.f32.mrf.mxu1  ;;  %v11953_v58 = vld [vmem:[%s12211_s27 + $0x80] sm:$0xff]  }
 0x18b   : > { %v1514_v23 = vpop.f32.mrf.mxu0  ;;  %v3814_v50 = vrot.slane %v11953_v58, 3 }
 0x18c   : > { %v13580_v48 = vadd.f32 %v1514_v23, %v13387_v0  ;;  %v13582_v12 = vadd.f32 %v10571_v5, %v1573_v17  ;;  %v13584_v19 = vpop.f32.mrf.mxu1 }
 0x18d   : > { %15826 = vst [vmem:[#allocation19_spill] sm:$0xff] %v13584_v19  ;;  %v10536_v16 = vpop.f32.mrf.mxu0  ;;  %10751 = vmatmul.mubr.msk.bf16.gmra.mxu0 %vm810_vm1, %v3811_v30 }
 0x18e   : > { %v1576_v27 = vadd.f32 %v10536_v16, %v13397_v32  ;;  %10754 = vmatprep.mubr.msk.bf16.mxu0 %vm810_vm1, %v3813_v42  ;;  %v10618_v7 = vpop.f32.mrf.mxu1  ;;  %v3815_v32 = vsel %vm3786_vm7, %v3812_v34, %v3814_v50  ;;  %v3817_v16 = vsel %vm3786_vm7, %v3814_v50, %v3816_v43 }
 0x18f   : > { %v1527_v24 = vpop.f32.mrf.mxu0 }
 0x190   : > { %v1574_v0 = vadd.f32 %v1527_v24, %v13406_v37  ;;  %v13592_v10 = vadd.f32 %v10574_v35, %v1576_v27  ;;  %v2715_v5 = vpop.f32.mrf.mxu1  ;;  %v3820_v27 = vrot.slane %v13234_v31, 3 }
 0x191   : > { %v10537_v17 = vpop.f32.mrf.mxu0 }
 0x192   : > { %v1577_v26 = vadd.f32 %v10537_v17, %v13408_v40  ;;  %v13595_v23 = vadd.f32 %v1960_v20, %v1574_v0  ;;  %v10619_v30 = vpop.f32.mrf.mxu1  ;;  %v3818_v40 = vrot.slane %v13199_v8, 3 }
 0x193   : > { %v13598_v42 = vpop.f32.mrf.mxu0 }
 0x194   : > { %v13601_v58 = vadd.f32 %v10575_v15, %v1577_v26  ;;  %v13603_v4 = vpop.f32.mrf.mxu1  ;;  %v3821_v8 = vsel %vm3786_vm7, %v3818_v40, %v3820_v27 }
 0x195   : > { %v10580_v37 = vpop.f32.mrf.mxu0  ;;  %10755 = vmatmul.mubr.msk.bf16.gmra.mxu0 %vm810_vm1, %v3815_v32 }
 0x196   : > { %v2546_v35 = vadd.f32 %v10580_v37, %v13428_v56  ;;  %10758 = vmatprep.mubr.msk.bf16.mxu0 %vm810_vm1, %v3817_v16  ;;  %v10622_v20 = vpop.f32.mrf.mxu1  ;;  %v3819_v56 = vsel %vm3786_vm7, %v3816_v43, %v3818_v40 }
 0x197   : > { %v2401_v34 = vpop.f32.mrf.mxu0 }
 0x198   : > { %v2544_v24 = vadd.f32 %v2401_v34, %v13432_v57  ;;  %v13611_v50 = vadd.f32 %v10618_v7, %v2546_v35  ;;  %v2731_v15 = vpop.f32.mrf.mxu1 }
 0x199   : > { %v10581_v0 = vpop.f32.mrf.mxu0 }
 0x19a   : > { %v2547_v17 = vadd.f32 %v10581_v0, %v13442_v61  ;;  %v13614_v26 = vadd.f32 %v2715_v5, %v2544_v24  ;;  %v10623_v32 = vpop.f32.mrf.mxu1  ;;  %v3822_v61 = vrot.slane %v13385_v59, 3 }
 0x19b   : > { %v13617_v16 = vpop.f32.mrf.mxu0 }
 0x19c   : > { %v13620_v37 = vadd.f32 %v10619_v30, %v2547_v17  ;;  %v13622_v31 = vpop.f32.mrf.mxu1  ;;  %v3823_v17 = vsel %vm3786_vm7, %v3820_v27, %v3822_v61 }
 0x19d   : > { %v10584_v57 = vpop.f32.mrf.mxu0  ;;  %10759 = vmatmul.mubr.msk.bf16.gmra.mxu0 %vm810_vm1, %v3819_v56 }
 0x19e   : > { %v2550_v7 = vadd.f32 %v10584_v57, %v13452_v2  ;;  %10762 = vmatprep.mubr.msk.bf16.mxu0 %vm810_vm1, %v3821_v8  ;;  %v10626_v5 = vpop.f32.mrf.mxu1 }
 0x19f   : > { %v2417_v43 = vpop.f32.mrf.mxu0 }
 0x1a0   : > { %v2548_v35 = vadd.f32 %v2417_v43, %v13455_v22  ;;  %v13629_v34 = vadd.f32 %v10622_v20, %v2550_v7  ;;  %v2747_v40 = vpop.f32.mrf.mxu1 }
 0x1a1   : > { %v10585_v30 = vpop.f32.mrf.mxu0 }
 0x1a2   : > { %v2551_v24 = vadd.f32 %v10585_v30, %v13462_v41  ;;  %v13632_v0 = vadd.f32 %v2731_v15, %v2548_v35  ;;  %v10627_v56 = vpop.f32.mrf.mxu1 }
 0x1a3   : > { %v13635_v2 = vpop.f32.mrf.mxu0 }
 0x1a4   : > { %v13637_v8 = vadd.f32 %v10623_v32, %v2551_v24  ;;  %v13639_v59 = vpop.f32.mrf.mxu1 }
 0x1a5   : > { %15827 = vst [vmem:[#allocation23_spill] sm:$0xff] %v13639_v59  ;;  %v10588_v57 = vpop.f32.mrf.mxu0  ;;  %10763 = vmatmul.mubr.msk.bf16.gmra.mxu0 %vm810_vm1, %v3823_v17 }
 0x1a6   : > { %v2554_v22 = vadd.f32 %v10588_v57, %v13472_v47  ;;  %v10630_v20 = vpop.f32.mrf.mxu1 }
 0x1a7   : > { %v2433_v7 = vpop.f32.mrf.mxu0 }
 0x1a8   : > { %v2552_v41 = vadd.f32 %v2433_v7, %v13475_v29  ;;  %v13644_v15 = vadd.f32 %v10626_v5, %v2554_v22  ;;  %v2763_v43 = vpop.f32.mrf.mxu1 }
 0x1a9   : > { %v10589_v27 = vpop.f32.mrf.mxu0 }
 0x1aa   : > { %v2555_v61 = vadd.f32 %v10589_v27, %v13482_v60  ;;  %v13647_v35 = vadd.f32 %v2747_v40, %v2552_v41  ;;  %v10631_v32 = vpop.f32.mrf.mxu1 }
 0x1ab   : > { %v13649_v30 = vpop.f32.mrf.mxu0 }
 0x1ac   : > { %v13651_v24 = vadd.f32 %v10627_v56, %v2555_v61  ;;  %v13653_v17 = vpop.f32.mrf.mxu1 }
 0x1ad   : > { %15828 = vst [vmem:[#allocation26_spill] sm:$0xff] %v13653_v17  ;;  %v10592_v47 = vpop.f32.mrf.mxu0 }
 0x1ae   : > { %v2558_v57 = vadd.f32 %v10592_v47, %v13492_v51  ;;  %v10634_v59 = vpop.f32.mrf.mxu1 }
 0x1af   : > { %v2449_v29 = vpop.f32.mrf.mxu0 }
 0x1b0   : > { %v2556_v5 = vadd.f32 %v2449_v29, %v13495_v45  ;;  %v13657_v22 = vadd.f32 %v10630_v20, %v2558_v57  ;;  %v2779_v7 = vpop.f32.mrf.mxu1 }
 0x1b1   : > { %v10593_v60 = vpop.f32.mrf.mxu0 }
 0x1b2   : > { %v2559_v40 = vadd.f32 %v10593_v60, %v13502_v38  ;;  %v13660_v41 = vadd.f32 %v2763_v43, %v2556_v5  ;;  %v10635_v27 = vpop.f32.mrf.mxu1 }
 0x1b3   : > { %v13662_v56 = vpop.f32.mrf.mxu0 }
 0x1b4   : > { %15829 = vst [vmem:[#allocation27_spill] sm:$0xff] %v13662_v56  ;;  %v13664_v61 = vadd.f32 %v10631_v32, %v2559_v40  ;;  %v13666_v17 = vpop.f32.mrf.mxu1 }
 0x1b5   : > { %15830 = vst [vmem:[#allocation28_spill] sm:$0xff] %v13666_v17  ;;  %v10596_v51 = vpop.f32.mrf.mxu0 }
 0x1b6   : > { %v2562_v47 = vadd.f32 %v10596_v51, %v13512_v55  ;;  %v10638_v19 = vpop.f32.mrf.mxu1 }
 0x1b7   : > { %v2465_v45 = vpop.f32.mrf.mxu0 }
 0x1b8   : > { %v2560_v20 = vadd.f32 %v2465_v45, %v13515_v36  ;;  %v13670_v57 = vadd.f32 %v10634_v59, %v2562_v47  ;;  %v2795_v29 = vpop.f32.mrf.mxu1 }
 0x1b9   : > { %v10597_v38 = vpop.f32.mrf.mxu0 }
 0x1ba   : > { %v2563_v43 = vadd.f32 %v10597_v38, %v13522_v11  ;;  %v13673_v5 = vadd.f32 %v2779_v7, %v2560_v20  ;;  %v10639_v60 = vpop.f32.mrf.mxu1 }
 0x1bb   : > { %v13675_v32 = vpop.f32.mrf.mxu0 }
 0x1bc   : > { %15831 = vst [vmem:[#allocation24_spill] sm:$0xff] %v13675_v32  ;;  %v13677_v40 = vadd.f32 %v10635_v27, %v2563_v43  ;;  %v13679_v17 = vpop.f32.mrf.mxu1 }
 0x1bd   : > { %15832 = vst [vmem:[#allocation21_spill] sm:$0xff] %v13679_v17  ;;  %v10600_v55 = vpop.f32.mrf.mxu0 }
 0x1be   : > { %v2566_v51 = vadd.f32 %v10600_v55, %v13532_v33  ;;  %v10642_v56 = vpop.f32.mrf.mxu1 }
 0x1bf   : > { %v2481_v36 = vpop.f32.mrf.mxu0 }
 0x1c0   : > { %v2564_v59 = vadd.f32 %v2481_v36, %v13535_v13  ;;  %v13683_v47 = vadd.f32 %v10638_v19, %v2566_v51  ;;  %v2811_v45 = vpop.f32.mrf.mxu1 }
 0x1c1   : > { %v10601_v11 = vpop.f32.mrf.mxu0 }
 0x1c2   : > { %v2567_v7 = vadd.f32 %v10601_v11, %v13542_v54  ;;  %v13686_v20 = vadd.f32 %v2795_v29, %v2564_v59  ;;  %v10643_v38 = vpop.f32.mrf.mxu1 }
 0x1c3   : > { %v13688_v27 = vpop.f32.mrf.mxu0 }
 0x1c4   : > { %15833 = vst [vmem:[#allocation20_spill] sm:$0xff] %v13688_v27  ;;  %v13690_v43 = vadd.f32 %v10639_v60, %v2567_v7  ;;  %v13692_v17 = vpop.f32.mrf.mxu1 }
 0x1c5   : > { %15834 = vst [vmem:[#allocation22_spill] sm:$0xff] %v13692_v17  ;;  %v10604_v33 = vpop.f32.mrf.mxu0 }
 0x1c6   : > { %v2570_v55 = vadd.f32 %v10604_v33, %v13552_v53  ;;  %v10646_v32 = vpop.f32.mrf.mxu1 }
 0x1c7   : > { %v2497_v13 = vpop.f32.mrf.mxu0 }
 0x1c8   : > { %v2568_v19 = vadd.f32 %v2497_v13, %v13555_v1  ;;  %v13696_v51 = vadd.f32 %v10642_v56, %v2570_v55  ;;  %v2827_v36 = vpop.f32.mrf.mxu1 }
 0x1c9   : > { %v10605_v54 = vpop.f32.mrf.mxu0 }
 0x1ca   : > { %v2571_v29 = vadd.f32 %v10605_v54, %v13562_v6  ;;  %v13699_v59 = vadd.f32 %v2811_v45, %v2568_v19  ;;  %v10647_v11 = vpop.f32.mrf.mxu1 }
 0x1cb   : > { %v13701_v60 = vpop.f32.mrf.mxu0 }
 0x1cc   : > { %15835 = vst [vmem:[#allocation25_spill] sm:$0xff] %v13701_v60  ;;  %v13703_v7 = vadd.f32 %v10643_v38, %v2571_v29  ;;  %v13705_v17 = vpop.f32.mrf.mxu1 }
 0x1cd   : > { %15836 = vst [vmem:[#allocation13_spill] sm:$0xff] %v13705_v17  ;;  %v10608_v53 = vpop.f32.mrf.mxu0 }
 0x1ce   : > { %v2574_v33 = vadd.f32 %v10608_v53, %v13572_v3  ;;  %v10650_v27 = vpop.f32.mrf.mxu1 }
 0x1cf   : > { %v2513_v1 = vpop.f32.mrf.mxu0 }
 0x1d0   : > { %v2572_v56 = vadd.f32 %v2513_v1, %v13575_v39  ;;  %v13709_v55 = vadd.f32 %v10646_v32, %v2574_v33  ;;  %v2843_v13 = vpop.f32.mrf.mxu1 }
 0x1d1   : > { %v10609_v6 = vpop.f32.mrf.mxu0 }
 0x1d2   : > { %v2575_v45 = vadd.f32 %v10609_v6, %v13582_v12  ;;  %v13712_v19 = vadd.f32 %v2827_v36, %v2572_v56  ;;  %v10651_v54 = vpop.f32.mrf.mxu1 }
 0x1d3   : > { %v13714_v38 = vpop.f32.mrf.mxu0 }
 0x1d4   : > { %15837 = vst [vmem:[#allocation14_spill] sm:$0xff] %v13714_v38  ;;  %v13716_v29 = vadd.f32 %v10647_v11, %v2575_v45  ;;  %v13718_v17 = vpop.f32.mrf.mxu1 }
 0x1d5   : > { %15838 = vst [vmem:[#allocation11_spill] sm:$0xff] %v13718_v17  ;;  %v10612_v3 = vpop.f32.mrf.mxu0 }
 0x1d6   : > { %v2578_v53 = vadd.f32 %v10612_v3, %v13592_v10  ;;  %v13721_v60 = vpop.f32.mrf.mxu1 }
 0x1d7   : > { %v2529_v39 = vpop.f32.mrf.mxu0 }
 0x1d8   : > { %v2576_v32 = vadd.f32 %v2529_v39, %v13595_v23  ;;  %v13724_v33 = vadd.f32 %v10650_v27, %v2578_v53  ;;  %v13726_v12 = vpop.f32.mrf.mxu1 }
 0x1d9   : > { %v10613_v36 = vpop.f32.mrf.mxu0 }
 0x1da   : > { %v2579_v1 = vadd.f32 %v10613_v36, %v13601_v58  ;;  %v13729_v56 = vadd.f32 %v2843_v13, %v2576_v32  ;;  %v13731_v11 = vpop.f32.mrf.mxu1 }
 0x1db   : > { %v13733_v6 = vpop.f32.mrf.mxu0 }
 0x1dc   : > { %15839 = vst [vmem:[#allocation29_spill] sm:$0xff] %v13733_v6  ;;  %v13735_v45 = vadd.f32 %v10651_v54, %v2579_v1  ;;  %v13737_v10 = vpop.f32.mrf.mxu1 }
 0x1dd   : > { %v10656_v3 = vpop.f32.mrf.mxu0 }
 0x1de   : > { %v13740_v23 = vadd.f32 %v10656_v3, %v13611_v50  ;;  %v13742_v27 = vpop.f32.mrf.mxu1 }
 0x1df   : > { %v3154_v53 = vpop.f32.mrf.mxu0 }
 0x1e0   : > { %v13745_v39 = vadd.f32 %v3154_v53, %v13614_v26  ;;  %v13747_v58 = vpop.f32.mrf.mxu1 }
 0x1e1   : > { %v10657_v13 = vpop.f32.mrf.mxu0 }
 0x1e2   : > { %v13750_v32 = vadd.f32 %v10657_v13, %v13620_v37  ;;  %v13752_v54 = vpop.f32.mrf.mxu1 }
 0x1e3   : > { %15840 = vst [vmem:[#allocation30_spill] sm:$0xff] %v13752_v54  ;;  %v13754_v36 = vpop.f32.mrf.mxu0 }
 0x1e4   : > { %v13756_v1 = vpop.f32.mrf.mxu1 }
 0x1e5   : > { %15841 = vst [vmem:[#allocation31_spill] sm:$0xff] %v13756_v1  ;;  %v10660_v50 = vpop.f32.mrf.mxu0 }
 0x1e6   : > { %v13759_v3 = vadd.f32 %v10660_v50, %v13629_v34  ;;  %v13761_v17 = vpop.f32.mrf.mxu1 }
 0x1e7   : > { %15842 = vst [vmem:[#allocation32_spill] sm:$0xff] %v13761_v17  ;;  %v3170_v26 = vpop.f32.mrf.mxu0 }
 0x1e8   : > { %v13764_v53 = vadd.f32 %v3170_v26, %v13632_v0  ;;  %v13766_v6 = vpop.f32.mrf.mxu1 }
 0x1e9   : > { %15843 = vst [vmem:[#allocation33_spill] sm:$0xff] %v13766_v6  ;;  %v10661_v37 = vpop.f32.mrf.mxu0 }
 0x1ea   : > { %v13769_v13 = vadd.f32 %v10661_v37, %v13637_v8  ;;  %v13771_v54 = vpop.f32.mrf.mxu1 }
 0x1eb   : > { %15845 = vst [vmem:[#allocation35_spill] sm:$0xff] %v13771_v54  ;;  %v13773_v38 = vpop.f32.mrf.mxu0 }
 0x1ec   : > { %15844 = vst [vmem:[#allocation34_spill] sm:$0xff] %v13769_v13  ;;  %v13775_v1 = vpop.f32.mrf.mxu1 }
 0x1ed   : > { %15846 = vst [vmem:[#allocation36_spill] sm:$0xff] %v13775_v1  ;;  %v10664_v34 = vpop.f32.mrf.mxu0 }
 0x1ee   : > { %v13778_v50 = vadd.f32 %v10664_v34, %v13644_v15  ;;  %v13780_v17 = vpop.f32.mrf.mxu1 }
 0x1ef   : > { %15847 = vst [vmem:[#allocation37_spill] sm:$0xff] %v13780_v17  ;;  %v3186_v0 = vpop.f32.mrf.mxu0 }
 0x1f0   : > { %v13783_v26 = vadd.f32 %v3186_v0, %v13647_v35  ;;  %v13785_v6 = vpop.f32.mrf.mxu1 }
 0x1f1   : > { %15848 = vst [vmem:[#allocation38_spill] sm:$0xff] %v13785_v6  ;;  %v10665_v8 = vpop.f32.mrf.mxu0 }
 0x1f2   : > { %v13788_v37 = vadd.f32 %v10665_v8, %v13651_v24  ;;  %v13790_v54 = vpop.f32.mrf.mxu1 }
 0x1f3   : > { %15850 = vst [vmem:[#allocation40_spill] sm:$0xff] %v13790_v54  ;;  %v13792_v13 = vpop.f32.mrf.mxu0 }
 0x1f4   : > { %15849 = vst [vmem:[#allocation39_spill] sm:$0xff] %v13788_v37  ;;  %v13794_v1 = vpop.f32.mrf.mxu1 }
 0x1f5   : > { %15851 = vst [vmem:[#allocation41_spill] sm:$0xff] %v13794_v1  ;;  %v10668_v15 = vpop.f32.mrf.mxu0 }
 0x1f6   : > { %v13797_v34 = vadd.f32 %v10668_v15, %v13657_v22  ;;  %v13799_v17 = vpop.f32.mrf.mxu1 }
 0x1f7   : > { %15852 = vst [vmem:[#allocation42_spill] sm:$0xff] %v13799_v17  ;;  %v3202_v35 = vpop.f32.mrf.mxu0 }
 0x1f8   : > { %v13802_v0 = vadd.f32 %v3202_v35, %v13660_v41  ;;  %v13804_v6 = vpop.f32.mrf.mxu1 }
 0x1f9   : > { %15853 = vst [vmem:[#allocation43_spill] sm:$0xff] %v13804_v6  ;;  %v10669_v24 = vpop.f32.mrf.mxu0 }
 0x1fa   : > { %v13807_v8 = vadd.f32 %v10669_v24, %v13664_v61  ;;  %v13811_v37 = vpop.f32.mrf.mxu1 }
 0x1fb   : > { %v13809_v54 = vpop.f32.mrf.mxu0  ;;  %15855 = vst [vmem:[#allocation45_spill] sm:$0xff] %v13811_v37 }
 0x1fc   : > { %15854 = vst [vmem:[#allocation44_spill] sm:$0xff] %v13807_v8  ;;  %v13819_v41 = vpop.f32.mrf.mxu1 }
 0x1fd   : > { %v10672_v1 = vpop.f32.mrf.mxu0  ;;  %15856 = vst [vmem:[#allocation46_spill] sm:$0xff] %v13819_v41 }
 0x1fe   : > { %v13814_v22 = vadd.f32 %v10672_v1, %v13670_v57  ;;  %v13826_v24 = vpop.f32.mrf.mxu1 }
 0x1ff   : > { %v3218_v15 = vpop.f32.mrf.mxu0  ;;  %15858 = vst [vmem:[#allocation48_spill] sm:$0xff] %v13826_v24 }
 0x200   : > { %v13817_v17 = vadd.f32 %v3218_v15, %v13673_v5  ;;  %v13834_v5 = vpop.f32.mrf.mxu1 }
 0x201   : > { %v10673_v35 = vpop.f32.mrf.mxu0  ;;  %15859 = vst [vmem:[#allocation49_spill] sm:$0xff] %v13834_v5 }
 0x202   : > { %v13822_v6 = vadd.f32 %v10673_v35, %v13677_v40  ;;  %v13841_v35 = vpop.f32.mrf.mxu1 }
 0x203   : > { %v13824_v61 = vpop.f32.mrf.mxu0  ;;  %15861 = vst [vmem:[#allocation51_spill] sm:$0xff] %v13841_v35 }
 0x204   : > { %15857 = vst [vmem:[#allocation47_spill] sm:$0xff] %v13822_v6 }
 0x205   : > { %v10676_v8 = vpop.f32.mrf.mxu0 }
 0x206   : > { %v13829_v37 = vadd.f32 %v10676_v8, %v13683_v47  ;;  %v13846_v8 = vpop.f32.mrf.mxu1 }
 0x207   : > { %v3234_v57 = vpop.f32.mrf.mxu0 }
 0x208   : > { %v13832_v1 = vadd.f32 %v3234_v57, %v13686_v20 }
 0x209   : > { %v10677_v15 = vpop.f32.mrf.mxu0 }
 0x20a   : > { %v13837_v41 = vadd.f32 %v10677_v15, %v13690_v43  ;;  %v13856_v15 = vpop.f32.mrf.mxu1 }
 0x20b   : > { %v13839_v40 = vpop.f32.mrf.mxu0 }
 0x20c   : > { %15860 = vst [vmem:[#allocation50_spill] sm:$0xff] %v13837_v41 }
 0x20d   : > { %v10680_v6 = vpop.f32.mrf.mxu0 }
 0x20e   : > { %v13844_v24 = vadd.f32 %v10680_v6, %v13696_v51  ;;  %v13861_v6 = vpop.f32.mrf.mxu1 }
 0x20f   : > { %v3250_v47 = vpop.f32.mrf.mxu0 }
 0x210   : > { %15862 = vst [vmem:[#allocation52_spill] sm:$0xff] %v13844_v24  ;;  %v13849_v20 = vadd.f32 %v3250_v47, %v13699_v59 }
 0x211   : > { %v10681_v57 = vpop.f32.mrf.mxu0 }
 0x212   : > { %15863 = vst [vmem:[#allocation53_spill] sm:$0xff] %v13849_v20  ;;  %v13852_v5 = vadd.f32 %v10681_v57, %v13703_v7  ;;  %v13871_v57 = vpop.f32.mrf.mxu1  ;;  %v1976_v20 = vadd.f32 %v13417_v49, %v13440_v25  ;;  %v3746_v49 = vadd.f32 %v13721_v60, %v13740_v23  ;;  %v3747_v60 = vadd.f32 %v13731_v11, %v13750_v32  ;;  %v15868_v11 = vld [vmem:[#allocation12_spill] sm:$0xff] }
 0x213   : > { %v13854_v43 = vpop.f32.mrf.mxu0  ;;  %v1992_v32 = vadd.f32 %v15868_v11, %v13520_v18 }
 0x214   : > { %15864 = vst [vmem:[#allocation54_spill] sm:$0xff] %v13852_v5 }
 0x215   : > { %v10684_v41 = vpop.f32.mrf.mxu0 }
 0x216   : > { %v13859_v35 = vadd.f32 %v10684_v41, %v13709_v55 }
 0x217   : > { %v3266_v51 = vpop.f32.mrf.mxu0 }
 0x218   : > { %15865 = vst [vmem:[#allocation55_spill] sm:$0xff] %v13859_v35  ;;  %v13864_v24 = vadd.f32 %v3266_v51, %v13712_v19  ;;  %v2545_v35 = vadd.f32 %v13617_v16, %v1976_v20  ;;  %v13879_v19 = vpop.f32.mrf.mxu1  ;;  %v1980_v16 = vadd.f32 %v13444_v14, %v13460_v52  ;;  %v1984_v14 = vadd.f32 %v13464_v28, %v13480_v44 }
 0x219   : > { %v10685_v59 = vpop.f32.mrf.mxu0  ;;  %v3750_v28 = vadd.f32 %v13742_v27, %v13759_v3  ;;  %v3748_v27 = vadd.f32 %v13747_v58, %v13764_v53  ;;  %v15882_v58 = vld [vmem:[#allocation30_spill] sm:$0xff] }
 0x21a   : > { %15866 = vst [vmem:[#allocation56_spill] sm:$0xff] %v13864_v24  ;;  %v13867_v47 = vadd.f32 %v10685_v59, %v13716_v29  ;;  %v2859_v24 = vadd.f32 %v13603_v4, %v2545_v35  ;;  %v13892_v25 = vpop.f32.mrf.mxu1  ;;  %v2549_v4 = vadd.f32 %v13635_v2, %v1980_v16  ;;  %v15873_v16 = vld [vmem:[#allocation27_spill] sm:$0xff] }
 0x21b   : > { %v13869_v7 = vpop.f32.mrf.mxu0 }
 0x21c   : > { %15867 = vst [vmem:[#allocation57_spill] sm:$0xff] %v13867_v47  ;;  %v13904_v23 = vpop.f32.mrf.mxu1 }
 0x21d   : > { %v10688_v5 = vpop.f32.mrf.mxu0 }
 0x21e   : > { %v13876_v55 = vadd.f32 %v10688_v5, %v13724_v33  ;;  %v3298_v5 = vadd.f32 %v13754_v36, %v2859_v24  ;;  %v2863_v24 = vadd.f32 %v13622_v31, %v2549_v4  ;;  %v13918_v44 = vpop.f32.mrf.mxu1  ;;  %v15874_v31 = vld [vmem:[#allocation19_spill] sm:$0xff] }
 0x21f   : > { %v3282_v41 = vpop.f32.mrf.mxu0 }
 0x220   : > { %v13882_v51 = vadd.f32 %v3282_v41, %v13729_v56  ;;  %v3744_v56 = vadd.f32 %v13726_v12, %v13745_v39  ;;  %v1255_v41 = vadd.f32 %v13389_v46, %v13413_v21  ;;  %v3745_v39 = vadd.f32 %v13737_v10, %v3298_v5  ;;  %v15869_v10 = vld [vmem:[#allocation15_spill] sm:$0xff] }
 0x221   : > { %v10689_v29 = vpop.f32.mrf.mxu0  ;;  %v1988_v46 = vadd.f32 %v13484_v9, %v13500_v62  ;;  %v2553_v21 = vadd.f32 %v13649_v30, %v1984_v14  ;;  %v15871_v9 = vld [vmem:[#allocation16_spill] sm:$0xff]  ;;  %v15872_v30 = vld [vmem:[#allocation18_spill] sm:$0xff]  ;;  %v3302_v3 = vadd.f32 %v13773_v38, %v2863_v24  ;;  %v13941_v38 = vpop.f32.mrf.mxu1 }
 0x222   : > { %v13885_v59 = vadd.f32 %v10689_v29, %v13735_v45  ;;  %v1575_v12 = vadd.f32 %v13598_v42, %v1255_v41  ;;  %v1996_v29 = vadd.f32 %v15869_v10, %v13540_v63  ;;  %v15875_v63 = vld [vmem:[#allocation23_spill] sm:$0xff]  ;;  %v15876_v41 = vld [vmem:[#allocation24_spill] sm:$0xff] }
 0x223   : > { %v13887_v47 = vpop.f32.mrf.mxu0  ;;  %v2557_v18 = vadd.f32 %v15873_v16, %v1988_v46  ;;  %v2561_v4 = vadd.f32 %v15876_v41, %v1992_v32  ;;  %v13962_v41 = vpop.f32.mrf.mxu1 }
 0x224   : > { %v2008_v5 = vadd.f32 %v15874_v31, %v1575_v12  ;;  %v15880_v12 = vld [vmem:[#allocation29_spill] sm:$0xff] }
 0x225   : > { %v10732_v33 = vpop.f32.mrf.mxu0 }
 0x226   : > { %v4060_v45 = vadd.f32 %v10732_v33, %v3746_v49  ;;  %v15870_v49 = vld [vmem:[#allocation17_spill] sm:$0xff]  ;;  %v2004_v33 = vadd.f32 %v15872_v30, %v13580_v48  ;;  %v2577_v46 = vadd.f32 %v15880_v12, %v2008_v5 }
 0x227   : > { %v3915_v20 = vpop.f32.mrf.mxu0  ;;  %v2000_v62 = vadd.f32 %v15871_v9, %v15870_v49  ;;  %v15878_v48 = vld [vmem:[#allocation25_spill] sm:$0xff]  ;;  %v15885_v49 = vld [vmem:[#allocation28_spill] sm:$0xff] }
 0x228   : > { %4096 = vst [vmem:[#allocation2 + $0x10] sm:$0xff] %v4060_v45  ;;  %v4058_v35 = vadd.f32 %v3915_v20, %v3744_v56  ;;  %v2867_v20 = vadd.f32 %v15875_v63, %v2553_v21  ;;  %v15883_v21 = vld [vmem:[#allocation26_spill] sm:$0xff]  ;;  %v2875_v9 = vadd.f32 %v15885_v49, %v2561_v4 }
 0x229   : > { %v10733_v52 = vpop.f32.mrf.mxu0  ;;  %v2569_v14 = vadd.f32 %v15878_v48, %v2000_v62  ;;  %v2871_v32 = vadd.f32 %v15883_v21, %v2557_v18  ;;  %v15886_v62 = vld [vmem:[#allocation21_spill] sm:$0xff]  ;;  %v15892_v48 = vld [vmem:[#allocation39_spill] sm:$0xff] }
 0x22a   : > { %4094 = vst [vmem:[#allocation2] sm:$0xff] %v4058_v35  ;;  %v4061_v36 = vadd.f32 %v10733_v52, %v3747_v60  ;;  %v15877_v60 = vld [vmem:[#allocation20_spill] sm:$0xff]  ;;  %v3306_v24 = vadd.f32 %v13792_v13, %v2867_v20  ;;  %v15888_v18 = vld [vmem:[#allocation13_spill] sm:$0xff]  ;;  %v15889_v13 = vld [vmem:[#allocation11_spill] sm:$0xff]  ;;  %v3314_v12 = vadd.f32 %v13824_v61, %v2875_v9 }
 0x22b   : > { %v3918_v2 = vpop.f32.mrf.mxu0  ;;  %v2565_v35 = vadd.f32 %v15877_v60, %v1996_v29  ;;  %v13958_v63 = vadd.f32 %v15889_v13, %v2577_v46  ;;  %v15899_v61 = vld [vmem:[#allocation41_spill] sm:$0xff]  ;;  %v15901_v13 = vld [vmem:[#allocation43_spill] sm:$0xff] }
 0x22c   : > { %4097 = vst [vmem:[#allocation2 + $0x18] sm:$0xff] %v4061_v36  ;;  %v4059_v42 = vadd.f32 %v3918_v2, %v3745_v39  ;;  %v15879_v39 = vld [vmem:[#allocation14_spill] sm:$0xff] }
 0x22d   : > { %v10736_v56 = vpop.f32.mrf.mxu0  ;;  %v2573_v36 = vadd.f32 %v15879_v39, %v2004_v33  ;;  %v15881_v2 = vld [vmem:[#allocation34_spill] sm:$0xff]  ;;  %v2879_v30 = vadd.f32 %v15886_v62, %v2565_v35  ;;  %v15891_v35 = vld [vmem:[#allocation33_spill] sm:$0xff]  ;;  %v15894_v39 = vld [vmem:[#allocation36_spill] sm:$0xff] }
 0x22e   : > { %4095 = vst [vmem:[#allocation2 + $0x8] sm:$0xff] %v4059_v42  ;;  %v13931_v45 = vadd.f32 %v10736_v56, %v3750_v28  ;;  %v3751_v53 = vadd.f32 %v15882_v58, %v15881_v2  ;;  %v15884_v42 = vld [vmem:[#allocation31_spill] sm:$0xff]  ;;  %v15887_v33 = vld [vmem:[#allocation22_spill] sm:$0xff]  ;;  %v3310_v56 = vadd.f32 %v13809_v54, %v2871_v32  ;;  %v3752_v54 = vadd.f32 %v15891_v35, %v13783_v26  ;;  %v15895_v58 = vld [vmem:[#allocation37_spill] sm:$0xff] }
 0x22f   : > { %v3931_v52 = vpop.f32.mrf.mxu0  ;;  %v3749_v10 = vadd.f32 %v15884_v42, %v3302_v3  ;;  %v2883_v16 = vadd.f32 %v15887_v33, %v2569_v14  ;;  %v15890_v3 = vld [vmem:[#allocation32_spill] sm:$0xff]  ;;  %v15893_v14 = vld [vmem:[#allocation35_spill] sm:$0xff]  ;;  %v15896_v26 = vld [vmem:[#allocation38_spill] sm:$0xff]  ;;  %v3318_v62 = vadd.f32 %v13839_v40, %v2879_v30 }
 0x230   : > { %4100 = vst [vmem:[#allocation2 + $0x30] sm:$0xff] %v13931_v45  ;;  %v13944_v11 = vadd.f32 %v3931_v52, %v3748_v27  ;;  %v2887_v27 = vadd.f32 %v15888_v18, %v2573_v36  ;;  %v3754_v20 = vadd.f32 %v15890_v3, %v13778_v50  ;;  %v3755_v52 = vadd.f32 %v15893_v14, %v15892_v48  ;;  %v13993_v33 = vld [vmem:[%s15675_s2] ss:$0 sm:$0xff]  ;;  %v15904_v48 = vld [vmem:[#allocation46_spill] sm:$0xff] }
 0x231   : > { %v10737_v28 = vpop.f32.mrf.mxu0  ;;  %v3753_v36 = vadd.f32 %v15894_v39, %v3306_v24  ;;  %v4131_v2 = vld [vmem:[#allocation2] sm:$0xff]  ;;  %v13980_v42 = vadd.f32 %v15896_v26, %v13802_v0  ;;  %v13987_v9 = vadd.f32 %v15899_v61, %v3310_v56  ;;  %v15900_v0 = vld [vmem:[#allocation42_spill] sm:$0xff]  ;;  %v14001_v3 = vadd.f32 %v15901_v13, %v13817_v17  ;;  %v14003_v56 = vpop.f32.mrf.mxu1 }
 0x232   : > { %4098 = vst [vmem:[#allocation2 + $0x20] sm:$0xff] %v13944_v11  ;;  %v13950_v29 = vadd.f32 %v10737_v28, %v3751_v53  ;;  %v3758_v53 = vadd.f32 %v15895_v58, %v13797_v34  ;;  %v15898_v24 = vld [vmem:[#allocation40_spill] sm:$0xff]  ;;  %v13997_v18 = vadd.f32 %v15900_v0, %v13814_v22  ;;  %v14013_v14 = vadd.f32 %v15904_v48, %v3314_v12  ;;  %v15907_v12 = vld [vmem:[#allocation49_spill] sm:$0xff] }
 0x233   : > { %v3934_v31 = vpop.f32.mrf.mxu0  ;;  %v4233_v5 = vld [vmem:[#allocation2 + $0x12] sm:$0xff]  ;;  %v15905_v22 = vld [vmem:[#allocation48_spill] sm:$0xff]  ;;  %v3322_v17 = vadd.f32 %v13854_v43, %v2883_v16  ;;  %v14028_v26 = vadd.f32 %v15907_v12, %v13832_v1  ;;  %v14035_v43 = vadd.f32 %v13846_v8, %v3318_v62  ;;  %v3326_v16 = vadd.f32 %v13869_v7, %v2887_v27  ;;  %v15911_v0 = vld [vmem:[#allocation53_spill] sm:$0xff]  ;;  %v10727_v13 = vpop.f32.mrf.mxu1 }
 0x234   : > { %4101 = vst [vmem:[#allocation2 + $0x38] sm:$0xff] %v13950_v29  ;;  %v13965_v4 = vadd.f32 %v3934_v31, %v3749_v10  ;;  %v4267_v60 = vld [vmem:[#allocation2 + $0x13] sm:$0xff]  ;;  %v15897_v10 = vld [vmem:[#allocation44_spill] sm:$0xff]  ;;  %v14017_v39 = vadd.f32 %v15905_v22, %v13829_v37  ;;  %v14044_v1 = vadd.f32 %v13861_v6, %v15911_v0  ;;  %v15915_v12 = vld [vmem:[#allocation57_spill] sm:$0xff] }
 0x235   : > { %v10740_v46 = vpop.f32.mrf.mxu0  ;;  %v4165_v50 = vld [vmem:[#allocation2 + $0x1] sm:$0xff]  ;;  %v4301_v28 = vmax.f32 %v4233_v5, %v4267_v60  ;;  %v13984_v49 = vadd.f32 %v15898_v24, %v15897_v10  ;;  %v4166_v5 = vld [vmem:[#allocation2 + $0x9] sm:$0xff]  ;;  %v15909_v10 = vld [vmem:[#allocation51_spill] sm:$0xff]  ;;  %v14054_v27 = vadd.f32 %v13879_v19, %v3322_v17 }
 0x236   : > { %4099 = vst [vmem:[#allocation2 + $0x28] sm:$0xff] %v13965_v4  ;;  %v13976_v21 = vadd.f32 %v10740_v46, %v3754_v20  ;;  %v4199_v32 = vmax.f32 %v4131_v2, %v4165_v50  ;;  %v4132_v31 = vld [vmem:[#allocation2 + $0x8] sm:$0xff]  ;;  %v15902_v20 = vld [vmem:[#allocation47_spill] sm:$0xff] }
 0x237   : > { %v3947_v34 = vpop.f32.mrf.mxu0  ;;  %v15903_v60 = vld [vmem:[#allocation45_spill] sm:$0xff]  ;;  %v4200_v58 = vmax.f32 %v4132_v31, %v4166_v5  ;;  %v15908_v37 = vld [vmem:[#allocation50_spill] sm:$0xff]  ;;  %v15910_v31 = vld [vmem:[#allocation52_spill] sm:$0xff] }
 0x238   : > { %4104 = vst [vmem:[#allocation2 + $0x50] sm:$0xff] %v13976_v21  ;;  %v14006_v40 = vadd.f32 %v3947_v34, %v3752_v54  ;;  %v4335_v30 = vmax.f32 %v4199_v32, %v4301_v28  ;;  %v14010_v35 = vadd.f32 %v15903_v60, %v15902_v20  ;;  %v14032_v24 = vadd.f32 %v15909_v10, %v15908_v37  ;;  %v4167_v8 = vld [vmem:[#allocation2 + $0x11] sm:$0xff] }
 0x239   : > { %v10741_v46 = vpop.f32.mrf.mxu0  ;;  %v4234_v2 = vld [vmem:[#allocation2 + $0x1a] sm:$0xff]  ;;  %v14040_v5 = vadd.f32 %v13856_v15, %v15910_v31  ;;  %v15912_v20 = vld [vmem:[#allocation54_spill] sm:$0xff]  ;;  %v14071_v37 = vadd.f32 %v13918_v44, %v15915_v12  ;;  %v14074_v10 = vadd.f32 %v13941_v38, %v3326_v16  ;;  %v14087_v16 = vadd.f32 %v13962_v41, %v13876_v55 }
 0x23a   : > { %v4268_v50 = vld [vmem:[#allocation2 + $0x1b] sm:$0xff]  ;;  %4102 = vst [vmem:[#allocation2 + $0x40] sm:$0xff] %v14006_v40  ;;  %v14021_v54 = vadd.f32 %v10741_v46, %v3755_v52  ;;  %v14024_v28 = vadd.f32 %v13993_v33, %v4335_v30  ;;  %v14051_v7 = vadd.f32 %v13871_v57, %v15912_v20  ;;  %v4133_v44 = vld [vmem:[#allocation2 + $0x10] sm:$0xff]  ;;  %v14100_v41 = vadd.f32 %v14003_v56, %v13882_v51 }
 0x23b   : > { %v4302_v32 = vmax.f32 %v4234_v2, %v4268_v50  ;;  %v3950_v52 = vpop.f32.mrf.mxu0  ;;  %v4237_v61 = vld [vmem:[#allocation2 + $0x32] sm:$0xff]  ;;  %v15914_v2 = vld [vmem:[#allocation56_spill] sm:$0xff] }
 0x23c   : > { %15906 = vst [vmem:[#allocation12_spill] sm:$0xff] %v14024_v28  ;;  %v4271_v34 = vld [vmem:[#allocation2 + $0x33] sm:$0xff]  ;;  %4105 = vst [vmem:[#allocation2 + $0x58] sm:$0xff] %v14021_v54  ;;  %v14047_v30 = vadd.f32 %v3950_v52, %v3753_v36  ;;  %v4443_v36 = vmul.f32 0.044715, %v14024_v28  ;;  %v14063_v50 = vadd.f32 %v13904_v23, %v15914_v2  ;;  %v3330_v23 = vadd.f32 %v13887_v47, %v13958_v63 }
 0x23d   : > { %v4336_v62 = vmax.f32 %v4200_v58, %v4302_v32  ;;  %v15913_v15 = vld [vmem:[#allocation55_spill] sm:$0xff]  ;;  %v10744_v6 = vpop.f32.mrf.mxu0  ;;  %v4169_v48 = vld [vmem:[#allocation2 + $0x21] sm:$0xff]  ;;  %v4305_v17 = vmax.f32 %v4237_v61, %v4271_v34  ;;  %v4236_v58 = vld [vmem:[#allocation2 + $0x2a] sm:$0xff] }
 0x23e   : > { %v14058_v60 = vadd.f32 %v13892_v25, %v15913_v15  ;;  %v4168_v22 = vld [vmem:[#allocation2 + $0x19] sm:$0xff]  ;;  %v4235_v46 = vld [vmem:[#allocation2 + $0x22] sm:$0xff]  ;;  %4103 = vst [vmem:[#allocation2 + $0x48] sm:$0xff] %v14047_v30  ;;  %v14066_v57 = vadd.f32 %v10744_v6, %v3758_v53  ;;  %v4203_v19 = vmax.f32 %v13944_v11, %v4169_v48  ;;  %v4270_v32 = vld [vmem:[#allocation2 + $0x2b] sm:$0xff]  ;;  %v3732_v11 = vpop.f32.mrf.mxu1  ;;  %v4477_v48 = vmul.f32 %v4443_v36, %v14024_v28 }
 0x23f   : > { %v4269_v25 = vld [vmem:[#allocation2 + $0x23] sm:$0xff]  ;;  %v3963_v52 = vpop.f32.mrf.mxu0  ;;  %v14079_v53 = vadd.f32 %v13993_v33, %v4336_v62  ;;  %v4134_v0 = vld [vmem:[#allocation2 + $0x18] sm:$0xff]  ;;  %v4304_v38 = vmax.f32 %v4236_v58, %v4270_v32  ;;  %v4201_v62 = vmax.f32 %v4133_v44, %v4167_v8  ;;  %v14103_v8 = vadd.f32 %v10727_v13, %v13885_v59 }
 0x240   : > { %v4170_v31 = vld [vmem:[#allocation2 + $0x29] sm:$0xff]  ;;  %4108 = vst [vmem:[#allocation2 + $0x70] sm:$0xff] %v14066_v57  ;;  %v14083_v61 = vadd.f32 %v3963_v52, %v13980_v42  ;;  %v4339_v34 = vmax.f32 %v4203_v19, %v4305_v17  ;;  %v4303_v20 = vmax.f32 %v4235_v46, %v4269_v25  ;;  %v4202_v6 = vmax.f32 %v4134_v0, %v4168_v22  ;;  %v4171_v2 = vld [vmem:[#allocation2 + $0x31] sm:$0xff] }
 0x241   : > { %v10745_v47 = vpop.f32.mrf.mxu0  ;;  %v4238_v63 = vld [vmem:[#allocation2 + $0x3a] sm:$0xff]  ;;  %v4204_v46 = vmax.f32 %v13965_v4, %v4170_v31  ;;  %v14105_v22 = vadd.f32 %v3732_v11, %v3330_v23  ;;  %v4444_v25 = vmul.f32 0.044715, %v14079_v53  ;;  %v11577_v51 = vld [vmem:[%s15676_s3 + $0x4] ss:$12 sps:$4 sm:$0xff]   ;;  %v4205_v13 = vmax.f32 %v13931_v45, %v4171_v2 }
 0x242   : > { %v4272_v15 = vld [vmem:[#allocation2 + $0x3b] sm:$0xff]  ;;  %4106 = vst [vmem:[#allocation2 + $0x60] sm:$0xff] %v14083_v61  ;;  %v14092_v42 = vadd.f32 %v10745_v47, %v13984_v49  ;;  %v14096_v55 = vadd.f32 %v13993_v33, %v4339_v34  ;;  %v4337_v12 = vmax.f32 %v4201_v62, %v4303_v20  ;;  %v4338_v52 = vmax.f32 %v4202_v6, %v4304_v38 }
 0x243   : > { %v4172_v19 = vld [vmem:[#allocation2 + $0x39] sm:$0xff]  ;;  %v4306_v17 = vmax.f32 %v4238_v63, %v4272_v15  ;;  %v3966_v36 = vpop.f32.mrf.mxu0  ;;  %v14119_v34 = vmul.f32 %v4477_v48, %v14024_v28  ;;  %4919 = vmatprep.mubr.bf16.mxu1 %v11577_v51  ;;  %v4478_v48 = vmul.f32 %v4444_v25, %v14079_v53 }
 0x244   : > { %v4241_v49 = vld [vmem:[#allocation2 + $0x52] sm:$0xff]  ;;  %4109 = vst [vmem:[#allocation2 + $0x78] sm:$0xff] %v14092_v42  ;;  %v14110_v4 = vadd.f32 %v3966_v36, %v13987_v9  ;;  %v4206_v23 = vmax.f32 %v13950_v29, %v4172_v19  ;;  %v4447_v11 = vmul.f32 0.044715, %v14096_v55  ;;  %v14134_v19 = vadd.f32 %v13993_v33, %v4337_v12 }
 0x245   : > { %v4275_v58 = vld [vmem:[#allocation2 + $0x53] sm:$0xff]  ;;  %v4340_v32 = vmax.f32 %v4204_v46, %v4306_v17  ;;  %v10748_v59 = vpop.f32.mrf.mxu0  ;;  %v4173_v56 = vld [vmem:[#allocation2 + $0x41] sm:$0xff]  ;;  %15916 = vst [vmem:[#allocation15_spill] sm:$0xff] %v14119_v34  ;;  %v4240_v20 = vld [vmem:[#allocation2 + $0x4a] sm:$0xff]  ;;  %v14137_v46 = vadd.f32 %v13993_v33, %v4338_v52 }
 0x246   : > { %v4239_v31 = vld [vmem:[#allocation2 + $0x42] sm:$0xff]  ;;  %4107 = vst [vmem:[#allocation2 + $0x68] sm:$0xff] %v14110_v4  ;;  %v14123_v9 = vadd.f32 %v10748_v59, %v13997_v18  ;;  %v4207_v44 = vmax.f32 %v14006_v40, %v4173_v56  ;;  %v4309_v0 = vmax.f32 %v4241_v49, %v4275_v58  ;;  %v4274_v47 = vld [vmem:[#allocation2 + $0x4b] sm:$0xff]  ;;  %v4481_v6 = vmul.f32 %v4447_v11, %v14096_v55 }
 0x247   : > { %v4273_v38 = vld [vmem:[#allocation2 + $0x43] sm:$0xff]  ;;  %v14127_v45 = vadd.f32 %v13993_v33, %v4340_v32  ;;  %v3979_v29 = vpop.f32.mrf.mxu0  ;;  %v4308_v62 = vmax.f32 %v4240_v20, %v4274_v47  ;;  %v4175_v40 = vld [vmem:[#allocation2 + $0x51] sm:$0xff] }
 0x248   : > { %v4174_v63 = vld [vmem:[#allocation2 + $0x49] sm:$0xff]  ;;  %v4307_v15 = vmax.f32 %v4239_v31, %v4273_v38  ;;  %4112 = vst [vmem:[#allocation2 + $0x90] sm:$0xff] %v14123_v9  ;;  %v4074_v18 = vadd.f32 %v3979_v29, %v14001_v3  ;;  %v4343_v2 = vmax.f32 %v4207_v44, %v4309_v0  ;;  %v4515_v59 = vmul.f32 %v4481_v6, %v14096_v55 }
 0x249   : > { %v10749_v17 = vpop.f32.mrf.mxu0  ;;  %v4176_v36 = vld [vmem:[#allocation2 + $0x59] sm:$0xff]  ;;  %v4342_v51 = vmax.f32 %v4206_v23, %v4308_v62  ;;  %v4448_v25 = vmul.f32 0.044715, %v14127_v45  ;;  %v4208_v12 = vmax.f32 %v14047_v30, %v4174_v63  ;;  %v14150_v23 = vmul.f32 0.5, %v14096_v55 }
 0x24a   : > { %v4242_v49 = vld [vmem:[#allocation2 + $0x5a] sm:$0xff]  ;;  %v4341_v32 = vmax.f32 %v4205_v13, %v4307_v15  ;;  %4110 = vst [vmem:[#allocation2 + $0x80] sm:$0xff] %v4074_v18  ;;  %v14142_v3 = vadd.f32 %v10749_v17, %v14010_v35  ;;  %v14146_v52 = vadd.f32 %v13993_v33, %v4343_v2  ;;  %v4209_v13 = vmax.f32 %v13976_v21, %v4175_v40 }
 0x24b   : > { %v4276_v58 = vld [vmem:[#allocation2 + $0x5b] sm:$0xff]  ;;  %v3982_v31 = vpop.f32.mrf.mxu0  ;;  %v4245_v11 = vld [vmem:[#allocation2 + $0x72] sm:$0xff]  ;;  %v14153_v0 = vmul.f32 0.5, %v14127_v45  ;;  %v14156_v35 = vmul.f32 %v4478_v48, %v14079_v53  ;;  %v4210_v38 = vmax.f32 %v14021_v54, %v4176_v36  ;;  %v14168_v6 = vadd.f32 %v13993_v33, %v4342_v51 }
 0x24c   : > { %v4310_v56 = vmax.f32 %v4242_v49, %v4276_v58  ;;  %v4279_v44 = vld [vmem:[#allocation2 + $0x73] sm:$0xff]  ;;  %4113 = vst [vmem:[#allocation2 + $0x98] sm:$0xff] %v14142_v3  ;;  %v4075_v30 = vadd.f32 %v3982_v31, %v14013_v14  ;;  %v14164_v21 = vadd.f32 %v13993_v33, %v4341_v32  ;;  %v4451_v62 = vmul.f32 0.044715, %v14146_v52 }
 0x24d   : > { %v14160_v20 = vld [vmem:[#allocation2 + $0x71] sm:$0xff]  ;;  %v10752_v29 = vpop.f32.mrf.mxu0  ;;  %v4177_v63 = vld [vmem:[#allocation2 + $0x61] sm:$0xff]  ;;  %v4482_v48 = vmul.f32 %v4448_v25, %v14127_v45  ;;  %v14172_v14 = vadd.f32 %v4515_v59, %v14096_v55  ;;  %v4313_v40 = vmax.f32 %v4245_v11, %v4279_v44  ;;  %v4178_v51 = vld [vmem:[#allocation2 + $0x69] sm:$0xff] }
 0x24e   : > { %v4344_v47 = vmax.f32 %v4208_v12, %v4310_v56  ;;  %v4243_v15 = vld [vmem:[#allocation2 + $0x62] sm:$0xff]  ;;  %4111 = vst [vmem:[#allocation2 + $0x88] sm:$0xff] %v4075_v30  ;;  %v14175_v54 = vadd.f32 %v10752_v29, %v14017_v39  ;;  %v4211_v18 = vmax.f32 %v14083_v61, %v4177_v63  ;;  %v4244_v2 = vld [vmem:[#allocation2 + $0x6a] sm:$0xff]  ;;  %v4213_v32 = vmax.f32 %v14066_v57, %v14160_v20 }
 0x24f   : > { %v4277_v17 = vld [vmem:[#allocation2 + $0x63] sm:$0xff]  ;;  %v4278_v36 = vld [vmem:[#allocation2 + $0x6b] sm:$0xff]  ;;  %v3995_v58 = vpop.f32.mrf.mxu0  ;;  %v4485_v59 = vmul.f32 %v4451_v62, %v14146_v52  ;;  %v14189_v12 = vmul.f32 0.5, %v14146_v52  ;;  %v4212_v63 = vmax.f32 %v14110_v4, %v4178_v51 }
 0x250   : > { %v14179_v49 = vadd.f32 %v13993_v33, %v4344_v47  ;;  %v4311_v55 = vmax.f32 %v4243_v15, %v4277_v17  ;;  %v4312_v25 = vmax.f32 %v4244_v2, %v4278_v36  ;;  %4116 = vst [vmem:[#allocation2 + $0xb0] sm:$0xff] %v14175_v54  ;;  %v14186_v39 = vadd.f32 %v3995_v58, %v14028_v26 }
 0x251   : > { %v4347_v61 = vmax.f32 %v4211_v18, %v4313_v40  ;;  %v10753_v31 = vpop.f32.mrf.mxu0  ;;  %v4246_v11 = vld [vmem:[#allocation2 + $0x7a] sm:$0xff]  ;;  %v4519_v20 = vmul.f32 %v4485_v59, %v14146_v52  ;;  %v4516_v47 = vmul.f32 %v4482_v48, %v14127_v45  ;;  %v14206_v48 = vmul.f32 0.5, %v14164_v21 }
 0x252   : > { %v4452_v56 = vmul.f32 0.044715, %v14179_v49  ;;  %v4280_v44 = vld [vmem:[#allocation2 + $0x7b] sm:$0xff]  ;;  %v4345_v57 = vmax.f32 %v4209_v13, %v4311_v55  ;;  %v4346_v30 = vmax.f32 %v4210_v38, %v4312_v25  ;;  %4114 = vst [vmem:[#allocation2 + $0xa0] sm:$0xff] %v14186_v39  ;;  %v14196_v26 = vadd.f32 %v10753_v31, %v14032_v24 }
 0x253   : > { %v4180_v29 = vld [vmem:[#allocation2 + $0x79] sm:$0xff]  ;;  %v4314_v15 = vmax.f32 %v4246_v11, %v4280_v44  ;;  %v4387_v62 = vadd.f32 %v13993_v33, %v4347_v61  ;;  %v3998_v18 = vpop.f32.mrf.mxu0  ;;  %v14203_v38 = vmul.f32 0.5, %v14179_v49  ;;  %v4553_v61 = vadd.f32 %v4519_v20, %v14146_v52 }
 0x254   : > { %v4385_v40 = vadd.f32 %v13993_v33, %v4345_v57  ;;  %v4386_v13 = vadd.f32 %v13993_v33, %v4346_v30  ;;  %4117 = vst [vmem:[#allocation2 + $0xb8] sm:$0xff] %v14196_v26  ;;  %v14210_v24 = vadd.f32 %v3998_v18, %v14035_v43  ;;  %v4486_v17 = vmul.f32 %v4452_v56, %v14179_v49 }
 0x255   : > { %v4348_v4 = vmax.f32 %v4212_v63, %v4314_v15  ;;  %v4455_v2 = vmul.f32 0.044715, %v4387_v62  ;;  %v10756_v36 = vpop.f32.mrf.mxu0  ;;  %v4214_v58 = vmax.f32 %v14092_v42, %v4180_v29  ;;  %v4247_v51 = vld [vmem:[#allocation2 + $0x82] sm:$0xff]  ;;  %v4248_v55 = vld [vmem:[#allocation2 + $0x8a] sm:$0xff]  ;;  %v14214_v59 = vmul.f32 0.5, %v4387_v62 }
 0x256   : > { %v4281_v25 = vld [vmem:[#allocation2 + $0x83] sm:$0xff]  ;;  %v14218_v31 = vmul.f32 0.5, %v14168_v6  ;;  %4115 = vst [vmem:[#allocation2 + $0xa8] sm:$0xff] %v14210_v24  ;;  %v14222_v43 = vadd.f32 %v10756_v36, %v14040_v5  ;;  %v4282_v11 = vld [vmem:[#allocation2 + $0x8b] sm:$0xff]  ;;  %v14225_v29 = vmul.f32 0.5, %v4385_v40  ;;  %v4520_v5 = vmul.f32 %v4486_v17, %v14179_v49 }
 0x257   : > { %v4315_v56 = vmax.f32 %v4247_v51, %v4281_v25  ;;  %v4388_v44 = vadd.f32 %v13993_v33, %v4348_v4  ;;  %v4489_v42 = vmul.f32 %v4455_v2, %v4387_v62  ;;  %v4011_v57 = vpop.f32.mrf.mxu0  ;;  %v4316_v30 = vmax.f32 %v4248_v55, %v4282_v11 }
 0x258   : > { %v4453_v63 = vmul.f32 0.044715, %v4385_v40  ;;  %v4454_v15 = vmul.f32 0.044715, %v4386_v13  ;;  %4120 = vst [vmem:[#allocation2 + $0xd0] sm:$0xff] %v14222_v43  ;;  %v14229_v52 = vadd.f32 %v4011_v57, %v14044_v1  ;;  %v14237_v28 = vmul.f32 0.5, %v4386_v13 }
 0x259   : > { %v4349_v20 = vmax.f32 %v4213_v32, %v4315_v56  ;;  %v4456_v18 = vmul.f32 0.044715, %v4388_v44  ;;  %v10757_v36 = vpop.f32.mrf.mxu0  ;;  %v4350_v51 = vmax.f32 %v4214_v58, %v4316_v30  ;;  %v4523_v25 = vmul.f32 %v4489_v42, %v4387_v62 }
 0x25a   : > { %v4487_v4 = vmul.f32 %v4453_v63, %v4385_v40  ;;  %v4488_v2 = vmul.f32 %v4454_v15, %v4386_v13  ;;  %4118 = vst [vmem:[#allocation2 + $0xc0] sm:$0xff] %v14229_v52  ;;  %v14234_v55 = vadd.f32 %v10757_v36, %v14051_v7  ;;  %v14247_v30 = vadd.f32 %v4516_v47, %v14127_v45 }
 0x25b   : > { %v4389_v11 = vadd.f32 %v13993_v33, %v4349_v20  ;;  %v4490_v34 = vmul.f32 %v4456_v18, %v4388_v44  ;;  %v4014_v1 = vpop.f32.mrf.mxu0  ;;  %v14240_v32 = vadd.f32 %v13993_v33, %v4350_v51  ;;  %v4557_v17 = vadd.f32 %v4523_v25, %v4387_v62 }
 0x25c   : > { %v4521_v56 = vmul.f32 %v4487_v4, %v4385_v40  ;;  %v4522_v58 = vmul.f32 %v4488_v2, %v4386_v13  ;;  %4121 = vst [vmem:[#allocation2 + $0xd8] sm:$0xff] %v14234_v55  ;;  %v14244_v42 = vadd.f32 %v4014_v1, %v14054_v27  ;;  %v4554_v36 = vadd.f32 %v4520_v5, %v14179_v49 }
 0x25d   : > { %v4457_v57 = vmul.f32 0.044715, %v4389_v11  ;;  %v4524_v7 = vmul.f32 %v4490_v34, %v4388_v44  ;;  %v10760_v63 = vpop.f32.mrf.mxu0  ;;  %v4458_v15 = vmul.f32 0.044715, %v14240_v32  ;;  %v4591_v20 = vmul.f32 0.7978846, %v4557_v17 }
 0x25e   : > { %v4555_v18 = vadd.f32 %v4521_v56, %v4385_v40  ;;  %4119 = vst [vmem:[#allocation2 + $0xc8] sm:$0xff] %v14244_v42  ;;  %v14253_v62 = vadd.f32 %v10760_v63, %v14058_v60  ;;  %v4556_v25 = vadd.f32 %v4522_v58, %v4386_v13  ;;  %v14256_v45 = vmul.f32 0.5, %v4388_v44  ;;  %v4187_v17 = vld [vmem:[#allocation2 + $0xb1] sm:$0xff] }
 0x25f   : > { %v4491_v51 = vmul.f32 %v4457_v57, %v4389_v11  ;;  %v4558_v27 = vadd.f32 %v4524_v7, %v4388_v44  ;;  %v4027_v4 = vpop.f32.mrf.mxu0  ;;  %v4492_v34 = vmul.f32 %v4458_v15, %v14240_v32  ;;  %11837 = vtanh.f32 %v4591_v20 }
 0x260   : > { %v4589_v47 = vmul.f32 0.7978846, %v4555_v18  ;;  %4124 = vst [vmem:[#allocation2 + $0xf0] sm:$0xff] %v14253_v62  ;;  %v14260_v40 = vadd.f32 %v4027_v4, %v14063_v50  ;;  %v4590_v2 = vmul.f32 0.7978846, %v4556_v25  ;;  %v14268_v58 = vmul.f32 0.5, %v4389_v11 }
 0x261   : > { %v4525_v49 = vmul.f32 %v4491_v51, %v4389_v11  ;;  %v4592_v5 = vmul.f32 0.7978846, %v4558_v27  ;;  %v10761_v60 = vpop.f32.mrf.mxu0  ;;  %v4526_v1 = vmul.f32 %v4492_v34, %v14240_v32  ;;  %v4587_v13 = vmul.f32 0.7978846, %v4553_v61  ;;  %v4188_v57 = vld [vmem:[#allocation2 + $0xb9] sm:$0xff] }
 0x262   : > { %11839 = vtanh.f32 %v4589_v47  ;;  %v4449_v56 = vmul.f32 0.044715, %v14164_v21  ;;  %4122 = vst [vmem:[#allocation2 + $0xe0] sm:$0xff] %v14260_v40  ;;  %v14266_v44 = vadd.f32 %v10761_v60, %v14071_v37  ;;  %v4450_v61 = vmul.f32 0.044715, %v14168_v6 }
 0x263   : > { %v4559_v50 = vadd.f32 %v4525_v49, %v4389_v11  ;;  %11841 = vtanh.f32 %v4592_v5  ;;  %v4030_v7 = vpop.f32.mrf.mxu0  ;;  %v4560_v63 = vadd.f32 %v4526_v1, %v14240_v32  ;;  %v4257_v15 = vld [vmem:[#allocation2 + $0xd2] sm:$0xff]  ;;  %v4588_v27 = vmul.f32 0.7978846, %v4554_v36 }
 0x264   : > { %11843 = vtanh.f32 %v4590_v2  ;;  %v4291_v20 = vld [vmem:[#allocation2 + $0xd3] sm:$0xff]  ;;  %v4483_v18 = vmul.f32 %v4449_v56, %v14164_v21  ;;  %4125 = vst [vmem:[#allocation2 + $0xf8] sm:$0xff] %v14266_v44  ;;  %v14275_v37 = vadd.f32 %v4030_v7, %v14074_v10  ;;  %v4221_v11 = vmax.f32 %v14175_v54, %v4187_v17 }
 0x265   : > { %v4593_v51 = vmul.f32 0.7978846, %v4559_v50  ;;  %v10764_v25 = vpop.f32.mrf.mxu0  ;;  %v4594_v4 = vmul.f32 0.7978846, %v4560_v63  ;;  %v14278_v34 = vld [vmem:[#allocation2 + $0xd1] sm:$0xff]  ;;  %v4189_v47 = vld [vmem:[#allocation2 + $0xc1] sm:$0xff]  ;;  %v4222_v49 = vmax.f32 %v14196_v26, %v4188_v57  ;;  %v4484_v2 = vmul.f32 %v4450_v61, %v14168_v6 }
 0x266   : > { %v4255_v5 = vld [vmem:[#allocation2 + $0xc2] sm:$0xff]  ;;  %v4517_v60 = vmul.f32 %v4483_v18, %v14164_v21  ;;  %4123 = vst [vmem:[#allocation2 + $0xe8] sm:$0xff] %v14275_v37  ;;  %v4092_v10 = vadd.f32 %v10764_v25, %v14087_v16  ;;  %v4223_v36 = vmax.f32 %v14229_v52, %v4189_v47  ;;  %v4325_v54 = vmax.f32 %v4257_v15, %v4291_v20  ;;  %v4256_v1 = vld [vmem:[#allocation2 + $0xca] sm:$0xff] }
 0x267   : > { %11845 = vtanh.f32 %v4593_v51  ;;  %v4289_v17 = vld [vmem:[#allocation2 + $0xc3] sm:$0xff]  ;;  %v4290_v56 = vld [vmem:[#allocation2 + $0xcb] sm:$0xff]  ;;  %v4043_v50 = vpop.f32.mrf.mxu0  ;;  %v4518_v63 = vmul.f32 %v4484_v2, %v14168_v6  ;;  %v14289_v18 = vmul.f32 0.5, %v14240_v32  ;;  %v4225_v25 = vmax.f32 %v14222_v43, %v14278_v34 }
 0x268   : > { %11847 = vtanh.f32 %v4594_v4  ;;  %v4190_v7 = vld [vmem:[#allocation2 + $0xc9] sm:$0xff]  ;;  %v4323_v26 = vmax.f32 %v4255_v5, %v4289_v17  ;;  %v4324_v57 = vmax.f32 %v4256_v1, %v4290_v56  ;;  %4128 = vst [vmem:[#allocation2 + $0x110] sm:$0xff] %v4092_v10  ;;  %v4090_v61 = vadd.f32 %v4043_v50, %v14100_v41  ;;  %v14292_v15 = vld [vmem:[#allocation2 + $0xa1] sm:$0xff] }
 0x269   : > { %v4359_v16 = vmax.f32 %v4223_v36, %v4325_v54  ;;  %v4551_v52 = vadd.f32 %v4517_v60, %v14164_v21  ;;  %v10765_v20 = vpop.f32.mrf.mxu0  ;;  %v4192_v51 = vld [vmem:[#allocation2 + $0xd9] sm:$0xff]  ;;  %11849 = vtanh.f32 %v4587_v13  ;;  %v4224_v32 = vmax.f32 %v14244_v42, %v4190_v7  ;;  %v14301_v60 = vld [vmem:[#allocation2 + $0xa9] sm:$0xff] }
 0x26a   : > { %v4258_v4 = vld [vmem:[#allocation2 + $0xda] sm:$0xff]  ;;  %v4357_v5 = vmax.f32 %v4221_v11, %v4323_v26  ;;  %v4358_v2 = vmax.f32 %v4222_v49, %v4324_v57  ;;  %4126 = vst [vmem:[#allocation2 + $0x100] sm:$0xff] %v4090_v61  ;;  %v4093_v41 = vadd.f32 %v10765_v20, %v14103_v8  ;;  %11851 = vtanh.f32 %v4588_v27 }
 0x26b   : > { %v4292_v47 = vld [vmem:[#allocation2 + $0xdb] sm:$0xff]  ;;  %v14299_v21 = vadd.f32 %v13993_v33, %v4359_v16  ;;  %v4046_v36 = vpop.f32.mrf.mxu0  ;;  %v14303_v54 = vld [vmem:[#allocation2 + $0xf1] sm:$0xff]  ;;  %v14309_v11 = vadd.f32 %v4518_v63, %v14168_v6  ;;  %v4585_v8 = vmul.f32 0.7978846, %v4551_v52  ;;  %v4226_v1 = vmax.f32 %v14234_v55, %v4192_v51 }
 0x26c   : > { %v4326_v10 = vmax.f32 %v4258_v4, %v4292_v47  ;;  %v4261_v43 = vld [vmem:[#allocation2 + $0xf2] sm:$0xff]  ;;  %v14306_v13 = vadd.f32 %v13993_v33, %v4357_v5  ;;  %v11838_v42 = vpop.eup %11837  ;;  %4129 = vst [vmem:[#allocation2 + $0x118] sm:$0x3f] %v4093_v41  ;;  %v4091_v49 = vadd.f32 %v4046_v36, %v14105_v22  ;;  %v14318_v6 = vadd.f32 %v13993_v33, %v4358_v2 }
 0x26d   : > { %v4295_v34 = vld [vmem:[#allocation2 + $0xf3] sm:$0xff]  ;;  %v4193_v50 = vld [vmem:[#allocation2 + $0xe1] sm:$0xff]  ;;  %v4194_v7 = vld [vmem:[#allocation2 + $0xe9] sm:$0xff]  ;;  %v4659_v61 = vadd.f32 1.0, %v11838_v42  ;;  %v14324_v51 = vmul.f32 0.5, %v14299_v21  ;;  %11853 = vtanh.f32 %v4585_v8 }
 0x26e   : > { %v4360_v17 = vmax.f32 %v4224_v32, %v4326_v10  ;;  %v4329_v26 = vmax.f32 %v4261_v43, %v4295_v34  ;;  %v4259_v57 = vld [vmem:[#allocation2 + $0xe2] sm:$0xff]  ;;  %4127 = vst [vmem:[#allocation2 + $0x108] sm:$0xff] %v4091_v49  ;;  %v4227_v55 = vmax.f32 %v14260_v40, %v4193_v50  ;;  %v4260_v16 = vld [vmem:[#allocation2 + $0xea] sm:$0xff]  ;;  %v14327_v4 = vmul.f32 0.5, %v14306_v13 }
 0x26f   : > { %v11840_v22 = vpop.eup %11839  ;;  %v4293_v52 = vld [vmem:[#allocation2 + $0xe3] sm:$0xff]  ;;  %v4294_v20 = vld [vmem:[#allocation2 + $0xeb] sm:$0xff]  ;;  %v4228_v40 = vmax.f32 %v14275_v37, %v4194_v7  ;;  %v4467_v56 = vmul.f32 0.044715, %v14299_v21 }
 0x270   : > { %v11842_v47 = vpop.eup %11841  ;;  %v4327_v5 = vmax.f32 %v4259_v57, %v4293_v52  ;;  %v4328_v2 = vmax.f32 %v4260_v16, %v4294_v20  ;;  %v14330_v41 = vadd.f32 %v13993_v33, %v4360_v17  ;;  %v4363_v10 = vmax.f32 %v4227_v55, %v4329_v26 }
 0x271   : > { %v11844_v32 = vpop.eup %11843  ;;  %v4660_v36 = vadd.f32 1.0, %v11842_v47  ;;  %v4657_v43 = vadd.f32 1.0, %v11840_v22  ;;  %v4262_v34 = vld [vmem:[#allocation2 + $0xfa] sm:$0xff]  ;;  %v14336_v17 = vmul.f32 %v4659_v61, %v14214_v59 }
 0x272   : > { %v4296_v42 = vld [vmem:[#allocation2 + $0xfb] sm:$0xff]  ;;  %v4361_v49 = vmax.f32 %v4225_v25, %v4327_v5  ;;  %v4362_v50 = vmax.f32 %v4226_v1, %v4328_v2  ;;  %v4658_v63 = vadd.f32 1.0, %v11844_v32  ;;  %v4403_v16 = vadd.f32 %v13993_v33, %v4363_v10 }
 0x273   : > { %v4196_v27 = vld [vmem:[#allocation2 + $0xf9] sm:$0xff]  ;;  %v4330_v57 = vmax.f32 %v4262_v34, %v4296_v42  ;;  %v14339_v8 = vmul.f32 %v4660_v36, %v14256_v45  ;;  %v14346_v25 = vmul.f32 0.5, %v14330_v41  ;;  %v4468_v1 = vmul.f32 0.044715, %v14330_v41 }
 0x274   : > { %v11846_v37 = vpop.eup %11845  ;;  %v4401_v7 = vadd.f32 %v13993_v33, %v4361_v49  ;;  %v14343_v26 = vadd.f32 %v13993_v33, %v4362_v50  ;;  %v4471_v20 = vmul.f32 0.044715, %v4403_v16  ;;  %v14350_v59 = vmul.f32 %v4657_v43, %v14225_v29 }
 0x275   : > { %v11848_v22 = vpop.eup %11847  ;;  %v4661_v55 = vadd.f32 1.0, %v11846_v37  ;;  %v4364_v52 = vmax.f32 %v4228_v40, %v4330_v57  ;;  %v4230_v45 = vmax.f32 %v14266_v44, %v4196_v27  ;;  %v4263_v61 = vld [vmem:[#allocation2 + $0x102] sm:$0xff]  ;;  %v4264_v47 = vld [vmem:[#allocation2 + $0x10a] sm:$0xff]  ;;  %v14356_v10 = vmul.f32 %v4658_v63, %v14237_v28 }
 0x276   : > { %v4297_v5 = vld [vmem:[#allocation2 + $0x103] sm:$0xff]  ;;  %v4662_v2 = vadd.f32 1.0, %v11848_v22  ;;  %v11850_v36 = vpop.eup %11849  ;;  %v4298_v34 = vld [vmem:[#allocation2 + $0x10b] sm:$0xff]  ;;  %v4505_v44 = vmul.f32 %v4471_v20, %v4403_v16  ;;  %v4469_v49 = vmul.f32 0.044715, %v4401_v7  ;;  %v15917_v28 = vmax.f32 %v14253_v62, %v14303_v54 }
 0x277   : > { %v4331_v42 = vmax.f32 %v4263_v61, %v4297_v5  ;;  %v14359_v40 = vmul.f32 %v4661_v55, %v14268_v58  ;;  %v14362_v29 = vadd.f32 %v13993_v33, %v4364_v52  ;;  %v4332_v27 = vmax.f32 %v4264_v47, %v4298_v34  ;;  %v11852_v57 = vpop.eup %11851 }
 0x278   : > { %v14365_v43 = vmul.f32 %v4662_v2, %v14289_v18  ;;  %v4470_v50 = vmul.f32 0.044715, %v14343_v26  ;;  %v4539_v58 = vmul.f32 %v4505_v44, %v4403_v16  ;;  %v4501_v22 = vmul.f32 %v4467_v56, %v14299_v21 }
 0x279   : > { %v4365_v63 = vmax.f32 %v15917_v28, %v4331_v42  ;;  %v4472_v37 = vmul.f32 0.044715, %v14362_v29  ;;  %v4366_v55 = vmax.f32 %v4230_v45, %v4332_v27  ;;  %v4503_v20 = vmul.f32 %v4469_v49, %v4401_v7 }
 0x27a   : > { %v4504_v18 = vmul.f32 %v4470_v50, %v14343_v26  ;;  %v4573_v5 = vadd.f32 %v4539_v58, %v4403_v16  ;;  %v4502_v45 = vmul.f32 %v4468_v1, %v14330_v41  ;;  %v14385_v34 = vpop.eup %11853  ;;  %v14387_v44 = vmul.f32 0.5, %v4403_v16 }
 0x27b   : > { %v4405_v61 = vadd.f32 %v13993_v33, %v4365_v63  ;;  %v4506_v47 = vmul.f32 %v4472_v37, %v14362_v29  ;;  %v14381_v54 = vadd.f32 %v13993_v33, %v4366_v55  ;;  %v4537_v2 = vmul.f32 %v4503_v20, %v4401_v7 }
 0x27c   : > { %v4538_v56 = vmul.f32 %v4504_v18, %v14343_v26  ;;  %v4607_v49 = vmul.f32 0.7978846, %v4573_v5  ;;  %v14391_v28 = vmul.f32 0.5, %v4401_v7  ;;  %v4535_v1 = vmul.f32 %v4501_v22, %v14299_v21 }
 0x27d   : > { %v4473_v42 = vmul.f32 0.044715, %v4405_v61  ;;  %v4540_v27 = vmul.f32 %v4506_v47, %v14362_v29  ;;  %v4474_v50 = vmul.f32 0.044715, %v14381_v54  ;;  %v4571_v63 = vadd.f32 %v4537_v2, %v4401_v7 }
 0x27e   : > { %v4572_v37 = vadd.f32 %v4538_v56, %v14343_v26  ;;  %11855 = vtanh.f32 %v4607_v49  ;;  %v4536_v47 = vmul.f32 %v4502_v45, %v14330_v41  ;;  %v4569_v32 = vadd.f32 %v4535_v1, %v14299_v21  ;;  %v4253_v21 = vld [vmem:[#allocation2 + $0xb2] sm:$0xff] }
 0x27f   : > { %v4507_v58 = vmul.f32 %v4473_v42, %v4405_v61  ;;  %v4574_v55 = vadd.f32 %v4540_v27, %v14362_v29  ;;  %v4508_v20 = vmul.f32 %v4474_v50, %v14381_v54  ;;  %v4605_v16 = vmul.f32 0.7978846, %v4571_v63  ;;  %v4287_v63 = vld [vmem:[#allocation2 + $0xb3] sm:$0xff] }
 0x280   : > { %v4606_v18 = vmul.f32 0.7978846, %v4572_v37  ;;  %v4655_v52 = vadd.f32 1.0, %v11850_v36  ;;  %v4570_v2 = vadd.f32 %v4536_v47, %v14330_v41  ;;  %v4656_v56 = vadd.f32 1.0, %v11852_v57  ;;  %v4254_v36 = vld [vmem:[#allocation2 + $0xba] sm:$0xff] }
 0x281   : > { %v4541_v5 = vmul.f32 %v4507_v58, %v4405_v61  ;;  %v4608_v62 = vmul.f32 0.7978846, %v4574_v55  ;;  %v4542_v7 = vmul.f32 %v4508_v20, %v14381_v54  ;;  %11857 = vtanh.f32 %v4605_v16  ;;  %v4288_v57 = vld [vmem:[#allocation2 + $0xbb] sm:$0xff]  ;;  %v4183_v16 = vld [vmem:[#allocation2 + $0x91] sm:$0xff] }
 0x282   : > { %v4603_v22 = vmul.f32 0.7978846, %v4569_v32  ;;  %v14402_v27 = vmul.f32 %v4655_v52, %v14189_v12  ;;  %v4604_v45 = vmul.f32 0.7978846, %v4570_v2  ;;  %v14406_v50 = vmul.f32 %v4656_v56, %v14203_v38 }
 0x283   : > { %v4575_v42 = vadd.f32 %v4541_v5, %v4405_v61  ;;  %11859 = vtanh.f32 %v4608_v62  ;;  %v4576_v49 = vadd.f32 %v4542_v7, %v14381_v54  ;;  %v14409_v41 = vmul.f32 0.5, %v14343_v26  ;;  %v4251_v7 = vld [vmem:[#allocation2 + $0xa2] sm:$0xff] }
 0x284   : > { %11861 = vtanh.f32 %v4606_v18  ;;  %v4465_v32 = vmul.f32 0.044715, %v14306_v13  ;;  %v4719_v52 = vpack.c.bf16 %v14406_v50, %v14402_v27  ;;  %v4466_v62 = vmul.f32 0.044715, %v14318_v6 }
 0x285   : > { %v4609_v37 = vmul.f32 0.7978846, %v4575_v42  ;;  %11863 = vtanh.f32 %v4603_v22  ;;  %v4610_v12 = vmul.f32 0.7978846, %v4576_v49  ;;  %v4438_v38 = vmul.f32 0.5, %v14362_v29  ;;  %v4285_v49 = vld [vmem:[#allocation2 + $0xa3] sm:$0xff] }
 0x286   : > { %11865 = vtanh.f32 %v4604_v45  ;;  %v4499_v58 = vmul.f32 %v4465_v32, %v14306_v13  ;;  %v4586_v55 = vmul.f32 0.7978846, %v14309_v11  ;;  %v4500_v26 = vmul.f32 %v4466_v62, %v14318_v6  ;;  %v4286_v45 = vld [vmem:[#allocation2 + $0xab] sm:$0xff] }
 0x287   : > { %11867 = vtanh.f32 %v4609_v37  ;;  %v4321_v1 = vmax.f32 %v4253_v21, %v4287_v63  ;;  %v4322_v20 = vmax.f32 %v4254_v36, %v4288_v57  ;;  %v14419_v18 = vmul.f32 0.5, %v4405_v61  ;;  %v4252_v61 = vld [vmem:[#allocation2 + $0xaa] sm:$0xff]  ;;  %v4184_v36 = vld [vmem:[#allocation2 + $0x99] sm:$0xff] }
 0x288   : > { %11869 = vtanh.f32 %v4610_v12  ;;  %v4533_v47 = vmul.f32 %v4499_v58, %v14306_v13  ;;  %v4583_v5 = vmul.f32 0.7978846, %v14172_v14  ;;  %v4534_v29 = vmul.f32 %v4500_v26, %v14318_v6 }
 0x289   : > { %11871 = vtanh.f32 %v4586_v55  ;;  %v15918_v2 = vmax.f32 %v14186_v39, %v14292_v15  ;;  %v15919_v56 = vmax.f32 %v14210_v24, %v14301_v60  ;;  %v4584_v22 = vmul.f32 0.7978846, %v14247_v30 }
 0x28a   : > { %v4567_v21 = vadd.f32 %v4533_v47, %v14306_v13  ;;  %v4653_v14 = vadd.f32 1.0, %v14385_v34  ;;  %11873 = vtanh.f32 %v4583_v5  ;;  %v4217_v63 = vmax.f32 %v14123_v9, %v4183_v16 }
 0x28b   : > { %v4355_v11 = vmax.f32 %v15918_v2, %v4321_v1  ;;  %v4356_v42 = vmax.f32 %v15919_v56, %v4322_v20  ;;  %v11856_v37 = vpop.eup %11855  ;;  %v4568_v39 = vadd.f32 %v4534_v29, %v14318_v6  ;;  %11875 = vtanh.f32 %v4584_v22  ;;  %v14463_v56 = vld [vmem:[%s15675_s2] ss:$0 sm:$0xff] }
 0x28c   : > { %v4675_v30 = vadd.f32 1.0, %v11856_v37  ;;  %v4601_v60 = vmul.f32 0.7978846, %v4567_v21  ;;  %v4319_v32 = vmax.f32 %v4251_v7, %v4285_v49  ;;  %v4320_v13 = vmax.f32 %v4252_v61, %v4286_v45 }
 0x28d   : > { %v14436_v15 = vadd.f32 %v13993_v33, %v4355_v11  ;;  %v14439_v24 = vadd.f32 %v13993_v33, %v4356_v42  ;;  %v4440_v34 = vmul.f32 0.5, %v14381_v54  ;;  %v4602_v57 = vmul.f32 0.7978846, %v4568_v39 }
 0x28e   : > { %v4218_v9 = vmax.f32 %v14142_v3, %v4184_v36  ;;  %v11858_v62 = vpop.eup %11857  ;;  %v14445_v58 = vmul.f32 0.5, %v14318_v6  ;;  %11877 = vtanh.f32 %v4601_v60  ;;  %v4353_v55 = vmax.f32 %v4217_v63, %v4319_v32 }
 0x28f   : > { %v4463_v12 = vmul.f32 0.044715, %v14436_v15  ;;  %v4464_v33 = vmul.f32 0.044715, %v14439_v24  ;;  %v4673_v1 = vadd.f32 1.0, %v11858_v62  ;;  %11879 = vtanh.f32 %v4602_v57 }
 0x290   : > { %v11860_v26 = vpop.eup %11859  ;;  %v4354_v16 = vmax.f32 %v4218_v9, %v4320_v13  ;;  %v14450_v5 = vmul.f32 %v4675_v30, %v14387_v44  ;;  %v14453_v3 = vmul.f32 %v4653_v14, %v14206_v48  ;;  %v14466_v44 = vadd.f32 %v14463_v56, %v4353_v55 }
 0x291   : > { %v4497_v20 = vmul.f32 %v4463_v12, %v14436_v15  ;;  %v11862_v54 = vpop.eup %11861  ;;  %v4676_v47 = vadd.f32 1.0, %v11860_v26  ;;  %v4498_v6 = vmul.f32 %v4464_v33, %v14439_v24  ;;  %v14457_v2 = vmul.f32 %v4673_v1, %v14391_v28 }
 0x292   : > { %v11864_v7 = vpop.eup %11863  ;;  %v4674_v29 = vadd.f32 1.0, %v11862_v54  ;;  %v4445_v49 = vmul.f32 0.044715, %v14134_v19  ;;  %v14475_v36 = vadd.f32 %v14463_v56, %v4354_v16  ;;  %v4461_v33 = vmul.f32 0.044715, %v14466_v44  ;;  %v4181_v54 = vld [vmem:[#allocation2 + $0x81] sm:$0xff] }
 0x293   : > { %v4531_v11 = vmul.f32 %v4497_v20, %v14436_v15  ;;  %v11866_v42 = vpop.eup %11865  ;;  %v4710_v48 = vmul.f32 %v4676_v47, %v4438_v38  ;;  %v4671_v22 = vadd.f32 1.0, %v11864_v7  ;;  %v4532_v61 = vmul.f32 %v4498_v6, %v14439_v24  ;;  %v4148_v7 = vld [vmem:[#allocation2 + $0x88] sm:$0xff] }
 0x294   : > { %v11868_v45 = vpop.eup %11867  ;;  %v14471_v28 = vmul.f32 %v4674_v29, %v14409_v41  ;;  %v4672_v21 = vadd.f32 1.0, %v11866_v42  ;;  %v4462_v1 = vmul.f32 0.044715, %v14475_v36  ;;  %v4182_v29 = vld [vmem:[#allocation2 + $0x89] sm:$0xff] }
 0x295   : > { %v4565_v14 = vadd.f32 %v4531_v11, %v14436_v15  ;;  %v11870_v63 = vpop.eup %11869  ;;  %v4677_v37 = vadd.f32 1.0, %v11868_v45  ;;  %v4729_v39 = vpack.c.bf16 %v4710_v48, %v14450_v5  ;;  %v14479_v38 = vmul.f32 %v4671_v22, %v14324_v51  ;;  %v4147_v22 = vld [vmem:[#allocation2 + $0x80] sm:$0xff] }
 0x296   : > { %v4566_v30 = vadd.f32 %v4532_v61, %v14439_v24  ;;  %v11872_v60 = vpop.eup %11871  ;;  %v4678_v32 = vadd.f32 1.0, %v11870_v63  ;;  %v4728_v41 = vpack.c.bf16 %v14471_v28, %v14457_v2  ;;  %v14485_v13 = vmul.f32 %v4672_v21, %v14346_v25  ;;  %v4266_v28 = vld [vmem:[#allocation2 + $0x11a] sm:$0x7] }
 0x297   : > { %v4599_v57 = vmul.f32 0.7978846, %v4565_v14  ;;  %v4711_v12 = vmul.f32 %v4677_v37, %v14419_v18  ;;  %v4654_v9 = vadd.f32 1.0, %v11872_v60  ;;  %v11874_v55 = vpop.eup %11873  ;;  %v4495_v18 = vmul.f32 %v4461_v33, %v14466_v44  ;;  %v4249_v37 = vld [vmem:[#allocation2 + $0x92] sm:$0xff] }
 0x298   : > { %v4600_v62 = vmul.f32 0.7978846, %v4566_v30  ;;  %v4712_v51 = vmul.f32 %v4678_v32, %v4440_v34  ;;  %v4727_v26 = vpack.c.bf16 %v14485_v13, %v14479_v38  ;;  %v11876_v20 = vpop.eup %11875  ;;  %v4651_v25 = vadd.f32 1.0, %v11874_v55  ;;  %v4283_v30 = vld [vmem:[#allocation2 + $0x93] sm:$0xff] }
 0x299   : > { %11881 = vtanh.f32 %v4599_v57  ;;  %v14493_v16 = vmul.f32 %v4654_v9, %v14218_v31  ;;  %v4652_v5 = vadd.f32 1.0, %v11876_v20  ;;  %v4496_v6 = vmul.f32 %v4462_v1, %v14475_v36  ;;  %v4284_v9 = vld [vmem:[#allocation2 + $0x9b] sm:$0xff] }
 0x29a   : > { %11883 = vtanh.f32 %v4600_v62  ;;  %v4730_v47 = vpack.c.bf16 %v4712_v51, %v4711_v12  ;;  %v4446_v34 = vmul.f32 0.044715, %v14137_v46  ;;  %v14501_v42 = vmul.f32 %v4651_v25, %v14150_v23 }
 0x29b   : > { %v4718_v11 = vpack.c.bf16 %v14493_v16, %v14453_v3  ;;  %v4529_v31 = vmul.f32 %v4495_v18, %v14466_v44  ;;  %v4479_v48 = vmul.f32 %v4445_v49, %v14134_v19  ;;  %v11878_v61 = vpop.eup %11877  ;;  %v14506_v45 = vmul.f32 %v4652_v5, %v14153_v0  ;;  %v4250_v0 = vld [vmem:[#allocation2 + $0x9a] sm:$0xff] }
 0x29c   : > { %10089 = vmatprep.subr.bf16.mxu1 %v4730_v47  ;;  %v4530_v21 = vmul.f32 %v4496_v6, %v14475_v36  ;;  %v4480_v14 = vmul.f32 %v4446_v34, %v14137_v46  ;;  %v4215_v63 = vmax.f32 %v4147_v22, %v4181_v54  ;;  %v11880_v60 = vpop.eup %11879  ;;  %v15920_v23 = vpack.c.bf16 %v14365_v43, %v14359_v40  ;;  %v4197_v34 = vld [vmem:[#allocation2 + $0x101] sm:$0xff] }
 0x29d   : > { %v4669_v32 = vadd.f32 1.0, %v11878_v61  ;;  %v4563_v49 = vadd.f32 %v4529_v31, %v14466_v44  ;;  %v4513_v57 = vmul.f32 %v4479_v48, %v14134_v19  ;;  %v4216_v12 = vmax.f32 %v4148_v7, %v4182_v29  ;;  %v4265_v7 = vld [vmem:[#allocation2 + $0x112] sm:$0xff]  ;;  %v4164_v22 = vld [vmem:[#allocation2 + $0x108] sm:$0x7]  ;;  %v4163_v61 = vld [vmem:[#allocation2 + $0x100] sm:$0xff] }
 0x29e   : > { %10090 = vmatpush3.bf16.msra.mxu1 %v15920_v23  ;;  %v4670_v62 = vadd.f32 1.0, %v11880_v60  ;;  %v4717_v33 = vpack.c.bf16 %v14506_v45, %v14501_v42  ;;  %v4564_v55 = vadd.f32 %v4530_v21, %v14475_v36  ;;  %v4514_v51 = vmul.f32 %v4480_v14, %v14137_v46  ;;  %v4299_v29 = vld [vmem:[#allocation2 + $0x113] sm:$0xff]  ;;  %v15922_v21 = vld [vmem:[#allocation12_spill] sm:$0xff] }
 0x29f   : > { %10091 = vmatprep.subr.bf16.mxu1 %v4729_v39  ;;  %v4703_v40 = vmul.f32 %v4669_v32, %v14327_v4  ;;  %v4597_v43 = vmul.f32 0.7978846, %v4563_v49  ;;  %v4547_v1 = vadd.f32 %v4513_v57, %v14134_v19  ;;  %v4317_v20 = vmax.f32 %v4249_v37, %v4283_v30  ;;  %v15923_v14 = vld [vmem:[#allocation15_spill] sm:$0xff] }
 0x2a0   : > { %v4704_v25 = vmul.f32 %v4670_v62, %v14445_v58  ;;  %v4598_v18 = vmul.f32 0.7978846, %v4564_v55  ;;  %v4548_v54 = vadd.f32 %v4514_v51, %v14137_v46  ;;  %v4318_v39 = vmax.f32 %v4250_v0, %v4284_v9 }
 0x2a1   : > { %v15921_v47 = vpack.c.bf16 %v14339_v8, %v14336_v17  ;;  %11885 = vtanh.f32 %v4597_v43  ;;  %v4581_v5 = vmul.f32 0.7978846, %v4547_v1  ;;  %v4351_v6 = vmax.f32 %v4215_v63, %v4317_v20  ;;  %v4198_v17 = vld [vmem:[#allocation2 + $0x109] sm:$0x7] }
 0x2a2   : > { %v4546_v4 = vadd.f32 %v14156_v35, %v14079_v53  ;;  %v4726_v58 = vpack.c.bf16 %v4704_v25, %v4703_v40  ;;  %11887 = vtanh.f32 %v4598_v18  ;;  %v4582_v31 = vmul.f32 0.7978846, %v4548_v54 }
 0x2a3   : > { %10092 = vmatpush3.bf16.msra.mxu1 %v15921_v47  ;;  %v4352_v48 = vmax.f32 %v4216_v12, %v4318_v39  ;;  %11889 = vtanh.f32 %v4581_v5  ;;  %v14532_v8 = vadd.f32 %v14463_v56, %v4351_v6  ;;  %v4545_v63 = vadd.f32 %v15923_v14, %v15922_v21 }
 0x2a4   : > { %10093 = vmatprep.subr.bf16.mxu1 %v4728_v41  ;;  %11891 = vtanh.f32 %v4582_v31  ;;  %v4231_v2 = vmax.f32 %v4163_v61, %v4197_v34  ;;  %v4300_v41 = vld [vmem:[#allocation2 + $0x11b] sm:$0x7]  ;;  %v12054_v37 = vmov 0.0   ;;  %v15924_v60 = vpack.c.bf16 %v14356_v10, %v14350_v59 }
 0x2a5   : > { %v14535_v35 = vadd.f32 %v14463_v56, %v4352_v48  ;;  %10796 = vmatprep.subr.bf16.mxu0 %v12054_v37  ;;  %v4429_v23 = vmul.f32 0.5, %v14436_v15  ;;  %v4459_v32 = vmul.f32 0.044715, %v14532_v8  ;;  %v4232_v49 = vmax.f32 %v4164_v22, %v4198_v17  ;;  %10812 = vmatprep.mubr.msk.bf16.mxu0 %vm12055_vm8, %v12054_v37 }
 0x2a6   : > { %v11882_v30 = vpop.eup %11881  ;;  %v4333_v57 = vmax.f32 %v4265_v7, %v4299_v29  ;;  %v4430_v0 = vmul.f32 0.5, %v14439_v24  ;;  %v4580_v55 = vmul.f32 0.7978846, %v4546_v4  ;;  %v4334_v10 = vmax.f32 %v4266_v28, %v4300_v41 }
 0x2a7   : > { %10094 = vmatpush3.bf16.msra.mxu1 %v15924_v60  ;;  %v11884_v12 = vpop.eup %11883  ;;  %v4667_v9 = vadd.f32 1.0, %v11882_v30  ;;  %v4460_v62 = vmul.f32 0.044715, %v14535_v35  ;;  %v4493_v59 = vmul.f32 %v4459_v32, %v14532_v8  ;;  %v4579_v1 = vmul.f32 0.7978846, %v4545_v63 }
 0x2a8   : > { %10095 = vmatprep.subr.bf16.mxu1 %v4727_v26  ;;  %v4668_v51 = vadd.f32 1.0, %v11884_v12  ;;  %v4367_v15 = vmax.f32 %v4231_v2, %v4333_v57  ;;  %v4368_v13 = vmax.f32 %v4232_v49, %v4334_v10  ;;  %11893 = vtanh.f32 %v4580_v55 }
 0x2a9   : > { %v4701_v40 = vmul.f32 %v4667_v9, %v4429_v23  ;;  %v4494_v43 = vmul.f32 %v4460_v62, %v14535_v35  ;;  %v4527_v24 = vmul.f32 %v4493_v59, %v14532_v8  ;;  %11895 = vtanh.f32 %v4579_v1 }
 0x2aa   : > { %v4702_v38 = vmul.f32 %v4668_v51, %v4430_v0  ;;  %v14557_v26 = vadd.f32 %v14463_v56, %v4367_v15  ;;  %v14562_v54 = vadd.f32 %v14463_v56, %v4368_v13  ;;  %v4427_v4 = vmul.f32 0.5, %v14466_v44 }
 0x2ab   : > { %10096 = vmatpush3.bf16.msra.mxu1 %v4719_v52  ;;  %v4528_v20 = vmul.f32 %v4494_v43, %v14535_v35  ;;  %v4561_v18 = vadd.f32 %v4527_v24, %v14532_v8  ;;  %v4428_v3 = vmul.f32 0.5, %v14475_v36  ;;  %v4411_v48 = vmul.f32 0.5, %v14134_v19 }
 0x2ac   : > { %10097 = vmatprep.subr.bf16.mxu1 %v4726_v58  ;;  %v4725_v25 = vpack.c.bf16 %v4702_v38, %v4701_v40  ;;  %v4475_v50 = vmul.f32 0.044715, %v14557_v26  ;;  %v4476_v39 = vmul.f32 0.044715, %v14562_v54  ;;  %v4412_v61 = vmul.f32 0.5, %v14137_v46 }
 0x2ad   : > { %v4562_v27 = vadd.f32 %v4528_v20, %v14535_v35  ;;  %v4595_v52 = vmul.f32 0.7978846, %v4561_v18  ;;  %v4410_v49 = vmul.f32 0.5, %v14079_v53  ;;  %v4425_v12 = vmul.f32 0.5, %v14532_v8  ;;  %v11575_v53 = vld [vmem:[%s15676_s3] ss:$12 sps:$4 sm:$0xff]  }
 0x2ae   : > { %v11886_v47 = vpop.eup %11885  ;;  %v4509_v5 = vmul.f32 %v4475_v50, %v14557_v26  ;;  %v4510_v7 = vmul.f32 %v4476_v39, %v14562_v54  ;;  %v4426_v0 = vmul.f32 0.5, %v14535_v35  ;;  %v4409_v62 = vmul.f32 0.5, %v15922_v21  ;;  %v11580_v20 = vld [vmem:[%s15676_s3 + $0x1c] ss:$12 sps:$4 sm:$0xff]  }
 0x2af   : > { %10098 = vmatpush3.bf16.msra.mxu1 %v4718_v11  ;;  %v4596_v56 = vmul.f32 0.7978846, %v4562_v27  ;;  %v11888_v6 = vpop.eup %11887  ;;  %v4665_v34 = vadd.f32 1.0, %v11886_v47  ;;  %11897 = vtanh.f32 %v4595_v52  ;;  %v4441_v8 = vmul.f32 0.5, %v14557_v26  ;;  %v11583_v52 = vld [vmem:[%s15676_s3 + $0x34] ss:$12 sps:$4 sm:$0xff]  }
 0x2b0   : > { %10099 = vmatprep.subr.bf16.mxu1 %v4725_v25  ;;  %v11890_v29 = vpop.eup %11889  ;;  %v4666_v16 = vadd.f32 1.0, %v11888_v6  ;;  %v4543_v11 = vmul.f32 %v4509_v5, %v14557_v26  ;;  %v4544_v22 = vmul.f32 %v4510_v7, %v14562_v54  ;;  %v4442_v35 = vmul.f32 0.5, %v14562_v54  ;;  %v11581_v39 = vld [vmem:[%s15676_s3 + $0x30] ss:$12 sps:$4 sm:$0xff]   ;;  %v11586_v47 = vld [vmem:[%s15676_s3 + $0x4c] ss:$12 sps:$4 sm:$0xff]  }
 0x2b1   : > { %11899 = vtanh.f32 %v4596_v56  ;;  %v11892_v58 = vpop.eup %11891  ;;  %v4699_v31 = vmul.f32 %v4665_v34, %v4427_v4  ;;  %v4649_v44 = vadd.f32 1.0, %v11890_v29  ;;  %v12056_v24 = vmov 65535   ;;  %v11584_v56 = vld [vmem:[%s15676_s3 + $0x48] ss:$12 sps:$4 sm:$0xff]   ;;  %v11589_v5 = vld [vmem:[%s15676_s3 + $0x64] ss:$12 sps:$4 sm:$0xff]  }
 0x2b2   : > { %v4700_v17 = vmul.f32 %v4666_v16, %v4428_v3  ;;  %v4650_v14 = vadd.f32 1.0, %v11892_v58  ;;  %v4577_v36 = vadd.f32 %v4543_v11, %v14557_v26  ;;  %v4578_v2 = vadd.f32 %v4544_v22, %v14562_v54  ;;  %v11578_v54 = vld [vmem:[%s15676_s3 + $0x18] ss:$12 sps:$4 sm:$0xff]   ;;  %v11587_v6 = vld [vmem:[%s15676_s3 + $0x60] ss:$12 sps:$4 sm:$0xff]  }
 0x2b3   : > { %10100 = vmatpush3.bf16.msra.mxu1 %v4717_v33  ;;  %v4683_v63 = vmul.f32 %v4649_v44, %v4411_v48  ;;  %v4882_v13 = vsel %vm3786_vm7, 4294967295, %v12056_v24  ;;  %v11592_v4 = vld [vmem:[%s15676_s3 + $0x7c] ss:$12 sps:$4 sm:$0xff]   ;;  %v4756_v34 = vld [vmem:[%s15676_s3 + $0x90] sm:$0x33] }
 0x2b4   : > { %v4724_v28 = vpack.c.bf16 %v4700_v17, %v4699_v31  ;;  %v4684_v41 = vmul.f32 %v4650_v14, %v4412_v61  ;;  %v4611_v30 = vmul.f32 0.7978846, %v4577_v36  ;;  %v4612_v42 = vmul.f32 0.7978846, %v4578_v2  ;;  %v11590_v7 = vld [vmem:[%s15676_s3 + $0x78] ss:$12 sps:$4 sm:$0xff]  }
 0x2b5   : > { %v11894_v19 = vpop.eup %11893  ;;  %v4883_v26 = vsel %vm2586_vm4, %v4882_v13, 0  ;;  %v9409_v29 = vcombine.high %v4756_v34, %v4756_v34  ;;  %v9408_v3 = vcombine.low %v4756_v34, %v4756_v34  ;;  %v11595_v16 = vld [vmem:[%s15676_s3 + $0x8] ss:$12 sps:$4 sm:$0xff]   ;;  %v11596_v11 = vld [vmem:[%s15676_s3 + $0x20] ss:$12 sps:$4 sm:$0xff]   ;;  %v11602_v17 = vld [vmem:[%s15677_s4 + $0xb8] sm:$0xff]  }
 0x2b6   : > { %10101 = vmatprep.subr.bf16.mxu1 %v4724_v28  ;;  %v4716_v45 = vpack.c.bf16 %v4684_v41, %v4683_v63  ;;  %11901 = vtanh.f32 %v4611_v30  ;;  %v11896_v33 = vpop.eup %11895  ;;  %v4648_v60 = vadd.f32 1.0, %v11894_v19  ;;  %v11597_v58 = vld [vmem:[%s15676_s3 + $0x38] ss:$12 sps:$4 sm:$0xff]   ;;  %v11598_v31 = vld [vmem:[%s15676_s3 + $0x50] ss:$12 sps:$4 sm:$0xff]   ;;  %v11606_v63 = vld [vmem:[%s15677_s4 + $0xa8] sm:$0xff]  }
 0x2b7   : > { %11903 = vtanh.f32 %v4612_v42  ;;  %v4647_v57 = vadd.f32 1.0, %v11896_v33  ;;  %v11599_v48 = vld [vmem:[%s15676_s3 + $0x68] ss:$12 sps:$4 sm:$0xff]   ;;  %v11600_v44 = vld [vmem:[%s15676_s3 + $0x80] ss:$12 sps:$4 sm:$0xff]   ;;  %v11603_v61 = vld [vmem:[%s15677_s4 + $0x78] sm:$0xff]  }
 0x2b8   : > { %10102 = vmatpush3.bf16.msra.mxu1 %v4716_v45  ;;  %v4682_v55 = vmul.f32 %v4648_v60, %v4410_v49  ;;  %v11601_v22 = vld [vmem:[%s15676_s3 + $0x98] ss:$0 sps:$4 sm:$0x33]   ;;  %v11604_v14 = vld [vmem:[%s15677_s4 + $0xb0] sm:$0xff]   ;;  %10797 = vmatpush3.bf16.msra.mxu0 %v11603_v61  ;;  %v11607_v2 = vld [vmem:[%s15677_s4 + $0x68] sm:$0xff]  }
 0x2b9   : > { %v4681_v10 = vmul.f32 %v4647_v57, %v4409_v62  ;;  %10798 = vmatprep.subr.bf16.mxu0 %v12054_v37  ;;  %v11605_v36 = vld [vmem:[%s15677_s4 + $0x70] sm:$0xff]   ;;  %v11608_v28 = vld [vmem:[%s15677_s4 + $0xa0] sm:$0xff]   ;;  %v11610_v30 = vld [vmem:[%s15677_s4 + $0x98] sm:$0xff]  }
 0x2ba   : > { %v11609_v41 = vld [vmem:[%s15677_s4 + $0x60] sm:$0xff]   ;;  %v11611_v42 = vld [vmem:[%s15677_s4 + $0x58] sm:$0xff]   ;;  %v11612_v45 = vld [vmem:[%s15677_s4 + $0x90] sm:$0xff]  }
 0x2bb   : > { %v4715_v43 = vpack.c.bf16 %v4682_v55, %v4681_v10  ;;  %v11613_v19 = vld [vmem:[%s15677_s4 + $0x50] sm:$0xff]   ;;  %v11614_v33 = vld [vmem:[%s15677_s4 + $0x88] sm:$0xff]  }
 0x2bc   : > { %v11898_v23 = vpop.eup %11897  ;;  %10799 = vmatpush3.bf16.msra.mxu0 %v11605_v36  ;;  %v11615_v60 = vld [vmem:[%s15677_s4 + $0x48] sm:$0xff]  }
 0x2bd   : > { %v4663_v32 = vadd.f32 1.0, %v11898_v23  ;;  %10800 = vmatprep.subr.bf16.mxu0 %v12054_v37  ;;  %v11616_v23 = vld [vmem:[%s15677_s4 + $0x80] sm:$0xff]  }
 0x2be   : > { %v11900_v46 = vpop.eup %11899 }
 0x2bf   : > { %v4664_v9 = vadd.f32 1.0, %v11900_v46  ;;  %v4697_v51 = vmul.f32 %v4663_v32, %v4425_v12  ;;  %v11617_v46 = vld [vmem:[%s15677_s4 + $0x40] sm:$0xff]  }
 0x2c0   : > { %10801 = vmatpush3.bf16.msra.mxu0 %v11607_v2 }
 0x2c1   : > { %v4698_v59 = vmul.f32 %v4664_v9, %v4426_v0  ;;  %10802 = vmatprep.subr.bf16.mxu0 %v12054_v37 }
 0x2c3   : > { %v4723_v15 = vpack.c.bf16 %v4698_v59, %v4697_v51  ;;  %v11902_v40 = vpop.eup %11901 }
 0x2c4   : > { %v11904_v1 = vpop.eup %11903  ;;  %v4679_v38 = vadd.f32 1.0, %v11902_v40  ;;  %10803 = vmatpush3.bf16.msra.mxu0 %v11609_v41 }
 0x2c5   : > { %10103 = vmatprep.subr.bf16.mxu1 %v4723_v15  ;;  %v4680_v21 = vadd.f32 1.0, %v11904_v1  ;;  %10804 = vmatprep.subr.bf16.mxu0 %v12054_v37 }
 0x2c6   : > { %10104 = vmatpush3.bf16.msra.mxu1 %v4715_v43  ;;  %v4713_v25 = vmul.f32 %v4679_v38, %v4441_v8 }
 0x2c7   : > { %10766 = vmatprep.subr.bf16.mxu1 %v12054_v37  ;;  %v4714_v18 = vmul.f32 %v4680_v21, %v4442_v35 }
 0x2c8   : > { %10805 = vmatpush3.bf16.msra.mxu0 %v11611_v42 }
 0x2c9   : > { %4920 = vmatmul.mubr.bf16.vlgmr.msra.gmra.mxu1 %v11575_v53  ;;  %v4731_v27 = vpack.c.bf16 %v4714_v18, %v4713_v25  ;;  %10806 = vmatprep.subr.bf16.mxu0 %v12054_v37 }
 0x2ca   : > { %4927 = vmatprep.mubr.bf16.mxu1 %v11580_v20 }
 0x2cb   : > { %v4885_v50 = vand.u32 %v4883_v26, %v4731_v27 }
 0x2cc   : > { %10807 = vmatpush3.bf16.msra.mxu0 %v11613_v19 }
 0x2cd   : > { %10767 = vmatpush3.bf16.msra.mxu1 %v4885_v50  ;;  %10808 = vmatprep.subr.bf16.mxu0 %v12054_v37 }
 0x2ce   : > { %10868 = vmatprep.subr.bf16.mxu1 %v12054_v37 }
 0x2d0   : > { %10809 = vmatpush3.bf16.msra.mxu0 %v11615_v60 }
 0x2d1   : > { %4928 = vmatmul.mubr.bf16.gmra.mxu1 %v11578_v54  ;;  %10810 = vmatprep.subr.bf16.mxu0 %v12054_v37 }
 0x2d2   : > { %4935 = vmatprep.mubr.bf16.mxu1 %v11583_v52 }
 0x2d4   : > { %10811 = vmatpush3.bf16.msra.mxu0 %v11617_v46 }
 0x2d5   : > { %10832 = vmatprep.subr.bf16.mxu0 %v12054_v37 }
 0x2d9   : > { %4936 = vmatmul.mubr.bf16.gmra.mxu1 %v11581_v39 }
 0x2da   : > { %4943 = vmatprep.mubr.bf16.mxu1 %v11586_v47 }
 0x2e1   : > { %4944 = vmatmul.mubr.bf16.gmra.mxu1 %v11584_v56 }
 0x2e2   : > { %4951 = vmatprep.mubr.bf16.mxu1 %v11589_v5 }
 0x2e9   : > { %4952 = vmatmul.mubr.bf16.gmra.mxu1 %v11587_v6 }
 0x2ea   : > { %4959 = vmatprep.mubr.bf16.mxu1 %v11592_v4 }
 0x2f1   : > { %4960 = vmatmul.mubr.bf16.gmra.mxu1 %v11590_v7 }
 0x2f2   : > { %4967 = vmatprep.mubr.bf16.mxu1 %v9409_v29 }
 0x2f9   : > { %4968 = vmatmul.mubr.bf16.gmra.mxu1 %v9408_v3 }
 0x2fa   : > { %10768 = vmatprep.mubr.msk.bf16.mxu1 %vm12055_vm8, %v12054_v37 }
 0x301   : > { %10769 = vmatmul.mubr.msk.bf16.vlgmr.msra.gmra.mxu1 %vm4858_vm9, %v11595_v16 }
 0x302   : > { %10772 = vmatprep.mubr.msk.bf16.mxu1 %vm12055_vm8, %v12054_v37  ;;  %10869 = vmatpush3.bf16.msra.mxu1 %v11602_v17 }
 0x303   : > { %10870 = vmatprep.subr.bf16.mxu1 %v12054_v37 }
 0x306   : > { %10871 = vmatpush3.bf16.msra.mxu1 %v11604_v14 }
 0x307   : > { %10872 = vmatprep.subr.bf16.mxu1 %v12054_v37 }
 0x309   : > { %10773 = vmatmul.mubr.msk.bf16.gmra.mxu1 %vm4858_vm9, %v11596_v11 }
 0x30a   : > { %10776 = vmatprep.mubr.msk.bf16.mxu1 %vm12055_vm8, %v12054_v37  ;;  %10873 = vmatpush3.bf16.msra.mxu1 %v11606_v63 }
 0x30b   : > { %10874 = vmatprep.subr.bf16.mxu1 %v12054_v37 }
 0x30e   : > { %10875 = vmatpush3.bf16.msra.mxu1 %v11608_v28 }
 0x30f   : > { %10876 = vmatprep.subr.bf16.mxu1 %v12054_v37 }
 0x311   : > { %10777 = vmatmul.mubr.msk.bf16.gmra.mxu1 %vm4858_vm9, %v11597_v58 }
 0x312   : > { %10780 = vmatprep.mubr.msk.bf16.mxu1 %vm12055_vm8, %v12054_v37  ;;  %10877 = vmatpush3.bf16.msra.mxu1 %v11610_v30 }
 0x313   : > { %10878 = vmatprep.subr.bf16.mxu1 %v12054_v37 }
 0x316   : > { %10879 = vmatpush3.bf16.msra.mxu1 %v11612_v45 }
 0x317   : > { %10880 = vmatprep.subr.bf16.mxu1 %v12054_v37 }
 0x319   : > { %10781 = vmatmul.mubr.msk.bf16.gmra.mxu1 %vm4858_vm9, %v11598_v31 }
 0x31a   : > { %10784 = vmatprep.mubr.msk.bf16.mxu1 %vm12055_vm8, %v12054_v37  ;;  %10881 = vmatpush3.bf16.msra.mxu1 %v11614_v33 }
 0x31b   : > { %10882 = vmatprep.subr.bf16.mxu1 %v12054_v37 }
 0x31e   : > { %10883 = vmatpush3.bf16.msra.mxu1 %v11616_v23 }
 0x31f   : > { %10940 = vmatprep.subr.bf16.mxu1 %v12054_v37 }
 0x321   : > { %10785 = vmatmul.mubr.msk.bf16.gmra.mxu1 %vm4858_vm9, %v11599_v48 }
 0x322   : > { %10788 = vmatprep.mubr.msk.bf16.mxu1 %vm12055_vm8, %v12054_v37 }
 0x329   : > { %10789 = vmatmul.mubr.msk.bf16.gmra.mxu1 %vm4858_vm9, %v11600_v44 }
 0x32a   : > { %10792 = vmatprep.mubr.msk.bf16.mxu1 %vm12055_vm8, %v12054_v37 }
 0x331   : > { %10793 = vmatmul.mubr.msk.bf16.gmra.mxu1 %vm4858_vm9, %v11601_v22 }
 0x332   : > { %10884 = vmatprep.mubr.msk.bf16.mxu1 %vm12055_vm8, %v12054_v37 }
 0x389   : > { %v10105_v32 = vpop.f32.mrf.mxu1 }
 0x38b   : > { %v10106_v49 = vpop.f32.mrf.mxu1 }
 0x38c   : > { %v10107_v47 = vadd.f32 %v10106_v49, %v10105_v32 }
 0x38d   : > { %v10108_v57 = vpop.f32.mrf.mxu1 }
 0x38f   : > { %v10109_v12 = vpop.f32.mrf.mxu1 }
 0x390   : > { %v10110_v56 = vadd.f32 %v10109_v12, %v10108_v57 }
 0x391   : > { %v10111_v0 = vpop.f32.mrf.mxu1 }
 0x393   : > { %v10112_v9 = vpop.f32.mrf.mxu1 }
 0x394   : > { %v10113_v16 = vadd.f32 %v10112_v9, %v10111_v0 }
 0x395   : > { %v10114_v62 = vpop.f32.mrf.mxu1 }
 0x397   : > { %v10115_v55 = vpop.f32.mrf.mxu1 }
 0x398   : > { %v10116_v11 = vadd.f32 %v10115_v55, %v10114_v62  ;;  %v11622_v55 = vld [vmem:[%s15677_s4 + $0x138] sm:$0xff]  }
 0x399   : > { %v10117_v51 = vpop.f32.mrf.mxu1 }
 0x39b   : > { %v10118_v59 = vpop.f32.mrf.mxu1 }
 0x39c   : > { %v10119_v2 = vadd.f32 %v10118_v59, %v10117_v51 }
 0x39d   : > { %v10120_v10 = vpop.f32.mrf.mxu1 }
 0x39f   : > { %v10121_v15 = vpop.f32.mrf.mxu1 }
 0x3a0   : > { %v10122_v28 = vadd.f32 %v10121_v15, %v10120_v10 }
 0x3a1   : > { %v10123_v40 = vpop.f32.mrf.mxu1 }
 0x3a3   : > { %v10124_v43 = vpop.f32.mrf.mxu1 }
 0x3a4   : > { %v10125_v51 = vadd.f32 %v10124_v43, %v10123_v40  ;;  %v11624_v40 = vld [vmem:[%s15677_s4 + $0x130] sm:$0xff]  }
 0x3a5   : > { %v10126_v1 = vpop.f32.mrf.mxu1 }
 0x3a7   : > { %v10127_v53 = vpop.f32.mrf.mxu1 }
 0x3a8   : > { %v10128_v59 = vadd.f32 %v10127_v53, %v10126_v1  ;;  %v11625_v1 = vld [vmem:[%s15677_s4 + $0x30] sm:$0xff]  }
 0x3a9   : > { %v14740_v8 = vpop.f32.mrf.mxu1 }
 0x3ab   : > { %v14742_v38 = vpop.f32.mrf.mxu1 }
 0x3ad   : > { %v14744_v35 = vpop.f32.mrf.mxu1 }
 0x3af   : > { %v14746_v21 = vpop.f32.mrf.mxu1 }
 0x3b1   : > { %v14748_v13 = vpop.f32.mrf.mxu1 }
 0x3b3   : > { %v14750_v20 = vpop.f32.mrf.mxu1 }
 0x3b5   : > { %v14752_v25 = vpop.f32.mrf.mxu1 }
 0x3b7   : > { %v14754_v18 = vpop.f32.mrf.mxu1 }
 0x3b9   : > { %v14756_v26 = vpop.f32.mrf.mxu1 }
 0x3bb   : > { %v14758_v27 = vpop.f32.mrf.mxu1 }
 0x3bd   : > { %v10144_v50 = vpop.f32.mrf.mxu1 }
 0x3bf   : > { %v10145_v54 = vpop.f32.mrf.mxu1 }
 0x3c1   : > { %v5009_v52 = vpop.f32.mrf.mxu1 }
 0x3c2   : > { %v5010_v6 = vadd.f32 %v10107_v47, %v5009_v52  ;;  %v11623_v52 = vld [vmem:[%s15677_s4 + $0x38] sm:$0xff]  }
 0x3c3   : > { %v10770_v39 = vpop.f32.mrf.mxu1 }
 0x3c5   : > { %v5012_v5 = vpop.f32.mrf.mxu1 }
 0x3c6   : > { %v5013_v4 = vadd.f32 %v10110_v56, %v5012_v5 }
 0x3c7   : > { %v10771_v34 = vpop.f32.mrf.mxu1 }
 0x3c8   : > { %v9875_v7 = vpack.c.bf16 %v5013_v4, %v5010_v6 }
 0x3c9   : > { %v5017_v29 = vpop.f32.mrf.mxu1 }
 0x3ca   : > { %9876 = vst [vmem:[#allocation3] sm:$0xff] %v9875_v7   ;;  %v5018_v31 = vadd.f32 %v10113_v16, %v5017_v29  ;;  %v10131_v16 = vadd.f32 %v14742_v38, %v14740_v8 }
 0x3cb   : > { %v10774_v3 = vpop.f32.mrf.mxu1 }
 0x3cc   : > { %v11627_v3 = vld [vmem:[%s15677_s4 + $0x128] sm:$0xff]  }
 0x3cd   : > { %v5020_v58 = vpop.f32.mrf.mxu1 }
 0x3ce   : > { %v5021_v48 = vadd.f32 %v10116_v11, %v5020_v58  ;;  %v10134_v11 = vadd.f32 %v14746_v21, %v14744_v35  ;;  %v11629_v35 = vld [vmem:[%s15677_s4 + $0x120] sm:$0xff]  }
 0x3cf   : > { %v10775_v44 = vpop.f32.mrf.mxu1 }
 0x3d0   : > { %v9880_v22 = vpack.c.bf16 %v5021_v48, %v5018_v31 }
 0x3d1   : > { %v5025_v17 = vpop.f32.mrf.mxu1  ;;  %v5129_v61 = vld [vmem:[#allocation3] sm:$0xf]  ;;  %v5130_v14 = vld [vmem:[#allocation3 + $0x4] sm:$0xf] }
 0x3d2   : > { %9912 = vst [vmem:[#allocation3 + $0x8] sm:$0xff] %v9880_v22   ;;  %v14760_v36 = vcombine.low %v5129_v61, %v5130_v14  ;;  %v5492_v41 = vld [vmem:[#allocation3] sm:$0xe]  ;;  %v5026_v45 = vadd.f32 %v10119_v2, %v5025_v17  ;;  %v11628_v22 = vld [vmem:[%s15677_s4 + $0x28] sm:$0xff]  }
 0x3d3   : > { %v10778_v63 = vpop.f32.mrf.mxu1  ;;  %v9485_v60 = vcombine.low %v5492_v41, %v5130_v14  ;;  %v11630_v14 = vld [vmem:[%s15677_s4 + $0x20] sm:$0xff]  }
 0x3d4   : > { %v5201_v42 = vshll.u32 %v14760_v36, 16  ;;  %v5199_v9 = vshrl.u32 %v14760_v36, 16 }
 0x3d5   : > { %v5028_v30 = vpop.f32.mrf.mxu1  ;;  %v5513_v12 = vrot.slane %v9485_v60, 1 }
 0x3d6   : > { %v5029_v19 = vadd.f32 %v10122_v28, %v5028_v30  ;;  %v5203_v49 = vrot.slane %v5201_v42, 1 }
 0x3d7   : > { %v10779_v33 = vpop.f32.mrf.mxu1 }
 0x3d8   : > { %v9885_v23 = vpack.c.bf16 %v5029_v19, %v5026_v45  ;;  %v5204_v50 = vor.u32 %v5203_v49, %v5199_v9  ;;  %v11632_v45 = vld [vmem:[%s15677_s4 + $0x118] sm:$0xff]   ;;  %v10137_v19 = vadd.f32 %v14750_v20, %v14748_v13  ;;  %v10140_v33 = vadd.f32 %v14754_v18, %v14752_v25  ;;  %v11634_v25 = vld [vmem:[%s15677_s4 + $0x110] sm:$0xff]  }
 0x3d9   : > { %v5033_v46 = vpop.f32.mrf.mxu1  ;;  %v14763_v32 = vld [vmem:[#allocation3 + $0x8] sm:$0xff]   ;;  %v10143_v18 = vadd.f32 %v14758_v27, %v14756_v26 }
 0x3da   : > { %9913 = vst [vmem:[#allocation3 + $0x10] sm:$0xff] %v9885_v23   ;;  %v5514_v0 = vrot.slane %v14763_v32, 1  ;;  %v5206_v62 = vshll.u32 %v14763_v32, 16  ;;  %v5034_v39 = vadd.f32 %v10125_v51, %v5033_v46  ;;  %v5210_v7 = vshrl.u32 %v14763_v32, 16  ;;  %v11636_v27 = vld [vmem:[%s15677_s4 + $0x108] sm:$0xff]  }
 0x3db   : > { %v10782_v57 = vpop.f32.mrf.mxu1 }
 0x3dc   : > { %v5515_v15 = vsel %vm1272_vm3, %v5513_v12, %v5514_v0  ;;  %v5208_v54 = vrot.slane %v5206_v62, 1  ;;  %v11633_v57 = vld [vmem:[%s15677_s4 + $0x18] sm:$0xff]   ;;  %v11635_v62 = vld [vmem:[%s15677_s4 + $0x10] sm:$0xff]  }
 0x3dd   : > { %v5036_v10 = vpop.f32.mrf.mxu1  ;;  %10885 = vmatmul.mubr.bf16.vlgmr.msra.gmra.mxu1 %v5515_v15  ;;  %v5855_v15 = vld [vmem:[#allocation3 + $0x4] sm:$0xe] }
 0x3de   : > { %v5037_v47 = vadd.f32 %v10128_v59, %v5036_v10  ;;  %v5209_v5 = vsel %vm666_vm2, %v5204_v50, %v5208_v54  ;;  %10888 = vmatprep.mubr.msk.bf16.mxu1 %vm12055_vm8, %v12054_v37  ;;  %10941 = vmatpush3.bf16.msra.mxu1 %v11622_v55  ;;  %v5212_v48 = vor.u32 %v5210_v7, %v5208_v54  ;;  %v14858_v50 = vld [vmem:[#allocation3 + $0x8] sm:$0xf] }
 0x3df   : > { %v10783_v56 = vpop.f32.mrf.mxu1  ;;  %10813 = vmatmul.mubr.bf16.vlgmr.msra.gmra.mxu0 %v5209_v5  ;;  %10942 = vmatprep.subr.bf16.mxu1 %v12054_v37 }
 0x3e0   : > { %v9890_v43 = vpack.c.bf16 %v5037_v47, %v5034_v39  ;;  %10816 = vmatprep.mubr.msk.bf16.mxu0 %vm12055_vm8, %v12054_v37  ;;  %10833 = vmatpush3.bf16.msra.mxu0 %v11623_v52 }
 0x3e1   : > { %v5041_v53 = vpop.f32.mrf.mxu1  ;;  %v14785_v6 = vld [vmem:[#allocation3 + $0x10] sm:$0xff]   ;;  %10834 = vmatprep.subr.bf16.mxu0 %v12054_v37 }
 0x3e2   : > { %9914 = vst [vmem:[#allocation3 + $0x18] sm:$0xff] %v9890_v43   ;;  %v5516_v34 = vrot.slane %v14785_v6, 1  ;;  %v5214_v29 = vshll.u32 %v14785_v6, 16  ;;  %10943 = vmatpush3.bf16.msra.mxu1 %v11624_v40  ;;  %v5042_v17 = vadd.f32 %v10131_v16, %v5041_v53  ;;  %v5218_v30 = vshrl.u32 %v14785_v6, 16  ;;  %v14866_v43 = vld [vmem:[#allocation3 + $0xc] sm:$0xff]  }
 0x3e3   : > { %v10786_v4 = vpop.f32.mrf.mxu1  ;;  %10944 = vmatprep.subr.bf16.mxu1 %v12054_v37 }
 0x3e4   : > { %v5517_v31 = vsel %vm1272_vm3, %v5514_v0, %v5516_v34  ;;  %v5216_v44 = vrot.slane %v5214_v29, 1  ;;  %10835 = vmatpush3.bf16.msra.mxu0 %v11625_v1  ;;  %v9539_v1 = vcombine.low %v5855_v15, %v14858_v50  ;;  %v11637_v29 = vld [vmem:[%s15677_s4 + $0x8] sm:$0xff]  }
 0x3e5   : > { %v5044_v58 = vpop.f32.mrf.mxu1  ;;  %10889 = vmatmul.mubr.bf16.gmra.mxu1 %v5517_v31  ;;  %10836 = vmatprep.subr.bf16.mxu0 %v12054_v37  ;;  %v11638_v31 = vld [vmem:[%s15677_s4 + $0x100] sm:$0xff]  }
 0x3e6   : > { %v5045_v61 = vadd.f32 %v10134_v11, %v5044_v58  ;;  %v5217_v38 = vsel %vm666_vm2, %v5212_v48, %v5216_v44  ;;  %10892 = vmatprep.mubr.msk.bf16.mxu1 %vm12055_vm8, %v12054_v37  ;;  %10945 = vmatpush3.bf16.msra.mxu1 %v11627_v3  ;;  %v5220_v46 = vor.u32 %v5218_v30, %v5216_v44  ;;  %v11639_v48 = vld [vmem:[%s15677_s4] sm:$0xff]   ;;  %v5920_v44 = vshrl.u32 %v14866_v43, 16 }
 0x3e7   : > { %v10787_v8 = vpop.f32.mrf.mxu1  ;;  %10817 = vmatmul.mubr.bf16.gmra.mxu0 %v5217_v38  ;;  %10946 = vmatprep.subr.bf16.mxu1 %v12054_v37  ;;  %v5912_v38 = vshrl.u32 %v9539_v1, 16 }
 0x3e8   : > { %v9895_v21 = vpack.c.bf16 %v5045_v61, %v5042_v17  ;;  %10820 = vmatprep.mubr.msk.bf16.mxu0 %vm12055_vm8, %v12054_v37  ;;  %10837 = vmatpush3.bf16.msra.mxu0 %v11628_v22  ;;  %v5923_v17 = vshll.u32 %v14866_v43, 16 }
 0x3e9   : > { %v5049_v63 = vpop.f32.mrf.mxu1  ;;  %v14816_v2 = vld [vmem:[#allocation3 + $0x18] sm:$0xff]   ;;  %10838 = vmatprep.subr.bf16.mxu0 %v12054_v37 }
 0x3ea   : > { %9915 = vst [vmem:[#allocation3 + $0x20] sm:$0xff] %v9895_v21   ;;  %v5518_v41 = vrot.slane %v14816_v2, 1  ;;  %v5222_v42 = vshll.u32 %v14816_v2, 16  ;;  %10947 = vmatpush3.bf16.msra.mxu1 %v11629_v35  ;;  %v5050_v12 = vadd.f32 %v10137_v19, %v5049_v63  ;;  %v14862_v52 = vld [vmem:[#allocation3 + $0x14] sm:$0xff]   ;;  %v5226_v5 = vshrl.u32 %v14816_v2, 16 }
 0x3eb   : > { %v10790_v28 = vpop.f32.mrf.mxu1  ;;  %10948 = vmatprep.subr.bf16.mxu1 %v12054_v37  ;;  %v6120_v16 = vrot.slane %v14862_v52, 2  ;;  %v14886_v22 = vld [vmem:[#allocation3 + $0x18] sm:$0xff]   ;;  %v5915_v21 = vshll.u32 %v9539_v1, 16  ;;  %v5914_v19 = vrot.slane %v5912_v38, 1  ;;  %v11649_v38 = vld [vmem:[%s15677_s4 + $0xe8] sm:$0xff]  }
 0x3ec   : > { %v5519_v23 = vsel %vm1272_vm3, %v5516_v34, %v5518_v41  ;;  %v5224_v49 = vrot.slane %v5222_v42, 1  ;;  %10839 = vmatpush3.bf16.msra.mxu0 %v11630_v14  ;;  %v5922_v14 = vrot.slane %v5920_v44, 1  ;;  %v6509_v30 = vshll.u32 %v14886_v22, 16 }
 0x3ed   : > { %v5052_v60 = vpop.f32.mrf.mxu1  ;;  %10893 = vmatmul.mubr.bf16.gmra.mxu1 %v5519_v23  ;;  %10840 = vmatprep.subr.bf16.mxu0 %v12054_v37 }
 0x3ee   : > { %v5053_v0 = vadd.f32 %v10140_v33, %v5052_v60  ;;  %v5225_v20 = vsel %vm666_vm2, %v5220_v46, %v5224_v49  ;;  %10896 = vmatprep.mubr.msk.bf16.mxu1 %vm12055_vm8, %v12054_v37  ;;  %10949 = vmatpush3.bf16.msra.mxu1 %v11632_v45  ;;  %v5228_v34 = vor.u32 %v5226_v5, %v5224_v49  ;;  %v5925_v45 = vrot.slane %v5923_v17, 2 }
 0x3ef   : > { %v10791_v13 = vpop.f32.mrf.mxu1  ;;  %10821 = vmatmul.mubr.bf16.gmra.mxu0 %v5225_v20  ;;  %10950 = vmatprep.subr.bf16.mxu1 %v12054_v37  ;;  %v5917_v60 = vrot.slane %v5915_v21, 2 }
 0x3f0   : > { %v9900_v9 = vpack.c.bf16 %v5053_v0, %v5050_v12  ;;  %10824 = vmatprep.mubr.msk.bf16.mxu0 %vm12055_vm8, %v12054_v37  ;;  %10841 = vmatpush3.bf16.msra.mxu0 %v11633_v57  ;;  %v6511_v12 = vrot.slane %v6509_v30, 3  ;;  %v5926_v20 = vor.u32 %v5925_v45, %v5922_v14  ;;  %v11651_v14 = vld [vmem:[%s15677_s4 + $0xe0] sm:$0xff]  }
 0x3f1   : > { %v5057_v55 = vpop.f32.mrf.mxu1  ;;  %v14849_v51 = vld [vmem:[#allocation3 + $0x20] sm:$0xf]  ;;  %v5155_v59 = vld [vmem:[#allocation3 + $0x24] sm:$0xf]  ;;  %10842 = vmatprep.subr.bf16.mxu0 %v12054_v37 }
 0x3f2   : > { %9916 = vst [vmem:[#allocation3 + $0x28] sm:$0xff] %v9900_v9   ;;  %v5058_v10 = vadd.f32 %v10143_v18, %v5057_v55  ;;  %v9451_v26 = vcombine.low %v14849_v51, %v5155_v59  ;;  %v14860_v54 = vld [vmem:[#allocation3 + $0x1c] sm:$0xff]   ;;  %10951 = vmatpush3.bf16.msra.mxu1 %v11634_v25  ;;  %v5929_v18 = vshrl.u32 %v14862_v52, 16  ;;  %v5932_v9 = vshll.u32 %v14862_v52, 16 }
 0x3f3   : > { %v10794_v39 = vpop.f32.mrf.mxu1  ;;  %10952 = vmatprep.subr.bf16.mxu1 %v12054_v37  ;;  %v6122_v3 = vrot.slane %v14860_v54, 2  ;;  %v14902_v63 = vld [vmem:[#allocation3 + $0x20] sm:$0xff]  }
 0x3f4   : > { %v9866_v47 = vpack.c.bf16 %v5058_v10, %v5058_v10  ;;  %v5520_v56 = vrot.slane %v9451_v26, 1  ;;  %v5230_v40 = vshll.u32 %v9451_v26, 16  ;;  %10843 = vmatpush3.bf16.msra.mxu0 %v11635_v62  ;;  %v5234_v42 = vshrl.u32 %v9451_v26, 16 }
 0x3f5   : > { %v5060_v53 = vpop.f32.mrf.mxu1  ;;  %10844 = vmatprep.subr.bf16.mxu0 %v12054_v37  ;;  %v14895_v8 = vsel %vm2586_vm4, %v6120_v16, %v6122_v3  ;;  %v6515_v0 = vshrl.u32 %v14902_v63, 16  ;;  %v6518_v13 = vshll.u32 %v14902_v63, 16  ;;  %v5918_v26 = vor.u32 %v5917_v60, %v5914_v19  ;;  %v11654_v19 = vld [vmem:[%s15677_s4 + $0xd8] sm:$0xff]   ;;  %v11656_v60 = vld [vmem:[%s15677_s4 + $0xd0] sm:$0xff]  }
 0x3f6   : > { %5128 = vst [vmem:[#allocation3 + $0x30] sm:$0x3] %v9866_v47  ;;  %v5521_v4 = vsel %vm1272_vm3, %v5518_v41, %v5520_v56  ;;  %v5232_v7 = vrot.slane %v5230_v40, 1  ;;  %10953 = vmatpush3.bf16.msra.mxu1 %v11636_v27  ;;  %v6506_v41 = vshrl.u32 %v14886_v22, 16  ;;  %v11643_v27 = vld [vmem:[%s15677_s4 + $0x1b8] sm:$0xff]   ;;  %v5931_v40 = vrot.slane %v5929_v18, 1 }
 0x3f7   : > { %10897 = vmatmul.mubr.bf16.gmra.mxu1 %v5521_v4  ;;  %v10795_v11 = vpop.f32.mrf.mxu1  ;;  %10954 = vmatprep.subr.bf16.mxu1 %v12054_v37  ;;  %v6517_v62 = vrot.slane %v6515_v0, 2  ;;  %v6520_v55 = vrot.slane %v6518_v13, 3  ;;  %v5927_v5 = vsel %vm2143_vm5, %v5918_v26, %v5926_v20  ;;  %v5934_v1 = vrot.slane %v5932_v9, 2  ;;  %v11644_v53 = vld [vmem:[%s15677_s4 + $0xf8] sm:$0xff]   ;;  %v11661_v0 = vld [vmem:[%s15677_s4 + $0x180] sm:$0xff]  }
 0x3f8   : > { %v5233_v58 = vsel %vm666_vm2, %v5228_v34, %v5232_v7  ;;  %10900 = vmatprep.mubr.msk.bf16.mxu1 %vm12055_vm8, %v12054_v37  ;;  %10845 = vmatpush3.bf16.msra.mxu0 %v11637_v29  ;;  %v5236_v33 = vor.u32 %v5234_v42, %v5232_v7  ;;  %v6508_v57 = vrot.slane %v6506_v41, 2  ;;  %v11645_v7 = vld [vmem:[%s15677_s4 + $0x1b0] sm:$0xff]   ;;  %v11662_v13 = vld [vmem:[%s15677_s4 + $0xc0] sm:$0xff]   ;;  %v6264_v18 = vld [vmem:[#allocation3 + $0x8] sm:$0xc] }
 0x3f9   : > { %10825 = vmatmul.mubr.bf16.gmra.mxu0 %v5233_v58  ;;  %v14890_v61 = vld [vmem:[#allocation3 + $0x24] sm:$0xff]   ;;  %v14899_v35 = vld [vmem:[#allocation3 + $0x2c] ss:$0 sps:$4 sm:$0x11]   ;;  %10846 = vmatprep.subr.bf16.mxu0 %v12054_v37  ;;  %v6521_v39 = vor.u32 %v6520_v55, %v6517_v62  ;;  %v11646_v11 = vld [vmem:[%s15677_s4 + $0xf0] sm:$0xff]   ;;  %v5938_v58 = vshrl.u32 %v14860_v54, 16 }
 0x3fa   : > { %10828 = vmatprep.mubr.msk.bf16.mxu0 %vm12055_vm8, %v12054_v37  ;;  %10955 = vmatpush3.bf16.msra.mxu1 %v11638_v31  ;;  %v6124_v28 = vrot.slane %v14890_v61, 2  ;;  %v14909_v23 = vld [vmem:[#allocation3 + $0x28] sm:$0xff]   ;;  %v6126_v49 = vrot.slane %v14899_v35, 2  ;;  %v14931_v15 = vor.u32 %v6511_v12, %v6508_v57  ;;  %v5941_v31 = vshll.u32 %v14860_v54, 16  ;;  %v11650_v54 = vld [vmem:[%s15677_s4 + $0x1a0] sm:$0xff]   ;;  %v15035_v62 = vld [vmem:[#allocation3 + $0x10] sm:$0xff]  }
 0x3fb   : > { %11012 = vmatprep.subr.bf16.mxu1 %v12054_v37  ;;  %v6524_v59 = vshrl.u32 %v14909_v23, 16  ;;  %v6527_v10 = vshll.u32 %v14909_v23, 16  ;;  %v5940_v44 = vrot.slane %v5938_v58, 1  ;;  %v5950_v41 = vshll.u32 %v14890_v61, 16  ;;  %v11660_v57 = vld [vmem:[%s15677_s4 + $0xc8] sm:$0xff]  }
 0x3fc   : > { %10847 = vmatpush3.bf16.msra.mxu0 %v11639_v48  ;;  %v14912_v46 = vsel %vm2586_vm4, %v6122_v3, %v6124_v28  ;;  %v14920_v25 = vsel %vm2586_vm4, %v6124_v28, %v6126_v49  ;;  %v14939_v4 = vsel %vm3339_vm6, %v14931_v15, %v6521_v39  ;;  %v5935_v3 = vor.u32 %v5934_v1, %v5931_v40  ;;  %v11658_v49 = vld [vmem:[%s15677_s4 + $0x188] sm:$0xff]   ;;  %v11670_v40 = vld [vmem:[%s15677_s4 + $0x178] sm:$0xff]  }
 0x3fd   : > { %10904 = vmatprep.subr.bf16.mxu0 %v12054_v37  ;;  %v6526_v47 = vrot.slane %v6524_v59, 2  ;;  %v5943_v17 = vrot.slane %v5941_v31, 2  ;;  %v5947_v28 = vshrl.u32 %v14890_v61, 16  ;;  %v5952_v45 = vrot.slane %v5950_v41, 2  ;;  %v11655_v61 = vld [vmem:[%s15677_s4 + $0x190] sm:$0xff]   ;;  %v11674_v31 = vld [vmem:[%s15677_s4 + $0x228] sm:$0xff]  }
 0x3fe   : > { %v5936_v48 = vsel %vm2143_vm5, %v5926_v20, %v5935_v3  ;;  %v5956_v12 = vshll.u32 %v14899_v35, 16  ;;  %v5138_v20 = vld [vmem:[#allocation3 + $0x24] sm:$0x7]  ;;  %v15031_v9 = vld [vmem:[#allocation3 + $0xc] sm:$0xf]  ;;  %v6321_v26 = vrot.slane %v15035_v62, 2 }
 0x3ff   : > { %10901 = vmatmul.mubr.bf16.gmra.mxu1 %v5520_v56  ;;  %v6529_v56 = vrot.slane %v6527_v10, 3  ;;  %v5944_v21 = vor.u32 %v5943_v17, %v5940_v44  ;;  %v5949_v42 = vrot.slane %v5947_v28, 1  ;;  %v9460_v55 = vcombine.low %v14849_v51, %v5138_v20  ;;  %v11666_v10 = vld [vmem:[#allocation3 + $0xc] sm:$0xff]   ;;  %v11668_v51 = vld [vmem:[%s15677_s4 + $0x238] sm:$0xff]   ;;  %v6677_v20 = vld [vmem:[#allocation3 + $0x8] sm:$0x8] }
 0x400   : > { %10956 = vmatprep.mubr.msk.bf16.mxu1 %vm12055_vm8, %v12054_v37  ;;  %v5958_v35 = vrot.slane %v5956_v12, 2  ;;  %v15042_v59 = vcombine.low %v6264_v18, %v15031_v9  ;;  %v11675_v17 = vld [vmem:[#allocation3 + $0x1c] sm:$0xff]  }
 0x401   : > { %10829 = vmatmul.mubr.bf16.gmra.mxu0 %v5236_v33  ;;  %v14941_v34 = vor.u32 %v6529_v56, %v6526_v47  ;;  %v5945_v30 = vsel %vm2143_vm5, %v5935_v3, %v5944_v21  ;;  %v5953_v33 = vor.u32 %v5952_v45, %v5949_v42  ;;  %v5711_v47 = vrot.slane %v11666_v10, 1  ;;  %v11680_v28 = vld [vmem:[%s15677_s4 + $0x218] sm:$0xff]   ;;  %v11681_v42 = vld [vmem:[#allocation3 + $0x24] sm:$0xff]   ;;  %v11683_v45 = vld [vmem:[%s15677_s4 + $0x210] sm:$0xff]  }
 0x402   : > { %10848 = vmatprep.mubr.msk.bf16.mxu0 %vm12055_vm8, %v12054_v37  ;;  %v6323_v3 = vrot.slane %v14886_v22, 2  ;;  %v6699_v10 = vrot.slane %v15035_v62, 3 }
 0x403   : > { %v14952_v29 = vsel %vm3339_vm6, %v6521_v39, %v14941_v34  ;;  %v6320_v39 = vrot.slane %v15042_v59, 2 }
 0x405   : > { %v6322_v56 = vsel %vm2586_vm4, %v6320_v39, %v6321_v26  ;;  %v6118_v39 = vrot.slane %v14866_v43, 2 }
 0x407   : > { %10957 = vmatmul.mubr.bf16.vlgmr.msra.gmra.mxu1 %v5927_v5 }
 0x408   : > { %10960 = vmatprep.mubr.msk.bf16.mxu1 %vm12055_vm8, %v12054_v37  ;;  %11013 = vmatpush3.bf16.msra.mxu1 %v11643_v27  ;;  %v11665_v27 = vld [vmem:[#allocation3 + $0x4] sm:$0xfe]  }
 0x409   : > { %10849 = vmatmul.mubr.bf16.vlgmr.msra.gmra.mxu0 %v14760_v36  ;;  %11014 = vmatprep.subr.bf16.mxu1 %v12054_v37  ;;  %v11648_v36 = vld [vmem:[%s15677_s4 + $0x1a8] sm:$0xff]   ;;  %v5710_v5 = vrot.slane %v11665_v27, 1 }
 0x40a   : > { %10852 = vmatprep.mubr.msk.bf16.mxu0 %vm12055_vm8, %v12054_v37  ;;  %10905 = vmatpush3.bf16.msra.mxu0 %v11644_v53  ;;  %v11669_v53 = vld [vmem:[#allocation3 + $0x14] sm:$0xff]  }
 0x40b   : > { %10906 = vmatprep.subr.bf16.mxu0 %v12054_v37  ;;  %v5712_v1 = vsel %vm1272_vm3, %v5710_v5, %v5711_v47  ;;  %v5713_v58 = vrot.slane %v11669_v53, 1  ;;  %v6701_v5 = vrot.slane %v14886_v22, 3  ;;  %v6121_v22 = vsel %vm2586_vm4, %v6118_v39, %v6120_v16  ;;  %v11695_v53 = vld [vmem:[%s15677_s4 + $0x1e0] sm:$0xff]   ;;  %v11696_v16 = vld [vmem:[%s15677_s4 + $0x1d8] sm:$0xff]  }
 0x40c   : > { %11015 = vmatpush3.bf16.msra.mxu1 %v11645_v7  ;;  %v11671_v7 = vld [vmem:[%s15677_s4 + $0x230] sm:$0xff]  }
 0x40d   : > { %11016 = vmatprep.subr.bf16.mxu1 %v12054_v37  ;;  %v5714_v44 = vsel %vm1272_vm3, %v5711_v47, %v5713_v58  ;;  %v6702_v43 = vsel %vm3786_vm7, %v6699_v10, %v6701_v5 }
 0x40e   : > { %10907 = vmatpush3.bf16.msra.mxu0 %v11646_v11  ;;  %v11672_v11 = vld [vmem:[%s15677_s4 + $0x170] sm:$0xff]  }
 0x40f   : > { %10961 = vmatmul.mubr.bf16.gmra.mxu1 %v5936_v48  ;;  %10908 = vmatprep.subr.bf16.mxu0 %v12054_v37  ;;  %v11676_v48 = vld [vmem:[%s15677_s4 + $0x168] sm:$0xff]  }
 0x410   : > { %10964 = vmatprep.mubr.msk.bf16.mxu1 %vm12055_vm8, %v12054_v37  ;;  %11017 = vmatpush3.bf16.msra.mxu1 %v11648_v36  ;;  %v6324_v36 = vsel %vm2586_vm4, %v6321_v26, %v6323_v3 }
 0x411   : > { %10853 = vmatmul.mubr.bf16.gmra.mxu0 %v14763_v32  ;;  %11018 = vmatprep.subr.bf16.mxu1 %v12054_v37  ;;  %v11653_v32 = vld [vmem:[%s15677_s4 + $0x198] sm:$0xff]  }
 0x412   : > { %10856 = vmatprep.mubr.msk.bf16.mxu0 %vm12055_vm8, %v12054_v37  ;;  %10909 = vmatpush3.bf16.msra.mxu0 %v11649_v38  ;;  %v11677_v38 = vld [vmem:[%s15677_s4 + $0x220] sm:$0xff]  }
 0x413   : > { %10910 = vmatprep.subr.bf16.mxu0 %v12054_v37 }
 0x414   : > { %11019 = vmatpush3.bf16.msra.mxu1 %v11650_v54  ;;  %v6325_v54 = vrot.slane %v14902_v63, 2 }
 0x415   : > { %11020 = vmatprep.subr.bf16.mxu1 %v12054_v37 }
 0x416   : > { %10911 = vmatpush3.bf16.msra.mxu0 %v11651_v14  ;;  %v5715_v14 = vrot.slane %v11675_v17, 1  ;;  %v6326_v41 = vsel %vm2586_vm4, %v6323_v3, %v6325_v54 }
 0x417   : > { %10965 = vmatmul.mubr.bf16.gmra.mxu1 %v5945_v30  ;;  %10912 = vmatprep.subr.bf16.mxu0 %v12054_v37 }
 0x418   : > { %10968 = vmatprep.mubr.msk.bf16.mxu1 %vm12055_vm8, %v12054_v37  ;;  %11021 = vmatpush3.bf16.msra.mxu1 %v11653_v32  ;;  %v11682_v32 = vld [vmem:[%s15677_s4 + $0x158] sm:$0xff]   ;;  %v5716_v30 = vsel %vm1272_vm3, %v5713_v58, %v5715_v14  ;;  %v11700_v58 = vld [vmem:[%s15677_s4 + $0x1c0] sm:$0xff]  }
 0x419   : > { %10857 = vmatmul.mubr.bf16.gmra.mxu0 %v14785_v6  ;;  %11022 = vmatprep.subr.bf16.mxu1 %v12054_v37  ;;  %v5954_v6 = vsel %vm2143_vm5, %v5944_v21, %v5953_v33  ;;  %v11678_v21 = vld [vmem:[%s15677_s4 + $0x160] sm:$0xff]  }
 0x41a   : > { %10860 = vmatprep.mubr.msk.bf16.mxu0 %vm12055_vm8, %v12054_v37  ;;  %10913 = vmatpush3.bf16.msra.mxu0 %v11654_v19  ;;  %v6327_v19 = vrot.slane %v14909_v23, 2 }
 0x41b   : > { %10914 = vmatprep.subr.bf16.mxu0 %v12054_v37 }
 0x41c   : > { %11023 = vmatpush3.bf16.msra.mxu1 %v11655_v61  ;;  %v11684_v61 = vld [vmem:[%s15677_s4 + $0x150] sm:$0xff]  }
 0x41d   : > { %11024 = vmatprep.subr.bf16.mxu1 %v12054_v37 }
 0x41e   : > { %10915 = vmatpush3.bf16.msra.mxu0 %v11656_v60  ;;  %v11686_v60 = vld [vmem:[%s15677_s4 + $0x208] sm:$0xff]  }
 0x41f   : > { %10969 = vmatmul.mubr.bf16.gmra.mxu1 %v5954_v6  ;;  %10916 = vmatprep.subr.bf16.mxu0 %v12054_v37  ;;  %v11685_v6 = vld [vmem:[#allocation3 + $0x30] ss:$0 sps:$4 sm:$0x11]  }
 0x420   : > { %10972 = vmatprep.mubr.msk.bf16.mxu1 %vm12055_vm8, %v12054_v37  ;;  %11025 = vmatpush3.bf16.msra.mxu1 %v11658_v49  ;;  %v6328_v49 = vsel %vm2586_vm4, %v6325_v54, %v6327_v19 }
 0x421   : > { %10861 = vmatmul.mubr.bf16.gmra.mxu0 %v14816_v2  ;;  %11026 = vmatprep.subr.bf16.mxu1 %v12054_v37  ;;  %v5959_v2 = vsel %vm2143_vm5, %v5953_v33, %v5958_v35  ;;  %v5717_v33 = vrot.slane %v11681_v42, 1  ;;  %v11689_v35 = vld [vmem:[%s15677_s4 + $0x140] sm:$0xff]  }
 0x422   : > { %10864 = vmatprep.mubr.msk.bf16.mxu0 %vm12055_vm8, %v12054_v37  ;;  %10917 = vmatpush3.bf16.msra.mxu0 %v11660_v57  ;;  %v11687_v57 = vld [vmem:[%s15677_s4 + $0x148] sm:$0xff]  }
 0x423   : > { %10918 = vmatprep.subr.bf16.mxu0 %v12054_v37  ;;  %v5718_v12 = vsel %vm1272_vm3, %v5715_v14, %v5717_v33 }
 0x424   : > { %11027 = vmatpush3.bf16.msra.mxu1 %v11661_v0  ;;  %v11688_v0 = vld [vmem:[%s15677_s4 + $0x200] sm:$0xff]  }
 0x425   : > { %11084 = vmatprep.subr.bf16.mxu1 %v12054_v37 }
 0x426   : > { %10919 = vmatpush3.bf16.msra.mxu0 %v11662_v13  ;;  %v6329_v13 = vrot.slane %v11685_v6, 2 }
 0x427   : > { %10973 = vmatmul.mubr.bf16.gmra.mxu1 %v5959_v2  ;;  %10976 = vmatprep.subr.bf16.mxu0 %v12054_v37  ;;  %v9649_v2 = vcombine.low %v6677_v20, %v15031_v9 }
 0x428   : > { %11028 = vmatprep.mubr.msk.bf16.mxu1 %vm12055_vm8, %v12054_v37  ;;  %v6330_v18 = vsel %vm2586_vm4, %v6327_v19, %v6329_v13 }
 0x429   : > { %10865 = vmatmul.mubr.bf16.gmra.mxu0 %v9460_v55  ;;  %v6096_v55 = vld [vmem:[#allocation3 + $0x4] sm:$0xc]  ;;  %v6698_v27 = vrot.slane %v9649_v2, 3 }
 0x42a   : > { %10920 = vmatprep.mubr.msk.bf16.mxu0 %vm12055_vm8, %v12054_v37  ;;  %v9569_v26 = vcombine.low %v6096_v55, %v14858_v50  ;;  %v11693_v50 = vld [vmem:[%s15677_s4 + $0x1f0] sm:$0xff]  }
 0x42b   : > { %v6700_v47 = vsel %vm3786_vm7, %v6698_v27, %v6699_v10 }
 0x42f   : > { %11029 = vmatmul.mubr.bf16.vlgmr.msra.gmra.mxu1 %v6322_v56  ;;  %v11692_v56 = vld [vmem:[%s15677_s4 + $0x1f8] sm:$0xff]  }
 0x430   : > { %11032 = vmatprep.mubr.msk.bf16.mxu1 %vm12055_vm8, %v12054_v37  ;;  %11085 = vmatpush3.bf16.msra.mxu1 %v11668_v51  ;;  %v6117_v51 = vrot.slane %v9569_v26, 2 }
 0x431   : > { %10921 = vmatmul.mubr.bf16.vlgmr.msra.gmra.mxu0 %v5712_v1  ;;  %11086 = vmatprep.subr.bf16.mxu1 %v12054_v37  ;;  %v6703_v1 = vrot.slane %v14902_v63, 3  ;;  %v6705_v63 = vrot.slane %v14909_v23, 3 }
 0x432   : > { %10924 = vmatprep.mubr.msk.bf16.mxu0 %vm12055_vm8, %v12054_v37  ;;  %10977 = vmatpush3.bf16.msra.mxu0 %v11670_v40  ;;  %v6119_v9 = vsel %vm2586_vm4, %v6117_v51, %v6118_v39  ;;  %v11694_v40 = vld [vmem:[%s15677_s4 + $0x1e8] sm:$0xff]  }
 0x433   : > { %10978 = vmatprep.subr.bf16.mxu0 %v12054_v37  ;;  %v6704_v52 = vsel %vm3786_vm7, %v6701_v5, %v6703_v1  ;;  %v6706_v3 = vsel %vm3786_vm7, %v6703_v1, %v6705_v63 }
 0x434   : > { %11087 = vmatpush3.bf16.msra.mxu1 %v11671_v7  ;;  %v11697_v7 = vld [vmem:[%s15677_s4 + $0x1d0] sm:$0xff]  }
 0x435   : > { %11088 = vmatprep.subr.bf16.mxu1 %v12054_v37 }
 0x436   : > { %10979 = vmatpush3.bf16.msra.mxu0 %v11672_v11  ;;  %v11698_v11 = vld [vmem:[#allocation3 + $0x30] ss:$0 sps:$4 sm:$0x33]  }
 0x437   : > { %11033 = vmatmul.mubr.bf16.gmra.mxu1 %v6324_v36  ;;  %10980 = vmatprep.subr.bf16.mxu0 %v12054_v37  ;;  %v6707_v23 = vrot.slane %v11698_v11, 3  ;;  %v6500_v36 = vshll.u32 %v15035_v62, 16 }
 0x438   : > { %11036 = vmatprep.mubr.msk.bf16.mxu1 %vm12055_vm8, %v12054_v37  ;;  %11089 = vmatpush3.bf16.msra.mxu1 %v11674_v31  ;;  %v6497_v31 = vshrl.u32 %v15035_v62, 16 }
 0x439   : > { %10925 = vmatmul.mubr.bf16.gmra.mxu0 %v5714_v44  ;;  %11090 = vmatprep.subr.bf16.mxu1 %v12054_v37  ;;  %v6492_v44 = vshll.u32 %v15042_v59, 16 }
 0x43a   : > { %10928 = vmatprep.mubr.msk.bf16.mxu0 %vm12055_vm8, %v12054_v37  ;;  %10981 = vmatpush3.bf16.msra.mxu0 %v11676_v48  ;;  %v6708_v48 = vsel %vm3786_vm7, %v6705_v63, %v6707_v23  ;;  %v6499_v17 = vrot.slane %v6497_v31, 2 }
 0x43b   : > { %10982 = vmatprep.subr.bf16.mxu0 %v12054_v37 }
 0x43c   : > { %11091 = vmatpush3.bf16.msra.mxu1 %v11677_v38  ;;  %v6502_v38 = vrot.slane %v6500_v36, 3 }
 0x43d   : > { %11092 = vmatprep.subr.bf16.mxu1 %v12054_v37 }
 0x43e   : > { %10983 = vmatpush3.bf16.msra.mxu0 %v11678_v21  ;;  %v6494_v21 = vrot.slane %v6492_v44, 3  ;;  %v6503_v62 = vor.u32 %v6502_v38, %v6499_v17 }
 0x43f   : > { %11037 = vmatmul.mubr.bf16.gmra.mxu1 %v6326_v41  ;;  %10984 = vmatprep.subr.bf16.mxu0 %v12054_v37  ;;  %v6536_v41 = vshll.u32 %v11698_v11, 16 }
 0x440   : > { %11040 = vmatprep.mubr.msk.bf16.mxu1 %vm12055_vm8, %v12054_v37  ;;  %11093 = vmatpush3.bf16.msra.mxu1 %v11680_v28 }
 0x441   : > { %10929 = vmatmul.mubr.bf16.gmra.mxu0 %v5716_v30  ;;  %11094 = vmatprep.subr.bf16.mxu1 %v12054_v37  ;;  %v6538_v30 = vrot.slane %v6536_v41, 3 }
 0x442   : > { %10932 = vmatprep.mubr.msk.bf16.mxu0 %vm12055_vm8, %v12054_v37  ;;  %10985 = vmatpush3.bf16.msra.mxu0 %v11682_v32 }
 0x443   : > { %10986 = vmatprep.subr.bf16.mxu0 %v12054_v37 }
 0x444   : > { %11095 = vmatpush3.bf16.msra.mxu1 %v11683_v45 }
 0x445   : > { %11096 = vmatprep.subr.bf16.mxu1 %v12054_v37 }
 0x446   : > { %10987 = vmatpush3.bf16.msra.mxu0 %v11684_v61 }
 0x447   : > { %11041 = vmatmul.mubr.bf16.gmra.mxu1 %v6328_v49  ;;  %10988 = vmatprep.subr.bf16.mxu0 %v12054_v37 }
 0x448   : > { %11044 = vmatprep.mubr.msk.bf16.mxu1 %vm12055_vm8, %v12054_v37  ;;  %11097 = vmatpush3.bf16.msra.mxu1 %v11686_v60 }
 0x449   : > { %10933 = vmatmul.mubr.bf16.gmra.mxu0 %v5718_v12  ;;  %11098 = vmatprep.subr.bf16.mxu1 %v12054_v37 }
 0x44a   : > { %10936 = vmatprep.mubr.msk.bf16.mxu0 %vm12055_vm8, %v12054_v37  ;;  %10989 = vmatpush3.bf16.msra.mxu0 %v11687_v57 }
 0x44b   : > { %10990 = vmatprep.subr.bf16.mxu0 %v12054_v37 }
 0x44c   : > { %11099 = vmatpush3.bf16.msra.mxu1 %v11688_v0 }
 0x44e   : > { %10991 = vmatpush3.bf16.msra.mxu0 %v11689_v35 }
 0x44f   : > { %11045 = vmatmul.mubr.bf16.gmra.mxu1 %v6330_v18  ;;  %11048 = vmatprep.subr.bf16.mxu0 %v12054_v37 }
 0x450   : > { %11100 = vmatprep.mubr.msk.bf16.mxu1 %vm12055_vm8, %v12054_v37 }
 0x451   : > { %10937 = vmatmul.mubr.bf16.gmra.mxu0 %v5717_v33 }
 0x452   : > { %10992 = vmatprep.mubr.msk.bf16.mxu0 %vm12055_vm8, %v12054_v37 }
 0x457   : > { %11101 = vmatmul.mubr.bf16.vlgmr.msra.gmra.mxu1 %v6700_v47 }
 0x458   : > { %11104 = vmatprep.mubr.msk.bf16.mxu1 %vm12055_vm8, %v12054_v37 }
 0x459   : > { %10993 = vmatmul.mubr.bf16.vlgmr.msra.gmra.mxu0 %v6119_v9 }
 0x45a   : > { %10996 = vmatprep.mubr.msk.bf16.mxu0 %vm12055_vm8, %v12054_v37  ;;  %11049 = vmatpush3.bf16.msra.mxu0 %v11692_v56 }
 0x45b   : > { %11050 = vmatprep.subr.bf16.mxu0 %v12054_v37 }
 0x45e   : > { %11051 = vmatpush3.bf16.msra.mxu0 %v11693_v50 }
 0x45f   : > { %11105 = vmatmul.mubr.bf16.gmra.mxu1 %v6702_v43  ;;  %11052 = vmatprep.subr.bf16.mxu0 %v12054_v37 }
 0x460   : > { %11108 = vmatprep.mubr.msk.bf16.mxu1 %vm12055_vm8, %v12054_v37 }
 0x461   : > { %10997 = vmatmul.mubr.bf16.gmra.mxu0 %v6121_v22 }
 0x462   : > { %11000 = vmatprep.mubr.msk.bf16.mxu0 %vm12055_vm8, %v12054_v37  ;;  %11053 = vmatpush3.bf16.msra.mxu0 %v11694_v40 }
 0x463   : > { %11054 = vmatprep.subr.bf16.mxu0 %v12054_v37 }
 0x466   : > { %11055 = vmatpush3.bf16.msra.mxu0 %v11695_v53 }
 0x467   : > { %11109 = vmatmul.mubr.bf16.gmra.mxu1 %v6704_v52  ;;  %11056 = vmatprep.subr.bf16.mxu0 %v12054_v37 }
 0x468   : > { %11112 = vmatprep.mubr.msk.bf16.mxu1 %vm12055_vm8, %v12054_v37 }
 0x469   : > { %11001 = vmatmul.mubr.bf16.gmra.mxu0 %v14895_v8  ;;  %v11699_v8 = vld [vmem:[%s15677_s4 + $0x1c8] sm:$0xff]  }
 0x46a   : > { %11004 = vmatprep.mubr.msk.bf16.mxu0 %vm12055_vm8, %v12054_v37  ;;  %11057 = vmatpush3.bf16.msra.mxu0 %v11696_v16 }
 0x46b   : > { %11058 = vmatprep.subr.bf16.mxu0 %v12054_v37 }
 0x46e   : > { %11059 = vmatpush3.bf16.msra.mxu0 %v11697_v7 }
 0x46f   : > { %11113 = vmatmul.mubr.bf16.gmra.mxu1 %v6706_v3  ;;  %11060 = vmatprep.subr.bf16.mxu0 %v12054_v37 }
 0x470   : > { %11116 = vmatprep.mubr.msk.bf16.mxu1 %vm12055_vm8, %v12054_v37 }
 0x471   : > { %11005 = vmatmul.mubr.bf16.gmra.mxu0 %v14912_v46  ;;  %v6489_v46 = vshrl.u32 %v15042_v59, 16  ;;  %v6513_v59 = vsel %vm3339_vm6, %v6503_v62, %v14931_v15 }
 0x472   : > { %11008 = vmatprep.mubr.msk.bf16.mxu0 %vm12055_vm8, %v12054_v37  ;;  %11061 = vmatpush3.bf16.msra.mxu0 %v11699_v8 }
 0x473   : > { %11062 = vmatprep.subr.bf16.mxu0 %v12054_v37  ;;  %v6491_v54 = vrot.slane %v6489_v46, 2 }
 0x475   : > { %v6495_v14 = vor.u32 %v6494_v21, %v6491_v54 }
 0x476   : > { %11063 = vmatpush3.bf16.msra.mxu0 %v11700_v58 }
 0x477   : > { %11117 = vmatmul.mubr.bf16.gmra.mxu1 %v6708_v48  ;;  %11120 = vmatprep.subr.bf16.mxu0 %v12054_v37  ;;  %v6504_v28 = vsel %vm3339_vm6, %v6495_v14, %v6503_v62 }
 0x479   : > { %11009 = vmatmul.mubr.bf16.gmra.mxu0 %v14920_v25  ;;  %v6533_v25 = vshrl.u32 %v11698_v11, 16 }
 0x47a   : > { %11064 = vmatprep.mubr.msk.bf16.mxu0 %vm12055_vm8, %v12054_v37 }
 0x47b   : > { %v6535_v32 = vrot.slane %v6533_v25, 2 }
 0x47d   : > { %v6539_v42 = vor.u32 %v6538_v30, %v6535_v32 }
 0x47f   : > { %v6540_v61 = vsel %vm3339_vm6, %v14941_v34, %v6539_v42 }
 0x481   : > { %11065 = vmatmul.mubr.bf16.vlgmr.msra.gmra.mxu0 %v6504_v28 }
 0x482   : > { %11068 = vmatprep.mubr.msk.bf16.mxu0 %vm12055_vm8, %v12054_v37 }
 0x489   : > { %11069 = vmatmul.mubr.bf16.gmra.mxu0 %v6513_v59 }
 0x48a   : > { %11072 = vmatprep.mubr.msk.bf16.mxu0 %vm12055_vm8, %v12054_v37 }
 0x491   : > { %11073 = vmatmul.mubr.bf16.gmra.mxu0 %v14939_v4 }
 0x492   : > { %11076 = vmatprep.mubr.msk.bf16.mxu0 %vm12055_vm8, %v12054_v37 }
 0x499   : > { %11077 = vmatmul.mubr.bf16.gmra.mxu0 %v14952_v29 }
 0x49a   : > { %11080 = vmatprep.mubr.msk.bf16.mxu0 %vm12055_vm8, %v12054_v37 }
 0x49d   : > { %v5609_v15 = vpop.f32.mrf.mxu1 }
 0x49f   : > { %v5324_v45 = vpop.f32.mrf.mxu0  ;;  %v10886_v19 = vpop.f32.mrf.mxu1 }
 0x4a1   : > { %11081 = vmatmul.mubr.bf16.gmra.mxu0 %v6540_v61  ;;  %v10814_v4 = vpop.f32.mrf.mxu0  ;;  %v5612_v33 = vpop.f32.mrf.mxu1 }
 0x4a2   : > { %11130 = vmatprep.mubr.msk.bf16.mxu0 %vm12055_vm8, %v12054_v37 }
 0x4a3   : > { %v5327_v60 = vpop.f32.mrf.mxu0  ;;  %v10887_v49 = vpop.f32.mrf.mxu1 }
 0x4a5   : > { %v10815_v6 = vpop.f32.mrf.mxu0  ;;  %v5617_v29 = vpop.f32.mrf.mxu1 }
 0x4a7   : > { %v5332_v57 = vpop.f32.mrf.mxu0  ;;  %v10890_v12 = vpop.f32.mrf.mxu1 }
 0x4a9   : > { %v10818_v0 = vpop.f32.mrf.mxu0  ;;  %v5620_v13 = vpop.f32.mrf.mxu1 }
 0x4ab   : > { %v5335_v35 = vpop.f32.mrf.mxu0  ;;  %v10891_v20 = vpop.f32.mrf.mxu1 }
 0x4ad   : > { %v10819_v18 = vpop.f32.mrf.mxu0  ;;  %v5625_v2 = vpop.f32.mrf.mxu1 }
 0x4af   : > { %v5340_v55 = vpop.f32.mrf.mxu0  ;;  %v10894_v34 = vpop.f32.mrf.mxu1 }
 0x4b1   : > { %v10822_v10 = vpop.f32.mrf.mxu0  ;;  %v5628_v26 = vpop.f32.mrf.mxu1 }
 0x4b3   : > { %v5343_v27 = vpop.f32.mrf.mxu0  ;;  %v10895_v39 = vpop.f32.mrf.mxu1 }
 0x4b5   : > { %v10823_v47 = vpop.f32.mrf.mxu0 }
 0x4b7   : > { %v5633_v51 = vpop.f32.mrf.mxu1 }
 0x4b9   : > { %v5348_v56 = vpop.f32.mrf.mxu0  ;;  %v10898_v9 = vpop.f32.mrf.mxu1 }
 0x4bb   : > { %v10826_v5 = vpop.f32.mrf.mxu0  ;;  %v5636_v50 = vpop.f32.mrf.mxu1 }
 0x4bd   : > { %v5351_v43 = vpop.f32.mrf.mxu0  ;;  %v10899_v40 = vpop.f32.mrf.mxu1 }
 0x4bf   : > { %v10827_v22 = vpop.f32.mrf.mxu0  ;;  %v5641_v1 = vpop.f32.mrf.mxu1 }
 0x4c1   : > { %v5356_v53 = vpop.f32.mrf.mxu0  ;;  %v10902_v52 = vpop.f32.mrf.mxu1 }
 0x4c3   : > { %v10830_v16 = vpop.f32.mrf.mxu0  ;;  %v15233_v63 = vpop.f32.mrf.mxu1 }
 0x4c5   : > { %v5359_v7 = vpop.f32.mrf.mxu0  ;;  %v10903_v3 = vpop.f32.mrf.mxu1 }
 0x4c7   : > { %v10831_v11 = vpop.f32.mrf.mxu0  ;;  %v15235_v8 = vpop.f32.mrf.mxu1 }
 0x4c9   : > { %v5453_v23 = vpop.f32.mrf.mxu0  ;;  %v10958_v58 = vpop.f32.mrf.mxu1 }
 0x4ca   : > { %v5454_v31 = vadd.f32 %v5453_v23, %v5324_v45 }
 0x4cb   : > { %v10850_v36 = vpop.f32.mrf.mxu0  ;;  %v15237_v48 = vpop.f32.mrf.mxu1 }
 0x4cc   : > { %v5648_v46 = vadd.f32 %v5609_v15, %v5454_v31 }
 0x4cd   : > { %v5456_v44 = vpop.f32.mrf.mxu0  ;;  %v10959_v17 = vpop.f32.mrf.mxu1 }
 0x4ce   : > { %v5457_v38 = vadd.f32 %v5456_v44, %v5327_v60 }
 0x4cf   : > { %v10851_v54 = vpop.f32.mrf.mxu0  ;;  %v15239_v21 = vpop.f32.mrf.mxu1 }
 0x4d0   : > { %v5649_v62 = vadd.f32 %v5612_v33, %v5457_v38 }
 0x4d1   : > { %v5461_v14 = vpop.f32.mrf.mxu0  ;;  %v10962_v28 = vpop.f32.mrf.mxu1 }
 0x4d2   : > { %v5462_v59 = vadd.f32 %v5461_v14, %v5332_v57 }
 0x4d3   : > { %v10854_v25 = vpop.f32.mrf.mxu0  ;;  %v15241_v41 = vpop.f32.mrf.mxu1 }
 0x4d4   : > { %v5650_v32 = vadd.f32 %v5617_v29, %v5462_v59 }
 0x4d5   : > { %v5464_v30 = vpop.f32.mrf.mxu0  ;;  %v10963_v42 = vpop.f32.mrf.mxu1 }
 0x4d6   : > { %v5465_v45 = vadd.f32 %v5464_v30, %v5335_v35 }
 0x4d7   : > { %v10855_v19 = vpop.f32.mrf.mxu0  ;;  %v15243_v61 = vpop.f32.mrf.mxu1 }
 0x4d8   : > { %v5651_v15 = vadd.f32 %v5620_v13, %v5465_v45 }
 0x4d9   : > { %v5469_v4 = vpop.f32.mrf.mxu0  ;;  %v10966_v60 = vpop.f32.mrf.mxu1 }
 0x4da   : > { %v5470_v49 = vadd.f32 %v5469_v4, %v5340_v55 }
 0x4db   : > { %v10858_v6 = vpop.f32.mrf.mxu0  ;;  %v15245_v12 = vpop.f32.mrf.mxu1 }
 0x4dc   : > { %v5652_v33 = vadd.f32 %v5625_v2, %v5470_v49 }
 0x4dd   : > { %v5472_v0 = vpop.f32.mrf.mxu0  ;;  %v10967_v57 = vpop.f32.mrf.mxu1 }
 0x4de   : > { %v5473_v20 = vadd.f32 %v5472_v0, %v5343_v27 }
 0x4df   : > { %v10859_v18 = vpop.f32.mrf.mxu0  ;;  %v15247_v34 = vpop.f32.mrf.mxu1 }
 0x4e0   : > { %v5653_v29 = vadd.f32 %v5628_v26, %v5473_v20 }
 0x4e1   : > { %v5477_v10 = vpop.f32.mrf.mxu0  ;;  %v10970_v35 = vpop.f32.mrf.mxu1 }
 0x4e2   : > { %v5478_v39 = vadd.f32 %v5477_v10, %v5348_v56 }
 0x4e3   : > { %v10862_v47 = vpop.f32.mrf.mxu0  ;;  %v15249_v9 = vpop.f32.mrf.mxu1 }
 0x4e4   : > { %v5654_v13 = vadd.f32 %v5633_v51, %v5478_v39 }
 0x4e5   : > { %v5480_v5 = vpop.f32.mrf.mxu0  ;;  %v10971_v55 = vpop.f32.mrf.mxu1 }
 0x4e6   : > { %v5481_v40 = vadd.f32 %v5480_v5, %v5351_v43 }
 0x4e7   : > { %v10863_v22 = vpop.f32.mrf.mxu0  ;;  %v15251_v52 = vpop.f32.mrf.mxu1 }
 0x4e8   : > { %v5655_v2 = vadd.f32 %v5636_v50, %v5481_v40 }
 0x4e9   : > { %v5485_v16 = vpop.f32.mrf.mxu0  ;;  %v10974_v27 = vpop.f32.mrf.mxu1 }
 0x4ea   : > { %v5486_v3 = vadd.f32 %v5485_v16, %v5356_v53 }
 0x4eb   : > { %v10866_v11 = vpop.f32.mrf.mxu0  ;;  %v15253_v23 = vpop.f32.mrf.mxu1 }
 0x4ec   : > { %v5656_v26 = vadd.f32 %v5641_v1, %v5486_v3 }
 0x4ed   : > { %v5488_v58 = vpop.f32.mrf.mxu0  ;;  %v10975_v56 = vpop.f32.mrf.mxu1 }
 0x4ee   : > { %v5489_v31 = vadd.f32 %v5488_v58, %v5359_v7 }
 0x4ef   : > { %v10867_v36 = vpop.f32.mrf.mxu0  ;;  %v15255_v44 = vpop.f32.mrf.mxu1 }
 0x4f0   : > { %v5657_v51 = vadd.f32 %v15233_v63, %v5489_v31 }
 0x4f1   : > { %v5806_v43 = vpop.f32.mrf.mxu0  ;;  %v11030_v17 = vpop.f32.mrf.mxu1 }
 0x4f2   : > { %v5845_v38 = vadd.f32 %v5806_v43, %v5648_v46 }
 0x4f3   : > { %v10922_v54 = vpop.f32.mrf.mxu0  ;;  %v15258_v50 = vpop.f32.mrf.mxu1 }
 0x4f4   : > { %v6086_v53 = vadd.f32 %v15235_v8, %v5845_v38 }
 0x4f5   : > { %v5809_v14 = vpop.f32.mrf.mxu0  ;;  %v11031_v28 = vpop.f32.mrf.mxu1 }
 0x4f6   : > { %v5846_v59 = vadd.f32 %v5809_v14, %v5649_v62 }
 0x4f7   : > { %v10923_v1 = vpop.f32.mrf.mxu0  ;;  %v15261_v25 = vpop.f32.mrf.mxu1 }
 0x4f8   : > { %v6087_v7 = vadd.f32 %v15237_v48, %v5846_v59 }
 0x4f9   : > { %v5814_v30 = vpop.f32.mrf.mxu0  ;;  %v11034_v42 = vpop.f32.mrf.mxu1 }
 0x4fa   : > { %v5847_v45 = vadd.f32 %v5814_v30, %v5650_v32 }
 0x4fb   : > { %v10926_v63 = vpop.f32.mrf.mxu0  ;;  %v15264_v19 = vpop.f32.mrf.mxu1 }
 0x4fc   : > { %v6088_v46 = vadd.f32 %v15239_v21, %v5847_v45 }
 0x4fd   : > { %v5817_v4 = vpop.f32.mrf.mxu0  ;;  %v11035_v60 = vpop.f32.mrf.mxu1 }
 0x4fe   : > { %v5848_v49 = vadd.f32 %v5817_v4, %v5651_v15 }
 0x4ff   : > { %v10927_v8 = vpop.f32.mrf.mxu0  ;;  %v15267_v6 = vpop.f32.mrf.mxu1 }
 0x500   : > { %v6089_v62 = vadd.f32 %v15241_v41, %v5848_v49 }
 0x501   : > { %v5822_v0 = vpop.f32.mrf.mxu0  ;;  %v11038_v57 = vpop.f32.mrf.mxu1 }
 0x502   : > { %v5849_v20 = vadd.f32 %v5822_v0, %v5652_v33 }
 0x503   : > { %v10930_v48 = vpop.f32.mrf.mxu0  ;;  %v15270_v18 = vpop.f32.mrf.mxu1 }
 0x504   : > { %v6090_v32 = vadd.f32 %v15243_v61, %v5849_v20 }
 0x505   : > { %v5825_v10 = vpop.f32.mrf.mxu0  ;;  %v11039_v35 = vpop.f32.mrf.mxu1 }
 0x506   : > { %v5850_v39 = vadd.f32 %v5825_v10, %v5653_v29 }
 0x507   : > { %v10931_v21 = vpop.f32.mrf.mxu0  ;;  %v15273_v47 = vpop.f32.mrf.mxu1 }
 0x508   : > { %v6091_v15 = vadd.f32 %v15245_v12, %v5850_v39 }
 0x509   : > { %v5830_v5 = vpop.f32.mrf.mxu0  ;;  %v11042_v55 = vpop.f32.mrf.mxu1 }
 0x50a   : > { %v5851_v40 = vadd.f32 %v5830_v5, %v5654_v13 }
 0x50b   : > { %v10934_v41 = vpop.f32.mrf.mxu0  ;;  %v15276_v22 = vpop.f32.mrf.mxu1 }
 0x50c   : > { %v6092_v33 = vadd.f32 %v15247_v34, %v5851_v40 }
 0x50d   : > { %v5833_v16 = vpop.f32.mrf.mxu0  ;;  %v11043_v27 = vpop.f32.mrf.mxu1 }
 0x50e   : > { %v5852_v3 = vadd.f32 %v5833_v16, %v5655_v2 }
 0x50f   : > { %v10935_v61 = vpop.f32.mrf.mxu0  ;;  %v15279_v11 = vpop.f32.mrf.mxu1 }
 0x510   : > { %v6093_v29 = vadd.f32 %v15249_v9, %v5852_v3 }
 0x511   : > { %v5838_v58 = vpop.f32.mrf.mxu0  ;;  %v11046_v56 = vpop.f32.mrf.mxu1 }
 0x512   : > { %v5853_v31 = vadd.f32 %v5838_v58, %v5656_v26 }
 0x513   : > { %v10938_v12 = vpop.f32.mrf.mxu0  ;;  %v15282_v36 = vpop.f32.mrf.mxu1 }
 0x514   : > { %v6094_v13 = vadd.f32 %v15251_v52, %v5853_v31 }
 0x515   : > { %v5841_v43 = vpop.f32.mrf.mxu0  ;;  %v11047_v17 = vpop.f32.mrf.mxu1 }
 0x516   : > { %v5854_v38 = vadd.f32 %v5841_v43, %v5657_v51 }
 0x517   : > { %v10939_v34 = vpop.f32.mrf.mxu0  ;;  %v15285_v54 = vpop.f32.mrf.mxu1 }
 0x518   : > { %v6095_v2 = vadd.f32 %v15253_v23, %v5854_v38 }
 0x519   : > { %v6215_v14 = vpop.f32.mrf.mxu0  ;;  %v11102_v28 = vpop.f32.mrf.mxu1 }
 0x51a   : > { %v6254_v59 = vadd.f32 %v6215_v14, %v6086_v53 }
 0x51b   : > { %v10994_v9 = vpop.f32.mrf.mxu0  ;;  %v15288_v1 = vpop.f32.mrf.mxu1 }
 0x51c   : > { %v6457_v26 = vadd.f32 %v15255_v44, %v6254_v59 }
 0x51d   : > { %v6218_v30 = vpop.f32.mrf.mxu0  ;;  %v11103_v42 = vpop.f32.mrf.mxu1 }
 0x51e   : > { %v6255_v45 = vadd.f32 %v6218_v30, %v6087_v7 }
 0x51f   : > { %v10995_v52 = vpop.f32.mrf.mxu0  ;;  %v15291_v63 = vpop.f32.mrf.mxu1 }
 0x520   : > { %v6458_v51 = vadd.f32 %v15258_v50, %v6255_v45 }
 0x521   : > { %v6223_v4 = vpop.f32.mrf.mxu0  ;;  %v11106_v60 = vpop.f32.mrf.mxu1 }
 0x522   : > { %v6256_v49 = vadd.f32 %v6223_v4, %v6088_v46 }
 0x523   : > { %v10998_v23 = vpop.f32.mrf.mxu0  ;;  %v15294_v8 = vpop.f32.mrf.mxu1 }
 0x524   : > { %v6459_v53 = vadd.f32 %v15261_v25, %v6256_v49 }
 0x525   : > { %v6226_v0 = vpop.f32.mrf.mxu0  ;;  %v11107_v57 = vpop.f32.mrf.mxu1 }
 0x526   : > { %v6257_v20 = vadd.f32 %v6226_v0, %v6089_v62 }
 0x527   : > { %v10999_v44 = vpop.f32.mrf.mxu0  ;;  %v15297_v48 = vpop.f32.mrf.mxu1 }
 0x528   : > { %v6460_v7 = vadd.f32 %v15264_v19, %v6257_v20 }
 0x529   : > { %v6231_v10 = vpop.f32.mrf.mxu0  ;;  %v11110_v35 = vpop.f32.mrf.mxu1 }
 0x52a   : > { %v6258_v39 = vadd.f32 %v6231_v10, %v6090_v32 }
 0x52b   : > { %v11002_v50 = vpop.f32.mrf.mxu0  ;;  %v15300_v21 = vpop.f32.mrf.mxu1 }
 0x52c   : > { %v6461_v46 = vadd.f32 %v15267_v6, %v6258_v39 }
 0x52d   : > { %v6234_v5 = vpop.f32.mrf.mxu0  ;;  %v11111_v55 = vpop.f32.mrf.mxu1 }
 0x52e   : > { %v6259_v40 = vadd.f32 %v6234_v5, %v6091_v15 }
 0x52f   : > { %v11003_v25 = vpop.f32.mrf.mxu0  ;;  %v15303_v41 = vpop.f32.mrf.mxu1 }
 0x530   : > { %v6462_v62 = vadd.f32 %v15270_v18, %v6259_v40 }
 0x531   : > { %v6239_v16 = vpop.f32.mrf.mxu0  ;;  %v11114_v27 = vpop.f32.mrf.mxu1 }
 0x532   : > { %v6260_v3 = vadd.f32 %v6239_v16, %v6092_v33  ;;  %v11706_v33 = vld [vmem:[#allocation4 + $0x78] sm:$0xff]  }
 0x533   : > { %v11006_v19 = vpop.f32.mrf.mxu0  ;;  %v15306_v61 = vpop.f32.mrf.mxu1  ;;  %11142 = vmatprep.subr.bf16.mxu1 %v11706_v33 }
 0x534   : > { %v6463_v32 = vadd.f32 %v15273_v47, %v6260_v3  ;;  %11143 = vmatpush3.bf16.msra.mxu1 %v11706_v33 }
 0x535   : > { %v6242_v58 = vpop.f32.mrf.mxu0  ;;  %v11115_v56 = vpop.f32.mrf.mxu1 }
 0x536   : > { %v6261_v31 = vadd.f32 %v6242_v58, %v6093_v29 }
 0x537   : > { %v11007_v6 = vpop.f32.mrf.mxu0  ;;  %v15309_v12 = vpop.f32.mrf.mxu1 }
 0x538   : > { %v15312_v15 = vadd.f32 %v15276_v22, %v6261_v31 }
 0x539   : > { %v6247_v43 = vpop.f32.mrf.mxu0  ;;  %v11118_v17 = vpop.f32.mrf.mxu1 }
 0x53a   : > { %v6262_v18 = vadd.f32 %v6247_v43, %v6094_v13 }
 0x53b   : > { %v11010_v38 = vpop.f32.mrf.mxu0  ;;  %v15314_v34 = vpop.f32.mrf.mxu1 }
 0x53c   : > { %v15317_v14 = vadd.f32 %v15279_v11, %v6262_v18 }
 0x53d   : > { %v6250_v47 = vpop.f32.mrf.mxu0  ;;  %v11119_v28 = vpop.f32.mrf.mxu1 }
 0x53e   : > { %v6263_v29 = vadd.f32 %v6250_v47, %v6095_v2 }
 0x53f   : > { %v11011_v59 = vpop.f32.mrf.mxu0 }
 0x540   : > { %v15320_v9 = vadd.f32 %v15282_v36, %v6263_v29 }
 0x541   : > { %v6628_v22 = vpop.f32.mrf.mxu0 }
 0x542   : > { %v6667_v30 = vadd.f32 %v6628_v22, %v6457_v26 }
 0x543   : > { %v11066_v42 = vpop.f32.mrf.mxu0 }
 0x544   : > { %v6835_v13 = vadd.f32 %v15285_v54, %v6667_v30 }
 0x545   : > { %v6631_v45 = vpop.f32.mrf.mxu0 }
 0x546   : > { %6845 = vst [vmem:[#allocation2] sm:$0xff] %v6835_v13  ;;  %v6668_v52 = vadd.f32 %v6631_v45, %v6458_v51 }
 0x547   : > { %v11067_v4 = vpop.f32.mrf.mxu0 }
 0x548   : > { %v6836_v11 = vadd.f32 %v15288_v1, %v6668_v52 }
 0x549   : > { %v6636_v60 = vpop.f32.mrf.mxu0 }
 0x54a   : > { %6846 = vst [vmem:[#allocation2 + $0x8] sm:$0xff] %v6836_v11  ;;  %v6669_v49 = vadd.f32 %v6636_v60, %v6459_v53 }
 0x54b   : > { %v11070_v2 = vpop.f32.mrf.mxu0 }
 0x54c   : > { %v6837_v23 = vadd.f32 %v15291_v63, %v6669_v49 }
 0x54d   : > { %v6639_v0 = vpop.f32.mrf.mxu0 }
 0x54e   : > { %6847 = vst [vmem:[#allocation2 + $0x10] sm:$0xff] %v6837_v23  ;;  %v6670_v36 = vadd.f32 %v6639_v0, %v6460_v7 }
 0x54f   : > { %v11071_v57 = vpop.f32.mrf.mxu0 }
 0x550   : > { %v6838_v26 = vadd.f32 %v15294_v8, %v6670_v36  ;;  %v15333_v8 = vld [vmem:[%s15678_s5] ss:$0 sm:$0xff] }
 0x551   : > { %v6644_v20 = vpop.f32.mrf.mxu0  ;;  %v6865_v51 = vld [vmem:[#allocation2 + $0x1] sm:$0xff] }
 0x552   : > { %6848 = vst [vmem:[#allocation2 + $0x18] sm:$0xff] %v6838_v26  ;;  %v6671_v54 = vadd.f32 %v6644_v20, %v6461_v46  ;;  %v6874_v39 = vmax.f32 %v6835_v13, %v6865_v51 }
 0x553   : > { %v11074_v44 = vpop.f32.mrf.mxu0 }
 0x554   : > { %v15327_v10 = vadd.f32 %v15297_v48, %v6671_v54 }
 0x555   : > { %v6647_v1 = vpop.f32.mrf.mxu0  ;;  %v6883_v35 = vld [vmem:[#allocation2 + $0xa] sm:$0xff] }
 0x556   : > { %v6892_v53 = vld [vmem:[#allocation2 + $0xb] sm:$0xff]  ;;  %6849 = vst [vmem:[#allocation2 + $0x20] sm:$0xff] %v15327_v10  ;;  %v6672_v63 = vadd.f32 %v6647_v1, %v6462_v62 }
 0x557   : > { %v6901_v50 = vmax.f32 %v6883_v35, %v6892_v53  ;;  %v11075_v7 = vpop.f32.mrf.mxu0  ;;  %v6866_v46 = vld [vmem:[#allocation2 + $0x9] sm:$0xff] }
 0x558   : > { %v15336_v5 = vadd.f32 %v15300_v21, %v6672_v63  ;;  %v6875_v62 = vmax.f32 %v6836_v11, %v6866_v46 }
 0x559   : > { %v6910_v48 = vmax.f32 %v6874_v39, %v6901_v50  ;;  %v6652_v55 = vpop.f32.mrf.mxu0  ;;  %v6884_v40 = vld [vmem:[#allocation2 + $0x12] sm:$0xff] }
 0x55a   : > { %v6893_v25 = vld [vmem:[#allocation2 + $0x13] sm:$0xff]  ;;  %6850 = vst [vmem:[#allocation2 + $0x28] sm:$0xff] %v15336_v5  ;;  %v6673_v16 = vadd.f32 %v6652_v55, %v6463_v32 }
 0x55b   : > { %v6902_v27 = vmax.f32 %v6884_v40, %v6893_v25  ;;  %v15340_v3 = vadd.f32 %v15333_v8, %v6910_v48  ;;  %v11078_v19 = vpop.f32.mrf.mxu0  ;;  %v6867_v58 = vld [vmem:[#allocation2 + $0x11] sm:$0xff] }
 0x55c   : > { %v15343_v56 = vadd.f32 %v15303_v41, %v6673_v16  ;;  %v6876_v18 = vmax.f32 %v6837_v23, %v6867_v58 }
 0x55d   : > { %v6911_v31 = vmax.f32 %v6875_v62, %v6902_v27  ;;  %v6943_v21 = vmul.f32 0.044715, %v15340_v3  ;;  %v6655_v6 = vpop.f32.mrf.mxu0  ;;  %v6885_v43 = vld [vmem:[#allocation2 + $0x1a] sm:$0xff] }
 0x55e   : > { %v6894_v17 = vld [vmem:[#allocation2 + $0x1b] sm:$0xff]  ;;  %6851 = vst [vmem:[#allocation2 + $0x30] sm:$0xff] %v15343_v56  ;;  %v6674_v32 = vadd.f32 %v6655_v6, %v15312_v15 }
 0x55f   : > { %v6903_v38 = vmax.f32 %v6885_v43, %v6894_v17  ;;  %v15349_v33 = vadd.f32 %v15333_v8, %v6911_v31  ;;  %v11079_v47 = vpop.f32.mrf.mxu0  ;;  %v6868_v28 = vld [vmem:[#allocation2 + $0x19] sm:$0xff]  ;;  %v6952_v41 = vmul.f32 %v6943_v21, %v15340_v3 }
 0x560   : > { %v15353_v29 = vadd.f32 %v15306_v61, %v6674_v32  ;;  %v6877_v52 = vmax.f32 %v6838_v26, %v6868_v28 }
 0x561   : > { %v6912_v59 = vmax.f32 %v6876_v18, %v6903_v38  ;;  %v6944_v22 = vmul.f32 0.044715, %v15349_v33  ;;  %v6660_v30 = vpop.f32.mrf.mxu0  ;;  %v6886_v42 = vld [vmem:[#allocation2 + $0x22] sm:$0xff]  ;;  %v6961_v15 = vmul.f32 %v6952_v41, %v15340_v3 }
 0x562   : > { %v6895_v13 = vld [vmem:[#allocation2 + $0x23] sm:$0xff]  ;;  %6852 = vst [vmem:[#allocation2 + $0x38] sm:$0xff] %v15353_v29  ;;  %v6675_v45 = vadd.f32 %v6660_v30, %v15317_v14 }
 0x563   : > { %v6904_v4 = vmax.f32 %v6886_v42, %v6895_v13  ;;  %v15360_v11 = vadd.f32 %v15333_v8, %v6912_v59  ;;  %v11082_v60 = vpop.f32.mrf.mxu0  ;;  %v6869_v61 = vld [vmem:[#allocation2 + $0x21] sm:$0xff]  ;;  %v6953_v49 = vmul.f32 %v6944_v22, %v15349_v33  ;;  %v6970_v2 = vadd.f32 %v6961_v15, %v15340_v3 }
 0x564   : > { %v6843_v23 = vadd.f32 %v15309_v12, %v6675_v45  ;;  %v6878_v51 = vmax.f32 %v15327_v10, %v6869_v61 }
 0x565   : > { %v6913_v0 = vmax.f32 %v6877_v52, %v6904_v4  ;;  %v6945_v36 = vmul.f32 0.044715, %v15360_v11  ;;  %v6663_v57 = vpop.f32.mrf.mxu0  ;;  %v6887_v20 = vld [vmem:[#allocation2 + $0x2a] sm:$0xff]  ;;  %v6962_v14 = vmul.f32 %v6953_v49, %v15349_v33  ;;  %v6979_v26 = vmul.f32 0.7978846, %v6970_v2 }
 0x566   : > { %v6896_v54 = vld [vmem:[#allocation2 + $0x2b] sm:$0xff]  ;;  %6853 = vst [vmem:[#allocation2 + $0x40] sm:$0xff] %v6843_v23  ;;  %v6676_v44 = vadd.f32 %v6663_v57, %v15320_v9 }
 0x567   : > { %v6905_v1 = vmax.f32 %v6887_v20, %v6896_v54  ;;  %v15370_v35 = vadd.f32 %v15333_v8, %v6913_v0  ;;  %v11083_v53 = vpop.f32.mrf.mxu0  ;;  %v6870_v12 = vld [vmem:[#allocation2 + $0x29] sm:$0xff]  ;;  %v6954_v63 = vmul.f32 %v6945_v36, %v15360_v11  ;;  %v6971_v39 = vadd.f32 %v6962_v14, %v15349_v33 }
 0x568   : > { %11905 = vtanh.f32 %v6979_v26  ;;  %v6844_v50 = vadd.f32 %v15314_v34, %v6676_v44  ;;  %v6879_v40 = vmax.f32 %v15336_v5, %v6870_v12 }
 0x569   : > { %v6914_v7 = vmax.f32 %v6878_v51, %v6905_v1  ;;  %v6946_v46 = vmul.f32 0.044715, %v15370_v35  ;;  %v6888_v48 = vld [vmem:[#allocation2 + $0x32] sm:$0xff]  ;;  %v6963_v10 = vmul.f32 %v6954_v63, %v15360_v11  ;;  %v6980_v55 = vmul.f32 0.7978846, %v6971_v39 }
 0x56a   : > { %v6897_v9 = vld [vmem:[#allocation2 + $0x33] sm:$0xff]  ;;  %6854 = vst [vmem:[#allocation2 + $0x48] sm:$0x3f] %v6844_v50  ;;  %v6934_v39 = vmul.f32 0.5, %v15340_v3 }
 0x56b   : > { %v6906_v25 = vmax.f32 %v6888_v48, %v6897_v9  ;;  %v15379_v16 = vadd.f32 %v15333_v8, %v6914_v7  ;;  %v6955_v62 = vmul.f32 %v6946_v46, %v15370_v35  ;;  %v6972_v27 = vadd.f32 %v6963_v10, %v15360_v11  ;;  %v6871_v34 = vld [vmem:[#allocation2 + $0x31] sm:$0xff] }
 0x56c   : > { %11907 = vtanh.f32 %v6980_v55  ;;  %v6880_v18 = vmax.f32 %v15343_v56, %v6871_v34  ;;  %v6935_v46 = vmul.f32 0.5, %v15349_v33 }
 0x56d   : > { %v6915_v19 = vmax.f32 %v6879_v40, %v6906_v25  ;;  %v6947_v58 = vmul.f32 0.044715, %v15379_v16  ;;  %v6964_v31 = vmul.f32 %v6955_v62, %v15370_v35  ;;  %v6864_v21 = vld [vmem:[#allocation2 + $0x40] sm:$0x7]  ;;  %v6981_v28 = vmul.f32 0.7978846, %v6972_v27 }
 0x56e   : > { %v6873_v6 = vld [vmem:[#allocation2 + $0x41] sm:$0x7]  ;;  %v6872_v41 = vld [vmem:[#allocation2 + $0x39] sm:$0xff] }
 0x56f   : > { %v6889_v43 = vld [vmem:[#allocation2 + $0x3a] sm:$0xff]  ;;  %v15386_v5 = vadd.f32 %v15333_v8, %v6915_v19  ;;  %v6956_v32 = vmul.f32 %v6947_v58, %v15379_v16  ;;  %v6973_v47 = vadd.f32 %v6964_v31, %v15370_v35  ;;  %v6882_v30 = vmax.f32 %v6864_v21, %v6873_v6 }
 0x570   : > { %v6898_v17 = vld [vmem:[#allocation2 + $0x3b] sm:$0xff]  ;;  %11909 = vtanh.f32 %v6981_v28  ;;  %v6881_v49 = vmax.f32 %v15353_v29, %v6872_v41 }
 0x571   : > { %v6907_v38 = vmax.f32 %v6889_v43, %v6898_v17  ;;  %v6948_v59 = vmul.f32 0.044715, %v15386_v5  ;;  %v6965_v22 = vmul.f32 %v6956_v32, %v15379_v16  ;;  %v6891_v42 = vld [vmem:[#allocation2 + $0x4a] sm:$0x7]  ;;  %v6890_v15 = vld [vmem:[#allocation2 + $0x42] sm:$0xff]  ;;  %v6936_v43 = vmul.f32 0.5, %v15360_v11 }
 0x572   : > { %v6900_v13 = vld [vmem:[#allocation2 + $0x4b] sm:$0x7]  ;;  %v6899_v4 = vld [vmem:[#allocation2 + $0x43] sm:$0xff]  ;;  %v6982_v61 = vmul.f32 0.7978846, %v6973_v47  ;;  %v6937_v17 = vmul.f32 0.5, %v15370_v35 }
 0x573   : > { %v6916_v45 = vmax.f32 %v6880_v18, %v6907_v38  ;;  %v6909_v52 = vmax.f32 %v6891_v42, %v6900_v13  ;;  %v6957_v60 = vmul.f32 %v6948_v59, %v15386_v5  ;;  %v6974_v56 = vadd.f32 %v6965_v22, %v15379_v16 }
 0x574   : > { %v6908_v2 = vmax.f32 %v6890_v15, %v6899_v4  ;;  %11911 = vtanh.f32 %v6982_v61  ;;  %v6938_v22 = vmul.f32 0.5, %v15379_v16  ;;  %v7049_v61 = vsel %vm865_vm0, 4294967295, %v12056_v24  ;;  %v11704_v24 = vld [vmem:[#allocation4 + $0x38] sm:$0xff]  }
 0x575   : > { %v15397_v23 = vadd.f32 %v15333_v8, %v6916_v45  ;;  %v11906_v0 = vpop.eup %11905  ;;  %v6918_v36 = vmax.f32 %v6882_v30, %v6909_v52  ;;  %v6966_v57 = vmul.f32 %v6957_v60, %v15386_v5  ;;  %v6983_v20 = vmul.f32 0.7978846, %v6974_v56 }
 0x576   : > { %v6917_v54 = vmax.f32 %v6881_v49, %v6908_v2  ;;  %v6997_v1 = vadd.f32 1.0, %v11906_v0  ;;  %v6939_v30 = vmul.f32 0.5, %v15386_v5 }
 0x577   : > { %v6949_v14 = vmul.f32 0.044715, %v15397_v23  ;;  %v6933_v26 = vadd.f32 %v15333_v8, %v6918_v36  ;;  %v6975_v44 = vadd.f32 %v6966_v57, %v15386_v5  ;;  %11913 = vtanh.f32 %v6983_v20 }
 0x578   : > { %v6932_v29 = vadd.f32 %v15333_v8, %v6917_v54  ;;  %v7006_v8 = vmul.f32 %v6997_v1, %v6934_v39  ;;  %v6940_v49 = vmul.f32 0.5, %v15397_v23  ;;  %v7050_v5 = vsel %vm7048_vm10, %v7049_v61, 0  ;;  %v11708_v1 = vld [vmem:[#allocation4 + $0x70] sm:$0xff]   ;;  %v11712_v39 = vld [vmem:[#allocation4 + $0x60] sm:$0xff]  }
 0x579   : > { %v6958_v51 = vmul.f32 %v6949_v14, %v15397_v23  ;;  %v11908_v53 = vpop.eup %11907  ;;  %v6951_v12 = vmul.f32 0.044715, %v6933_v26  ;;  %v6984_v63 = vmul.f32 0.7978846, %v6975_v44  ;;  %v6942_v60 = vmul.f32 0.5, %v6933_v26  ;;  %v11702_v44 = vld [vmem:[%s15679_s6 + $0x8] sm:$0xff]   ;;  %11144 = vmatprep.subr.bf16.mxu1 %v11708_v1 }
 0x57a   : > { %v6950_v50 = vmul.f32 0.044715, %v6932_v29  ;;  %v6998_v48 = vadd.f32 1.0, %v11908_v53  ;;  %v6941_v2 = vmul.f32 0.5, %v6932_v29  ;;  %11145 = vmatpush3.bf16.msra.mxu1 %v11708_v1  ;;  %v11709_v53 = vld [vmem:[#allocation4 + $0x20] sm:$0xff]  }
 0x57b   : > { %v6967_v7 = vmul.f32 %v6958_v51, %v15397_v23  ;;  %v6960_v9 = vmul.f32 %v6951_v12, %v6933_v26  ;;  %11915 = vtanh.f32 %v6984_v63  ;;  %v11707_v51 = vld [vmem:[#allocation4 + $0x28] sm:$0xff]   ;;  %v11711_v63 = vld [vmem:[#allocation4 + $0x18] sm:$0xff]   ;;  %v11732_v1 = vld [vmem:[#allocation4 + $0xa0] sm:$0xff]  }
 0x57c   : > { %v6959_v10 = vmul.f32 %v6950_v50, %v6932_v29  ;;  %v7007_v40 = vmul.f32 %v6998_v48, %v6935_v46  ;;  %v11710_v12 = vld [vmem:[#allocation4 + $0x68] sm:$0xff]   ;;  %v11713_v50 = vld [vmem:[#allocation4 + $0x10] sm:$0xff]  }
 0x57d   : > { %v6976_v55 = vadd.f32 %v6967_v7, %v15397_v23  ;;  %v6969_v25 = vmul.f32 %v6960_v9, %v6933_v26  ;;  %v11910_v19 = vpop.eup %11909  ;;  %v11701_v23 = vld [vmem:[%s15679_s6] sm:$0xff]   ;;  %11146 = vmatprep.subr.bf16.mxu1 %v11710_v12  ;;  %v11714_v7 = vld [vmem:[#allocation4 + $0x58] sm:$0xff]   ;;  %v11717_v9 = vld [vmem:[#allocation4] sm:$0xff]  }
 0x57e   : > { %v6968_v62 = vmul.f32 %v6959_v10, %v6932_v29  ;;  %v7015_v34 = vpack.c.bf16 %v7007_v40, %v7006_v8  ;;  %v6999_v21 = vadd.f32 1.0, %v11910_v19  ;;  %11147 = vmatpush3.bf16.msra.mxu1 %v11710_v12  ;;  %v11715_v46 = vld [vmem:[#allocation4 + $0x8] sm:$0xff]   ;;  %v11716_v48 = vld [vmem:[#allocation4 + $0x50] sm:$0xff]   ;;  %v11723_v8 = vld [vmem:[#allocation4 + $0x40] sm:$0xff]  }
 0x57f   : > { %v6985_v27 = vmul.f32 0.7978846, %v6976_v55  ;;  %v6978_v58 = vadd.f32 %v6969_v25, %v6933_v26  ;;  %v11705_v26 = vld [vmem:[#allocation4 + $0x30] sm:$0xff]   ;;  %11148 = vmatprep.subr.bf16.mxu1 %v11712_v39  ;;  %v11718_v10 = vld [vmem:[#allocation4 + $0x48] sm:$0xff]   ;;  %v11721_v55 = vld [vmem:[#allocation4 + $0xf8] sm:$0xff]  }
 0x580   : > { %v6977_v3 = vadd.f32 %v6968_v62, %v6932_v29  ;;  %v7008_v38 = vmul.f32 %v6999_v21, %v6936_v43  ;;  %v11703_v29 = vld [vmem:[%s15679_s6 + $0x10] ss:$0 sps:$4 sm:$0x33]  }
 0x581   : > { %11917 = vtanh.f32 %v6985_v27  ;;  %v6987_v31 = vmul.f32 0.7978846, %v6978_v58  ;;  %v11912_v6 = vpop.eup %11911  ;;  %v11726_v40 = vld [vmem:[#allocation4 + $0xb8] sm:$0xff]  }
 0x582   : > { %v6986_v33 = vmul.f32 0.7978846, %v6977_v3  ;;  %v7000_v32 = vadd.f32 1.0, %v11912_v6  ;;  %11149 = vmatpush3.bf16.msra.mxu1 %v11712_v39  ;;  %v11734_v12 = vld [vmem:[#allocation4 + $0x98] sm:$0xff]  }
 0x583   : > { %11919 = vtanh.f32 %v6987_v31  ;;  %11150 = vmatprep.subr.bf16.mxu1 %v11714_v7 }
 0x584   : > { %v11914_v18 = vpop.eup %11913  ;;  %11921 = vtanh.f32 %v6986_v33  ;;  %v7009_v47 = vmul.f32 %v7000_v32, %v6937_v17 }
 0x585   : > { %v7001_v28 = vadd.f32 1.0, %v11914_v18 }
 0x586   : > { %v7016_v41 = vpack.c.bf16 %v7009_v47, %v7008_v38  ;;  %11151 = vmatpush3.bf16.msra.mxu1 %v11714_v7  ;;  %v11737_v7 = vld [vmem:[#allocation4 + $0xc0] sm:$0xff]  }
 0x587   : > { %v7010_v13 = vmul.f32 %v7001_v28, %v6938_v22  ;;  %11152 = vmatprep.subr.bf16.mxu1 %v11716_v48 }
 0x588   : > { %v11916_v59 = vpop.eup %11915 }
 0x589   : > { %v7002_v42 = vadd.f32 1.0, %v11916_v59 }
 0x58a   : > { %11153 = vmatpush3.bf16.msra.mxu1 %v11716_v48  ;;  %v11738_v48 = vld [vmem:[#allocation4 + $0x88] sm:$0xff]  }
 0x58b   : > { %v7011_v15 = vmul.f32 %v7002_v42, %v6939_v30  ;;  %11154 = vmatprep.subr.bf16.mxu1 %v11718_v10  ;;  %v11724_v30 = vld [vmem:[#allocation4 + $0xf0] sm:$0xff]  }
 0x58d   : > { %v7017_v52 = vpack.c.bf16 %v7011_v15, %v7010_v13 }
 0x58e   : > { %v11918_v45 = vpop.eup %11917  ;;  %11155 = vmatpush3.bf16.msra.mxu1 %v11718_v10 }
 0x58f   : > { %v7003_v4 = vadd.f32 1.0, %v11918_v45  ;;  %11156 = vmatprep.subr.bf16.mxu1 %v11723_v8 }
 0x590   : > { %v11920_v11 = vpop.eup %11919 }
 0x591   : > { %v11922_v35 = vpop.eup %11921  ;;  %v7005_v56 = vadd.f32 1.0, %v11920_v11  ;;  %v7012_v36 = vmul.f32 %v7003_v4, %v6940_v49 }
 0x592   : > { %v7004_v16 = vadd.f32 1.0, %v11922_v35  ;;  %11157 = vmatpush3.bf16.msra.mxu1 %v11723_v8 }
 0x593   : > { %v7014_v0 = vmul.f32 %v7005_v56, %v6942_v60  ;;  %11182 = vmatprep.subr.bf16.mxu1 %v11726_v40 }
 0x594   : > { %v7013_v57 = vmul.f32 %v7004_v16, %v6941_v2  ;;  %v11727_v2 = vld [vmem:[#allocation4 + $0xe8] sm:$0xff]  }
 0x595   : > { %v7019_v20 = vpack.c.bf16 %v7014_v0, %v7014_v0 }
 0x596   : > { %v7018_v54 = vpack.c.bf16 %v7013_v57, %v7012_v36 }
 0x597   : > { %v7052_v14 = vand.u32 %v7050_v5, %v7019_v20 }
 0x599   : > { %11121 = vmatpush3.bf16.msra.mxu0 %v7052_v14  ;;  %v11728_v14 = vld [vmem:[#allocation4 + $0xb0] sm:$0xff]  }
 0x59a   : > { %11122 = vmatprep.subr.bf16.mxu0 %v12054_v37 }
 0x59d   : > { %11123 = vmatpush3.bf16.msra.mxu0 %v7018_v54 }
 0x59e   : > { %11124 = vmatprep.subr.bf16.mxu0 %v12054_v37 }
 0x5a1   : > { %11125 = vmatpush3.bf16.msra.mxu0 %v7017_v52 }
 0x5a2   : > { %11126 = vmatprep.subr.bf16.mxu0 %v12054_v37 }
 0x5a5   : > { %11127 = vmatpush3.bf16.msra.mxu0 %v7016_v41 }
 0x5a6   : > { %11128 = vmatprep.subr.bf16.mxu0 %v12054_v37 }
 0x5a9   : > { %11129 = vmatpush3.bf16.msra.mxu0 %v7015_v34 }
 0x5aa   : > { %11162 = vmatprep.subr.bf16.mxu0 %v11704_v24 }
 0x5ac   : > { %11131 = vmatmul.mubr.msk.bf16.vlgmr.msra.gmra.mxu0 %vm7038_vm11, %v11701_v23 }
 0x5ad   : > { %11134 = vmatprep.mubr.msk.bf16.mxu0 %vm12055_vm8, %v12054_v37  ;;  %11163 = vmatpush3.bf16.msra.mxu0 %v11704_v24 }
 0x5ae   : > { %11164 = vmatprep.subr.bf16.mxu0 %v11705_v26 }
 0x5b1   : > { %11165 = vmatpush3.bf16.msra.mxu0 %v11705_v26  ;;  %v11729_v26 = vld [vmem:[#allocation4 + $0xe0] sm:$0xff]  }
 0x5b2   : > { %11166 = vmatprep.subr.bf16.mxu0 %v11707_v51 }
 0x5b4   : > { %11135 = vmatmul.mubr.msk.bf16.gmra.mxu0 %vm7038_vm11, %v11702_v44 }
 0x5b5   : > { %11138 = vmatprep.mubr.msk.bf16.mxu0 %vm12055_vm8, %v12054_v37  ;;  %11167 = vmatpush3.bf16.msra.mxu0 %v11707_v51  ;;  %v11731_v51 = vld [vmem:[#allocation4 + $0xd8] sm:$0xff]  }
 0x5b6   : > { %11168 = vmatprep.subr.bf16.mxu0 %v11709_v53 }
 0x5b9   : > { %11169 = vmatpush3.bf16.msra.mxu0 %v11709_v53  ;;  %v11733_v53 = vld [vmem:[#allocation4 + $0xd0] sm:$0xff]  }
 0x5ba   : > { %11170 = vmatprep.subr.bf16.mxu0 %v11711_v63 }
 0x5bc   : > { %11139 = vmatmul.mubr.msk.bf16.gmra.mxu0 %vm7038_vm11, %v11703_v29  ;;  %v11730_v29 = vld [vmem:[#allocation4 + $0xa8] sm:$0xff]  }
 0x5bd   : > { %11171 = vmatpush3.bf16.msra.mxu0 %v11711_v63  ;;  %v11735_v63 = vld [vmem:[#allocation4 + $0xc8] sm:$0xff]  }
 0x5be   : > { %11172 = vmatprep.subr.bf16.mxu0 %v11713_v50 }
 0x5c1   : > { %11173 = vmatpush3.bf16.msra.mxu0 %v11713_v50  ;;  %v11736_v50 = vld [vmem:[#allocation4 + $0x90] sm:$0xff]  }
 0x5c2   : > { %11174 = vmatprep.subr.bf16.mxu0 %v11715_v46 }
 0x5c5   : > { %11175 = vmatpush3.bf16.msra.mxu0 %v11715_v46 }
 0x5c6   : > { %11176 = vmatprep.subr.bf16.mxu0 %v11717_v9 }
 0x5c9   : > { %11177 = vmatpush3.bf16.msra.mxu0 %v11717_v9  ;;  %v11741_v9 = vld [vmem:[#allocation4 + $0x178] sm:$0xff]  }
 0x5ca   : > { %11202 = vmatprep.subr.bf16.mxu0 %v11721_v55 }
 0x66c   : > { %v7088_v25 = vpop.f32.mrf.mxu0 }
 0x66e   : > { %v11132_v62 = vpop.f32.mrf.mxu0 }
 0x66f   : > { %v11744_v62 = vld [vmem:[#allocation4 + $0x170] sm:$0xff]  }
 0x670   : > { %v7091_v27 = vpop.f32.mrf.mxu0 }
 0x671   : > { %v9905_v34 = vpack.c.bf16 %v7091_v27, %v7088_v25  ;;  %v11743_v25 = vld [vmem:[#allocation4 + $0x80] sm:$0xff]  }
 0x672   : > { %v11133_v19 = vpop.f32.mrf.mxu0 }
 0x673   : > { %9906 = vst [vmem:[#allocation3] sm:$0xff] %v9905_v34  }
 0x674   : > { %v7096_v58 = vpop.f32.mrf.mxu0 }
 0x676   : > { %v11136_v3 = vpop.f32.mrf.mxu0 }
 0x678   : > { %v7099_v31 = vpop.f32.mrf.mxu0 }
 0x679   : > { %v9910_v21 = vpack.c.bf16 %v7099_v31, %v7096_v58  ;;  %v11745_v58 = vld [vmem:[#allocation4 + $0x138] sm:$0xff]  }
 0x67a   : > { %v7136_v6 = vld [vmem:[#allocation3] sm:$0xf]  ;;  %v7137_v33 = vld [vmem:[#allocation3 + $0x4] sm:$0xf]  ;;  %v11137_v43 = vpop.f32.mrf.mxu0 }
 0x67b   : > { %9917 = vst [vmem:[#allocation3 + $0x8] sm:$0xff] %v9910_v21   ;;  %v9670_v17 = vcombine.low %v7136_v6, %v7137_v33  ;;  %v7520_v28 = vld [vmem:[#allocation3] sm:$0x8]  ;;  %v15433_v41 = vld [vmem:[#allocation3 + $0x4] sm:$0xf] }
 0x67c   : > { %v7104_v32 = vpop.f32.mrf.mxu0  ;;  %v7395_v22 = vld [vmem:[#allocation3] sm:$0xe]  ;;  %v15436_v15 = vcombine.low %v7520_v28, %v15433_v41  ;;  %v11748_v43 = vld [vmem:[#allocation4 + $0x130] sm:$0xff]  }
 0x67d   : > { %11178 = vmatprep.mubr.bf16.mxu0 %v9670_v17  ;;  %v9871_v18 = vpack.c.bf16 %v7104_v32, %v7104_v32  ;;  %v7184_v38 = vshll.u32 %v9670_v17, 16  ;;  %v7182_v4 = vshrl.u32 %v9670_v17, 16  ;;  %v9689_v60 = vcombine.low %v7395_v22, %v7137_v33  ;;  %v11747_v21 = vld [vmem:[#allocation4 + $0x168] sm:$0xff]   ;;  %v11749_v17 = vld [vmem:[#allocation4 + $0x160] sm:$0xff]  }
 0x67e   : > { %v11140_v47 = vpop.f32.mrf.mxu0  ;;  %v7551_v16 = vrot.slane %v15436_v15, 3  ;;  %v7678_v8 = vshrl.u32 %v15436_v15, 16 }
 0x67f   : > { %7135 = vst [vmem:[#allocation3 + $0x10] sm:$0x3] %v9871_v18  ;;  %v7186_v13 = vrot.slane %v7184_v38, 1  ;;  %v7416_v23 = vrot.slane %v9689_v60, 1  ;;  %v11750_v18 = vld [vmem:[#allocation4 + $0x128] sm:$0xff]   ;;  %v11751_v38 = vld [vmem:[#allocation4 + $0x158] sm:$0xff]  }
 0x680   : > { %v7107_v59 = vpop.f32.mrf.mxu0  ;;  %v7680_v3 = vrot.slane %v7678_v8, 3  ;;  %v11752_v47 = vld [vmem:[#allocation4 + $0x120] sm:$0xff]   ;;  %v11778_v8 = vld [vmem:[#allocation4 + $0x188] sm:$0xff]  }
 0x681   : > { %v7187_v49 = vor.u32 %v7186_v13, %v7182_v4  ;;  %v7915_v13 = vld [vmem:[#allocation3 + $0x4] sm:$0xc] }
 0x682   : > { %v11722_v42 = vld [vmem:[#allocation3 + $0x8] ss:$0 sps:$4 sm:$0x77]   ;;  %v11141_v45 = vpop.f32.mrf.mxu0  ;;  %v7523_v35 = vld [vmem:[#allocation3 + $0xc] sm:$0x3] }
 0x683   : > { %v15438_v52 = vld [vmem:[#allocation3 + $0x8] ss:$0 sps:$4 sm:$0xff]   ;;  %11179 = vmatmul.mubr.bf16.vlgmr.msra.gmra.mxu0 %v11722_v42  ;;  %v15452_v39 = vld [vmem:[#allocation3 + $0xc] sm:$0x7] }
 0x684   : > { %v15440_v11 = vld [vmem:[#allocation3 + $0x8] sm:$0xf]  ;;  %11203 = vmatpush3.bf16.msra.mxu0 %v11721_v55  ;;  %v7189_v56 = vshll.u32 %v15438_v52, 16  ;;  %v7193_v5 = vshrl.u32 %v15438_v52, 16  ;;  %v7417_v57 = vrot.slane %v15438_v52, 1  ;;  %v11754_v42 = vld [vmem:[#allocation4 + $0x118] sm:$0xff]  }
 0x685   : > { %v9699_v61 = vcombine.low %v15440_v11, %v7523_v35  ;;  %11204 = vmatprep.subr.bf16.mxu0 %v11724_v30  ;;  %v9708_v46 = vcombine.low %v15440_v11, %v15452_v39  ;;  %v9717_v27 = vcombine.low %v15433_v41, %v15440_v11  ;;  %v11753_v41 = vld [vmem:[#allocation4 + $0x150] sm:$0xff]   ;;  %v7917_v22 = vld [vmem:[#allocation3 + $0xc] sm:$0xf]  ;;  %v11757_v35 = vld [vmem:[#allocation4 + $0x140] sm:$0xff]  }
 0x686   : > { %v7191_v0 = vrot.slane %v7189_v56, 1  ;;  %v7418_v44 = vsel %vm1272_vm3, %v7416_v23, %v7417_v57  ;;  %v8050_v28 = vld [vmem:[#allocation3 + $0x10] sm:$0x3]  ;;  %v15465_v59 = vld [vmem:[#allocation3 + $0x8] sm:$0xf] }
 0x687   : > { %v7552_v36 = vrot.slane %v9699_v61, 3  ;;  %v7686_v10 = vshrl.u32 %v9708_v46, 16  ;;  %v7689_v55 = vshll.u32 %v9708_v46, 16  ;;  %v9727_v45 = vcombine.low %v7915_v13, %v15465_v59  ;;  %v11756_v4 = vld [vmem:[#allocation4 + $0x110] sm:$0xff]  }
 0x688   : > { %11205 = vmatpush3.bf16.msra.mxu0 %v11724_v30  ;;  %v7192_v20 = vsel %vm666_vm2, %v7187_v49, %v7191_v0  ;;  %v7195_v54 = vor.u32 %v7193_v5, %v7191_v0  ;;  %v15467_v30 = vcombine.low %v7917_v22, %v8050_v28  ;;  %v11773_v46 = vld [vmem:[#allocation4 + $0x1d0] sm:$0xff]  }
 0x689   : > { %v7553_v24 = vsel %vm3786_vm7, %v7551_v16, %v7552_v36  ;;  %11158 = vmatprep.mubr.bf16.mxu1 %v7192_v20  ;;  %11206 = vmatprep.subr.bf16.mxu0 %v11727_v2  ;;  %v7688_v34 = vrot.slane %v7686_v10, 3  ;;  %v7691_v19 = vrot.slane %v7689_v55, 4  ;;  %v8072_v60 = vshrl.u32 %v9727_v45, 16  ;;  %v11760_v16 = vld [vmem:[#allocation4 + $0x1f8] sm:$0xff]   ;;  %v11776_v10 = vld [vmem:[#allocation4 + $0x190] sm:$0xff]   ;;  %v11777_v55 = vld [vmem:[#allocation4 + $0x1c0] sm:$0xff]  }
 0x68a   : > { %11159 = vmatmul.mubr.bf16.vlgmr.msra.gmra.mxu1 %v7195_v54  ;;  %11218 = vmatprep.mubr.bf16.mxu0 %v7553_v24  ;;  %v8080_v52 = vshrl.u32 %v15467_v30, 16  ;;  %v8083_v11 = vshll.u32 %v15467_v30, 16  ;;  %v8075_v56 = vshll.u32 %v9727_v45, 16  ;;  %v9718_v20 = vcombine.low %v15452_v39, %v15452_v39  ;;  %v11764_v24 = vld [vmem:[#allocation4 + $0x1f0] sm:$0xff]   ;;  %v11770_v39 = vld [vmem:[#allocation4 + $0x1a8] sm:$0xff]  }
 0x68b   : > { %11183 = vmatpush3.bf16.msra.mxu1 %v11726_v40  ;;  %11198 = vmatprep.mubr.bf16.mxu1 %v7418_v44  ;;  %v7681_v40 = vshll.u32 %v15436_v15, 16  ;;  %v15460_v6 = vor.u32 %v7691_v19, %v7688_v34  ;;  %v11755_v15 = vld [vmem:[#allocation4 + $0x148] sm:$0xff]   ;;  %v8074_v0 = vrot.slane %v8072_v60, 2  ;;  %v11765_v44 = vld [vmem:[#allocation4 + $0x1b8] sm:$0xff]   ;;  %v8211_v34 = vrot.slane %v15467_v30, 3 }
 0x68c   : > { %11207 = vmatpush3.bf16.msra.mxu0 %v11727_v2  ;;  %11184 = vmatprep.subr.bf16.mxu1 %v11728_v14  ;;  %v8082_v61 = vrot.slane %v8080_v52, 2  ;;  %v8085_v49 = vrot.slane %v8083_v11, 3  ;;  %v11758_v2 = vld [vmem:[#allocation4 + $0x108] sm:$0xff]   ;;  %v8077_v5 = vrot.slane %v8075_v56, 3  ;;  %v11791_v52 = vld [vmem:[%s15682_s9 + $0x30] sm:$0xff]  }
 0x68d   : > { %11208 = vmatprep.subr.bf16.mxu0 %v11729_v26  ;;  %v7683_v31 = vrot.slane %v7681_v40, 4  ;;  %v11779_v40 = vld [vmem:[#allocation4 + $0x180] sm:$0xff]   ;;  %v11795_v60 = vld [vmem:[%s15682_s9 + $0x20] sm:$0xff]  }
 0x68e   : > { %v8078_v54 = vor.u32 %v8077_v5, %v8074_v0  ;;  %v11792_v11 = vld [vmem:[%s15682_s9 + $0x70] sm:$0xff]   ;;  %v11796_v56 = vld [vmem:[%s15682_s9 + $0x60] sm:$0xff]  }
 0x68f   : > { %11185 = vmatpush3.bf16.msra.mxu1 %v11728_v14  ;;  %v7684_v33 = vor.u32 %v7683_v31, %v7680_v3  ;;  %v11763_v14 = vld [vmem:[#allocation4 + $0x100] sm:$0xff]   ;;  %v11783_v31 = vld [vmem:[#allocation4 + $0x228] sm:$0xff]  }
 0x690   : > { %11209 = vmatpush3.bf16.msra.mxu0 %v11729_v26  ;;  %11186 = vmatprep.subr.bf16.mxu1 %v11730_v29  ;;  %v11799_v0 = vld [vmem:[%s15682_s9 + $0x10] sm:$0xff]  }
 0x691   : > { %11210 = vmatprep.subr.bf16.mxu0 %v11731_v51  ;;  %v7693_v32 = vsel %vm7676_vm12, %v7684_v33, %v15460_v6  ;;  %v11786_v33 = vld [vmem:[#allocation4 + $0x210] sm:$0xff]   ;;  %v11800_v5 = vld [vmem:[%s15682_s9 + $0x50] sm:$0xff]  }
 0x693   : > { %11187 = vmatpush3.bf16.msra.mxu1 %v11730_v29  ;;  %v11767_v29 = vld [vmem:[#allocation4 + $0x1e8] sm:$0xff]  }
 0x694   : > { %11211 = vmatpush3.bf16.msra.mxu0 %v11731_v51  ;;  %11188 = vmatprep.subr.bf16.mxu1 %v11732_v1 }
 0x695   : > { %11212 = vmatprep.subr.bf16.mxu0 %v11733_v53 }
 0x697   : > { %11189 = vmatpush3.bf16.msra.mxu1 %v11732_v1  ;;  %v7946_v1 = vrot.slane %v9727_v45, 2  ;;  %v11790_v45 = vld [vmem:[%s15682_s9 + $0x78] sm:$0xff]  }
 0x698   : > { %11213 = vmatpush3.bf16.msra.mxu0 %v11733_v53  ;;  %11190 = vmatprep.subr.bf16.mxu1 %v11734_v12  ;;  %v11768_v53 = vld [vmem:[#allocation4 + $0x1b0] sm:$0xff]  }
 0x699   : > { %11214 = vmatprep.subr.bf16.mxu0 %v11735_v63 }
 0x69b   : > { %11191 = vmatpush3.bf16.msra.mxu1 %v11734_v12  ;;  %v11769_v12 = vld [vmem:[#allocation4 + $0x1e0] sm:$0xff]  }
 0x69c   : > { %11215 = vmatpush3.bf16.msra.mxu0 %v11735_v63  ;;  %11192 = vmatprep.subr.bf16.mxu1 %v11736_v50 }
 0x69d   : > { %11216 = vmatprep.subr.bf16.mxu0 %v11737_v7 }
 0x69f   : > { %11193 = vmatpush3.bf16.msra.mxu1 %v11736_v50  ;;  %v11771_v50 = vld [vmem:[#allocation4 + $0x1d8] sm:$0xff]  }
 0x6a0   : > { %11217 = vmatpush3.bf16.msra.mxu0 %v11737_v7  ;;  %11194 = vmatprep.subr.bf16.mxu1 %v11738_v48  ;;  %v11772_v7 = vld [vmem:[#allocation4 + $0x1a0] sm:$0xff]  }
 0x6a1   : > { %11242 = vmatprep.subr.bf16.mxu0 %v11741_v9 }
 0x6a3   : > { %11195 = vmatpush3.bf16.msra.mxu1 %v11738_v48  ;;  %11219 = vmatmul.mubr.bf16.vlgmr.msra.gmra.mxu0 %v7552_v36  ;;  %v15472_v36 = vor.u32 %v8085_v49, %v8082_v61  ;;  %v11774_v48 = vld [vmem:[#allocation4 + $0x198] sm:$0xff]   ;;  %v11797_v61 = vld [vmem:[%s15682_s9 + $0x18] sm:$0xff]  }
 0x6a4   : > { %11243 = vmatpush3.bf16.msra.mxu0 %v11741_v9  ;;  %11258 = vmatprep.mubr.bf16.mxu0 %v9717_v27  ;;  %v11775_v9 = vld [vmem:[#allocation4 + $0x1c8] sm:$0xff]  }
 0x6a5   : > { %11196 = vmatprep.subr.bf16.mxu1 %v11743_v25  ;;  %11244 = vmatprep.subr.bf16.mxu0 %v11744_v62  ;;  %v8087_v26 = vsel %vm3339_vm6, %v8078_v54, %v15472_v36  ;;  %v11798_v49 = vld [vmem:[%s15682_s9 + $0x58] sm:$0xff]  }
 0x6a7   : > { %11197 = vmatpush3.bf16.msra.mxu1 %v11743_v25  ;;  %v8189_v25 = vld [vmem:[#allocation3 + $0x4] sm:$0x8] }
 0x6a8   : > { %11245 = vmatpush3.bf16.msra.mxu0 %v11744_v62  ;;  %11222 = vmatprep.subr.bf16.mxu1 %v11745_v58  ;;  %v11780_v62 = vld [vmem:[#allocation4 + $0x238] sm:$0xff]   ;;  %v9746_v27 = vcombine.low %v8189_v25, %v15465_v59 }
 0x6a9   : > { %11246 = vmatprep.subr.bf16.mxu0 %v11747_v21 }
 0x6aa   : > { %11199 = vmatmul.mubr.bf16.vlgmr.msra.gmra.mxu1 %v7417_v57  ;;  %v7918_v57 = vld [vmem:[#allocation3 + $0x10] sm:$0x1]  ;;  %v8210_v19 = vrot.slane %v9746_v27, 3 }
 0x6ab   : > { %11223 = vmatpush3.bf16.msra.mxu1 %v11745_v58  ;;  %11238 = vmatprep.mubr.bf16.mxu1 %v7693_v32  ;;  %v9728_v23 = vcombine.low %v7917_v22, %v7918_v57  ;;  %v11782_v58 = vld [vmem:[#allocation4 + $0x230] sm:$0xff]  }
 0x6ac   : > { %11247 = vmatpush3.bf16.msra.mxu0 %v11747_v21  ;;  %11224 = vmatprep.subr.bf16.mxu1 %v11748_v43  ;;  %v8212_v3 = vsel %vm3786_vm7, %v8210_v19, %v8211_v34  ;;  %v11784_v21 = vld [vmem:[#allocation4 + $0x220] sm:$0xff]   ;;  %v11801_v57 = vld [vmem:[%s15682_s9 + $0x8] sm:$0xff]  }
 0x6ad   : > { %11248 = vmatprep.subr.bf16.mxu0 %v11749_v17  ;;  %v7947_v51 = vrot.slane %v9728_v23, 2 }
 0x6af   : > { %11225 = vmatpush3.bf16.msra.mxu1 %v11748_v43  ;;  %v7948_v63 = vsel %vm2586_vm4, %v7946_v1, %v7947_v51  ;;  %v11787_v43 = vld [vmem:[#allocation4 + $0x208] sm:$0xff]  }
 0x6b0   : > { %11249 = vmatpush3.bf16.msra.mxu0 %v11749_v17  ;;  %11226 = vmatprep.subr.bf16.mxu1 %v11750_v18  ;;  %v11788_v17 = vld [vmem:[#allocation4 + $0x200] sm:$0xff]  }
 0x6b1   : > { %11250 = vmatprep.subr.bf16.mxu0 %v11751_v38 }
 0x6b3   : > { %11227 = vmatpush3.bf16.msra.mxu1 %v11750_v18 }
 0x6b4   : > { %11251 = vmatpush3.bf16.msra.mxu0 %v11751_v38  ;;  %11228 = vmatprep.subr.bf16.mxu1 %v11752_v47 }
 0x6b5   : > { %11252 = vmatprep.subr.bf16.mxu0 %v11753_v41 }
 0x6b7   : > { %11229 = vmatpush3.bf16.msra.mxu1 %v11752_v47 }
 0x6b8   : > { %11253 = vmatpush3.bf16.msra.mxu0 %v11753_v41  ;;  %11230 = vmatprep.subr.bf16.mxu1 %v11754_v42 }
 0x6b9   : > { %11254 = vmatprep.subr.bf16.mxu0 %v11755_v15 }
 0x6bb   : > { %11231 = vmatpush3.bf16.msra.mxu1 %v11754_v42 }
 0x6bc   : > { %11255 = vmatpush3.bf16.msra.mxu0 %v11755_v15  ;;  %11232 = vmatprep.subr.bf16.mxu1 %v11756_v4  ;;  %v11789_v15 = vld [vmem:[%s15682_s9 + $0x38] sm:$0xff]  }
 0x6bd   : > { %11256 = vmatprep.subr.bf16.mxu0 %v11757_v35 }
 0x6bf   : > { %11233 = vmatpush3.bf16.msra.mxu1 %v11756_v4  ;;  %v11793_v4 = vld [vmem:[%s15682_s9 + $0x28] sm:$0xff]  }
 0x6c0   : > { %11257 = vmatpush3.bf16.msra.mxu0 %v11757_v35  ;;  %11234 = vmatprep.subr.bf16.mxu1 %v11758_v2  ;;  %v11794_v35 = vld [vmem:[%s15682_s9 + $0x68] sm:$0xff]  }
 0x6c1   : > { %11282 = vmatprep.subr.bf16.mxu0 %v11760_v16 }
 0x6c3   : > { %11235 = vmatpush3.bf16.msra.mxu1 %v11758_v2  ;;  %11259 = vmatmul.mubr.bf16.vlgmr.msra.gmra.mxu0 %v9718_v20  ;;  %v11802_v20 = vld [vmem:[%s15682_s9 + $0x48] sm:$0xff]  }
 0x6c4   : > { %11283 = vmatpush3.bf16.msra.mxu0 %v11760_v16  ;;  %11298 = vmatprep.mubr.bf16.mxu0 %v8087_v26 }
 0x6c5   : > { %11236 = vmatprep.subr.bf16.mxu1 %v11763_v14  ;;  %11284 = vmatprep.subr.bf16.mxu0 %v11764_v24 }
 0x6c7   : > { %11237 = vmatpush3.bf16.msra.mxu1 %v11763_v14 }
 0x6c8   : > { %11285 = vmatpush3.bf16.msra.mxu0 %v11764_v24  ;;  %11262 = vmatprep.subr.bf16.mxu1 %v11765_v44 }
 0x6c9   : > { %11286 = vmatprep.subr.bf16.mxu0 %v11767_v29 }
 0x6ca   : > { %11239 = vmatmul.mubr.bf16.vlgmr.msra.gmra.mxu1 %v15460_v6  ;;  %v11785_v6 = vld [vmem:[#allocation4 + $0x218] sm:$0xff]  }
 0x6cb   : > { %11263 = vmatpush3.bf16.msra.mxu1 %v11765_v44  ;;  %11278 = vmatprep.mubr.bf16.mxu1 %v7948_v63  ;;  %v11803_v44 = vld [vmem:[%s15682_s9] sm:$0xff]  }
 0x6cc   : > { %11287 = vmatpush3.bf16.msra.mxu0 %v11767_v29  ;;  %11264 = vmatprep.subr.bf16.mxu1 %v11768_v53  ;;  %v11804_v29 = vld [vmem:[%s15682_s9 + $0x40] sm:$0xff]  }
 0x6cd   : > { %11288 = vmatprep.subr.bf16.mxu0 %v11769_v12 }
 0x6cf   : > { %11265 = vmatpush3.bf16.msra.mxu1 %v11768_v53 }
 0x6d0   : > { %11289 = vmatpush3.bf16.msra.mxu0 %v11769_v12  ;;  %11266 = vmatprep.subr.bf16.mxu1 %v11770_v39 }
 0x6d1   : > { %11290 = vmatprep.subr.bf16.mxu0 %v11771_v50 }
 0x6d3   : > { %11267 = vmatpush3.bf16.msra.mxu1 %v11770_v39 }
 0x6d4   : > { %11291 = vmatpush3.bf16.msra.mxu0 %v11771_v50  ;;  %11268 = vmatprep.subr.bf16.mxu1 %v11772_v7 }
 0x6d5   : > { %11292 = vmatprep.subr.bf16.mxu0 %v11773_v46 }
 0x6d7   : > { %11269 = vmatpush3.bf16.msra.mxu1 %v11772_v7 }
 0x6d8   : > { %11293 = vmatpush3.bf16.msra.mxu0 %v11773_v46  ;;  %11270 = vmatprep.subr.bf16.mxu1 %v11774_v48 }
 0x6d9   : > { %11294 = vmatprep.subr.bf16.mxu0 %v11775_v9 }
 0x6db   : > { %11271 = vmatpush3.bf16.msra.mxu1 %v11774_v48 }
 0x6dc   : > { %11295 = vmatpush3.bf16.msra.mxu0 %v11775_v9  ;;  %11272 = vmatprep.subr.bf16.mxu1 %v11776_v10 }
 0x6dd   : > { %11296 = vmatprep.subr.bf16.mxu0 %v11777_v55 }
 0x6df   : > { %11273 = vmatpush3.bf16.msra.mxu1 %v11776_v10 }
 0x6e0   : > { %11297 = vmatpush3.bf16.msra.mxu0 %v11777_v55  ;;  %11274 = vmatprep.subr.bf16.mxu1 %v11778_v8 }
 0x6e1   : > { %11322 = vmatprep.subr.bf16.mxu0 %v12054_v37 }
 0x6e3   : > { %11275 = vmatpush3.bf16.msra.mxu1 %v11778_v8  ;;  %11299 = vmatmul.mubr.bf16.vlgmr.msra.gmra.mxu0 %v15472_v36 }
 0x6e4   : > { %11276 = vmatprep.subr.bf16.mxu1 %v11779_v40  ;;  %11338 = vmatprep.mubr.msk.bf16.mxu0 %vm12055_vm8, %v12054_v37 }
 0x6e5   : > { %11323 = vmatpush3.bf16.msra.mxu0 %v11790_v45 }
 0x6e6   : > { %11324 = vmatprep.subr.bf16.mxu0 %v12054_v37 }
 0x6e7   : > { %11277 = vmatpush3.bf16.msra.mxu1 %v11779_v40 }
 0x6e8   : > { %11302 = vmatprep.subr.bf16.mxu1 %v11780_v62 }
 0x6e9   : > { %11325 = vmatpush3.bf16.msra.mxu0 %v11792_v11 }
 0x6ea   : > { %11279 = vmatmul.mubr.bf16.vlgmr.msra.gmra.mxu1 %v7947_v51  ;;  %11326 = vmatprep.subr.bf16.mxu0 %v12054_v37 }
 0x6eb   : > { %11303 = vmatpush3.bf16.msra.mxu1 %v11780_v62  ;;  %11318 = vmatprep.mubr.bf16.mxu1 %v8212_v3 }
 0x6ec   : > { %11304 = vmatprep.subr.bf16.mxu1 %v11782_v58 }
 0x6ed   : > { %11327 = vmatpush3.bf16.msra.mxu0 %v11794_v35 }
 0x6ee   : > { %11328 = vmatprep.subr.bf16.mxu0 %v12054_v37 }
 0x6ef   : > { %11305 = vmatpush3.bf16.msra.mxu1 %v11782_v58 }
 0x6f0   : > { %11306 = vmatprep.subr.bf16.mxu1 %v11783_v31 }
 0x6f1   : > { %11329 = vmatpush3.bf16.msra.mxu0 %v11796_v56 }
 0x6f2   : > { %11330 = vmatprep.subr.bf16.mxu0 %v12054_v37 }
 0x6f3   : > { %11307 = vmatpush3.bf16.msra.mxu1 %v11783_v31 }
 0x6f4   : > { %11308 = vmatprep.subr.bf16.mxu1 %v11784_v21 }
 0x6f5   : > { %11331 = vmatpush3.bf16.msra.mxu0 %v11798_v49 }
 0x6f6   : > { %11332 = vmatprep.subr.bf16.mxu0 %v12054_v37 }
 0x6f7   : > { %11309 = vmatpush3.bf16.msra.mxu1 %v11784_v21 }
 0x6f8   : > { %11310 = vmatprep.subr.bf16.mxu1 %v11785_v6 }
 0x6f9   : > { %11333 = vmatpush3.bf16.msra.mxu0 %v11800_v5 }
 0x6fa   : > { %11334 = vmatprep.subr.bf16.mxu0 %v12054_v37 }
 0x6fb   : > { %11311 = vmatpush3.bf16.msra.mxu1 %v11785_v6 }
 0x6fc   : > { %11312 = vmatprep.subr.bf16.mxu1 %v11786_v33 }
 0x6fd   : > { %11335 = vmatpush3.bf16.msra.mxu0 %v11802_v20 }
 0x6fe   : > { %11336 = vmatprep.subr.bf16.mxu0 %v12054_v37 }
 0x6ff   : > { %11313 = vmatpush3.bf16.msra.mxu1 %v11786_v33 }
 0x700   : > { %11314 = vmatprep.subr.bf16.mxu1 %v11787_v43 }
 0x701   : > { %11337 = vmatpush3.bf16.msra.mxu0 %v11804_v29 }
 0x702   : > { %11362 = vmatprep.subr.bf16.mxu0 %v12054_v37 }
 0x703   : > { %11315 = vmatpush3.bf16.msra.mxu1 %v11787_v43 }
 0x704   : > { %11316 = vmatprep.subr.bf16.mxu1 %v11788_v17 }
 0x707   : > { %11317 = vmatpush3.bf16.msra.mxu1 %v11788_v17 }
 0x708   : > { %11342 = vmatprep.subr.bf16.mxu1 %v12054_v37 }
 0x70a   : > { %11319 = vmatmul.mubr.bf16.vlgmr.msra.gmra.mxu1 %v8211_v34 }
 0x70b   : > { %11358 = vmatprep.mubr.msk.bf16.mxu1 %vm12055_vm8, %v12054_v37  ;;  %11343 = vmatpush3.bf16.msra.mxu1 %v11789_v15 }
 0x70c   : > { %11344 = vmatprep.subr.bf16.mxu1 %v12054_v37 }
 0x70f   : > { %11345 = vmatpush3.bf16.msra.mxu1 %v11791_v52 }
 0x710   : > { %11346 = vmatprep.subr.bf16.mxu1 %v12054_v37 }
 0x713   : > { %11347 = vmatpush3.bf16.msra.mxu1 %v11793_v4 }
 0x714   : > { %11348 = vmatprep.subr.bf16.mxu1 %v12054_v37 }
 0x717   : > { %11349 = vmatpush3.bf16.msra.mxu1 %v11795_v60 }
 0x718   : > { %11350 = vmatprep.subr.bf16.mxu1 %v12054_v37 }
 0x71b   : > { %11351 = vmatpush3.bf16.msra.mxu1 %v11797_v61 }
 0x71c   : > { %11352 = vmatprep.subr.bf16.mxu1 %v12054_v37 }
 0x71f   : > { %11353 = vmatpush3.bf16.msra.mxu1 %v11799_v0 }
 0x720   : > { %11354 = vmatprep.subr.bf16.mxu1 %v12054_v37 }
 0x723   : > { %11355 = vmatpush3.bf16.msra.mxu1 %v11801_v57 }
 0x724   : > { %11356 = vmatprep.subr.bf16.mxu1 %v12054_v37 }
 0x727   : > { %11357 = vmatpush3.bf16.msra.mxu1 %v11803_v44 }
 0x728   : > { %11382 = vmatprep.subr.bf16.mxu1 %v12054_v37 }
 0x743   : > { %v11180_v32 = vpop.f32.mrf.mxu0 }
 0x745   : > { %v7381_v18 = vpop.f32.mrf.mxu0 }
 0x747   : > { %v11181_v38 = vpop.f32.mrf.mxu0 }
 0x749   : > { %v7384_v30 = vpop.f32.mrf.mxu0 }
 0x74a   : > { %v11160_v47 = vpop.f32.mrf.mxu1 }
 0x74b   : > { %v7390_v28 = vadd.f32 %v11180_v32, %v11160_v47 }
 0x74c   : > { %v7280_v41 = vpop.f32.mrf.mxu1 }
 0x74d   : > { %v7382_v59 = vadd.f32 %v7381_v18, %v7280_v41 }
 0x74e   : > { %v11161_v22 = vpop.f32.mrf.mxu1 }
 0x750   : > { %v7283_v42 = vpop.f32.mrf.mxu1 }
 0x751   : > { %v7385_v13 = vadd.f32 %v7384_v30, %v7283_v42 }
 0x763   : > { %v11220_v2 = vpop.f32.mrf.mxu0 }
 0x765   : > { %v7638_v16 = vpop.f32.mrf.mxu0 }
 0x767   : > { %v11221_v36 = vpop.f32.mrf.mxu0 }
 0x769   : > { %v7641_v63 = vpop.f32.mrf.mxu0 }
 0x76a   : > { %v11200_v54 = vpop.f32.mrf.mxu1 }
 0x76b   : > { %v7519_v14 = vadd.f32 %v11200_v54, %v7390_v28 }
 0x76c   : > { %v7503_v24 = vpop.f32.mrf.mxu1 }
 0x76d   : > { %v7517_v23 = vadd.f32 %v7503_v24, %v7382_v59  ;;  %v7654_v26 = vadd.f32 %v11220_v2, %v7519_v14  ;;  %v8317_v2 = vld [vmem:[%s15681_s8] sm:$0x1] }
 0x76e   : > { %v11201_v51 = vpop.f32.mrf.mxu1 }
 0x76f   : > { %v7652_v1 = vadd.f32 %v7638_v16, %v7517_v23 }
 0x770   : > { %v7506_v53 = vpop.f32.mrf.mxu1 }
 0x771   : > { %v7518_v12 = vadd.f32 %v7506_v53, %v7385_v13 }
 0x773   : > { %v7653_v39 = vadd.f32 %v7641_v63, %v7518_v12 }
 0x783   : > { %v11260_v50 = vpop.f32.mrf.mxu0 }
 0x785   : > { %v7898_v7 = vpop.f32.mrf.mxu0 }
 0x787   : > { %v11261_v46 = vpop.f32.mrf.mxu0 }
 0x789   : > { %v7901_v62 = vpop.f32.mrf.mxu0 }
 0x78a   : > { %v11240_v48 = vpop.f32.mrf.mxu1 }
 0x78b   : > { %v7794_v9 = vadd.f32 %v11240_v48, %v7654_v26 }
 0x78c   : > { %v7778_v10 = vpop.f32.mrf.mxu1 }
 0x78d   : > { %v7792_v55 = vadd.f32 %v7778_v10, %v7652_v1  ;;  %v7914_v8 = vadd.f32 %v11260_v50, %v7794_v9 }
 0x78e   : > { %v11241_v40 = vpop.f32.mrf.mxu1 }
 0x78f   : > { %v7912_v25 = vadd.f32 %v7898_v7, %v7792_v55 }
 0x790   : > { %v7781_v58 = vpop.f32.mrf.mxu1 }
 0x791   : > { %v7793_v6 = vadd.f32 %v7781_v58, %v7653_v39 }
 0x793   : > { %v7913_v32 = vadd.f32 %v7901_v62, %v7793_v6 }
 0x7a3   : > { %v11300_v27 = vpop.f32.mrf.mxu0 }
 0x7a5   : > { %v8172_v34 = vpop.f32.mrf.mxu0 }
 0x7a7   : > { %v11301_v19 = vpop.f32.mrf.mxu0 }
 0x7a9   : > { %v8175_v30 = vpop.f32.mrf.mxu0 }
 0x7aa   : > { %v11280_v3 = vpop.f32.mrf.mxu1 }
 0x7ab   : > { %v8049_v33 = vadd.f32 %v11280_v3, %v7914_v8 }
 0x7ac   : > { %v8033_v31 = vpop.f32.mrf.mxu1 }
 0x7ad   : > { %v8047_v43 = vadd.f32 %v8033_v31, %v7912_v25  ;;  %v8188_v18 = vadd.f32 %v11300_v27, %v8049_v33 }
 0x7ae   : > { %v11281_v21 = vpop.f32.mrf.mxu1 }
 0x7af   : > { %v8186_v41 = vadd.f32 %v8172_v34, %v8047_v43 }
 0x7b0   : > { %v8036_v17 = vpop.f32.mrf.mxu1 }
 0x7b1   : > { %v8048_v47 = vadd.f32 %v8036_v17, %v7913_v32 }
 0x7b3   : > { %v8187_v13 = vadd.f32 %v8175_v30, %v8048_v47  ;;  %v11805_v47 = vld [vmem:[%s15682_s9 + $0xf8] sm:$0xff]  }
 0x7ca   : > { %v11320_v38 = vpop.f32.mrf.mxu1 }
 0x7cb   : > { %v8313_v28 = vadd.f32 %v11320_v38, %v8188_v18 }
 0x7cc   : > { %v8297_v59 = vpop.f32.mrf.mxu1 }
 0x7cd   : > { %8316 = vst [vmem:[#allocation2 + $0x10] sm:$0x3f] %v8313_v28  ;;  %v8311_v22 = vadd.f32 %v8297_v59, %v8186_v41 }
 0x7ce   : > { %v11321_v42 = vpop.f32.mrf.mxu1 }
 0x7cf   : > { %8314 = vst [vmem:[#allocation2] sm:$0xff] %v8311_v22 }
 0x7d0   : > { %v8300_v15 = vpop.f32.mrf.mxu1 }
 0x7d1   : > { %v8312_v45 = vadd.f32 %v8300_v15, %v8187_v13  ;;  %v11806_v13 = vld [vmem:[%s15682_s9 + $0xb8] sm:$0xff]  }
 0x7d3   : > { %8315 = vst [vmem:[#allocation2 + $0x8] sm:$0xff] %v8312_v45  ;;  %v11807_v45 = vld [vmem:[%s15682_s9 + $0xf0] sm:$0xff]  }
 0x7d4   : > { %v8690_v51 = vld [vmem:[#allocation2 + $0x14] sm:$0x1]  ;;  %v8691_v1 = vld [vmem:[#allocation2 + $0x15] sm:$0x1]  ;;  %v8566_v48 = vld [vmem:[#allocation2 + $0x12] sm:$0x1] }
 0x7d5   : > { %v8692_v46 = vmax.f32 %v8690_v51, %v8691_v1  ;;  %v8567_v9 = vld [vmem:[#allocation2 + $0x13] sm:$0x1]  ;;  %v11820_v51 = vld [vmem:[%s15682_s9 + $0x80] sm:$0xff]  }
 0x7d6   : > { %v8318_v52 = vld [vmem:[#allocation2] sm:$0x1]  ;;  %v8319_v11 = vld [vmem:[#allocation2 + $0x1] sm:$0x1]  ;;  %v8321_v4 = vld [vmem:[#allocation2 + $0x6] sm:$0x1]  ;;  %v8568_v62 = vmax.f32 %v8566_v48, %v8567_v9 }
 0x7d7   : > { %v8320_v35 = vmax.f32 %v8318_v52, %v8319_v11  ;;  %v8322_v60 = vld [vmem:[#allocation2 + $0x7] sm:$0x1]  ;;  %v8352_v61 = vld [vmem:[#allocation2 + $0x2] sm:$0x1]  ;;  %v8353_v49 = vld [vmem:[#allocation2 + $0x3] sm:$0x1] }
 0x7d8   : > { %v8323_v56 = vmax.f32 %v8321_v4, %v8322_v60  ;;  %v8354_v36 = vmax.f32 %v8352_v61, %v8353_v49  ;;  %v11808_v4 = vld [vmem:[%s15682_s9 + $0xb0] sm:$0xff]   ;;  %v11811_v61 = vld [vmem:[%s15682_s9 + $0xe0] sm:$0xff]  }
 0x7d9   : > { %v11812_v49 = vld [vmem:[%s15682_s9 + $0xa0] sm:$0xff]  }
 0x7da   : > { %v8324_v16 = vmax.f32 %v8320_v35, %v8323_v56  ;;  %v8355_v0 = vld [vmem:[#allocation2 + $0x8] sm:$0x1]  ;;  %v8356_v5 = vld [vmem:[#allocation2 + $0x9] sm:$0x1]  ;;  %v8687_v23 = vld [vmem:[#allocation2 + $0xe] sm:$0x1] }
 0x7db   : > { %v8357_v57 = vmax.f32 %v8355_v0, %v8356_v5  ;;  %v8688_v26 = vld [vmem:[#allocation2 + $0xf] sm:$0x1]  ;;  %v8563_v63 = vld [vmem:[#allocation2 + $0xc] sm:$0x1]  ;;  %v8564_v39 = vld [vmem:[#allocation2 + $0xd] sm:$0x1] }
 0x7dc   : > { %v8325_v20 = vadd.f32 %v8324_v16, %v8317_v2  ;;  %v8689_v12 = vmax.f32 %v8687_v23, %v8688_v26  ;;  %v8565_v55 = vmax.f32 %v8563_v63, %v8564_v39  ;;  %v11809_v35 = vld [vmem:[%s15682_s9 + $0xe8] sm:$0xff]   ;;  %v11814_v16 = vld [vmem:[%s15682_s9 + $0x98] sm:$0xff]   ;;  %v11815_v0 = vld [vmem:[%s15682_s9 + $0xd0] sm:$0xff]  }
 0x7dd   : > { %v8358_v54 = vmax.f32 %v8354_v36, %v8357_v57  ;;  %v11810_v56 = vld [vmem:[%s15682_s9 + $0xa8] sm:$0xff]   ;;  %v11816_v36 = vld [vmem:[%s15682_s9 + $0x90] sm:$0xff]   ;;  %v11819_v23 = vld [vmem:[%s15682_s9 + $0xc0] sm:$0xff]  }
 0x7de   : > { %v8327_v14 = vmul.f32 0.044715, %v8325_v20  ;;  %v8693_v40 = vmax.f32 %v8689_v12, %v8692_v46  ;;  %v8569_v34 = vmax.f32 %v8565_v55, %v8568_v62  ;;  %v8326_v43 = vmul.f32 0.5, %v8325_v20  ;;  %v11817_v57 = vld [vmem:[%s15682_s9 + $0xc8] sm:$0xff]   ;;  %v11827_v9 = vld [vmem:[#allocation6 + $0x8] sm:$0xff]  }
 0x7df   : > { %v8359_v24 = vadd.f32 %v8358_v54, %v8317_v2  ;;  %v11821_v63 = vld [vmem:[#allocation6 + $0x38] sm:$0xff]   ;;  %v11822_v39 = vld [vmem:[#allocation6 + $0x30] sm:$0xff]  }
 0x7e0   : > { %v8328_v44 = vmul.f32 %v8327_v14, %v8325_v20  ;;  %v15557_v19 = vadd.f32 %v8693_v40, %v8317_v2  ;;  %v15559_v58 = vadd.f32 %v8569_v34, %v8317_v2  ;;  %v11813_v2 = vld [vmem:[%s15682_s9 + $0xd8] sm:$0xff]   ;;  %v11818_v14 = vld [vmem:[%s15682_s9 + $0x88] sm:$0xff]  }
 0x7e1   : > { %v8361_v29 = vmul.f32 0.044715, %v8359_v24  ;;  %v8360_v28 = vmul.f32 0.5, %v8359_v24  ;;  %v11825_v46 = vld [vmem:[#allocation6 + $0x18] sm:$0xff]   ;;  %v11826_v48 = vld [vmem:[#allocation6 + $0x10] sm:$0xff]  }
 0x7e2   : > { %v8329_v53 = vmul.f32 %v8328_v44, %v8325_v20  ;;  %v8696_v3 = vmul.f32 0.044715, %v15557_v19  ;;  %v8572_v31 = vmul.f32 0.044715, %v15559_v58 }
 0x7e3   : > { %v8362_v50 = vmul.f32 %v8361_v29, %v8359_v24  ;;  %v8571_v29 = vmul.f32 0.5, %v15559_v58 }
 0x7e4   : > { %v8330_v7 = vadd.f32 %v8329_v53, %v8325_v20  ;;  %v8697_v21 = vmul.f32 %v8696_v3, %v15557_v19  ;;  %v8573_v33 = vmul.f32 %v8572_v31, %v15559_v58 }
 0x7e5   : > { %v8363_v10 = vmul.f32 %v8362_v50, %v8359_v24  ;;  %v11823_v50 = vld [vmem:[#allocation6 + $0x28] sm:$0xff]  }
 0x7e6   : > { %v8331_v8 = vmul.f32 0.7978846, %v8330_v7  ;;  %v8698_v32 = vmul.f32 %v8697_v21, %v15557_v19  ;;  %v8574_v59 = vmul.f32 %v8573_v33, %v15559_v58  ;;  %v11824_v7 = vld [vmem:[#allocation6 + $0x20] sm:$0xff]  }
 0x7e7   : > { %v8364_v25 = vadd.f32 %v8363_v10, %v8359_v24  ;;  %v8695_v24 = vmul.f32 0.5, %v15557_v19  ;;  %v11828_v10 = vld [vmem:[#allocation6] sm:$0xff]  }
 0x7e8   : > { %11923 = vtanh.f32 %v8331_v8  ;;  %v8699_v30 = vadd.f32 %v8698_v32, %v15557_v19  ;;  %v8575_v52 = vadd.f32 %v8574_v59, %v15559_v58 }
 0x7e9   : > { %v8365_v27 = vmul.f32 0.7978846, %v8364_v25 }
 0x7ea   : > { %v8700_v11 = vmul.f32 0.7978846, %v8699_v30  ;;  %v8576_v60 = vmul.f32 0.7978846, %v8575_v52 }
 0x7eb   : > { %11925 = vtanh.f32 %v8365_v27 }
 0x7ec   : > { %11927 = vtanh.f32 %v8700_v11 }
 0x7ed   : > { %11929 = vtanh.f32 %v8576_v60  ;;  %v11831_v60 = vld [vmem:[#allocation8 + $0x28] sm:$0xff]  }
 0x7f5   : > { %v11924_v6 = vpop.eup %11923 }
 0x7f6   : > { %v8333_v17 = vadd.f32 1.0, %v11924_v6 }
 0x7f8   : > { %v11926_v18 = vpop.eup %11925  ;;  %v8334_v38 = vmul.f32 %v8333_v17, %v8326_v43  ;;  %v8811_v43 = vld [vmem:[%s15683_s10] sm:$0x1] }
 0x7f9   : > { %v8367_v41 = vadd.f32 1.0, %v11926_v18  ;;  %v11928_v5 = vpop.eup %11927 }
 0x7fa   : > { %v8335_v22 = vpack.c.bf16 %v8334_v38, %v8334_v38  ;;  %v11930_v20 = vpop.eup %11929  ;;  %v8702_v54 = vadd.f32 1.0, %v11928_v5 }
 0x7fb   : > { %v8368_v42 = vmul.f32 %v8367_v41, %v8360_v28  ;;  %v8578_v26 = vadd.f32 1.0, %v11930_v20 }
 0x7fc   : > { %11359 = vmatmul.mubr.bf16.vlgmr.msra.gmra.mxu1 %v8335_v22  ;;  %v8703_v44 = vmul.f32 %v8702_v54, %v8695_v24 }
 0x7fd   : > { %11383 = vmatpush3.bf16.msra.mxu1 %v11805_v47  ;;  %v8369_v15 = vpack.c.bf16 %v8368_v42, %v8368_v42  ;;  %11398 = vmatprep.mubr.msk.bf16.mxu1 %vm12055_vm8, %v12054_v37  ;;  %v8579_v1 = vmul.f32 %v8578_v26, %v8571_v29 }
 0x7fe   : > { %11384 = vmatprep.subr.bf16.mxu1 %v12054_v37  ;;  %v8704_v53 = vpack.c.bf16 %v8703_v44, %v8703_v44 }
 0x7ff   : > { %11339 = vmatmul.mubr.bf16.vlgmr.msra.gmra.mxu0 %v8369_v15  ;;  %v8580_v12 = vpack.c.bf16 %v8579_v1, %v8579_v1 }
 0x800   : > { %11363 = vmatpush3.bf16.msra.mxu0 %v11806_v13  ;;  %11378 = vmatprep.mubr.msk.bf16.mxu0 %vm12055_vm8, %v12054_v37 }
 0x801   : > { %11385 = vmatpush3.bf16.msra.mxu1 %v11807_v45  ;;  %11364 = vmatprep.subr.bf16.mxu0 %v12054_v37 }
 0x802   : > { %11386 = vmatprep.subr.bf16.mxu1 %v12054_v37 }
 0x804   : > { %11365 = vmatpush3.bf16.msra.mxu0 %v11808_v4  ;;  %v11829_v4 = vld [vmem:[#allocation8 + $0x38] sm:$0xff]  }
 0x805   : > { %11387 = vmatpush3.bf16.msra.mxu1 %v11809_v35  ;;  %11366 = vmatprep.subr.bf16.mxu0 %v12054_v37  ;;  %v11830_v35 = vld [vmem:[#allocation8 + $0x30] sm:$0xff]  }
 0x806   : > { %11388 = vmatprep.subr.bf16.mxu1 %v12054_v37 }
 0x808   : > { %11367 = vmatpush3.bf16.msra.mxu0 %v11810_v56  ;;  %v11832_v56 = vld [vmem:[#allocation8 + $0x20] sm:$0xff]  }
 0x809   : > { %11389 = vmatpush3.bf16.msra.mxu1 %v11811_v61  ;;  %11368 = vmatprep.subr.bf16.mxu0 %v12054_v37  ;;  %v11833_v61 = vld [vmem:[#allocation8 + $0x18] sm:$0xff]  }
 0x80a   : > { %11390 = vmatprep.subr.bf16.mxu1 %v12054_v37 }
 0x80c   : > { %11369 = vmatpush3.bf16.msra.mxu0 %v11812_v49  ;;  %v11834_v49 = vld [vmem:[#allocation8 + $0x10] sm:$0xff]  }
 0x80d   : > { %11391 = vmatpush3.bf16.msra.mxu1 %v11813_v2  ;;  %11370 = vmatprep.subr.bf16.mxu0 %v12054_v37  ;;  %v11835_v2 = vld [vmem:[#allocation8 + $0x8] sm:$0xff]  }
 0x80e   : > { %11392 = vmatprep.subr.bf16.mxu1 %v12054_v37 }
 0x810   : > { %11371 = vmatpush3.bf16.msra.mxu0 %v11814_v16  ;;  %v11836_v16 = vld [vmem:[#allocation8] sm:$0xff]  }
 0x811   : > { %11393 = vmatpush3.bf16.msra.mxu1 %v11815_v0  ;;  %11372 = vmatprep.subr.bf16.mxu0 %v12054_v37  ;;  %v8839_v0 = vld [vmem:[%s15685_s12] sm:$0x1] }
 0x812   : > { %11394 = vmatprep.subr.bf16.mxu1 %v12054_v37 }
 0x814   : > { %11373 = vmatpush3.bf16.msra.mxu0 %v11816_v36 }
 0x815   : > { %11395 = vmatpush3.bf16.msra.mxu1 %v11817_v57  ;;  %11374 = vmatprep.subr.bf16.mxu0 %v12054_v37 }
 0x816   : > { %11396 = vmatprep.subr.bf16.mxu1 %v12054_v37 }
 0x818   : > { %11375 = vmatpush3.bf16.msra.mxu0 %v11818_v14 }
 0x819   : > { %11397 = vmatpush3.bf16.msra.mxu1 %v11819_v23  ;;  %11376 = vmatprep.subr.bf16.mxu0 %v12054_v37 }
 0x81a   : > { %11422 = vmatprep.subr.bf16.mxu1 %v12054_v37 }
 0x81c   : > { %11399 = vmatmul.mubr.bf16.vlgmr.msra.gmra.mxu1 %v8704_v53  ;;  %11377 = vmatpush3.bf16.msra.mxu0 %v11820_v51 }
 0x81d   : > { %11402 = vmatprep.subr.bf16.mxu0 %v12054_v37  ;;  %11438 = vmatprep.mubr.msk.bf16.mxu1 %vm12055_vm8, %v12054_v37 }
 0x81e   : > { %11423 = vmatpush3.bf16.msra.mxu1 %v11829_v4 }
 0x81f   : > { %11379 = vmatmul.mubr.bf16.vlgmr.msra.gmra.mxu0 %v8580_v12  ;;  %11424 = vmatprep.subr.bf16.mxu1 %v12054_v37  ;;  %v8954_v12 = vld [vmem:[%s15687_s14] sm:$0x1] }
 0x820   : > { %11418 = vmatprep.mubr.msk.bf16.mxu0 %vm12055_vm8, %v12054_v37  ;;  %11403 = vmatpush3.bf16.msra.mxu0 %v11821_v63 }
 0x821   : > { %11404 = vmatprep.subr.bf16.mxu0 %v12054_v37 }
 0x822   : > { %11425 = vmatpush3.bf16.msra.mxu1 %v11830_v35 }
 0x823   : > { %11426 = vmatprep.subr.bf16.mxu1 %v12054_v37 }
 0x824   : > { %11405 = vmatpush3.bf16.msra.mxu0 %v11822_v39 }
 0x825   : > { %11406 = vmatprep.subr.bf16.mxu0 %v12054_v37 }
 0x826   : > { %11427 = vmatpush3.bf16.msra.mxu1 %v11831_v60 }
 0x827   : > { %11428 = vmatprep.subr.bf16.mxu1 %v12054_v37 }
 0x828   : > { %11407 = vmatpush3.bf16.msra.mxu0 %v11823_v50 }
 0x829   : > { %11408 = vmatprep.subr.bf16.mxu0 %v12054_v37 }
 0x82a   : > { %11429 = vmatpush3.bf16.msra.mxu1 %v11832_v56 }
 0x82b   : > { %11430 = vmatprep.subr.bf16.mxu1 %v12054_v37 }
 0x82c   : > { %11409 = vmatpush3.bf16.msra.mxu0 %v11824_v7 }
 0x82d   : > { %11410 = vmatprep.subr.bf16.mxu0 %v12054_v37 }
 0x82e   : > { %11431 = vmatpush3.bf16.msra.mxu1 %v11833_v61 }
 0x82f   : > { %11432 = vmatprep.subr.bf16.mxu1 %v12054_v37 }
 0x830   : > { %11411 = vmatpush3.bf16.msra.mxu0 %v11825_v46 }
 0x831   : > { %11412 = vmatprep.subr.bf16.mxu0 %v12054_v37 }
 0x832   : > { %11433 = vmatpush3.bf16.msra.mxu1 %v11834_v49 }
 0x833   : > { %11434 = vmatprep.subr.bf16.mxu1 %v12054_v37 }
 0x834   : > { %11413 = vmatpush3.bf16.msra.mxu0 %v11826_v48 }
 0x835   : > { %11414 = vmatprep.subr.bf16.mxu0 %v12054_v37 }
 0x836   : > { %11435 = vmatpush3.bf16.msra.mxu1 %v11835_v2 }
 0x837   : > { %11436 = vmatprep.subr.bf16.mxu1 %v12054_v37 }
 0x838   : > { %11415 = vmatpush3.bf16.msra.mxu0 %v11827_v9 }
 0x839   : > { %11416 = vmatprep.subr.bf16.mxu0 %v12054_v37 }
 0x83a   : > { %11437 = vmatpush3.bf16.msra.mxu1 %v11836_v16 }
 0x83c   : > { %11417 = vmatpush3.bf16.msra.mxu0 %v11828_v10 }
 0x8bc   : > { %v8557_v55 = vpop.f32.mrf.mxu1 }
 0x8be   : > { %v11360_v8 = vpop.f32.mrf.mxu1 }
 0x8bf   : > { %v8469_v40 = vpop.f32.mrf.mxu0 }
 0x8c0   : > { %v8560_v25 = vpop.f32.mrf.mxu1  ;;  %v8558_v3 = vadd.f32 %v8557_v55, %v8469_v40 }
 0x8c1   : > { %v11340_v62 = vpop.f32.mrf.mxu0 }
 0x8c2   : > { %v11361_v27 = vpop.f32.mrf.mxu1 }
 0x8c3   : > { %v8472_v34 = vpop.f32.mrf.mxu0 }
 0x8c5   : > { %v11341_v19 = vpop.f32.mrf.mxu0 }
 0x8dc   : > { %v8804_v58 = vpop.f32.mrf.mxu1 }
 0x8de   : > { %v11400_v31 = vpop.f32.mrf.mxu1 }
 0x8df   : > { %v8680_v21 = vpop.f32.mrf.mxu0 }
 0x8e0   : > { %v8686_v6 = vadd.f32 %v8680_v21, %v8558_v3  ;;  %v8807_v33 = vpop.f32.mrf.mxu1 }
 0x8e1   : > { %v11380_v17 = vpop.f32.mrf.mxu0 }
 0x8e2   : > { %v8810_v32 = vadd.f32 %v8804_v58, %v8686_v6  ;;  %v11401_v18 = vpop.f32.mrf.mxu1 }
 0x8e3   : > { %v8683_v38 = vpop.f32.mrf.mxu0 }
 0x8e4   : > { %v8812_v47 = vadd.f32 %v8811_v43, %v8810_v32 }
 0x8e5   : > { %v11381_v28 = vpop.f32.mrf.mxu0 }
 0x8e6   : > { %v8814_v41 = vmul.f32 0.044715, %v8812_v47  ;;  %v8813_v15 = vmul.f32 0.5, %v8812_v47 }
 0x8e8   : > { %v8815_v59 = vmul.f32 %v8814_v41, %v8812_v47 }
 0x8ea   : > { %v8816_v22 = vmul.f32 %v8815_v59, %v8812_v47 }
 0x8ec   : > { %v8817_v30 = vadd.f32 %v8816_v22, %v8812_v47 }
 0x8ee   : > { %v8818_v42 = vmul.f32 0.7978846, %v8817_v30 }
 0x8f0   : > { %11931 = vtanh.f32 %v8818_v42 }
 0x8fd   : > { %v11932_v13 = vpop.eup %11931 }
 0x8fe   : > { %v8820_v45 = vadd.f32 1.0, %v11932_v13 }
 0x900   : > { %v8821_v52 = vmul.f32 %v8820_v45, %v8813_v15 }
 0x902   : > { %v8822_v11 = vpack.c.bf16 %v8821_v52, %v8821_v52 }
 0x904   : > { %11419 = vmatmul.mubr.bf16.vlgmr.msra.gmra.mxu0 %v8822_v11 }
 0x9c4   : > { %v8922_v5 = vpop.f32.mrf.mxu0 }
 0x9c5   : > { %v8923_v36 = vadd.f32 %v8922_v5, %v8839_v0 }
 0x9c6   : > { %v11420_v57 = vpop.f32.mrf.mxu0 }
 0x9c7   : > { %v8929_v20 = vmul.f32 0.044715, %v8923_v36  ;;  %v8928_v51 = vmul.f32 0.5, %v8923_v36 }
 0x9c8   : > { %v8925_v54 = vpop.f32.mrf.mxu0 }
 0x9c9   : > { %v8930_v14 = vmul.f32 %v8929_v20, %v8923_v36 }
 0x9ca   : > { %v11421_v24 = vpop.f32.mrf.mxu0 }
 0x9cb   : > { %v8931_v23 = vmul.f32 %v8930_v14, %v8923_v36 }
 0x9cd   : > { %v8932_v26 = vadd.f32 %v8931_v23, %v8923_v36 }
 0x9cf   : > { %v8933_v44 = vmul.f32 0.7978846, %v8932_v26 }
 0x9d1   : > { %11933 = vtanh.f32 %v8933_v44 }
 0x9de   : > { %v11934_v29 = vpop.eup %11933 }
 0x9df   : > { %v8935_v37 = vadd.f32 1.0, %v11934_v29 }
 0x9e1   : > { %v8936_v1 = vmul.f32 %v8935_v37, %v8928_v51 }
 0x9e3   : > { %v8937_v53 = vpack.c.bf16 %v8936_v1, %v8936_v1 }
 0x9e5   : > { %11439 = vmatmul.mubr.bf16.vlgmr.msra.gmra.mxu1 %v8937_v53 }
 0xaa5   : > { %v9037_v63 = vpop.f32.mrf.mxu1 }
 0xaa6   : > { %v9038_v39 = vadd.f32 %v9037_v63, %v8954_v12 }
 0xaa7   : > { %v11440_v50 = vpop.f32.mrf.mxu1 }
 0xaa8   : > { %v9851_v7 = vmul.f32 -1.442695, %v9038_v39 }
 0xaa9   : > { %v9040_v46 = vpop.f32.mrf.mxu1 }
 0xaaa   : > { %11935 = vpow2.f32 %v9851_v7 }
 0xaab   : > { %v11441_v48 = vpop.f32.mrf.mxu1 }
 0xab7   : > { %v11936_v9 = vpop.eup %11935 }
 0xab8   : > { %v9046_v10 = vadd.f32 1.0, %v11936_v9 }
 0xaba   : > { %11937 = vrcp.f32 %v9046_v10 }
 0xac7   : > { %v11938_v55 = vpop.eup %11937 }
 0xac8   : > { %9049 = vst [vmem:[%s534_s21] sm:$0x1] %v11938_v55 }
 0xac9 PF: > { %s27_s18 = sadd.s32 1, %s12047_s18  }
 0xaca   : > { %p24_p2 = scmp.ge.s32.totalorder %s27_s18, 4  }
 0xacc   :  { %26 = sbr.rel (!%p24_p2) target bundleno = 2 (0x2), region = 150 }
 0xad1   :  { %9067 = vsyncpa [#allocation5], 1 }
 0xad2   :  { %9069 = vsyncpa [#allocation5 + $0x1], 1 }
 0xad3   :  { %9070 = vsyncpa [#allocation7], 1 }

</bundles_post_ra>
